<compile_context>
chip_gen: v6e
topology: v6e:2x2x1
jax: 0.10.0
libtpu: 0.0.40
codegen_flags: <defaults>
</compile_context>

<pallas_src>
import functools
import random

import jax
import jax.numpy as jnp
from jax.experimental import pallas as pl
from jax.experimental.pallas import tpu as pltpu


IMG_C = 3          # image channels
HID = 16           # hidden conv channels
MSG_L = 8          # message length
VQ_DIM = 8         # VQ embedding dim
VQ_CODES = 16      # codebook size
LANE = 128         # lane-dense output width


# ----------------------------------------------------------------------------
# Fused forward kernel: one grid step = one batch element.
# ----------------------------------------------------------------------------
def _fused_vqmodel_kernel(
    # inputs
    xpad_ref, msg_ref,
    enc1_w_ref, enc1_b_ref,
    enc2_wf_ref, enc2_wm_ref, enc2_wi_ref, enc2_b_ref,
    vqe_w_ref, vqe_b_ref, cb_ref, cbt_ref, vqd_w_ref, vqd_b_ref,
    dec_w_ref, dec_b_ref, fc_w_ref, fc_b_ref,
    # outputs
    enc_out_ref, noi_out_ref, msg_out_ref,
    # scratch (zero-padded spatial buffers, VMEM resident)
    featpad_ref, msgpad_ref, noipad_ref,
    *, H, W, use_vq):
    HW = H * W

    def conv3x3(pad_val, w_val, cin, cout):
        """3x3 SAME conv as 9 accumulated (HW,cin)@(cin,cout) MXU matmuls."""
        acc = jnp.zeros((HW, cout), jnp.float32)
        for k in range(9):
            dh, dw = divmod(k, 3)
            patch = pad_val[dh:dh + H, dw:dw + W, :].reshape(HW, cin)
            wk = w_val[k * cin:(k + 1) * cin, :]
            acc = acc + jnp.dot(patch.astype(jnp.bfloat16),
                                wk.astype(jnp.bfloat16),
                                preferred_element_type=jnp.float32)
        return acc

    def lane_pad(v):
        return jnp.concatenate(
            [v, jnp.zeros((v.shape[0], LANE - v.shape[1]), jnp.float32)], axis=1)

    xpad = xpad_ref[0]                                      # (H+2, W+2, IMG_C)

    # ---- encoder conv1: 3x3, IMG_C -> HID, ReLU --------------------------------
    feat = conv3x3(xpad, enc1_w_ref[...], IMG_C, HID) + enc1_b_ref[...]
    feat = jnp.maximum(feat, 0.0)                           # (HW, HID)

    # ---- zero-padded spatial scratches feeding encoder conv2 -------------------
    featpad_ref[...] = jnp.zeros(featpad_ref.shape, jnp.float32)
    featpad_ref[1:H + 1, 1:W + 1, :] = feat.reshape(H, W, HID)

    msg_row = msg_ref[0]                                    # (1, MSG_L)
    msgpad_ref[...] = jnp.zeros(msgpad_ref.shape, jnp.float32)
    msgpad_ref[1:H + 1, 1:W + 1, :] = jnp.broadcast_to(
        msg_row.reshape(1, 1, MSG_L), (H, W, MSG_L))

    # ---- encoder conv2: 3x3 over concat([feat, msg_map, image]) -> IMG_C -------
    # decomposed over the three input-channel groups (avoids in-kernel lane concat)
    encoded = (conv3x3(featpad_ref[...], enc2_wf_ref[...], HID, IMG_C)
               + conv3x3(msgpad_ref[...], enc2_wm_ref[...], MSG_L, IMG_C)
               + conv3x3(xpad, enc2_wi_ref[...], IMG_C, IMG_C)
               + enc2_b_ref[...])                           # (HW, IMG_C)
    enc_out_ref[0] = lane_pad(encoded)

    # ---- VQ-VAE augmentation (only traced when the host coin flip selects it) --
    if use_vq:
        z = jnp.dot(encoded, vqe_w_ref[...],
                    preferred_element_type=jnp.float32) + vqe_b_ref[...]   # (HW, D)
        cb = cb_ref[...]                                    # (VQ_CODES, VQ_DIM)
        cbt = cbt_ref[...]                                  # (VQ_DIM, VQ_CODES)
        z_sq = jnp.sum(z * z, axis=1, keepdims=True)                       # (HW, 1)
        cb_sq = jnp.sum(cbt * cbt, axis=0, keepdims=True)                  # (1, Kc)
        cross = jnp.dot(z, cbt, preferred_element_type=jnp.float32)        # (HW, Kc)
        d = z_sq - 2.0 * cross + cb_sq
        d_min = jnp.min(d, axis=1, keepdims=True)
        iota = jax.lax.broadcasted_iota(jnp.int32, d.shape, 1)
        idx = jnp.min(jnp.where(d == d_min, iota, VQ_CODES),
                      axis=1, keepdims=True)                               # (HW, 1)
        onehot = (iota == idx).astype(jnp.float32)                         # (HW, Kc)
        z_q = jnp.dot(onehot, cb, preferred_element_type=jnp.float32)      # (HW, D)
        # NOTE: emb_loss and code indices returned by vqvae_aug.encode are never
        # used by VQmodel.forward, so they are not computed here.
        noised = jnp.dot(z_q, vqd_w_ref[...],
                         preferred_element_type=jnp.float32) + vqd_b_ref[...]
    else:
        noised = encoded
    noi_out_ref[0] = lane_pad(noised)

    # ---- decoder: 3x3 conv + ReLU -> global mean pool -> FC (fused) ------------
    noipad_ref[...] = jnp.zeros(noipad_ref.shape, jnp.float32)
    noipad_ref[1:H + 1, 1:W + 1, :] = noised.reshape(H, W, IMG_C)
    dfeat = conv3x3(noipad_ref[...], dec_w_ref[...], IMG_C, HID) + dec_b_ref[...]
    dfeat = jnp.maximum(dfeat, 0.0)                         # (HW, HID)
    pooled = jnp.mean(dfeat, axis=0, keepdims=True)         # (1, HID)
    dec = jnp.dot(pooled, fc_w_ref[...],
                  preferred_element_type=jnp.float32) + fc_b_ref[...]      # (1, L)
    dec_row = jnp.concatenate(
        [dec, jnp.zeros((1, LANE - MSG_L), jnp.float32)], axis=1)          # (1, 128)
    msg_out_ref[0] = jnp.broadcast_to(dec_row, (8, LANE))


def _fused_vqmodel_call(params, xpad, msg3, use_vq):
    B, Hp, Wp, _ = xpad.shape
    H, W = Hp - 2, Wp - 2
    HW = H * W

    def full(shape):
        return pl.BlockSpec(shape, lambda b: (0,) * len(shape))

    in_specs = [
        pl.BlockSpec((1, Hp, Wp, IMG_C), lambda b: (b, 0, 0, 0)),   # padded image
        pl.BlockSpec((1, 1, MSG_L), lambda b: (b, 0, 0)),           # message row
        full((9 * IMG_C, HID)), full((1, HID)),                     # enc conv1
        full((9 * HID, IMG_C)), full((9 * MSG_L, IMG_C)),           # enc conv2 groups
        full((9 * IMG_C, IMG_C)), full((1, IMG_C)),
        full((IMG_C, VQ_DIM)), full((1, VQ_DIM)),                   # vq enc 1x1
        full((VQ_CODES, VQ_DIM)), full((VQ_DIM, VQ_CODES)),         # codebook (+T)
        full((VQ_DIM, IMG_C)), full((1, IMG_C)),                    # vq dec 1x1
        full((9 * IMG_C, HID)), full((1, HID)),                     # dec conv
        full((HID, MSG_L)), full((1, MSG_L)),                       # dec fc
    ]
    out_specs = [
        pl.BlockSpec((1, HW, LANE), lambda b: (b, 0, 0)),           # encoded (padded)
        pl.BlockSpec((1, HW, LANE), lambda b: (b, 0, 0)),           # noised  (padded)
        pl.BlockSpec((1, 8, LANE), lambda b: (b, 0, 0)),            # decoded msgs
    ]
    out_shape = (
        jax.ShapeDtypeStruct((B, HW, LANE), jnp.float32),
        jax.ShapeDtypeStruct((B, HW, LANE), jnp.float32),
        jax.ShapeDtypeStruct((B, 8, LANE), jnp.float32),
    )
    scratch_shapes = [
        pltpu.VMEM((Hp, Wp, HID), jnp.float32),     # padded conv1 features
        pltpu.VMEM((Hp, Wp, MSG_L), jnp.float32),   # padded message map
        pltpu.VMEM((Hp, Wp, IMG_C), jnp.float32),   # padded noised image
    ]
    return pl.pallas_call(
        functools.partial(_fused_vqmodel_kernel, H=H, W=W, use_vq=use_vq),
        out_shape=out_shape,
        grid_spec=pltpu.PrefetchScalarGridSpec(
            num_scalar_prefetch=0,
            grid=(B,),
            in_specs=in_specs,
            out_specs=out_specs,
            scratch_shapes=scratch_shapes),
        compiler_params=pltpu.CompilerParams(
            dimension_semantics=("parallel",)),
    )(xpad, msg3,
      params["enc1_w"], params["enc1_b"],
      params["enc2_w_feat"], params["enc2_w_msg"], params["enc2_w_img"],
      params["enc2_b"],
      params["vq_enc_w"], params["vq_enc_b"],
      params["vq_codebook"], params["vq_codebook_t"],
      params["vq_dec_w"], params["vq_dec_b"],
      params["dec_conv_w"], params["dec_conv_b"],
      params["dec_fc_w"], params["dec_fc_b"])


# ----------------------------------------------------------------------------
# Parameters (deterministic synthetic init).
# ----------------------------------------------------------------------------
def init_params(key):
    ks = jax.random.split(key, 10)
    s = 0.1
    nrm = lambda k, shp: s * jax.random.normal(k, shp, jnp.float32)
    cb = nrm(ks[6], (VQ_CODES, VQ_DIM))
    return {
        # encoder
        "enc1_w": nrm(ks[0], (9 * IMG_C, HID)),
        "enc1_b": jnp.zeros((1, HID), jnp.float32),
        "enc2_w_feat": nrm(ks[1], (9 * HID, IMG_C)),
        "enc2_w_msg": nrm(ks[2], (9 * MSG_L, IMG_C)),
        "enc2_w_img": nrm(ks[3], (9 * IMG_C, IMG_C)),
        "enc2_b": jnp.zeros((1, IMG_C), jnp.float32),
        # vqvae_aug
        "vq_enc_w": nrm(ks[4], (IMG_C, VQ_DIM)),
        "vq_enc_b": jnp.zeros((1, VQ_DIM), jnp.float32),
        "vq_codebook": cb,
        "vq_codebook_t": jnp.transpose(cb),
        "vq_dec_w": nrm(ks[5], (VQ_DIM, IMG_C)),
        "vq_dec_b": jnp.zeros((1, IMG_C), jnp.float32),
        # decoder
        "dec_conv_w": nrm(ks[7], (9 * IMG_C, HID)),
        "dec_conv_b": jnp.zeros((1, HID), jnp.float32),
        "dec_fc_w": nrm(ks[8], (HID, MSG_L)),
        "dec_fc_b": jnp.zeros((1, MSG_L), jnp.float32),
    }


# ----------------------------------------------------------------------------
# VQmodel forward (matches the training_mode branching of the PyTorch module).
# ----------------------------------------------------------------------------
@functools.partial(jax.jit, static_argnames=("use_vq",))
def _vqmodel_forward_impl(params, images_nchw, messages, *, use_vq):
    B, _, H, W = images_nchw.shape
    x_nhwc = jnp.transpose(images_nchw, (0, 2, 3, 1)).astype(jnp.float32)
    xpad = jnp.pad(x_nhwc, ((0, 0), (1, 1), (1, 1), (0, 0)))
    msg3 = messages.astype(jnp.float32).reshape(B, 1, MSG_L)

    enc_p, noi_p, dec_p = _fused_vqmodel_call(params, xpad, msg3, use_vq)

    encoded = enc_p[:, :, :IMG_C].reshape(B, H, W, IMG_C)
    noised = noi_p[:, :, :IMG_C].reshape(B, H, W, IMG_C)
    decoded = dec_p[:, 0, :MSG_L]
    return (jnp.transpose(encoded, (0, 3, 1, 2)),
            jnp.transpose(noised, (0, 3, 1, 2)),
            decoded)


def vqmodel_forward(params, images_nchw, messages, training_mode=True):
    # Same Python-level coin flip as the reference module. Because it is host-side
    # control flow, the unused branch is never traced, compiled or executed.
    # TODO(synk): if this is ever wrapped in an outer jax.jit, the branch choice gets
    # baked into the trace (same caveat as the original review noted).
    use_vq = bool(random.choice([True, False])) if training_mode else False
    return _vqmodel_forward_impl(params, images_nchw, messages, use_vq=use_vq)


# ----------------------------------------------------------------------------
if __name__ == "__main__":
    random.seed(0)  # deterministic branch choice
    key = jax.random.PRNGKey(0)
    k_img, k_msg, k_par = jax.random.split(key, 3)

    B, H, W = 2, 16, 16
    images = jax.random.normal(k_img, (B, IMG_C, H, W), jnp.float32)          # NCHW
    messages = jax.random.bernoulli(k_msg, 0.5, (B, MSG_L)).astype(jnp.float32)

    params = init_params(k_par)

    encoded_images, noised_images, decoded_messages = vqmodel_forward(
        params, images, messages, training_mode=True)

    jax.block_until_ready((encoded_images, noised_images, decoded_messages))

    assert encoded_images.shape == (B, IMG_C, H, W)
    assert noised_images.shape == (B, IMG_C, H, W)
    assert decoded_messages.shape == (B, MSG_L)
    print("KERNEL_OK")
</pallas_src>

<mosaic_0001>
module attributes {stable_mosaic.version = 11 : i64} {
  func.func @_fused_vqmodel_kernel(%arg0: i32, %arg1: memref<1x18x18x3xf32, #tpu.memory_space<vmem>>, %arg2: memref<1x1x8xf32, #tpu.memory_space<vmem>>, %arg3: memref<27x16xf32, #tpu.memory_space<vmem>>, %arg4: memref<1x16xf32, #tpu.memory_space<vmem>>, %arg5: memref<144x3xf32, #tpu.memory_space<vmem>>, %arg6: memref<72x3xf32, #tpu.memory_space<vmem>>, %arg7: memref<27x3xf32, #tpu.memory_space<vmem>>, %arg8: memref<1x3xf32, #tpu.memory_space<vmem>>, %arg9: memref<3x8xf32, #tpu.memory_space<vmem>>, %arg10: memref<1x8xf32, #tpu.memory_space<vmem>>, %arg11: memref<16x8xf32, #tpu.memory_space<vmem>>, %arg12: memref<8x16xf32, #tpu.memory_space<vmem>>, %arg13: memref<8x3xf32, #tpu.memory_space<vmem>>, %arg14: memref<1x3xf32, #tpu.memory_space<vmem>>, %arg15: memref<27x16xf32, #tpu.memory_space<vmem>>, %arg16: memref<1x16xf32, #tpu.memory_space<vmem>>, %arg17: memref<16x8xf32, #tpu.memory_space<vmem>>, %arg18: memref<1x8xf32, #tpu.memory_space<vmem>>, %arg19: memref<1x256x128xf32, #tpu.memory_space<vmem>>, %arg20: memref<1x256x128xf32, #tpu.memory_space<vmem>>, %arg21: memref<1x8x128xf32, #tpu.memory_space<vmem>>, %arg22: memref<18x18x16xf32, #tpu.memory_space<vmem>>, %arg23: memref<18x18x8xf32, #tpu.memory_space<vmem>>, %arg24: memref<18x18x3xf32, #tpu.memory_space<vmem>>) attributes {dimension_semantics = [#tpu.dimension_semantics<parallel>], iteration_bounds = array<i64: 2>, scalar_prefetch = 0 : i64, scratch_operands = 3 : i64, tpu.core_type = #tpu.core_type<tc>, window_params = [{transform_indices = @transform_0, window_bounds = array<i64: 1, 18, 18, 3>}, {transform_indices = @transform_1, window_bounds = array<i64: 1, 1, 8>}, {pipeline_mode = #tpu.pipeline_mode<synchronous>, transform_indices = @transform_2, window_bounds = array<i64: 27, 16>}, {pipeline_mode = #tpu.pipeline_mode<synchronous>, transform_indices = @transform_3, window_bounds = array<i64: 1, 16>}, {pipeline_mode = #tpu.pipeline_mode<synchronous>, transform_indices = @transform_4, window_bounds = array<i64: 144, 3>}, {pipeline_mode = #tpu.pipeline_mode<synchronous>, transform_indices = @transform_5, window_bounds = array<i64: 72, 3>}, {pipeline_mode = #tpu.pipeline_mode<synchronous>, transform_indices = @transform_6, window_bounds = array<i64: 27, 3>}, {pipeline_mode = #tpu.pipeline_mode<synchronous>, transform_indices = @transform_7, window_bounds = array<i64: 1, 3>}, {pipeline_mode = #tpu.pipeline_mode<synchronous>, transform_indices = @transform_8, window_bounds = array<i64: 3, 8>}, {pipeline_mode = #tpu.pipeline_mode<synchronous>, transform_indices = @transform_9, window_bounds = array<i64: 1, 8>}, {pipeline_mode = #tpu.pipeline_mode<synchronous>, transform_indices = @transform_10, window_bounds = array<i64: 16, 8>}, {pipeline_mode = #tpu.pipeline_mode<synchronous>, transform_indices = @transform_11, window_bounds = array<i64: 8, 16>}, {pipeline_mode = #tpu.pipeline_mode<synchronous>, transform_indices = @transform_12, window_bounds = array<i64: 8, 3>}, {pipeline_mode = #tpu.pipeline_mode<synchronous>, transform_indices = @transform_13, window_bounds = array<i64: 1, 3>}, {pipeline_mode = #tpu.pipeline_mode<synchronous>, transform_indices = @transform_14, window_bounds = array<i64: 27, 16>}, {pipeline_mode = #tpu.pipeline_mode<synchronous>, transform_indices = @transform_15, window_bounds = array<i64: 1, 16>}, {pipeline_mode = #tpu.pipeline_mode<synchronous>, transform_indices = @transform_16, window_bounds = array<i64: 16, 8>}, {pipeline_mode = #tpu.pipeline_mode<synchronous>, transform_indices = @transform_17, window_bounds = array<i64: 1, 8>}, {transform_indices = @transform_18, window_bounds = array<i64: 1, 256, 128>}, {transform_indices = @transform_19, window_bounds = array<i64: 1, 256, 128>}, {transform_indices = @transform_20, window_bounds = array<i64: 1, 8, 128>}]} {
    %c0 = arith.constant 0 : index
    %c0_0 = arith.constant 0 : index
    %c0_1 = arith.constant 0 : index
    %c0_2 = arith.constant 0 : index
    %0 = vector.load %arg1[%c0, %c0_0, %c0_1, %c0_2] : memref<1x18x18x3xf32, #tpu.memory_space<vmem>>, vector<1x18x18x3xf32>
    %1 = vector.shape_cast %0 : vector<1x18x18x3xf32> to vector<18x18x3xf32>
    %c0_3 = arith.constant 0 : index
    %c0_4 = arith.constant 0 : index
    %2 = vector.load %arg3[%c0_3, %c0_4] : memref<27x16xf32, #tpu.memory_space<vmem>>, vector<27x16xf32>
    %cst = arith.constant 0.000000e+00 : f32
    %3 = vector.broadcast %cst : f32 to vector<256x16xf32>
    %4 = vector.extract_strided_slice %1 {offsets = [0, 0, 0], sizes = [16, 16, 3], strides = [1, 1, 1]} : vector<18x18x3xf32> to vector<16x16x3xf32>
    %5 = vector.shape_cast %4 : vector<16x16x3xf32> to vector<256x3xf32>
    %6 = vector.extract_strided_slice %2 {offsets = [0, 0], sizes = [3, 16], strides = [1, 1]} : vector<27x16xf32> to vector<3x16xf32>
    %7 = arith.truncf %5 : vector<256x3xf32> to vector<256x3xbf16>
    %8 = arith.truncf %6 : vector<3x16xf32> to vector<3x16xbf16>
    %cst_5 = arith.constant dense<0.000000e+00> : vector<256x16xf32>
    %9 = tpu.matmul %7, %8, %cst_5 {dimension_numbers = #tpu.dot_dimension_numbers<[1], [0], [0], [1], [0, 0, 1, 1], [], []>} : vector<256x3xbf16>, vector<3x16xbf16>, vector<256x16xf32> -> vector<256x16xf32>
    %10 = arith.addf %3, %9 : vector<256x16xf32>
    %11 = vector.extract_strided_slice %1 {offsets = [0, 1, 0], sizes = [16, 16, 3], strides = [1, 1, 1]} : vector<18x18x3xf32> to vector<16x16x3xf32>
    %12 = vector.shape_cast %11 : vector<16x16x3xf32> to vector<256x3xf32>
    %13 = vector.extract_strided_slice %2 {offsets = [3, 0], sizes = [3, 16], strides = [1, 1]} : vector<27x16xf32> to vector<3x16xf32>
    %14 = arith.truncf %12 : vector<256x3xf32> to vector<256x3xbf16>
    %15 = arith.truncf %13 : vector<3x16xf32> to vector<3x16xbf16>
    %cst_6 = arith.constant dense<0.000000e+00> : vector<256x16xf32>
    %16 = tpu.matmul %14, %15, %cst_6 {dimension_numbers = #tpu.dot_dimension_numbers<[1], [0], [0], [1], [0, 0, 1, 1], [], []>} : vector<256x3xbf16>, vector<3x16xbf16>, vector<256x16xf32> -> vector<256x16xf32>
    %17 = arith.addf %10, %16 : vector<256x16xf32>
    %18 = vector.extract_strided_slice %1 {offsets = [0, 2, 0], sizes = [16, 16, 3], strides = [1, 1, 1]} : vector<18x18x3xf32> to vector<16x16x3xf32>
    %19 = vector.shape_cast %18 : vector<16x16x3xf32> to vector<256x3xf32>
    %20 = vector.extract_strided_slice %2 {offsets = [6, 0], sizes = [3, 16], strides = [1, 1]} : vector<27x16xf32> to vector<3x16xf32>
    %21 = arith.truncf %19 : vector<256x3xf32> to vector<256x3xbf16>
    %22 = arith.truncf %20 : vector<3x16xf32> to vector<3x16xbf16>
    %cst_7 = arith.constant dense<0.000000e+00> : vector<256x16xf32>
    %23 = tpu.matmul %21, %22, %cst_7 {dimension_numbers = #tpu.dot_dimension_numbers<[1], [0], [0], [1], [0, 0, 1, 1], [], []>} : vector<256x3xbf16>, vector<3x16xbf16>, vector<256x16xf32> -> vector<256x16xf32>
    %24 = arith.addf %17, %23 : vector<256x16xf32>
    %25 = vector.extract_strided_slice %1 {offsets = [1, 0, 0], sizes = [16, 16, 3], strides = [1, 1, 1]} : vector<18x18x3xf32> to vector<16x16x3xf32>
    %26 = vector.shape_cast %25 : vector<16x16x3xf32> to vector<256x3xf32>
    %27 = vector.extract_strided_slice %2 {offsets = [9, 0], sizes = [3, 16], strides = [1, 1]} : vector<27x16xf32> to vector<3x16xf32>
    %28 = arith.truncf %26 : vector<256x3xf32> to vector<256x3xbf16>
    %29 = arith.truncf %27 : vector<3x16xf32> to vector<3x16xbf16>
    %cst_8 = arith.constant dense<0.000000e+00> : vector<256x16xf32>
    %30 = tpu.matmul %28, %29, %cst_8 {dimension_numbers = #tpu.dot_dimension_numbers<[1], [0], [0], [1], [0, 0, 1, 1], [], []>} : vector<256x3xbf16>, vector<3x16xbf16>, vector<256x16xf32> -> vector<256x16xf32>
    %31 = arith.addf %24, %30 : vector<256x16xf32>
    %32 = vector.extract_strided_slice %1 {offsets = [1, 1, 0], sizes = [16, 16, 3], strides = [1, 1, 1]} : vector<18x18x3xf32> to vector<16x16x3xf32>
    %33 = vector.shape_cast %32 : vector<16x16x3xf32> to vector<256x3xf32>
    %34 = vector.extract_strided_slice %2 {offsets = [12, 0], sizes = [3, 16], strides = [1, 1]} : vector<27x16xf32> to vector<3x16xf32>
    %35 = arith.truncf %33 : vector<256x3xf32> to vector<256x3xbf16>
    %36 = arith.truncf %34 : vector<3x16xf32> to vector<3x16xbf16>
    %cst_9 = arith.constant dense<0.000000e+00> : vector<256x16xf32>
    %37 = tpu.matmul %35, %36, %cst_9 {dimension_numbers = #tpu.dot_dimension_numbers<[1], [0], [0], [1], [0, 0, 1, 1], [], []>} : vector<256x3xbf16>, vector<3x16xbf16>, vector<256x16xf32> -> vector<256x16xf32>
    %38 = arith.addf %31, %37 : vector<256x16xf32>
    %39 = vector.extract_strided_slice %1 {offsets = [1, 2, 0], sizes = [16, 16, 3], strides = [1, 1, 1]} : vector<18x18x3xf32> to vector<16x16x3xf32>
    %40 = vector.shape_cast %39 : vector<16x16x3xf32> to vector<256x3xf32>
    %41 = vector.extract_strided_slice %2 {offsets = [15, 0], sizes = [3, 16], strides = [1, 1]} : vector<27x16xf32> to vector<3x16xf32>
    %42 = arith.truncf %40 : vector<256x3xf32> to vector<256x3xbf16>
    %43 = arith.truncf %41 : vector<3x16xf32> to vector<3x16xbf16>
    %cst_10 = arith.constant dense<0.000000e+00> : vector<256x16xf32>
    %44 = tpu.matmul %42, %43, %cst_10 {dimension_numbers = #tpu.dot_dimension_numbers<[1], [0], [0], [1], [0, 0, 1, 1], [], []>} : vector<256x3xbf16>, vector<3x16xbf16>, vector<256x16xf32> -> vector<256x16xf32>
    %45 = arith.addf %38, %44 : vector<256x16xf32>
    %46 = vector.extract_strided_slice %1 {offsets = [2, 0, 0], sizes = [16, 16, 3], strides = [1, 1, 1]} : vector<18x18x3xf32> to vector<16x16x3xf32>
    %47 = vector.shape_cast %46 : vector<16x16x3xf32> to vector<256x3xf32>
    %48 = vector.extract_strided_slice %2 {offsets = [18, 0], sizes = [3, 16], strides = [1, 1]} : vector<27x16xf32> to vector<3x16xf32>
    %49 = arith.truncf %47 : vector<256x3xf32> to vector<256x3xbf16>
    %50 = arith.truncf %48 : vector<3x16xf32> to vector<3x16xbf16>
    %cst_11 = arith.constant dense<0.000000e+00> : vector<256x16xf32>
    %51 = tpu.matmul %49, %50, %cst_11 {dimension_numbers = #tpu.dot_dimension_numbers<[1], [0], [0], [1], [0, 0, 1, 1], [], []>} : vector<256x3xbf16>, vector<3x16xbf16>, vector<256x16xf32> -> vector<256x16xf32>
    %52 = arith.addf %45, %51 : vector<256x16xf32>
    %53 = vector.extract_strided_slice %1 {offsets = [2, 1, 0], sizes = [16, 16, 3], strides = [1, 1, 1]} : vector<18x18x3xf32> to vector<16x16x3xf32>
    %54 = vector.shape_cast %53 : vector<16x16x3xf32> to vector<256x3xf32>
    %55 = vector.extract_strided_slice %2 {offsets = [21, 0], sizes = [3, 16], strides = [1, 1]} : vector<27x16xf32> to vector<3x16xf32>
    %56 = arith.truncf %54 : vector<256x3xf32> to vector<256x3xbf16>
    %57 = arith.truncf %55 : vector<3x16xf32> to vector<3x16xbf16>
    %cst_12 = arith.constant dense<0.000000e+00> : vector<256x16xf32>
    %58 = tpu.matmul %56, %57, %cst_12 {dimension_numbers = #tpu.dot_dimension_numbers<[1], [0], [0], [1], [0, 0, 1, 1], [], []>} : vector<256x3xbf16>, vector<3x16xbf16>, vector<256x16xf32> -> vector<256x16xf32>
    %59 = arith.addf %52, %58 : vector<256x16xf32>
    %60 = vector.extract_strided_slice %1 {offsets = [2, 2, 0], sizes = [16, 16, 3], strides = [1, 1, 1]} : vector<18x18x3xf32> to vector<16x16x3xf32>
    %61 = vector.shape_cast %60 : vector<16x16x3xf32> to vector<256x3xf32>
    %62 = vector.extract_strided_slice %2 {offsets = [24, 0], sizes = [3, 16], strides = [1, 1]} : vector<27x16xf32> to vector<3x16xf32>
    %63 = arith.truncf %61 : vector<256x3xf32> to vector<256x3xbf16>
    %64 = arith.truncf %62 : vector<3x16xf32> to vector<3x16xbf16>
    %cst_13 = arith.constant dense<0.000000e+00> : vector<256x16xf32>
    %65 = tpu.matmul %63, %64, %cst_13 {dimension_numbers = #tpu.dot_dimension_numbers<[1], [0], [0], [1], [0, 0, 1, 1], [], []>} : vector<256x3xbf16>, vector<3x16xbf16>, vector<256x16xf32> -> vector<256x16xf32>
    %66 = arith.addf %59, %65 : vector<256x16xf32>
    %c0_14 = arith.constant 0 : index
    %c0_15 = arith.constant 0 : index
    %67 = vector.load %arg4[%c0_14, %c0_15] : memref<1x16xf32, #tpu.memory_space<vmem>>, vector<1x16xf32>
    %68 = vector.broadcast %67 : vector<1x16xf32> to vector<256x16xf32>
    %69 = arith.addf %66, %68 : vector<256x16xf32>
    %cst_16 = arith.constant 0.000000e+00 : f32
    %70 = vector.broadcast %cst_16 : f32 to vector<256x16xf32>
    %71 = arith.maximumf %69, %70 : vector<256x16xf32>
    %cst_17 = arith.constant 0.000000e+00 : f32
    %72 = vector.broadcast %cst_17 : f32 to vector<18x18x16xf32>
    %c0_18 = arith.constant 0 : index
    %c0_19 = arith.constant 0 : index
    %c0_20 = arith.constant 0 : index
    %73 = vector.load %arg22[%c0_18, %c0_19, %c0_20] : memref<18x18x16xf32, #tpu.memory_space<vmem>>, vector<18x18x16xf32>
    tpu.vector_store %arg22[%c0_18, %c0_19, %c0_20], %72 {strides = array<i32>} : memref<18x18x16xf32, #tpu.memory_space<vmem>>, vector<18x18x16xf32>,
    %74 = vector.shape_cast %71 : vector<256x16xf32> to vector<16x16x16xf32>
    %c1 = arith.constant 1 : index
    %c1_21 = arith.constant 1 : index
    %c0_22 = arith.constant 0 : index
    %75 = vector.load %arg22[%c1, %c1_21, %c0_22] : memref<18x18x16xf32, #tpu.memory_space<vmem>>, vector<16x16x16xf32>
    tpu.vector_store %arg22[%c1, %c1_21, %c0_22], %74 {strides = array<i32>} : memref<18x18x16xf32, #tpu.memory_space<vmem>>, vector<16x16x16xf32>,
    %c0_23 = arith.constant 0 : index
    %c0_24 = arith.constant 0 : index
    %c0_25 = arith.constant 0 : index
    %76 = vector.load %arg2[%c0_23, %c0_24, %c0_25] : memref<1x1x8xf32, #tpu.memory_space<vmem>>, vector<1x1x8xf32>
    %77 = vector.shape_cast %76 : vector<1x1x8xf32> to vector<1x8xf32>
    %cst_26 = arith.constant 0.000000e+00 : f32
    %78 = vector.broadcast %cst_26 : f32 to vector<18x18x8xf32>
    %c0_27 = arith.constant 0 : index
    %c0_28 = arith.constant 0 : index
    %c0_29 = arith.constant 0 : index
    %79 = vector.load %arg23[%c0_27, %c0_28, %c0_29] : memref<18x18x8xf32, #tpu.memory_space<vmem>>, vector<18x18x8xf32>
    tpu.vector_store %arg23[%c0_27, %c0_28, %c0_29], %78 {strides = array<i32>} : memref<18x18x8xf32, #tpu.memory_space<vmem>>, vector<18x18x8xf32>,
    %80 = vector.shape_cast %77 : vector<1x8xf32> to vector<1x1x8xf32>
    %81 = vector.shape_cast %80 : vector<1x1x8xf32> to vector<1x1x8xf32>
    %82 = vector.broadcast %81 : vector<1x1x8xf32> to vector<16x16x8xf32>
    %c1_30 = arith.constant 1 : index
    %c1_31 = arith.constant 1 : index
    %c0_32 = arith.constant 0 : index
    %83 = vector.load %arg23[%c1_30, %c1_31, %c0_32] : memref<18x18x8xf32, #tpu.memory_space<vmem>>, vector<16x16x8xf32>
    tpu.vector_store %arg23[%c1_30, %c1_31, %c0_32], %82 {strides = array<i32>} : memref<18x18x8xf32, #tpu.memory_space<vmem>>, vector<16x16x8xf32>,
    %c0_33 = arith.constant 0 : index
    %c0_34 = arith.constant 0 : index
    %c0_35 = arith.constant 0 : index
    %84 = vector.load %arg22[%c0_33, %c0_34, %c0_35] : memref<18x18x16xf32, #tpu.memory_space<vmem>>, vector<18x18x16xf32>
    %c0_36 = arith.constant 0 : index
    %c0_37 = arith.constant 0 : index
    %85 = vector.load %arg5[%c0_36, %c0_37] : memref<144x3xf32, #tpu.memory_space<vmem>>, vector<144x3xf32>
    %cst_38 = arith.constant 0.000000e+00 : f32
    %86 = vector.broadcast %cst_38 : f32 to vector<256x3xf32>
    %87 = vector.extract_strided_slice %84 {offsets = [0, 0, 0], sizes = [16, 16, 16], strides = [1, 1, 1]} : vector<18x18x16xf32> to vector<16x16x16xf32>
    %88 = vector.shape_cast %87 : vector<16x16x16xf32> to vector<256x16xf32>
    %89 = vector.extract_strided_slice %85 {offsets = [0, 0], sizes = [16, 3], strides = [1, 1]} : vector<144x3xf32> to vector<16x3xf32>
    %90 = arith.truncf %88 : vector<256x16xf32> to vector<256x16xbf16>
    %91 = arith.truncf %89 : vector<16x3xf32> to vector<16x3xbf16>
    %cst_39 = arith.constant dense<0.000000e+00> : vector<256x3xf32>
    %92 = tpu.matmul %90, %91, %cst_39 {dimension_numbers = #tpu.dot_dimension_numbers<[1], [0], [0], [1], [0, 0, 1, 1], [], []>} : vector<256x16xbf16>, vector<16x3xbf16>, vector<256x3xf32> -> vector<256x3xf32>
    %93 = arith.addf %86, %92 : vector<256x3xf32>
    %94 = vector.extract_strided_slice %84 {offsets = [0, 1, 0], sizes = [16, 16, 16], strides = [1, 1, 1]} : vector<18x18x16xf32> to vector<16x16x16xf32>
    %95 = vector.shape_cast %94 : vector<16x16x16xf32> to vector<256x16xf32>
    %96 = vector.extract_strided_slice %85 {offsets = [16, 0], sizes = [16, 3], strides = [1, 1]} : vector<144x3xf32> to vector<16x3xf32>
    %97 = arith.truncf %95 : vector<256x16xf32> to vector<256x16xbf16>
    %98 = arith.truncf %96 : vector<16x3xf32> to vector<16x3xbf16>
    %cst_40 = arith.constant dense<0.000000e+00> : vector<256x3xf32>
    %99 = tpu.matmul %97, %98, %cst_40 {dimension_numbers = #tpu.dot_dimension_numbers<[1], [0], [0], [1], [0, 0, 1, 1], [], []>} : vector<256x16xbf16>, vector<16x3xbf16>, vector<256x3xf32> -> vector<256x3xf32>
    %100 = arith.addf %93, %99 : vector<256x3xf32>
    %101 = vector.extract_strided_slice %84 {offsets = [0, 2, 0], sizes = [16, 16, 16], strides = [1, 1, 1]} : vector<18x18x16xf32> to vector<16x16x16xf32>
    %102 = vector.shape_cast %101 : vector<16x16x16xf32> to vector<256x16xf32>
    %103 = vector.extract_strided_slice %85 {offsets = [32, 0], sizes = [16, 3], strides = [1, 1]} : vector<144x3xf32> to vector<16x3xf32>
    %104 = arith.truncf %102 : vector<256x16xf32> to vector<256x16xbf16>
    %105 = arith.truncf %103 : vector<16x3xf32> to vector<16x3xbf16>
    %cst_41 = arith.constant dense<0.000000e+00> : vector<256x3xf32>
    %106 = tpu.matmul %104, %105, %cst_41 {dimension_numbers = #tpu.dot_dimension_numbers<[1], [0], [0], [1], [0, 0, 1, 1], [], []>} : vector<256x16xbf16>, vector<16x3xbf16>, vector<256x3xf32> -> vector<256x3xf32>
    %107 = arith.addf %100, %106 : vector<256x3xf32>
    %108 = vector.extract_strided_slice %84 {offsets = [1, 0, 0], sizes = [16, 16, 16], strides = [1, 1, 1]} : vector<18x18x16xf32> to vector<16x16x16xf32>
    %109 = vector.shape_cast %108 : vector<16x16x16xf32> to vector<256x16xf32>
    %110 = vector.extract_strided_slice %85 {offsets = [48, 0], sizes = [16, 3], strides = [1, 1]} : vector<144x3xf32> to vector<16x3xf32>
    %111 = arith.truncf %109 : vector<256x16xf32> to vector<256x16xbf16>
    %112 = arith.truncf %110 : vector<16x3xf32> to vector<16x3xbf16>
    %cst_42 = arith.constant dense<0.000000e+00> : vector<256x3xf32>
    %113 = tpu.matmul %111, %112, %cst_42 {dimension_numbers = #tpu.dot_dimension_numbers<[1], [0], [0], [1], [0, 0, 1, 1], [], []>} : vector<256x16xbf16>, vector<16x3xbf16>, vector<256x3xf32> -> vector<256x3xf32>
    %114 = arith.addf %107, %113 : vector<256x3xf32>
    %115 = vector.extract_strided_slice %84 {offsets = [1, 1, 0], sizes = [16, 16, 16], strides = [1, 1, 1]} : vector<18x18x16xf32> to vector<16x16x16xf32>
    %116 = vector.shape_cast %115 : vector<16x16x16xf32> to vector<256x16xf32>
    %117 = vector.extract_strided_slice %85 {offsets = [64, 0], sizes = [16, 3], strides = [1, 1]} : vector<144x3xf32> to vector<16x3xf32>
    %118 = arith.truncf %116 : vector<256x16xf32> to vector<256x16xbf16>
    %119 = arith.truncf %117 : vector<16x3xf32> to vector<16x3xbf16>
    %cst_43 = arith.constant dense<0.000000e+00> : vector<256x3xf32>
    %120 = tpu.matmul %118, %119, %cst_43 {dimension_numbers = #tpu.dot_dimension_numbers<[1], [0], [0], [1], [0, 0, 1, 1], [], []>} : vector<256x16xbf16>, vector<16x3xbf16>, vector<256x3xf32> -> vector<256x3xf32>
    %121 = arith.addf %114, %120 : vector<256x3xf32>
    %122 = vector.extract_strided_slice %84 {offsets = [1, 2, 0], sizes = [16, 16, 16], strides = [1, 1, 1]} : vector<18x18x16xf32> to vector<16x16x16xf32>
    %123 = vector.shape_cast %122 : vector<16x16x16xf32> to vector<256x16xf32>
    %124 = vector.extract_strided_slice %85 {offsets = [80, 0], sizes = [16, 3], strides = [1, 1]} : vector<144x3xf32> to vector<16x3xf32>
    %125 = arith.truncf %123 : vector<256x16xf32> to vector<256x16xbf16>
    %126 = arith.truncf %124 : vector<16x3xf32> to vector<16x3xbf16>
    %cst_44 = arith.constant dense<0.000000e+00> : vector<256x3xf32>
    %127 = tpu.matmul %125, %126, %cst_44 {dimension_numbers = #tpu.dot_dimension_numbers<[1], [0], [0], [1], [0, 0, 1, 1], [], []>} : vector<256x16xbf16>, vector<16x3xbf16>, vector<256x3xf32> -> vector<256x3xf32>
    %128 = arith.addf %121, %127 : vector<256x3xf32>
    %129 = vector.extract_strided_slice %84 {offsets = [2, 0, 0], sizes = [16, 16, 16], strides = [1, 1, 1]} : vector<18x18x16xf32> to vector<16x16x16xf32>
    %130 = vector.shape_cast %129 : vector<16x16x16xf32> to vector<256x16xf32>
    %131 = vector.extract_strided_slice %85 {offsets = [96, 0], sizes = [16, 3], strides = [1, 1]} : vector<144x3xf32> to vector<16x3xf32>
    %132 = arith.truncf %130 : vector<256x16xf32> to vector<256x16xbf16>
    %133 = arith.truncf %131 : vector<16x3xf32> to vector<16x3xbf16>
    %cst_45 = arith.constant dense<0.000000e+00> : vector<256x3xf32>
    %134 = tpu.matmul %132, %133, %cst_45 {dimension_numbers = #tpu.dot_dimension_numbers<[1], [0], [0], [1], [0, 0, 1, 1], [], []>} : vector<256x16xbf16>, vector<16x3xbf16>, vector<256x3xf32> -> vector<256x3xf32>
    %135 = arith.addf %128, %134 : vector<256x3xf32>
    %136 = vector.extract_strided_slice %84 {offsets = [2, 1, 0], sizes = [16, 16, 16], strides = [1, 1, 1]} : vector<18x18x16xf32> to vector<16x16x16xf32>
    %137 = vector.shape_cast %136 : vector<16x16x16xf32> to vector<256x16xf32>
    %138 = vector.extract_strided_slice %85 {offsets = [112, 0], sizes = [16, 3], strides = [1, 1]} : vector<144x3xf32> to vector<16x3xf32>
    %139 = arith.truncf %137 : vector<256x16xf32> to vector<256x16xbf16>
    %140 = arith.truncf %138 : vector<16x3xf32> to vector<16x3xbf16>
    %cst_46 = arith.constant dense<0.000000e+00> : vector<256x3xf32>
    %141 = tpu.matmul %139, %140, %cst_46 {dimension_numbers = #tpu.dot_dimension_numbers<[1], [0], [0], [1], [0, 0, 1, 1], [], []>} : vector<256x16xbf16>, vector<16x3xbf16>, vector<256x3xf32> -> vector<256x3xf32>
    %142 = arith.addf %135, %141 : vector<256x3xf32>
    %143 = vector.extract_strided_slice %84 {offsets = [2, 2, 0], sizes = [16, 16, 16], strides = [1, 1, 1]} : vector<18x18x16xf32> to vector<16x16x16xf32>
    %144 = vector.shape_cast %143 : vector<16x16x16xf32> to vector<256x16xf32>
    %145 = vector.extract_strided_slice %85 {offsets = [128, 0], sizes = [16, 3], strides = [1, 1]} : vector<144x3xf32> to vector<16x3xf32>
    %146 = arith.truncf %144 : vector<256x16xf32> to vector<256x16xbf16>
    %147 = arith.truncf %145 : vector<16x3xf32> to vector<16x3xbf16>
    %cst_47 = arith.constant dense<0.000000e+00> : vector<256x3xf32>
    %148 = tpu.matmul %146, %147, %cst_47 {dimension_numbers = #tpu.dot_dimension_numbers<[1], [0], [0], [1], [0, 0, 1, 1], [], []>} : vector<256x16xbf16>, vector<16x3xbf16>, vector<256x3xf32> -> vector<256x3xf32>
    %149 = arith.addf %142, %148 : vector<256x3xf32>
    %c0_48 = arith.constant 0 : index
    %c0_49 = arith.constant 0 : index
    %c0_50 = arith.constant 0 : index
    %150 = vector.load %arg23[%c0_48, %c0_49, %c0_50] : memref<18x18x8xf32, #tpu.memory_space<vmem>>, vector<18x18x8xf32>
    %c0_51 = arith.constant 0 : index
    %c0_52 = arith.constant 0 : index
    %151 = vector.load %arg6[%c0_51, %c0_52] : memref<72x3xf32, #tpu.memory_space<vmem>>, vector<72x3xf32>
    %cst_53 = arith.constant 0.000000e+00 : f32
    %152 = vector.broadcast %cst_53 : f32 to vector<256x3xf32>
    %153 = vector.extract_strided_slice %150 {offsets = [0, 0, 0], sizes = [16, 16, 8], strides = [1, 1, 1]} : vector<18x18x8xf32> to vector<16x16x8xf32>
    %154 = vector.shape_cast %153 : vector<16x16x8xf32> to vector<256x8xf32>
    %155 = vector.extract_strided_slice %151 {offsets = [0, 0], sizes = [8, 3], strides = [1, 1]} : vector<72x3xf32> to vector<8x3xf32>
    %156 = arith.truncf %154 : vector<256x8xf32> to vector<256x8xbf16>
    %157 = arith.truncf %155 : vector<8x3xf32> to vector<8x3xbf16>
    %cst_54 = arith.constant dense<0.000000e+00> : vector<256x3xf32>
    %158 = tpu.matmul %156, %157, %cst_54 {dimension_numbers = #tpu.dot_dimension_numbers<[1], [0], [0], [1], [0, 0, 1, 1], [], []>} : vector<256x8xbf16>, vector<8x3xbf16>, vector<256x3xf32> -> vector<256x3xf32>
    %159 = arith.addf %152, %158 : vector<256x3xf32>
    %160 = vector.extract_strided_slice %150 {offsets = [0, 1, 0], sizes = [16, 16, 8], strides = [1, 1, 1]} : vector<18x18x8xf32> to vector<16x16x8xf32>
    %161 = vector.shape_cast %160 : vector<16x16x8xf32> to vector<256x8xf32>
    %162 = vector.extract_strided_slice %151 {offsets = [8, 0], sizes = [8, 3], strides = [1, 1]} : vector<72x3xf32> to vector<8x3xf32>
    %163 = arith.truncf %161 : vector<256x8xf32> to vector<256x8xbf16>
    %164 = arith.truncf %162 : vector<8x3xf32> to vector<8x3xbf16>
    %cst_55 = arith.constant dense<0.000000e+00> : vector<256x3xf32>
    %165 = tpu.matmul %163, %164, %cst_55 {dimension_numbers = #tpu.dot_dimension_numbers<[1], [0], [0], [1], [0, 0, 1, 1], [], []>} : vector<256x8xbf16>, vector<8x3xbf16>, vector<256x3xf32> -> vector<256x3xf32>
    %166 = arith.addf %159, %165 : vector<256x3xf32>
    %167 = vector.extract_strided_slice %150 {offsets = [0, 2, 0], sizes = [16, 16, 8], strides = [1, 1, 1]} : vector<18x18x8xf32> to vector<16x16x8xf32>
    %168 = vector.shape_cast %167 : vector<16x16x8xf32> to vector<256x8xf32>
    %169 = vector.extract_strided_slice %151 {offsets = [16, 0], sizes = [8, 3], strides = [1, 1]} : vector<72x3xf32> to vector<8x3xf32>
    %170 = arith.truncf %168 : vector<256x8xf32> to vector<256x8xbf16>
    %171 = arith.truncf %169 : vector<8x3xf32> to vector<8x3xbf16>
    %cst_56 = arith.constant dense<0.000000e+00> : vector<256x3xf32>
    %172 = tpu.matmul %170, %171, %cst_56 {dimension_numbers = #tpu.dot_dimension_numbers<[1], [0], [0], [1], [0, 0, 1, 1], [], []>} : vector<256x8xbf16>, vector<8x3xbf16>, vector<256x3xf32> -> vector<256x3xf32>
    %173 = arith.addf %166, %172 : vector<256x3xf32>
    %174 = vector.extract_strided_slice %150 {offsets = [1, 0, 0], sizes = [16, 16, 8], strides = [1, 1, 1]} : vector<18x18x8xf32> to vector<16x16x8xf32>
    %175 = vector.shape_cast %174 : vector<16x16x8xf32> to vector<256x8xf32>
    %176 = vector.extract_strided_slice %151 {offsets = [24, 0], sizes = [8, 3], strides = [1, 1]} : vector<72x3xf32> to vector<8x3xf32>
    %177 = arith.truncf %175 : vector<256x8xf32> to vector<256x8xbf16>
    %178 = arith.truncf %176 : vector<8x3xf32> to vector<8x3xbf16>
    %cst_57 = arith.constant dense<0.000000e+00> : vector<256x3xf32>
    %179 = tpu.matmul %177, %178, %cst_57 {dimension_numbers = #tpu.dot_dimension_numbers<[1], [0], [0], [1], [0, 0, 1, 1], [], []>} : vector<256x8xbf16>, vector<8x3xbf16>, vector<256x3xf32> -> vector<256x3xf32>
    %180 = arith.addf %173, %179 : vector<256x3xf32>
    %181 = vector.extract_strided_slice %150 {offsets = [1, 1, 0], sizes = [16, 16, 8], strides = [1, 1, 1]} : vector<18x18x8xf32> to vector<16x16x8xf32>
    %182 = vector.shape_cast %181 : vector<16x16x8xf32> to vector<256x8xf32>
    %183 = vector.extract_strided_slice %151 {offsets = [32, 0], sizes = [8, 3], strides = [1, 1]} : vector<72x3xf32> to vector<8x3xf32>
    %184 = arith.truncf %182 : vector<256x8xf32> to vector<256x8xbf16>
    %185 = arith.truncf %183 : vector<8x3xf32> to vector<8x3xbf16>
    %cst_58 = arith.constant dense<0.000000e+00> : vector<256x3xf32>
    %186 = tpu.matmul %184, %185, %cst_58 {dimension_numbers = #tpu.dot_dimension_numbers<[1], [0], [0], [1], [0, 0, 1, 1], [], []>} : vector<256x8xbf16>, vector<8x3xbf16>, vector<256x3xf32> -> vector<256x3xf32>
    %187 = arith.addf %180, %186 : vector<256x3xf32>
    %188 = vector.extract_strided_slice %150 {offsets = [1, 2, 0], sizes = [16, 16, 8], strides = [1, 1, 1]} : vector<18x18x8xf32> to vector<16x16x8xf32>
    %189 = vector.shape_cast %188 : vector<16x16x8xf32> to vector<256x8xf32>
    %190 = vector.extract_strided_slice %151 {offsets = [40, 0], sizes = [8, 3], strides = [1, 1]} : vector<72x3xf32> to vector<8x3xf32>
    %191 = arith.truncf %189 : vector<256x8xf32> to vector<256x8xbf16>
    %192 = arith.truncf %190 : vector<8x3xf32> to vector<8x3xbf16>
    %cst_59 = arith.constant dense<0.000000e+00> : vector<256x3xf32>
    %193 = tpu.matmul %191, %192, %cst_59 {dimension_numbers = #tpu.dot_dimension_numbers<[1], [0], [0], [1], [0, 0, 1, 1], [], []>} : vector<256x8xbf16>, vector<8x3xbf16>, vector<256x3xf32> -> vector<256x3xf32>
    %194 = arith.addf %187, %193 : vector<256x3xf32>
    %195 = vector.extract_strided_slice %150 {offsets = [2, 0, 0], sizes = [16, 16, 8], strides = [1, 1, 1]} : vector<18x18x8xf32> to vector<16x16x8xf32>
    %196 = vector.shape_cast %195 : vector<16x16x8xf32> to vector<256x8xf32>
    %197 = vector.extract_strided_slice %151 {offsets = [48, 0], sizes = [8, 3], strides = [1, 1]} : vector<72x3xf32> to vector<8x3xf32>
    %198 = arith.truncf %196 : vector<256x8xf32> to vector<256x8xbf16>
    %199 = arith.truncf %197 : vector<8x3xf32> to vector<8x3xbf16>
    %cst_60 = arith.constant dense<0.000000e+00> : vector<256x3xf32>
    %200 = tpu.matmul %198, %199, %cst_60 {dimension_numbers = #tpu.dot_dimension_numbers<[1], [0], [0], [1], [0, 0, 1, 1], [], []>} : vector<256x8xbf16>, vector<8x3xbf16>, vector<256x3xf32> -> vector<256x3xf32>
    %201 = arith.addf %194, %200 : vector<256x3xf32>
    %202 = vector.extract_strided_slice %150 {offsets = [2, 1, 0], sizes = [16, 16, 8], strides = [1, 1, 1]} : vector<18x18x8xf32> to vector<16x16x8xf32>
    %203 = vector.shape_cast %202 : vector<16x16x8xf32> to vector<256x8xf32>
    %204 = vector.extract_strided_slice %151 {offsets = [56, 0], sizes = [8, 3], strides = [1, 1]} : vector<72x3xf32> to vector<8x3xf32>
    %205 = arith.truncf %203 : vector<256x8xf32> to vector<256x8xbf16>
    %206 = arith.truncf %204 : vector<8x3xf32> to vector<8x3xbf16>
    %cst_61 = arith.constant dense<0.000000e+00> : vector<256x3xf32>
    %207 = tpu.matmul %205, %206, %cst_61 {dimension_numbers = #tpu.dot_dimension_numbers<[1], [0], [0], [1], [0, 0, 1, 1], [], []>} : vector<256x8xbf16>, vector<8x3xbf16>, vector<256x3xf32> -> vector<256x3xf32>
    %208 = arith.addf %201, %207 : vector<256x3xf32>
    %209 = vector.extract_strided_slice %150 {offsets = [2, 2, 0], sizes = [16, 16, 8], strides = [1, 1, 1]} : vector<18x18x8xf32> to vector<16x16x8xf32>
    %210 = vector.shape_cast %209 : vector<16x16x8xf32> to vector<256x8xf32>
    %211 = vector.extract_strided_slice %151 {offsets = [64, 0], sizes = [8, 3], strides = [1, 1]} : vector<72x3xf32> to vector<8x3xf32>
    %212 = arith.truncf %210 : vector<256x8xf32> to vector<256x8xbf16>
    %213 = arith.truncf %211 : vector<8x3xf32> to vector<8x3xbf16>
    %cst_62 = arith.constant dense<0.000000e+00> : vector<256x3xf32>
    %214 = tpu.matmul %212, %213, %cst_62 {dimension_numbers = #tpu.dot_dimension_numbers<[1], [0], [0], [1], [0, 0, 1, 1], [], []>} : vector<256x8xbf16>, vector<8x3xbf16>, vector<256x3xf32> -> vector<256x3xf32>
    %215 = arith.addf %208, %214 : vector<256x3xf32>
    %216 = arith.addf %149, %215 : vector<256x3xf32>
    %c0_63 = arith.constant 0 : index
    %c0_64 = arith.constant 0 : index
    %217 = vector.load %arg7[%c0_63, %c0_64] : memref<27x3xf32, #tpu.memory_space<vmem>>, vector<27x3xf32>
    %cst_65 = arith.constant 0.000000e+00 : f32
    %218 = vector.broadcast %cst_65 : f32 to vector<256x3xf32>
    %219 = vector.extract_strided_slice %1 {offsets = [0, 0, 0], sizes = [16, 16, 3], strides = [1, 1, 1]} : vector<18x18x3xf32> to vector<16x16x3xf32>
    %220 = vector.shape_cast %219 : vector<16x16x3xf32> to vector<256x3xf32>
    %221 = vector.extract_strided_slice %217 {offsets = [0, 0], sizes = [3, 3], strides = [1, 1]} : vector<27x3xf32> to vector<3x3xf32>
    %222 = arith.truncf %220 : vector<256x3xf32> to vector<256x3xbf16>
    %223 = arith.truncf %221 : vector<3x3xf32> to vector<3x3xbf16>
    %cst_66 = arith.constant dense<0.000000e+00> : vector<256x3xf32>
    %224 = tpu.matmul %222, %223, %cst_66 {dimension_numbers = #tpu.dot_dimension_numbers<[1], [0], [0], [1], [0, 0, 1, 1], [], []>} : vector<256x3xbf16>, vector<3x3xbf16>, vector<256x3xf32> -> vector<256x3xf32>
    %225 = arith.addf %218, %224 : vector<256x3xf32>
    %226 = vector.extract_strided_slice %1 {offsets = [0, 1, 0], sizes = [16, 16, 3], strides = [1, 1, 1]} : vector<18x18x3xf32> to vector<16x16x3xf32>
    %227 = vector.shape_cast %226 : vector<16x16x3xf32> to vector<256x3xf32>
    %228 = vector.extract_strided_slice %217 {offsets = [3, 0], sizes = [3, 3], strides = [1, 1]} : vector<27x3xf32> to vector<3x3xf32>
    %229 = arith.truncf %227 : vector<256x3xf32> to vector<256x3xbf16>
    %230 = arith.truncf %228 : vector<3x3xf32> to vector<3x3xbf16>
    %cst_67 = arith.constant dense<0.000000e+00> : vector<256x3xf32>
    %231 = tpu.matmul %229, %230, %cst_67 {dimension_numbers = #tpu.dot_dimension_numbers<[1], [0], [0], [1], [0, 0, 1, 1], [], []>} : vector<256x3xbf16>, vector<3x3xbf16>, vector<256x3xf32> -> vector<256x3xf32>
    %232 = arith.addf %225, %231 : vector<256x3xf32>
    %233 = vector.extract_strided_slice %1 {offsets = [0, 2, 0], sizes = [16, 16, 3], strides = [1, 1, 1]} : vector<18x18x3xf32> to vector<16x16x3xf32>
    %234 = vector.shape_cast %233 : vector<16x16x3xf32> to vector<256x3xf32>
    %235 = vector.extract_strided_slice %217 {offsets = [6, 0], sizes = [3, 3], strides = [1, 1]} : vector<27x3xf32> to vector<3x3xf32>
    %236 = arith.truncf %234 : vector<256x3xf32> to vector<256x3xbf16>
    %237 = arith.truncf %235 : vector<3x3xf32> to vector<3x3xbf16>
    %cst_68 = arith.constant dense<0.000000e+00> : vector<256x3xf32>
    %238 = tpu.matmul %236, %237, %cst_68 {dimension_numbers = #tpu.dot_dimension_numbers<[1], [0], [0], [1], [0, 0, 1, 1], [], []>} : vector<256x3xbf16>, vector<3x3xbf16>, vector<256x3xf32> -> vector<256x3xf32>
    %239 = arith.addf %232, %238 : vector<256x3xf32>
    %240 = vector.extract_strided_slice %1 {offsets = [1, 0, 0], sizes = [16, 16, 3], strides = [1, 1, 1]} : vector<18x18x3xf32> to vector<16x16x3xf32>
    %241 = vector.shape_cast %240 : vector<16x16x3xf32> to vector<256x3xf32>
    %242 = vector.extract_strided_slice %217 {offsets = [9, 0], sizes = [3, 3], strides = [1, 1]} : vector<27x3xf32> to vector<3x3xf32>
    %243 = arith.truncf %241 : vector<256x3xf32> to vector<256x3xbf16>
    %244 = arith.truncf %242 : vector<3x3xf32> to vector<3x3xbf16>
    %cst_69 = arith.constant dense<0.000000e+00> : vector<256x3xf32>
    %245 = tpu.matmul %243, %244, %cst_69 {dimension_numbers = #tpu.dot_dimension_numbers<[1], [0], [0], [1], [0, 0, 1, 1], [], []>} : vector<256x3xbf16>, vector<3x3xbf16>, vector<256x3xf32> -> vector<256x3xf32>
    %246 = arith.addf %239, %245 : vector<256x3xf32>
    %247 = vector.extract_strided_slice %1 {offsets = [1, 1, 0], sizes = [16, 16, 3], strides = [1, 1, 1]} : vector<18x18x3xf32> to vector<16x16x3xf32>
    %248 = vector.shape_cast %247 : vector<16x16x3xf32> to vector<256x3xf32>
    %249 = vector.extract_strided_slice %217 {offsets = [12, 0], sizes = [3, 3], strides = [1, 1]} : vector<27x3xf32> to vector<3x3xf32>
    %250 = arith.truncf %248 : vector<256x3xf32> to vector<256x3xbf16>
    %251 = arith.truncf %249 : vector<3x3xf32> to vector<3x3xbf16>
    %cst_70 = arith.constant dense<0.000000e+00> : vector<256x3xf32>
    %252 = tpu.matmul %250, %251, %cst_70 {dimension_numbers = #tpu.dot_dimension_numbers<[1], [0], [0], [1], [0, 0, 1, 1], [], []>} : vector<256x3xbf16>, vector<3x3xbf16>, vector<256x3xf32> -> vector<256x3xf32>
    %253 = arith.addf %246, %252 : vector<256x3xf32>
    %254 = vector.extract_strided_slice %1 {offsets = [1, 2, 0], sizes = [16, 16, 3], strides = [1, 1, 1]} : vector<18x18x3xf32> to vector<16x16x3xf32>
    %255 = vector.shape_cast %254 : vector<16x16x3xf32> to vector<256x3xf32>
    %256 = vector.extract_strided_slice %217 {offsets = [15, 0], sizes = [3, 3], strides = [1, 1]} : vector<27x3xf32> to vector<3x3xf32>
    %257 = arith.truncf %255 : vector<256x3xf32> to vector<256x3xbf16>
    %258 = arith.truncf %256 : vector<3x3xf32> to vector<3x3xbf16>
    %cst_71 = arith.constant dense<0.000000e+00> : vector<256x3xf32>
    %259 = tpu.matmul %257, %258, %cst_71 {dimension_numbers = #tpu.dot_dimension_numbers<[1], [0], [0], [1], [0, 0, 1, 1], [], []>} : vector<256x3xbf16>, vector<3x3xbf16>, vector<256x3xf32> -> vector<256x3xf32>
    %260 = arith.addf %253, %259 : vector<256x3xf32>
    %261 = vector.extract_strided_slice %1 {offsets = [2, 0, 0], sizes = [16, 16, 3], strides = [1, 1, 1]} : vector<18x18x3xf32> to vector<16x16x3xf32>
    %262 = vector.shape_cast %261 : vector<16x16x3xf32> to vector<256x3xf32>
    %263 = vector.extract_strided_slice %217 {offsets = [18, 0], sizes = [3, 3], strides = [1, 1]} : vector<27x3xf32> to vector<3x3xf32>
    %264 = arith.truncf %262 : vector<256x3xf32> to vector<256x3xbf16>
    %265 = arith.truncf %263 : vector<3x3xf32> to vector<3x3xbf16>
    %cst_72 = arith.constant dense<0.000000e+00> : vector<256x3xf32>
    %266 = tpu.matmul %264, %265, %cst_72 {dimension_numbers = #tpu.dot_dimension_numbers<[1], [0], [0], [1], [0, 0, 1, 1], [], []>} : vector<256x3xbf16>, vector<3x3xbf16>, vector<256x3xf32> -> vector<256x3xf32>
    %267 = arith.addf %260, %266 : vector<256x3xf32>
    %268 = vector.extract_strided_slice %1 {offsets = [2, 1, 0], sizes = [16, 16, 3], strides = [1, 1, 1]} : vector<18x18x3xf32> to vector<16x16x3xf32>
    %269 = vector.shape_cast %268 : vector<16x16x3xf32> to vector<256x3xf32>
    %270 = vector.extract_strided_slice %217 {offsets = [21, 0], sizes = [3, 3], strides = [1, 1]} : vector<27x3xf32> to vector<3x3xf32>
    %271 = arith.truncf %269 : vector<256x3xf32> to vector<256x3xbf16>
    %272 = arith.truncf %270 : vector<3x3xf32> to vector<3x3xbf16>
    %cst_73 = arith.constant dense<0.000000e+00> : vector<256x3xf32>
    %273 = tpu.matmul %271, %272, %cst_73 {dimension_numbers = #tpu.dot_dimension_numbers<[1], [0], [0], [1], [0, 0, 1, 1], [], []>} : vector<256x3xbf16>, vector<3x3xbf16>, vector<256x3xf32> -> vector<256x3xf32>
    %274 = arith.addf %267, %273 : vector<256x3xf32>
    %275 = vector.extract_strided_slice %1 {offsets = [2, 2, 0], sizes = [16, 16, 3], strides = [1, 1, 1]} : vector<18x18x3xf32> to vector<16x16x3xf32>
    %276 = vector.shape_cast %275 : vector<16x16x3xf32> to vector<256x3xf32>
    %277 = vector.extract_strided_slice %217 {offsets = [24, 0], sizes = [3, 3], strides = [1, 1]} : vector<27x3xf32> to vector<3x3xf32>
    %278 = arith.truncf %276 : vector<256x3xf32> to vector<256x3xbf16>
    %279 = arith.truncf %277 : vector<3x3xf32> to vector<3x3xbf16>
    %cst_74 = arith.constant dense<0.000000e+00> : vector<256x3xf32>
    %280 = tpu.matmul %278, %279, %cst_74 {dimension_numbers = #tpu.dot_dimension_numbers<[1], [0], [0], [1], [0, 0, 1, 1], [], []>} : vector<256x3xbf16>, vector<3x3xbf16>, vector<256x3xf32> -> vector<256x3xf32>
    %281 = arith.addf %274, %280 : vector<256x3xf32>
    %282 = arith.addf %216, %281 : vector<256x3xf32>
    %c0_75 = arith.constant 0 : index
    %c0_76 = arith.constant 0 : index
    %283 = vector.load %arg8[%c0_75, %c0_76] : memref<1x3xf32, #tpu.memory_space<vmem>>, vector<1x3xf32>
    %284 = vector.broadcast %283 : vector<1x3xf32> to vector<256x3xf32>
    %285 = arith.addf %282, %284 : vector<256x3xf32>
    %cst_77 = arith.constant 0.000000e+00 : f32
    %286 = vector.broadcast %cst_77 : f32 to vector<256x125xf32>
    %287 = tpu.concatenate %285, %286 in 1 : vector<256x3xf32>, vector<256x125xf32> -> vector<256x128xf32>
    %c0_78 = arith.constant 0 : index
    %c0_79 = arith.constant 0 : index
    %c0_80 = arith.constant 0 : index
    %288 = vector.load %arg19[%c0_78, %c0_79, %c0_80] : memref<1x256x128xf32, #tpu.memory_space<vmem>>, vector<1x256x128xf32>
    %289 = vector.shape_cast %288 : vector<1x256x128xf32> to vector<256x128xf32>
    %290 = vector.shape_cast %287 : vector<256x128xf32> to vector<1x256x128xf32>
    tpu.vector_store %arg19[%c0_78, %c0_79, %c0_80], %290 {strides = array<i32>} : memref<1x256x128xf32, #tpu.memory_space<vmem>>, vector<1x256x128xf32>,
    %cst_81 = arith.constant 0.000000e+00 : f32
    %291 = vector.broadcast %cst_81 : f32 to vector<256x125xf32>
    %292 = tpu.concatenate %285, %291 in 1 : vector<256x3xf32>, vector<256x125xf32> -> vector<256x128xf32>
    %c0_82 = arith.constant 0 : index
    %c0_83 = arith.constant 0 : index
    %c0_84 = arith.constant 0 : index
    %293 = vector.load %arg20[%c0_82, %c0_83, %c0_84] : memref<1x256x128xf32, #tpu.memory_space<vmem>>, vector<1x256x128xf32>
    %294 = vector.shape_cast %293 : vector<1x256x128xf32> to vector<256x128xf32>
    %295 = vector.shape_cast %292 : vector<256x128xf32> to vector<1x256x128xf32>
    tpu.vector_store %arg20[%c0_82, %c0_83, %c0_84], %295 {strides = array<i32>} : memref<1x256x128xf32, #tpu.memory_space<vmem>>, vector<1x256x128xf32>,
    %cst_85 = arith.constant 0.000000e+00 : f32
    %296 = vector.broadcast %cst_85 : f32 to vector<18x18x3xf32>
    %c0_86 = arith.constant 0 : index
    %c0_87 = arith.constant 0 : index
    %c0_88 = arith.constant 0 : index
    %297 = vector.load %arg24[%c0_86, %c0_87, %c0_88] : memref<18x18x3xf32, #tpu.memory_space<vmem>>, vector<18x18x3xf32>
    tpu.vector_store %arg24[%c0_86, %c0_87, %c0_88], %296 {strides = array<i32>} : memref<18x18x3xf32, #tpu.memory_space<vmem>>, vector<18x18x3xf32>,
    %298 = vector.shape_cast %285 : vector<256x3xf32> to vector<16x16x3xf32>
    %c1_89 = arith.constant 1 : index
    %c1_90 = arith.constant 1 : index
    %c0_91 = arith.constant 0 : index
    %299 = vector.load %arg24[%c1_89, %c1_90, %c0_91] : memref<18x18x3xf32, #tpu.memory_space<vmem>>, vector<16x16x3xf32>
    tpu.vector_store %arg24[%c1_89, %c1_90, %c0_91], %298 {strides = array<i32>} : memref<18x18x3xf32, #tpu.memory_space<vmem>>, vector<16x16x3xf32>,
    %c0_92 = arith.constant 0 : index
    %c0_93 = arith.constant 0 : index
    %c0_94 = arith.constant 0 : index
    %300 = vector.load %arg24[%c0_92, %c0_93, %c0_94] : memref<18x18x3xf32, #tpu.memory_space<vmem>>, vector<18x18x3xf32>
    %c0_95 = arith.constant 0 : index
    %c0_96 = arith.constant 0 : index
    %301 = vector.load %arg15[%c0_95, %c0_96] : memref<27x16xf32, #tpu.memory_space<vmem>>, vector<27x16xf32>
    %cst_97 = arith.constant 0.000000e+00 : f32
    %302 = vector.broadcast %cst_97 : f32 to vector<256x16xf32>
    %303 = vector.extract_strided_slice %300 {offsets = [0, 0, 0], sizes = [16, 16, 3], strides = [1, 1, 1]} : vector<18x18x3xf32> to vector<16x16x3xf32>
    %304 = vector.shape_cast %303 : vector<16x16x3xf32> to vector<256x3xf32>
    %305 = vector.extract_strided_slice %301 {offsets = [0, 0], sizes = [3, 16], strides = [1, 1]} : vector<27x16xf32> to vector<3x16xf32>
    %306 = arith.truncf %304 : vector<256x3xf32> to vector<256x3xbf16>
    %307 = arith.truncf %305 : vector<3x16xf32> to vector<3x16xbf16>
    %cst_98 = arith.constant dense<0.000000e+00> : vector<256x16xf32>
    %308 = tpu.matmul %306, %307, %cst_98 {dimension_numbers = #tpu.dot_dimension_numbers<[1], [0], [0], [1], [0, 0, 1, 1], [], []>} : vector<256x3xbf16>, vector<3x16xbf16>, vector<256x16xf32> -> vector<256x16xf32>
    %309 = arith.addf %302, %308 : vector<256x16xf32>
    %310 = vector.extract_strided_slice %300 {offsets = [0, 1, 0], sizes = [16, 16, 3], strides = [1, 1, 1]} : vector<18x18x3xf32> to vector<16x16x3xf32>
    %311 = vector.shape_cast %310 : vector<16x16x3xf32> to vector<256x3xf32>
    %312 = vector.extract_strided_slice %301 {offsets = [3, 0], sizes = [3, 16], strides = [1, 1]} : vector<27x16xf32> to vector<3x16xf32>
    %313 = arith.truncf %311 : vector<256x3xf32> to vector<256x3xbf16>
    %314 = arith.truncf %312 : vector<3x16xf32> to vector<3x16xbf16>
    %cst_99 = arith.constant dense<0.000000e+00> : vector<256x16xf32>
    %315 = tpu.matmul %313, %314, %cst_99 {dimension_numbers = #tpu.dot_dimension_numbers<[1], [0], [0], [1], [0, 0, 1, 1], [], []>} : vector<256x3xbf16>, vector<3x16xbf16>, vector<256x16xf32> -> vector<256x16xf32>
    %316 = arith.addf %309, %315 : vector<256x16xf32>
    %317 = vector.extract_strided_slice %300 {offsets = [0, 2, 0], sizes = [16, 16, 3], strides = [1, 1, 1]} : vector<18x18x3xf32> to vector<16x16x3xf32>
    %318 = vector.shape_cast %317 : vector<16x16x3xf32> to vector<256x3xf32>
    %319 = vector.extract_strided_slice %301 {offsets = [6, 0], sizes = [3, 16], strides = [1, 1]} : vector<27x16xf32> to vector<3x16xf32>
    %320 = arith.truncf %318 : vector<256x3xf32> to vector<256x3xbf16>
    %321 = arith.truncf %319 : vector<3x16xf32> to vector<3x16xbf16>
    %cst_100 = arith.constant dense<0.000000e+00> : vector<256x16xf32>
    %322 = tpu.matmul %320, %321, %cst_100 {dimension_numbers = #tpu.dot_dimension_numbers<[1], [0], [0], [1], [0, 0, 1, 1], [], []>} : vector<256x3xbf16>, vector<3x16xbf16>, vector<256x16xf32> -> vector<256x16xf32>
    %323 = arith.addf %316, %322 : vector<256x16xf32>
    %324 = vector.extract_strided_slice %300 {offsets = [1, 0, 0], sizes = [16, 16, 3], strides = [1, 1, 1]} : vector<18x18x3xf32> to vector<16x16x3xf32>
    %325 = vector.shape_cast %324 : vector<16x16x3xf32> to vector<256x3xf32>
    %326 = vector.extract_strided_slice %301 {offsets = [9, 0], sizes = [3, 16], strides = [1, 1]} : vector<27x16xf32> to vector<3x16xf32>
    %327 = arith.truncf %325 : vector<256x3xf32> to vector<256x3xbf16>
    %328 = arith.truncf %326 : vector<3x16xf32> to vector<3x16xbf16>
    %cst_101 = arith.constant dense<0.000000e+00> : vector<256x16xf32>
    %329 = tpu.matmul %327, %328, %cst_101 {dimension_numbers = #tpu.dot_dimension_numbers<[1], [0], [0], [1], [0, 0, 1, 1], [], []>} : vector<256x3xbf16>, vector<3x16xbf16>, vector<256x16xf32> -> vector<256x16xf32>
    %330 = arith.addf %323, %329 : vector<256x16xf32>
    %331 = vector.extract_strided_slice %300 {offsets = [1, 1, 0], sizes = [16, 16, 3], strides = [1, 1, 1]} : vector<18x18x3xf32> to vector<16x16x3xf32>
    %332 = vector.shape_cast %331 : vector<16x16x3xf32> to vector<256x3xf32>
    %333 = vector.extract_strided_slice %301 {offsets = [12, 0], sizes = [3, 16], strides = [1, 1]} : vector<27x16xf32> to vector<3x16xf32>
    %334 = arith.truncf %332 : vector<256x3xf32> to vector<256x3xbf16>
    %335 = arith.truncf %333 : vector<3x16xf32> to vector<3x16xbf16>
    %cst_102 = arith.constant dense<0.000000e+00> : vector<256x16xf32>
    %336 = tpu.matmul %334, %335, %cst_102 {dimension_numbers = #tpu.dot_dimension_numbers<[1], [0], [0], [1], [0, 0, 1, 1], [], []>} : vector<256x3xbf16>, vector<3x16xbf16>, vector<256x16xf32> -> vector<256x16xf32>
    %337 = arith.addf %330, %336 : vector<256x16xf32>
    %338 = vector.extract_strided_slice %300 {offsets = [1, 2, 0], sizes = [16, 16, 3], strides = [1, 1, 1]} : vector<18x18x3xf32> to vector<16x16x3xf32>
    %339 = vector.shape_cast %338 : vector<16x16x3xf32> to vector<256x3xf32>
    %340 = vector.extract_strided_slice %301 {offsets = [15, 0], sizes = [3, 16], strides = [1, 1]} : vector<27x16xf32> to vector<3x16xf32>
    %341 = arith.truncf %339 : vector<256x3xf32> to vector<256x3xbf16>
    %342 = arith.truncf %340 : vector<3x16xf32> to vector<3x16xbf16>
    %cst_103 = arith.constant dense<0.000000e+00> : vector<256x16xf32>
    %343 = tpu.matmul %341, %342, %cst_103 {dimension_numbers = #tpu.dot_dimension_numbers<[1], [0], [0], [1], [0, 0, 1, 1], [], []>} : vector<256x3xbf16>, vector<3x16xbf16>, vector<256x16xf32> -> vector<256x16xf32>
    %344 = arith.addf %337, %343 : vector<256x16xf32>
    %345 = vector.extract_strided_slice %300 {offsets = [2, 0, 0], sizes = [16, 16, 3], strides = [1, 1, 1]} : vector<18x18x3xf32> to vector<16x16x3xf32>
    %346 = vector.shape_cast %345 : vector<16x16x3xf32> to vector<256x3xf32>
    %347 = vector.extract_strided_slice %301 {offsets = [18, 0], sizes = [3, 16], strides = [1, 1]} : vector<27x16xf32> to vector<3x16xf32>
    %348 = arith.truncf %346 : vector<256x3xf32> to vector<256x3xbf16>
    %349 = arith.truncf %347 : vector<3x16xf32> to vector<3x16xbf16>
    %cst_104 = arith.constant dense<0.000000e+00> : vector<256x16xf32>
    %350 = tpu.matmul %348, %349, %cst_104 {dimension_numbers = #tpu.dot_dimension_numbers<[1], [0], [0], [1], [0, 0, 1, 1], [], []>} : vector<256x3xbf16>, vector<3x16xbf16>, vector<256x16xf32> -> vector<256x16xf32>
    %351 = arith.addf %344, %350 : vector<256x16xf32>
    %352 = vector.extract_strided_slice %300 {offsets = [2, 1, 0], sizes = [16, 16, 3], strides = [1, 1, 1]} : vector<18x18x3xf32> to vector<16x16x3xf32>
    %353 = vector.shape_cast %352 : vector<16x16x3xf32> to vector<256x3xf32>
    %354 = vector.extract_strided_slice %301 {offsets = [21, 0], sizes = [3, 16], strides = [1, 1]} : vector<27x16xf32> to vector<3x16xf32>
    %355 = arith.truncf %353 : vector<256x3xf32> to vector<256x3xbf16>
    %356 = arith.truncf %354 : vector<3x16xf32> to vector<3x16xbf16>
    %cst_105 = arith.constant dense<0.000000e+00> : vector<256x16xf32>
    %357 = tpu.matmul %355, %356, %cst_105 {dimension_numbers = #tpu.dot_dimension_numbers<[1], [0], [0], [1], [0, 0, 1, 1], [], []>} : vector<256x3xbf16>, vector<3x16xbf16>, vector<256x16xf32> -> vector<256x16xf32>
    %358 = arith.addf %351, %357 : vector<256x16xf32>
    %359 = vector.extract_strided_slice %300 {offsets = [2, 2, 0], sizes = [16, 16, 3], strides = [1, 1, 1]} : vector<18x18x3xf32> to vector<16x16x3xf32>
    %360 = vector.shape_cast %359 : vector<16x16x3xf32> to vector<256x3xf32>
    %361 = vector.extract_strided_slice %301 {offsets = [24, 0], sizes = [3, 16], strides = [1, 1]} : vector<27x16xf32> to vector<3x16xf32>
    %362 = arith.truncf %360 : vector<256x3xf32> to vector<256x3xbf16>
    %363 = arith.truncf %361 : vector<3x16xf32> to vector<3x16xbf16>
    %cst_106 = arith.constant dense<0.000000e+00> : vector<256x16xf32>
    %364 = tpu.matmul %362, %363, %cst_106 {dimension_numbers = #tpu.dot_dimension_numbers<[1], [0], [0], [1], [0, 0, 1, 1], [], []>} : vector<256x3xbf16>, vector<3x16xbf16>, vector<256x16xf32> -> vector<256x16xf32>
    %365 = arith.addf %358, %364 : vector<256x16xf32>
    %c0_107 = arith.constant 0 : index
    %c0_108 = arith.constant 0 : index
    %366 = vector.load %arg16[%c0_107, %c0_108] : memref<1x16xf32, #tpu.memory_space<vmem>>, vector<1x16xf32>
    %367 = vector.broadcast %366 : vector<1x16xf32> to vector<256x16xf32>
    %368 = arith.addf %365, %367 : vector<256x16xf32>
    %cst_109 = arith.constant 0.000000e+00 : f32
    %369 = vector.broadcast %cst_109 : f32 to vector<256x16xf32>
    %370 = arith.maximumf %368, %369 : vector<256x16xf32>
    %cst_110 = arith.constant dense<0.000000e+00> : vector<16xf32>
    %371 = vector.multi_reduction <add>, %370, %cst_110 [0] : vector<256x16xf32> to vector<16xf32>
    %372 = vector.shape_cast %371 : vector<16xf32> to vector<1x16xf32>
    %cst_111 = arith.constant 2.560000e+02 : f32
    %373 = vector.broadcast %cst_111 : f32 to vector<1x16xf32>
    %374 = arith.divf %372, %373 : vector<1x16xf32>
    %c0_112 = arith.constant 0 : index
    %c0_113 = arith.constant 0 : index
    %375 = vector.load %arg17[%c0_112, %c0_113] : memref<16x8xf32, #tpu.memory_space<vmem>>, vector<16x8xf32>
    %cst_114 = arith.constant dense<0.000000e+00> : vector<1x8xf32>
    %376 = tpu.matmul %374, %375, %cst_114 {dimension_numbers = #tpu.dot_dimension_numbers<[1], [0], [0], [1], [0, 0, 1, 1], [], []>} : vector<1x16xf32>, vector<16x8xf32>, vector<1x8xf32> -> vector<1x8xf32>
    %c0_115 = arith.constant 0 : index
    %c0_116 = arith.constant 0 : index
    %377 = vector.load %arg18[%c0_115, %c0_116] : memref<1x8xf32, #tpu.memory_space<vmem>>, vector<1x8xf32>
    %378 = arith.addf %376, %377 : vector<1x8xf32>
    %cst_117 = arith.constant 0.000000e+00 : f32
    %379 = vector.broadcast %cst_117 : f32 to vector<1x120xf32>
    %380 = tpu.concatenate %378, %379 in 1 : vector<1x8xf32>, vector<1x120xf32> -> vector<1x128xf32>
    %381 = vector.shape_cast %380 : vector<1x128xf32> to vector<1x128xf32>
    %382 = vector.broadcast %381 : vector<1x128xf32> to vector<8x128xf32>
    %c0_118 = arith.constant 0 : index
    %c0_119 = arith.constant 0 : index
    %c0_120 = arith.constant 0 : index
    %383 = vector.load %arg21[%c0_118, %c0_119, %c0_120] : memref<1x8x128xf32, #tpu.memory_space<vmem>>, vector<1x8x128xf32>
    %384 = vector.shape_cast %383 : vector<1x8x128xf32> to vector<8x128xf32>
    %385 = vector.shape_cast %382 : vector<8x128xf32> to vector<1x8x128xf32>
    tpu.vector_store %arg21[%c0_118, %c0_119, %c0_120], %385 {strides = array<i32>} : memref<1x8x128xf32, #tpu.memory_space<vmem>>, vector<1x8x128xf32>,
    return
  }
  func.func @transform_0(%arg0: i32) -> (i32, i32, i32, i32) {
    %c0_i32 = arith.constant 0 : i32
    %c0_i32_0 = arith.constant 0 : i32
    %c0_i32_1 = arith.constant 0 : i32
    %c0_i32_2 = arith.constant 0 : i32
    return %arg0, %c0_i32, %c0_i32_0, %c0_i32_1 : i32, i32, i32, i32
  }
  func.func @transform_1(%arg0: i32) -> (i32, i32, i32) {
    %c0_i32 = arith.constant 0 : i32
    %c0_i32_0 = arith.constant 0 : i32
    %c0_i32_1 = arith.constant 0 : i32
    return %arg0, %c0_i32, %c0_i32_0 : i32, i32, i32
  }
  func.func @transform_2(%arg0: i32) -> (i32, i32) {
    %c0_i32 = arith.constant 0 : i32
    %c0_i32_0 = arith.constant 0 : i32
    %c0_i32_1 = arith.constant 0 : i32
    return %c0_i32, %c0_i32_0 : i32, i32
  }
  func.func @transform_3(%arg0: i32) -> (i32, i32) {
    %c0_i32 = arith.constant 0 : i32
    %c0_i32_0 = arith.constant 0 : i32
    %c0_i32_1 = arith.constant 0 : i32
    return %c0_i32, %c0_i32_0 : i32, i32
  }
  func.func @transform_4(%arg0: i32) -> (i32, i32) {
    %c0_i32 = arith.constant 0 : i32
    %c0_i32_0 = arith.constant 0 : i32
    %c0_i32_1 = arith.constant 0 : i32
    return %c0_i32, %c0_i32_0 : i32, i32
  }
  func.func @transform_5(%arg0: i32) -> (i32, i32) {
    %c0_i32 = arith.constant 0 : i32
    %c0_i32_0 = arith.constant 0 : i32
    %c0_i32_1 = arith.constant 0 : i32
    return %c0_i32, %c0_i32_0 : i32, i32
  }
  func.func @transform_6(%arg0: i32) -> (i32, i32) {
    %c0_i32 = arith.constant 0 : i32
    %c0_i32_0 = arith.constant 0 : i32
    %c0_i32_1 = arith.constant 0 : i32
    return %c0_i32, %c0_i32_0 : i32, i32
  }
  func.func @transform_7(%arg0: i32) -> (i32, i32) {
    %c0_i32 = arith.constant 0 : i32
    %c0_i32_0 = arith.constant 0 : i32
    %c0_i32_1 = arith.constant 0 : i32
    return %c0_i32, %c0_i32_0 : i32, i32
  }
  func.func @transform_8(%arg0: i32) -> (i32, i32) {
    %c0_i32 = arith.constant 0 : i32
    %c0_i32_0 = arith.constant 0 : i32
    %c0_i32_1 = arith.constant 0 : i32
    return %c0_i32, %c0_i32_0 : i32, i32
  }
  func.func @transform_9(%arg0: i32) -> (i32, i32) {
    %c0_i32 = arith.constant 0 : i32
    %c0_i32_0 = arith.constant 0 : i32
    %c0_i32_1 = arith.constant 0 : i32
    return %c0_i32, %c0_i32_0 : i32, i32
  }
  func.func @transform_10(%arg0: i32) -> (i32, i32) {
    %c0_i32 = arith.constant 0 : i32
    %c0_i32_0 = arith.constant 0 : i32
    %c0_i32_1 = arith.constant 0 : i32
    return %c0_i32, %c0_i32_0 : i32, i32
  }
  func.func @transform_11(%arg0: i32) -> (i32, i32) {
    %c0_i32 = arith.constant 0 : i32
    %c0_i32_0 = arith.constant 0 : i32
    %c0_i32_1 = arith.constant 0 : i32
    return %c0_i32, %c0_i32_0 : i32, i32
  }
  func.func @transform_12(%arg0: i32) -> (i32, i32) {
    %c0_i32 = arith.constant 0 : i32
    %c0_i32_0 = arith.constant 0 : i32
    %c0_i32_1 = arith.constant 0 : i32
    return %c0_i32, %c0_i32_0 : i32, i32
  }
  func.func @transform_13(%arg0: i32) -> (i32, i32) {
    %c0_i32 = arith.constant 0 : i32
    %c0_i32_0 = arith.constant 0 : i32
    %c0_i32_1 = arith.constant 0 : i32
    return %c0_i32, %c0_i32_0 : i32, i32
  }
  func.func @transform_14(%arg0: i32) -> (i32, i32) {
    %c0_i32 = arith.constant 0 : i32
    %c0_i32_0 = arith.constant 0 : i32
    %c0_i32_1 = arith.constant 0 : i32
    return %c0_i32, %c0_i32_0 : i32, i32
  }
  func.func @transform_15(%arg0: i32) -> (i32, i32) {
    %c0_i32 = arith.constant 0 : i32
    %c0_i32_0 = arith.constant 0 : i32
    %c0_i32_1 = arith.constant 0 : i32
    return %c0_i32, %c0_i32_0 : i32, i32
  }
  func.func @transform_16(%arg0: i32) -> (i32, i32) {
    %c0_i32 = arith.constant 0 : i32
    %c0_i32_0 = arith.constant 0 : i32
    %c0_i32_1 = arith.constant 0 : i32
    return %c0_i32, %c0_i32_0 : i32, i32
  }
  func.func @transform_17(%arg0: i32) -> (i32, i32) {
    %c0_i32 = arith.constant 0 : i32
    %c0_i32_0 = arith.constant 0 : i32
    %c0_i32_1 = arith.constant 0 : i32
    return %c0_i32, %c0_i32_0 : i32, i32
  }
  func.func @transform_18(%arg0: i32) -> (i32, i32, i32) {
    %c0_i32 = arith.constant 0 : i32
    %c0_i32_0 = arith.constant 0 : i32
    %c0_i32_1 = arith.constant 0 : i32
    return %arg0, %c0_i32, %c0_i32_0 : i32, i32, i32
  }
  func.func @transform_19(%arg0: i32) -> (i32, i32, i32) {
    %c0_i32 = arith.constant 0 : i32
    %c0_i32_0 = arith.constant 0 : i32
    %c0_i32_1 = arith.constant 0 : i32
    return %arg0, %c0_i32, %c0_i32_0 : i32, i32, i32
  }
  func.func @transform_20(%arg0: i32) -> (i32, i32, i32) {
    %c0_i32 = arith.constant 0 : i32
    %c0_i32_0 = arith.constant 0 : i32
    %c0_i32_1 = arith.constant 0 : i32
    return %arg0, %c0_i32, %c0_i32_0 : i32, i32, i32
  }
}

</mosaic_0001>

<bundles_post_ra>
// kernel: _vqmodel_forward_impl.1
= control target key start
LH: loop header
LB: loop body
LE: loop exit
PB: predicated region body
PF: predicated region fallthrough
CT: control target
= control target key end

     0   :  { %s15716_s27 = smov 0   ;;  %s23008_s0 = inlined_call_operand.vmem [shape: f32[2,18,18,3], index: 0, kind: input, shape index: {}]   ;;  %s23009_s1 = inlined_call_operand.vmem [shape: f32[2,1,8], index: 1, kind: input, shape index: {}]   ;;  %s23010_s2 = inlined_call_operand.vmem [shape: f32[27,16], index: 2, kind: input, shape index: {}]   ;;  %s23011_s3 = inlined_call_operand.vmem [shape: f32[1,16], index: 3, kind: input, shape index: {}]   ;;  %s23012_s4 = inlined_call_operand.vmem [shape: f32[144,3], index: 4, kind: input, shape index: {}]   ;;  %s23013_s5 = inlined_call_operand.vmem [shape: f32[72,3], index: 5, kind: input, shape index: {}]   ;;  %s23014_s6 = inlined_call_operand.vmem [shape: f32[27,3], index: 6, kind: input, shape index: {}]   ;;  %s23015_s7 = inlined_call_operand.vmem [shape: f32[1,3], index: 7, kind: input, shape index: {}]   ;;  %s23016_s8 = inlined_call_operand.vmem [shape: f32[3,8], index: 8, kind: input, shape index: {}]   ;;  %s23017_s9 = inlined_call_operand.vmem [shape: f32[1,8], index: 9, kind: input, shape index: {}]   ;;  %s23018_s10 = inlined_call_operand.vmem [shape: f32[16,8], index: 10, kind: input, shape index: {}]   ;;  %s23019_s11 = inlined_call_operand.vmem [shape: f32[8,16], index: 11, kind: input, shape index: {}]   ;;  %s23020_s12 = inlined_call_operand.vmem [shape: f32[8,3], index: 12, kind: input, shape index: {}]   ;;  %s23021_s13 = inlined_call_operand.vmem [shape: f32[1,3], index: 13, kind: input, shape index: {}]   ;;  %s23022_s14 = inlined_call_operand.vmem [shape: f32[27,16], index: 14, kind: input, shape index: {}]   ;;  %s23023_s15 = inlined_call_operand.vmem [shape: f32[1,16], index: 15, kind: input, shape index: {}]   ;;  %s23024_s16 = inlined_call_operand.vmem [shape: f32[16,8], index: 16, kind: input, shape index: {}]   ;;  %s23025_s17 = inlined_call_operand.vmem [shape: f32[1,8], index: 17, kind: input, shape index: {}]   ;;  %s23026_s18 = inlined_call_operand.vmem [shape: f32[2,256,128], index: 18, kind: output, shape index: {0}]   ;;  %s23027_s19 = inlined_call_operand.vmem [shape: f32[2,256,128], index: 19, kind: output, shape index: {1}]   ;;  %s23028_s20 = inlined_call_operand.vmem [shape: f32[2,8,128], index: 20, kind: output, shape index: {2}]  }
   0x1   :  { %23353 = sst [smem:[#allocation141_spill]] %s23008_s0 }
   0x2   :  { %23354 = sst [smem:[#allocation142_spill]] %s23009_s1 }
   0x3   :  { %23355 = sst [smem:[#allocation143_spill]] %s23010_s2 }
   0x4   :  { %23356 = sst [smem:[#allocation144_spill]] %s23011_s3 }
   0x5   :  { %23357 = sst [smem:[#allocation145_spill]] %s23012_s4 }
   0x6 LB: > { %s12531_s28 = sadd.s32 4294967295, %s15606_s27   ;;  %p12535_p0 = scmp.ge.s32.totalorder %s15606_s27, 1  ;;  %s15606_s27 = sphi %s15716_s27, %s31_s27  }
   0x7   : > { %p575_p1 = scmp.lt.s32.totalorder %s15606_s27, 3 }
   0x9   : > { %p576_p2 = pnand %p12535_p0, %p575_p1 }
   0xb   : > { %579 = sbr.rel (%p576_p2) target bundleno = 2310 (0x906), region = 92 }
  0x10   : > { %s23358_s0 = sld [smem:[#allocation143_spill]]  ;;  %vm977_vm0 = vcmask 1040384   ;;  %p645_p3 = scmp.lt.s32.totalorder %s12531_s28, 1  ;;  %vm978_vm1 = vcmask 1041408   ;;  %v15608_v6 = vmov 65535   ;;  %vm791_vm2 = vcmask 1046528  }
  0x11   : > { %v979_v7 = vsel %vm977_vm0, 4294967295, %v15608_v6  ;;  %s23360_s2 = sld [smem:[#allocation141_spill]]  ;;  %vm928_vm3 = vcmask 23552   ;;  %vm1356_vm4 = vcmask 1045504   ;;  %vm3068_vm5 = vcmask 130048  }
  0x12   : > { %s24467_s28 = smov (!%p645_p3, %s12531_s28), 1  ;;  %v15736_v11 = vsel %vm978_vm1, %v979_v7, 0  ;;  %s23441_s12 = sld [smem:[#allocation145_spill]]  ;;  %vm3071_vm6 = vcmask 123904   ;;  %vm5834_vm7 = vcmask 1043456   ;;  %vm3158_vm8 = vcmask 64512  }
  0x13   : > { %s15587_s22 = smul.u32 432, %s24467_s28  ;;  %23359 = vst [vmem:[#allocation5_spill] sm:$0xff] %v15736_v11  ;;  %s23538_s30 = sld [smem:[#allocation144_spill]]  ;;  %vm3161_vm9 = vcmask 58368   ;;  %vm9771_vm10 = vcmask 17408   ;;  %vm15610_vm11 = vmmov 0  }
  0x14   : > { %s23656_s23 = sld [smem:[#allocation142_spill]] }
  0x16   : > { %v722_v0 = vld [vmem:[%s23358_s0] sm:$0xff]  ;;  %v15730_v2 = vld [vmem:[%s23358_s0 + $0x8] sm:$0xff] }
  0x17   : > { %v742_v1 = vpack.c.bf16 %v722_v0, %v722_v0  ;;  %v1485_v3 = vpack.c.bf16 %v15730_v2, %v722_v0  ;;  %s15741_s8 = scalar_lea.vmem %s23360_s2, %s15587_s22  ;;  %v15745_v12 = vpack.c.bf16 %v15730_v2, %v15730_v2  ;;  %s12541_s2 = sshll.u32 %s24467_s28, 3 }
  0x18   : > { %v15748_v14 = vld [vmem:[%s15741_s8] sm:$0xff]  ;;  %v15751_v15 = vld [vmem:[%s15741_s8 + $0x8] sm:$0xff]  ;;  %v15754_v16 = vld [vmem:[%s15741_s8 + $0x10] sm:$0x3]  ;;  %s666_s9 = scalar_lea.vmem %s23028_s20, %s12541_s2 }
  0x19   : > { %v921_v4 = vshrl.u32 %v742_v1, 16  ;;  %v924_v5 = vshll.u32 %v742_v1, 16  ;;  %v1487_v10 = vrot.slane %v1485_v3, 3  ;;  %v792_v17 = vrot.slane %v15748_v14, 1  ;;  %v15760_v20 = vld [vmem:[%s15741_s8 + $0xf0] sm:$0xff]  ;;  %v15763_v21 = vld [vmem:[%s15741_s8 + $0xf8] sm:$0xff] }
  0x1a   : > { %v793_v18 = vrot.slane %v15751_v15, 1  ;;  %v795_v19 = vrot.slane %v15754_v16, 1  ;;  %v1952_v22 = vrot.slane %v15745_v12, 2  ;;  %v15768_v24 = vld [vmem:[%s15741_s8 + $0x100] sm:$0x3]  ;;  %v842_v25 = vrot.slane %v15760_v20, 1  ;;  %s652_s24 = scalar_lea.vmem %s23656_s23, %s24467_s28 }
  0x1b   : > { %v923_v8 = vrot.slane %v921_v4, 1  ;;  %v926_v9 = vrot.slane %v924_v5, 2  ;;  %v15772_v26 = vld [vmem:[%s15741_s8 + $0x18] sm:$0xff]  ;;  %v1537_v27 = vand.u32 %v1487_v10, %v15736_v11  ;;  %v15776_v28 = vand.u32 %v15736_v11, %v742_v1  ;;  %v15783_v33 = vld [vmem:[%s15741_s8 + $0x20] sm:$0xff]  ;;  %v15786_v34 = vld [vmem:[%s15741_s8 + $0x28] sm:$0x3] }
  0x1c   : > { %v794_v29 = vsel %vm791_vm2, %v792_v17, %v793_v18  ;;  %v796_v30 = vsel %vm791_vm2, %v793_v18, %v795_v19  ;;  %v843_v31 = vrot.slane %v15763_v21, 1  ;;  %v845_v32 = vrot.slane %v15768_v24, 1  ;;  %v15789_v35 = vld [vmem:[%s15741_s8 + $0x108] sm:$0xff]  ;;  %v15797_v40 = vld [vmem:[%s15741_s8 + $0x110] sm:$0xff]  ;;  %v15800_v41 = vld [vmem:[%s15741_s8 + $0x118] sm:$0x3] }
  0x1d   : > { %v927_v13 = vor.u32 %v926_v9, %v923_v8  ;;  %v15791_v36 = vpack.c.bf16 %v796_v30, %v794_v29  ;;  %v797_v37 = vrot.slane %v15772_v26, 1  ;;  %v798_v38 = vrot.slane %v15783_v33, 1  ;;  %v15805_v44 = vld [vmem:[%s15741_s8 + $0x30] sm:$0xff]  ;;  %v15808_v45 = vld [vmem:[%s15741_s8 + $0x38] sm:$0xff]  ;;  %v15811_v46 = vld [vmem:[%s15741_s8 + $0x40] sm:$0x3] }
  0x1e   : > { %v800_v39 = vrot.slane %v15786_v34, 1  ;;  %v844_v42 = vsel %vm791_vm2, %v842_v25, %v843_v31  ;;  %v846_v43 = vsel %vm791_vm2, %v843_v31, %v845_v32  ;;  %v15815_v48 = vand.u32 %v1952_v22, %v15736_v11  ;;  %v15824_v52 = vld [vmem:[%s15741_s8 + $0x120] sm:$0xff]  ;;  %v15827_v53 = vld [vmem:[%s15741_s8 + $0x128] sm:$0xff]  ;;  %v15830_v54 = vld [vmem:[%s15741_s8 + $0x130] sm:$0x3] }
  0x1f   : > { %v982_v23 = vand.u32 %v15736_v11, %v927_v13  ;;  %23361 = vst [vmem:[#allocation6_spill] sm:$0xff] %v15791_v36  ;;  %14041 = vmatprep.mubr.msk.bf16.mxu0 %vm928_vm3, %v15791_v36  ;;  %v15819_v49 = vpack.c.bf16 %v846_v43, %v844_v42  ;;  %v799_v50 = vsel %vm791_vm2, %v797_v37, %v798_v38  ;;  %v847_v57 = vrot.slane %v15789_v35, 1  ;;  %v15839_v60 = vld [vmem:[%s15741_s8 + $0x48] sm:$0xff]  ;;  %v15849_v1 = vld [vmem:[%s15741_s8 + $0x50] sm:$0xff]  ;;  %v15858_v7 = vld [vmem:[%s15741_s8 + $0x58] sm:$0x3] }
  0x20   : > { %v801_v51 = vsel %vm791_vm2, %v798_v38, %v800_v39  ;;  %v848_v58 = vrot.slane %v15797_v40, 1  ;;  %v850_v59 = vrot.slane %v15800_v41, 1  ;;  %v802_v61 = vrot.slane %v15805_v44, 1  ;;  %v15861_v8 = vld [vmem:[%s15741_s8 + $0x138] sm:$0xff]  ;;  %v15864_v9 = vld [vmem:[%s15741_s8 + $0x140] sm:$0xff]  ;;  %v15889_v32 = vld [vmem:[%s15741_s8 + $0x150] sm:$0xff] }
  0x21   : > { %14039 = vmatprep.subr.bf16.mxu0 %v982_v23  ;;  %15576 = vmatprep.subr.bf16.mxu1 %v982_v23  ;;  %23362 = vst [vmem:[#allocation7_spill] sm:$0xff] %v15819_v49  ;;  %v15833_v56 = vpack.c.bf16 %v801_v51, %v799_v50  ;;  %v803_v62 = vrot.slane %v15808_v45, 1  ;;  %v805_v63 = vrot.slane %v15811_v46, 1  ;;  %v852_v0 = vrot.slane %v15824_v52, 1  ;;  %v15872_v19 = vld [vmem:[%s15741_s8 + $0x148] sm:$0x3] }
  0x22   : > { %14040 = vmatpush3.bf16.msra.mxu0 %v982_v23  ;;  %15577 = vmatpush3.bf16.msra.mxu1 %v982_v23  ;;  %v849_v3 = vsel %vm791_vm2, %v847_v57, %v848_v58  ;;  %v851_v4 = vsel %vm791_vm2, %v848_v58, %v850_v59  ;;  %v853_v5 = vrot.slane %v15827_v53, 1  ;;  %v855_v6 = vrot.slane %v15830_v54, 1  ;;  %v15875_v22 = vld [vmem:[%s15741_s8 + $0x60] sm:$0xff]  ;;  %v15878_v23 = vld [vmem:[%s15741_s8 + $0x68] sm:$0xff]  ;;  %v15886_v31 = vld [vmem:[%s15741_s8 + $0x70] sm:$0x3] }
  0x23   : > { %14107 = vmatprep.subr.bf16.mxu0 %v1537_v27  ;;  %23363 = vst [vmem:[#allocation8_spill] sm:$0xff] %v15833_v56  ;;  %14073 = vmatprep.subr.bf16.mxu1 %v15776_v28  ;;  %v15866_v10 = vpack.c.bf16 %v851_v4, %v849_v3  ;;  %v804_v13 = vsel %vm791_vm2, %v802_v61, %v803_v62  ;;  %v807_v18 = vrot.slane %v15839_v60, 1  ;;  %v810_v38 = vrot.slane %v15858_v7, 1  ;;  %v15900_v43 = vld [vmem:[%s15741_s8 + $0x158] sm:$0xff]  ;;  %v15909_v59 = vld [vmem:[%s15741_s8 + $0x160] sm:$0x3] }
  0x24   : > { %14061 = vmatprep.mubr.msk.bf16.mxu1 %vm928_vm3, %v15819_v49  ;;  %v806_v17 = vsel %vm791_vm2, %v803_v62, %v805_v63  ;;  %v854_v29 = vsel %vm791_vm2, %v852_v0, %v853_v5  ;;  %v856_v30 = vsel %vm791_vm2, %v853_v5, %v855_v6  ;;  %v857_v39 = vrot.slane %v15861_v8, 1  ;;  %v15913_v61 = vld [vmem:[%s15741_s8 + $0x78] sm:$0xff]  ;;  %v15922_v4 = vld [vmem:[%s15741_s8 + $0x80] sm:$0xff]  ;;  %v15925_v5 = vld [vmem:[%s15741_s8 + $0x88] sm:$0x3] }
  0x25   : > { %14042 = vmatmul.mubr.msk.bf16.vlgmr.msra.gmra.mxu0 %vm928_vm3, %v15833_v56  ;;  %23364 = vst [vmem:[#allocation9_spill] sm:$0xff] %v15866_v10  ;;  %v15880_v25 = vpack.c.bf16 %v806_v17, %v804_v13  ;;  %14062 = vmatmul.mubr.msk.bf16.vlgmr.msra.gmra.mxu1 %vm928_vm3, %v15866_v10  ;;  %v15894_v37 = vpack.c.bf16 %v856_v30, %v854_v29  ;;  %v858_v42 = vrot.slane %v15864_v9, 1  ;;  %v860_v51 = vrot.slane %v15872_v19, 1  ;;  %v15936_v29 = vld [vmem:[%s15741_s8 + $0x170] sm:$0xff]  ;;  %v15939_v30 = vld [vmem:[%s15741_s8 + $0x178] sm:$0x3] }
  0x26   : > { %14108 = vmatpush3.bf16.msra.mxu0 %v1537_v27  ;;  %v808_v27 = vrot.slane %v15849_v1, 1  ;;  %v812_v57 = vrot.slane %v15875_v22, 1  ;;  %v813_v58 = vrot.slane %v15878_v23, 1  ;;  %14074 = vmatpush3.bf16.msra.mxu1 %v15776_v28  ;;  %v815_v0 = vrot.slane %v15886_v31, 1  ;;  %23367 = vst [vmem:[#allocation12_spill] sm:$0xff] %v15925_v5  ;;  %23369 = vst [vmem:[#allocation14_spill] sm:$0xff] %v15939_v30 }
  0x27   : > { %23365 = vst [vmem:[#allocation10_spill] sm:$0xff] %v15880_v25  ;;  %14175 = vmatprep.subr.bf16.mxu0 %v15815_v48  ;;  %23366 = vst [vmem:[#allocation11_spill] sm:$0xff] %v15894_v37  ;;  %14045 = vmatprep.mubr.msk.bf16.mxu0 %vm928_vm3, %v15880_v25  ;;  %v859_v63 = vsel %vm791_vm2, %v857_v39, %v858_v42  ;;  %v862_v3 = vrot.slane %v15889_v32, 1  ;;  %v861_v28 = vsel %vm791_vm2, %v858_v42, %v860_v51  ;;  %v15964_v47 = vld [vmem:[%s15741_s8 + $0xa0] sm:$0x3] }
  0x28   : > { %v809_v50 = vsel %vm791_vm2, %v807_v18, %v808_v27  ;;  %14065 = vmatprep.mubr.msk.bf16.mxu1 %vm928_vm3, %v15894_v37  ;;  %v811_v62 = vsel %vm791_vm2, %v808_v27, %v810_v38  ;;  %v814_v13 = vsel %vm791_vm2, %v812_v57, %v813_v58  ;;  %v863_v17 = vrot.slane %v15900_v43, 1  ;;  %v15933_v18 = vld [vmem:[%s15741_s8 + $0x168] sm:$0xff]  ;;  %v15977_v37 = vld [vmem:[%s15741_s8 + $0xb0] sm:$0xff]  ;;  %v15980_v10 = vld [vmem:[%s15741_s8 + $0xb8] sm:$0x3] }
  0x29   : > { %v15927_v6 = vpack.c.bf16 %v811_v62, %v809_v50  ;;  %v15941_v27 = vpack.c.bf16 %v861_v28, %v859_v63  ;;  %v816_v38 = vsel %vm791_vm2, %v813_v58, %v815_v0  ;;  %v865_v39 = vrot.slane %v15909_v59, 1  ;;  %v15947_v50 = vld [vmem:[%s15741_s8 + $0x90] sm:$0xff]  ;;  %v15957_v63 = vld [vmem:[%s15741_s8 + $0x98] sm:$0xff]  ;;  %23373 = vst [vmem:[#allocation18_spill] sm:$0xff] %v15980_v10 }
  0x2a   : > { %v817_v42 = vrot.slane %v15913_v61, 1  ;;  %v15951_v51 = vpack.c.bf16 %v816_v38, %v814_v13  ;;  %v864_v57 = vsel %vm791_vm2, %v862_v3, %v863_v17  ;;  %v818_v62 = vrot.slane %v15922_v4, 1 }
  0x2b   : > { %23368 = vst [vmem:[#allocation13_spill] sm:$0xff] %v15927_v6  ;;  %23370 = vst [vmem:[#allocation15_spill] sm:$0xff] %v15941_v27  ;;  %v820_v58 = vrot.slane %v15925_v5, 1  ;;  %v866_v0 = vsel %vm791_vm2, %v863_v17, %v865_v39  ;;  %v867_v28 = vrot.slane %v15933_v18, 1  ;;  %v868_v13 = vrot.slane %v15936_v29, 1  ;;  %v15974_v39 = vld [vmem:[%s15741_s8 + $0xa8] sm:$0xff] }
  0x2c   : > { %23371 = vst [vmem:[#allocation16_spill] sm:$0xff] %v15951_v51  ;;  %v870_v38 = vrot.slane %v15939_v30, 1  ;;  %v15968_v3 = vpack.c.bf16 %v866_v0, %v864_v57  ;;  %v819_v55 = vsel %vm791_vm2, %v817_v42, %v818_v62  ;;  %v822_v17 = vrot.slane %v15947_v50, 1  ;;  %v15989_v57 = vld [vmem:[%s15741_s8 + $0xc8] sm:$0xff]  ;;  %v15992_v42 = vld [vmem:[%s15741_s8 + $0xd0] sm:$0x3] }
  0x2d   : > { %14046 = vmatmul.mubr.msk.bf16.gmra.mxu0 %vm928_vm3, %v15927_v6  ;;  %v821_v36 = vsel %vm791_vm2, %v818_v62, %v820_v58  ;;  %14066 = vmatmul.mubr.msk.bf16.gmra.mxu1 %vm928_vm3, %v15941_v27  ;;  %v823_v49 = vrot.slane %v15957_v63, 1  ;;  %23374 = vst [vmem:[#allocation19_spill] sm:$0xff] %v15989_v57  ;;  %23375 = vst [vmem:[#allocation20_spill] sm:$0xff] %v15992_v42  ;;  %v23376_v62 = vshll.u32 %v15745_v12, 16  ;;  %v825_v25 = vrot.slane %v15964_v47, 1 }
  0x2e   : > { %14049 = vmatprep.mubr.msk.bf16.mxu0 %vm928_vm3, %v15951_v51  ;;  %23372 = vst [vmem:[#allocation17_spill] sm:$0xff] %v15968_v3  ;;  %v15986_v51 = vld [vmem:[%s15741_s8 + $0xc0] sm:$0xff]  ;;  %14069 = vmatprep.mubr.msk.bf16.mxu1 %vm928_vm3, %v15968_v3  ;;  %v15998_v0 = vpack.c.bf16 %v821_v36, %v819_v55  ;;  %v869_v6 = vsel %vm791_vm2, %v867_v28, %v868_v13  ;;  %v827_v5 = vrot.slane %v15974_v39, 1  ;;  %v830_v30 = vrot.slane %v15980_v10, 1  ;;  %v16022_v10 = vld [vmem:[%s15741_s8 + $0xd8] sm:$0xff] }
  0x2f   : > { %v1739_v58 = vrot.slane %v23376_v62, 1  ;;  %v871_v27 = vsel %vm791_vm2, %v868_v13, %v870_v38  ;;  %v824_v56 = vsel %vm791_vm2, %v822_v17, %v823_v49  ;;  %v828_v62 = vrot.slane %v15977_v37, 1 }
  0x30   : > { %23377 = vst [vmem:[#allocation21_spill] sm:$0xff] %v15998_v0  ;;  %v826_v36 = vsel %vm791_vm2, %v823_v49, %v825_v25  ;;  %v832_v55 = vrot.slane %v15986_v51, 1  ;;  %v833_v28 = vrot.slane %v15989_v57, 1  ;;  %v835_v3 = vrot.slane %v15992_v42, 1  ;;  %v16025_v49 = vld [vmem:[%s15741_s8 + $0xe0] sm:$0xff]  ;;  %v724_v57 = vld [vmem:[%s23358_s0 + $0x10] sm:$0xff] }
  0x31   : > { %v16011_v13 = vpack.c.bf16 %v871_v27, %v869_v6  ;;  %v16013_v38 = vpack.c.bf16 %v826_v36, %v824_v56  ;;  %v16019_v17 = vpack.c.bf16 %v15751_v15, %v15748_v14  ;;  %v16028_v25 = vld [vmem:[%s15741_s8 + $0xe8] sm:$0x3]  ;;  %v829_v6 = vsel %vm791_vm2, %v827_v5, %v828_v62 }
  0x32   : > { %v831_v56 = vsel %vm791_vm2, %v828_v62, %v830_v30  ;;  %v834_v27 = vsel %vm791_vm2, %v832_v55, %v833_v28  ;;  %v836_v36 = vsel %vm791_vm2, %v833_v28, %v835_v3  ;;  %v838_v5 = vrot.slane %v16025_v49, 1 }
  0x33   : > { %23378 = vst [vmem:[#allocation22_spill] sm:$0xff] %v16011_v13  ;;  %23379 = vst [vmem:[#allocation23_spill] sm:$0xff] %v16013_v38  ;;  %v840_v30 = vrot.slane %v16028_v25, 1  ;;  %v16048_v3 = vpack.c.bf16 %v831_v56, %v829_v6  ;;  %v1357_v62 = vrot.slane %v15748_v14, 2  ;;  %v1358_v55 = vrot.slane %v15751_v15, 2 }
  0x34   : > { %23380 = vst [vmem:[#allocation24_spill] sm:$0xff] %v16019_v17  ;;  %v1360_v28 = vrot.slane %v15754_v16, 2  ;;  %v16069_v14 = vpack.c.bf16 %v724_v57, %v724_v57  ;;  %v1362_v15 = vrot.slane %v15772_v26, 2  ;;  %v1363_v16 = vrot.slane %v15783_v33, 2 }
  0x35   : > { %14050 = vmatmul.mubr.msk.bf16.gmra.mxu0 %vm928_vm3, %v15998_v0  ;;  %v23381_v0 = vshrl.u32 %v15745_v12, 16  ;;  %14070 = vmatmul.mubr.msk.bf16.gmra.mxu1 %vm928_vm3, %v16011_v13  ;;  %23382 = vst [vmem:[#allocation25_spill] sm:$0xff] %v16048_v3  ;;  %v16059_v13 = vpack.c.bf16 %v15783_v33, %v15772_v26  ;;  %v841_v56 = vsel %vm791_vm2, %v838_v5, %v840_v30  ;;  %v1367_v26 = vrot.slane %v15805_v44, 2 }
  0x36   : > { %14053 = vmatprep.mubr.msk.bf16.mxu0 %vm928_vm3, %v16013_v38  ;;  %v837_v38 = vrot.slane %v16022_v10, 1  ;;  %14075 = vmatprep.mubr.msk.bf16.mxu1 %vm928_vm3, %v16019_v17  ;;  %v1361_v30 = vsel %vm1356_vm4, %v1358_v55, %v1360_v28  ;;  %v1368_v33 = vrot.slane %v15808_v45, 2  ;;  %v16115_v17 = vpack.c.bf16 %v15827_v53, %v15824_v52 }
  0x37   : > { %v1740_v42 = vor.u32 %v1739_v58, %v23381_v0  ;;  %v16051_v58 = vpack.c.bf16 %v836_v36, %v834_v27  ;;  %v2160_v0 = vpack.c.bf16 %v724_v57, %v15730_v2  ;;  %23384 = vst [vmem:[#allocation27_spill] sm:$0xff] %v16059_v13  ;;  %v16067_v2 = vpack.c.bf16 %v15808_v45, %v15805_v44 }
  0x38   : > { %v839_v6 = vsel %vm791_vm2, %v837_v38, %v838_v5  ;;  %v1365_v27 = vrot.slane %v15786_v34, 2  ;;  %v1359_v5 = vsel %vm1356_vm4, %v1357_v62, %v1358_v55  ;;  %v1370_v57 = vrot.slane %v15811_v46, 2  ;;  %23392 = vst [vmem:[#allocation35_spill] sm:$0xff] %v16115_v17 }
  0x39   : > { %v1745_v12 = vand.u32 %v1740_v42, %v15736_v11  ;;  %23383 = vst [vmem:[#allocation26_spill] sm:$0xff] %v16051_v58  ;;  %23385 = vst [vmem:[#allocation28_spill] sm:$0xff] %v16067_v2  ;;  %v2162_v42 = vshrl.u32 %v2160_v0, 16  ;;  %v2165_v38 = vshll.u32 %v2160_v0, 16  ;;  %v16076_v36 = vpack.c.bf16 %v841_v56, %v839_v6 }
  0x3a   : > { %v16087_v0 = vpack.c.bf16 %v15763_v21, %v15760_v20  ;;  %v1372_v34 = vrot.slane %v15839_v60, 2  ;;  %v1373_v62 = vrot.slane %v15849_v1, 2  ;;  %v1375_v55 = vrot.slane %v15858_v7, 2 }
  0x3b   : > { %14141 = vmatprep.subr.bf16.mxu1 %v1745_v12  ;;  %23386 = vst [vmem:[#allocation29_spill] sm:$0xff] %v16076_v36  ;;  %v16096_v44 = vpack.c.bf16 %v15797_v40, %v15789_v35  ;;  %v16100_v45 = vpack.c.bf16 %v15849_v1, %v15839_v60  ;;  %v16102_v46 = vpack.c.bf16 %v1361_v30, %v1359_v5  ;;  %v16104_v28 = vrot.slane %v2162_v42, 3 }
  0x3c   : > { %23387 = vst [vmem:[#allocation30_spill] sm:$0xff] %v16087_v0  ;;  %v16109_v6 = vpack.c.bf16 %v15878_v23, %v15875_v22  ;;  %v1364_v7 = vsel %vm1356_vm4, %v1362_v15, %v1363_v16  ;;  %v1366_v56 = vsel %vm1356_vm4, %v1363_v16, %v1365_v27  ;;  %v1369_v60 = vsel %vm1356_vm4, %v1367_v26, %v1368_v33 }
  0x3d   : > { %14054 = vmatmul.mubr.msk.bf16.gmra.mxu0 %vm928_vm3, %v16048_v3  ;;  %14076 = vmatmul.mubr.msk.bf16.vlgmr.msra.gmra.mxu1 %vm928_vm3, %v16059_v13  ;;  %23388 = vst [vmem:[#allocation31_spill] sm:$0xff] %v16096_v44  ;;  %23389 = vst [vmem:[#allocation32_spill] sm:$0xff] %v16100_v45  ;;  %v1371_v1 = vsel %vm1356_vm4, %v1368_v33, %v1370_v57  ;;  %v1377_v42 = vrot.slane %v15875_v22, 2  ;;  %v1378_v5 = vrot.slane %v15878_v23, 2  ;;  %v1380_v16 = vrot.slane %v15886_v31, 2 }
  0x3e   : > { %14057 = vmatprep.mubr.msk.bf16.mxu0 %vm928_vm3, %v16051_v58  ;;  %14079 = vmatprep.mubr.msk.bf16.mxu1 %vm928_vm3, %v16067_v2  ;;  %23390 = vst [vmem:[#allocation33_spill] sm:$0xff] %v16102_v46  ;;  %23391 = vst [vmem:[#allocation34_spill] sm:$0xff] %v16109_v6  ;;  %v1374_v30 = vsel %vm1356_vm4, %v1372_v34, %v1373_v62  ;;  %v1376_v15 = vsel %vm1356_vm4, %v1373_v62, %v1375_v55  ;;  %v2167_v33 = vrot.slane %v2165_v38, 4 }
  0x3f   : > { %14142 = vmatpush3.bf16.msra.mxu1 %v1745_v12  ;;  %v16128_v27 = vpack.c.bf16 %v15864_v9, %v15861_v8  ;;  %v16134_v22 = vpack.c.bf16 %v15922_v4, %v15913_v61  ;;  %v16136_v23 = vpack.c.bf16 %v1366_v56, %v1364_v7  ;;  %v16140_v26 = vpack.c.bf16 %v15900_v43, %v15889_v32 }
  0x40   : > { %v16144_v31 = vpack.c.bf16 %v15957_v63, %v15947_v50  ;;  %v16146_v57 = vpack.c.bf16 %v1371_v1, %v1369_v60  ;;  %v1407_v34 = vrot.slane %v15760_v20, 2  ;;  %v1408_v62 = vrot.slane %v15763_v21, 2 }
  0x41   : > { %23393 = vst [vmem:[#allocation36_spill] sm:$0xff] %v16128_v27  ;;  %23394 = vst [vmem:[#allocation37_spill] sm:$0xff] %v16134_v22  ;;  %v16152_v55 = vpack.c.bf16 %v1376_v15, %v1374_v30  ;;  %v1379_v7 = vsel %vm1356_vm4, %v1377_v42, %v1378_v5  ;;  %v1382_v56 = vrot.slane %v15913_v61, 2  ;;  %v1410_v38 = vrot.slane %v15768_v24, 2 }
  0x42   : > { %23395 = vst [vmem:[#allocation38_spill] sm:$0xff] %v16136_v23  ;;  %23396 = vst [vmem:[#allocation39_spill] sm:$0xff] %v16140_v26  ;;  %v1381_v60 = vsel %vm1356_vm4, %v1378_v5, %v1380_v16  ;;  %v1409_v20 = vsel %vm1356_vm4, %v1407_v34, %v1408_v62  ;;  %v16163_v21 = vpack.c.bf16 %v15936_v29, %v15933_v18  ;;  %v1412_v1 = vrot.slane %v15789_v35, 2 }
  0x43   : > { %23397 = vst [vmem:[#allocation40_spill] sm:$0xff] %v16144_v31  ;;  %23398 = vst [vmem:[#allocation41_spill] sm:$0xff] %v16146_v57  ;;  %v1411_v30 = vsel %vm1356_vm4, %v1408_v62, %v1410_v38  ;;  %v1413_v42 = vrot.slane %v15797_v40, 2  ;;  %v1415_v61 = vrot.slane %v15800_v41, 2  ;;  %v1417_v24 = vrot.slane %v15824_v52, 2 }
  0x44   : > { %23399 = vst [vmem:[#allocation42_spill] sm:$0xff] %v16152_v55  ;;  %23400 = vst [vmem:[#allocation43_spill] sm:$0xff] %v16163_v21  ;;  %v16170_v15 = vpack.c.bf16 %v1411_v30, %v1409_v20  ;;  %v1418_v5 = vrot.slane %v15827_v53, 2  ;;  %v1420_v16 = vrot.slane %v15830_v54, 2  ;;  %v1422_v34 = vrot.slane %v15861_v8, 2  ;;  %v23405_v30 = vld [vmem:[#allocation14_spill] sm:$0xff] }
  0x45   : > { %14058 = vmatmul.mubr.msk.bf16.gmra.mxu0 %vm928_vm3, %v16076_v36  ;;  %14080 = vmatmul.mubr.msk.bf16.gmra.mxu1 %vm928_vm3, %v16100_v45  ;;  %v1414_v12 = vsel %vm1356_vm4, %v1412_v1, %v1413_v42  ;;  %v1416_v35 = vsel %vm1356_vm4, %v1413_v42, %v1415_v61  ;;  %v1423_v62 = vrot.slane %v15864_v9, 2  ;;  %v1425_v40 = vrot.slane %v15872_v19, 2 }
  0x46   : > { %14109 = vmatprep.mubr.msk.bf16.mxu0 %vm928_vm3, %v16102_v46  ;;  %14083 = vmatprep.mubr.msk.bf16.mxu1 %vm928_vm3, %v16109_v6  ;;  %23401 = vst [vmem:[#allocation44_spill] sm:$0xff] %v16170_v15  ;;  %v16181_v41 = vpack.c.bf16 %v1416_v35, %v1414_v12  ;;  %v1419_v52 = vsel %vm1356_vm4, %v1417_v24, %v1418_v5  ;;  %v1427_v54 = vrot.slane %v15889_v32, 2  ;;  %v1428_v12 = vrot.slane %v15900_v43, 2 }
  0x47   : > { %v1421_v53 = vsel %vm1356_vm4, %v1418_v5, %v1420_v16  ;;  %v1424_v9 = vsel %vm1356_vm4, %v1422_v34, %v1423_v62  ;;  %v1426_v19 = vsel %vm1356_vm4, %v1423_v62, %v1425_v40  ;;  %v1430_v20 = vrot.slane %v15909_v59, 2  ;;  %v23408_v16 = vld [vmem:[#allocation12_spill] sm:$0xff] }
  0x48   : > { %23402 = vst [vmem:[#allocation45_spill] sm:$0xff] %v16181_v41  ;;  %v16189_v8 = vpack.c.bf16 %v1421_v53, %v1419_v52  ;;  %v16194_v38 = vpack.c.bf16 %v1426_v19, %v1424_v9  ;;  %v1432_v1 = vrot.slane %v15933_v18, 2  ;;  %v1433_v32 = vrot.slane %v15936_v29, 2  ;;  %v23412_v52 = vld [vmem:[#allocation19_spill] sm:$0xff] }
  0x49   : > { %v1435_v42 = vrot.slane %v23405_v30, 2  ;;  %v2168_v61 = vor.u32 %v2167_v33, %v16104_v28  ;;  %v23406_v43 = vrot.slane %v16069_v14, 1  ;;  %v16211_v59 = vpack.c.bf16 %v1381_v60, %v1379_v7  ;;  %v23417_v30 = vld [vmem:[#allocation20_spill] sm:$0xff] }
  0x4a   : > { %23403 = vst [vmem:[#allocation46_spill] sm:$0xff] %v16189_v8  ;;  %23404 = vst [vmem:[#allocation47_spill] sm:$0xff] %v16194_v38  ;;  %v1383_v18 = vrot.slane %v15922_v4, 2  ;;  %v1431_v29 = vsel %vm1356_vm4, %v1428_v12, %v1430_v20  ;;  %v1434_v5 = vsel %vm1356_vm4, %v1432_v1, %v1433_v32  ;;  %v1385_v34 = vrot.slane %v23408_v16, 2  ;;  %v23416_v20 = vld [vmem:[#allocation18_spill] sm:$0xff] }
  0x4b   : > { %v16207_v24 = vand.u32 %v23406_v43, %v15736_v11  ;;  %23407 = vst [vmem:[#allocation14_spill] sm:$0xff] %v16211_v59  ;;  %v1436_v28 = vsel %vm1356_vm4, %v1433_v32, %v1435_v42  ;;  %v16221_v33 = vand.u32 %v2168_v61, %v15736_v11  ;;  %v1387_v7 = vrot.slane %v15947_v50, 2 }
  0x4c   : > { %v1388_v60 = vrot.slane %v15957_v63, 2  ;;  %v1390_v4 = vrot.slane %v15964_v47, 2  ;;  %v16227_v62 = vpack.c.bf16 %v1436_v28, %v1434_v5  ;;  %v16231_v40 = vpack.c.bf16 %v15977_v37, %v15974_v39 }
  0x4d   : > { %14110 = vmatmul.mubr.msk.bf16.vlgmr.msra.gmra.mxu0 %vm928_vm3, %v16136_v23  ;;  %14084 = vmatmul.mubr.msk.bf16.gmra.mxu1 %vm928_vm3, %v16134_v22  ;;  %v16238_v53 = vpack.c.bf16 %v23412_v52, %v15986_v51  ;;  %v1384_v47 = vsel %vm1356_vm4, %v1382_v56, %v1383_v18  ;;  %v1386_v50 = vsel %vm1356_vm4, %v1383_v18, %v1385_v34  ;;  %v1393_v56 = vrot.slane %v15977_v37, 2 }
  0x4e   : > { %14176 = vmatpush3.bf16.msra.mxu0 %v15815_v48  ;;  %14113 = vmatprep.mubr.msk.bf16.mxu0 %vm928_vm3, %v16146_v57  ;;  %v1429_v48 = vsel %vm1356_vm4, %v1427_v54, %v1428_v12  ;;  %23410 = vst [vmem:[#allocation48_spill] sm:$0xff] %v16227_v62  ;;  %23411 = vst [vmem:[#allocation49_spill] sm:$0xff] %v16231_v40  ;;  %v1389_v63 = vsel %vm1356_vm4, %v1387_v7, %v1388_v60  ;;  %v1392_v12 = vrot.slane %v15974_v39, 2 }
  0x4f   : > { %14087 = vmatprep.mubr.msk.bf16.mxu1 %vm928_vm3, %v16144_v31  ;;  %v16217_v35 = vpack.c.bf16 %v1431_v29, %v1429_v48  ;;  %14243 = vmatprep.subr.bf16.mxu0 %v16207_v24  ;;  %23413 = vst [vmem:[#allocation19_spill] sm:$0xff] %v16238_v53  ;;  %v1391_v54 = vsel %vm1356_vm4, %v1388_v60, %v1390_v4  ;;  %v1395_v1 = vrot.slane %v23416_v20, 2  ;;  %v1397_v32 = vrot.slane %v15986_v51, 2  ;;  %v23426_v20 = vld [vmem:[#allocation21_spill] sm:$0xff] }
  0x50   : > { %14209 = vmatprep.subr.bf16.mxu1 %v16221_v33  ;;  %v16250_v9 = vpack.c.bf16 %v1386_v50, %v1384_v47  ;;  %v16252_v19 = vpack.c.bf16 %v1391_v54, %v1389_v63  ;;  %v1398_v48 = vrot.slane %v23412_v52, 2  ;;  %v1400_v42 = vrot.slane %v23417_v30, 2  ;;  %v725_v47 = vld [vmem:[%s23358_s0 + $0x18] sm:$0x7]  ;;  %v23422_v50 = vld [vmem:[#allocation8_spill] sm:$0xff] }
  0x51   : > { %23409 = vst [vmem:[#allocation12_spill] sm:$0xff] %v16217_v35  ;;  %v16262_v61 = vpack.c.bf16 %v16025_v49, %v16022_v10  ;;  %v1394_v37 = vsel %vm1356_vm4, %v1392_v12, %v1393_v56  ;;  %v1396_v39 = vsel %vm1356_vm4, %v1393_v56, %v1395_v1  ;;  %v1402_v5 = vrot.slane %v16022_v10, 2  ;;  %v23423_v54 = vld [vmem:[#allocation10_spill] sm:$0xff]  ;;  %v23424_v12 = vld [vmem:[#allocation13_spill] sm:$0xff]  ;;  %v23425_v56 = vld [vmem:[#allocation16_spill] sm:$0xff] }
  0x52   : > { %23414 = vst [vmem:[#allocation50_spill] sm:$0xff] %v16250_v9  ;;  %23415 = vst [vmem:[#allocation51_spill] sm:$0xff] %v16252_v19  ;;  %v1399_v51 = vsel %vm1356_vm4, %v1397_v32, %v1398_v48  ;;  %v1401_v43 = vsel %vm1356_vm4, %v1398_v48, %v1400_v42  ;;  %v16276_v18 = vpack.c.bf16 %v1396_v39, %v1394_v37  ;;  %v1403_v16 = vrot.slane %v16025_v49, 2  ;;  %v23428_v1 = vld [vmem:[#allocation7_spill] sm:$0xff]  ;;  %v23429_v32 = vld [vmem:[#allocation9_spill] sm:$0xff] }
  0x53   : > { %23418 = vst [vmem:[#allocation18_spill] sm:$0xff] %v16262_v61  ;;  %v16278_v29 = vpack.c.bf16 %v1401_v43, %v1399_v51  ;;  %v1405_v34 = vrot.slane %v16028_v25, 2  ;;  %v2583_v49 = vshrl.u32 %v16069_v14, 16  ;;  %v2586_v25 = vshll.u32 %v16069_v14, 16  ;;  %v716_v48 = vld [vmem:[%s15741_s8 + $0x180] sm:$0xff]  ;;  %v717_v30 = vld [vmem:[%s15741_s8 + $0x188] sm:$0xff] }
  0x54   : > { %23419 = vst [vmem:[#allocation20_spill] sm:$0xff] %v16276_v18  ;;  %v1404_v28 = vsel %vm1356_vm4, %v1402_v5, %v1403_v16  ;;  %v2797_v63 = vpack.c.bf16 %v725_v47, %v725_v47  ;;  %v16378_v42 = vpack.c.bf16 %v717_v30, %v716_v48  ;;  %v23431_v37 = vld [vmem:[#allocation11_spill] sm:$0xff]  ;;  %v718_v51 = vld [vmem:[%s15741_s8 + $0x190] sm:$0x3]  ;;  %v1943_v43 = vrot.slane %v716_v48, 1 }
  0x55   : > { %14114 = vmatmul.mubr.msk.bf16.gmra.mxu0 %vm928_vm3, %v16152_v55  ;;  %14088 = vmatmul.mubr.msk.bf16.gmra.mxu1 %vm928_vm3, %v16231_v40  ;;  %23420 = vst [vmem:[#allocation52_spill] sm:$0xff] %v16278_v29  ;;  %v1406_v7 = vsel %vm1356_vm4, %v1403_v16, %v1405_v34  ;;  %v2585_v60 = vrot.slane %v2583_v49, 2  ;;  %v2588_v4 = vrot.slane %v2586_v25, 3  ;;  %v23432_v39 = vld [vmem:[#allocation15_spill] sm:$0xff]  ;;  %v1944_v5 = vrot.slane %v717_v30, 1  ;;  %v23433_v34 = vld [vmem:[#allocation17_spill] sm:$0xff] }
  0x56   : > { %14117 = vmatprep.mubr.msk.bf16.mxu0 %vm928_vm3, %v16211_v59  ;;  %14091 = vmatprep.mubr.msk.bf16.mxu1 %vm928_vm3, %v16238_v53  ;;  %v16293_v10 = vpack.c.bf16 %v1406_v7, %v1404_v28  ;;  %23430 = vst [vmem:[#allocation54_spill] sm:$0xff] %v16378_v42  ;;  %v1946_v16 = vrot.slane %v718_v51, 1  ;;  %v23434_v28 = vld [vmem:[#allocation22_spill] sm:$0xff] }
  0x57   : > { %v2589_v52 = vor.u32 %v2588_v4, %v2585_v60  ;;  %v1945_v7 = vsel %vm791_vm2, %v1943_v43, %v1944_v5  ;;  %v2152_v43 = vrot.slane %v716_v48, 2 }
  0x58   : > { %23421 = vst [vmem:[#allocation53_spill] sm:$0xff] %v16293_v10  ;;  %v1947_v49 = vsel %vm791_vm2, %v1944_v5, %v1946_v16  ;;  %v2153_v5 = vrot.slane %v717_v30, 2 }
  0x59   : > { %v2594_v14 = vand.u32 %v2589_v52, %v15736_v11  ;;  %v16399_v25 = vpack.c.bf16 %v1947_v49, %v1945_v7  ;;  %v2155_v7 = vrot.slane %v718_v51, 2 }
  0x5a   : > { %v2154_v48 = vsel %vm1356_vm4, %v2152_v43, %v2153_v5 }
  0x5b   : > { %23435 = vst [vmem:[#allocation55_spill] sm:$0xff] %v16399_v25  ;;  %v2156_v30 = vsel %vm1356_vm4, %v2153_v5, %v2155_v7 }
  0x5d   : > { %14118 = vmatmul.mubr.msk.bf16.gmra.mxu0 %vm928_vm3, %v16250_v9  ;;  %14092 = vmatmul.mubr.msk.bf16.gmra.mxu1 %vm928_vm3, %v16262_v61 }
  0x5e   : > { %14121 = vmatprep.mubr.msk.bf16.mxu0 %vm928_vm3, %v16252_v19  ;;  %14095 = vmatprep.mubr.msk.bf16.mxu1 %vm928_vm3, %v16087_v0 }
  0x65   : > { %14122 = vmatmul.mubr.msk.bf16.gmra.mxu0 %vm928_vm3, %v16276_v18  ;;  %14096 = vmatmul.mubr.msk.bf16.gmra.mxu1 %vm928_vm3, %v16096_v44 }
  0x66   : > { %14125 = vmatprep.mubr.msk.bf16.mxu0 %vm928_vm3, %v16278_v29  ;;  %14099 = vmatprep.mubr.msk.bf16.mxu1 %vm928_vm3, %v16115_v17 }
  0x6d   : > { %14126 = vmatmul.mubr.msk.bf16.gmra.mxu0 %vm928_vm3, %v16293_v10  ;;  %14100 = vmatmul.mubr.msk.bf16.gmra.mxu1 %vm928_vm3, %v16128_v27 }
  0x6e   : > { %14129 = vmatprep.mubr.msk.bf16.mxu0 %vm928_vm3, %v16170_v15  ;;  %14103 = vmatprep.mubr.msk.bf16.mxu1 %vm928_vm3, %v16140_v26 }
  0x75   : > { %14130 = vmatmul.mubr.msk.bf16.gmra.mxu0 %vm928_vm3, %v16181_v41  ;;  %14104 = vmatmul.mubr.msk.bf16.gmra.mxu1 %vm928_vm3, %v16163_v21 }
  0x76   : > { %14133 = vmatprep.mubr.msk.bf16.mxu0 %vm928_vm3, %v16189_v8  ;;  %14143 = vmatprep.mubr.msk.bf16.mxu1 %vm928_vm3, %v16059_v13 }
  0x7d   : > { %14134 = vmatmul.mubr.msk.bf16.gmra.mxu0 %vm928_vm3, %v16194_v38  ;;  %14144 = vmatmul.mubr.msk.bf16.vlgmr.msra.gmra.mxu1 %vm928_vm3, %v16067_v2 }
  0x7e   : > { %14137 = vmatprep.mubr.msk.bf16.mxu0 %vm928_vm3, %v16217_v35  ;;  %14147 = vmatprep.mubr.msk.bf16.mxu1 %vm928_vm3, %v16100_v45 }
  0x7f   : > { %14210 = vmatpush3.bf16.msra.mxu1 %v16221_v33  ;;  %v2802_v33 = vand.u32 %v2797_v63, %v15736_v11 }
  0x80   : > { %14277 = vmatprep.subr.bf16.mxu1 %v2594_v14 }
  0x85   : > { %14138 = vmatmul.mubr.msk.bf16.gmra.mxu0 %vm928_vm3, %v16227_v62  ;;  %14148 = vmatmul.mubr.msk.bf16.gmra.mxu1 %vm928_vm3, %v16109_v6 }
  0x86   : > { %14177 = vmatprep.mubr.msk.bf16.mxu0 %vm928_vm3, %v23422_v50  ;;  %14151 = vmatprep.mubr.msk.bf16.mxu1 %vm928_vm3, %v16134_v22 }
  0x8d   : > { %14178 = vmatmul.mubr.msk.bf16.vlgmr.msra.gmra.mxu0 %vm928_vm3, %v23423_v54  ;;  %14152 = vmatmul.mubr.msk.bf16.gmra.mxu1 %vm928_vm3, %v16144_v31 }
  0x8e   : > { %14244 = vmatpush3.bf16.msra.mxu0 %v16207_v24  ;;  %14181 = vmatprep.mubr.msk.bf16.mxu0 %vm928_vm3, %v23424_v12  ;;  %v23427_v24 = vld [vmem:[#allocation23_spill] sm:$0xff] }
  0x8f   : > { %14311 = vmatprep.subr.bf16.mxu0 %v2802_v33  ;;  %14155 = vmatprep.mubr.msk.bf16.mxu1 %vm928_vm3, %v16231_v40 }
  0x95   : > { %14182 = vmatmul.mubr.msk.bf16.gmra.mxu0 %vm928_vm3, %v23425_v56  ;;  %14156 = vmatmul.mubr.msk.bf16.gmra.mxu1 %vm928_vm3, %v16238_v53 }
  0x96   : > { %14185 = vmatprep.mubr.msk.bf16.mxu0 %vm928_vm3, %v23426_v20  ;;  %14159 = vmatprep.mubr.msk.bf16.mxu1 %vm928_vm3, %v16262_v61 }
  0x9d   : > { %14186 = vmatmul.mubr.msk.bf16.gmra.mxu0 %vm928_vm3, %v23427_v24  ;;  %14160 = vmatmul.mubr.msk.bf16.gmra.mxu1 %vm928_vm3, %v16087_v0 }
  0x9e   : > { %14189 = vmatprep.mubr.msk.bf16.mxu0 %vm928_vm3, %v16048_v3  ;;  %14163 = vmatprep.mubr.msk.bf16.mxu1 %vm928_vm3, %v16096_v44 }
  0xa5   : > { %14190 = vmatmul.mubr.msk.bf16.gmra.mxu0 %vm928_vm3, %v16051_v58  ;;  %14164 = vmatmul.mubr.msk.bf16.gmra.mxu1 %vm928_vm3, %v16115_v17 }
  0xa6   : > { %14193 = vmatprep.mubr.msk.bf16.mxu0 %vm928_vm3, %v16076_v36  ;;  %14167 = vmatprep.mubr.msk.bf16.mxu1 %vm928_vm3, %v16128_v27 }
  0xad   : > { %14194 = vmatmul.mubr.msk.bf16.gmra.mxu0 %vm928_vm3, %v23428_v1  ;;  %14168 = vmatmul.mubr.msk.bf16.gmra.mxu1 %vm928_vm3, %v16140_v26 }
  0xae   : > { %14197 = vmatprep.mubr.msk.bf16.mxu0 %vm928_vm3, %v23429_v32  ;;  %14171 = vmatprep.mubr.msk.bf16.mxu1 %vm928_vm3, %v16163_v21 }
  0xb5   : > { %14198 = vmatmul.mubr.msk.bf16.gmra.mxu0 %vm928_vm3, %v23431_v37  ;;  %14172 = vmatmul.mubr.msk.bf16.gmra.mxu1 %vm928_vm3, %v16378_v42 }
  0xb6   : > { %14201 = vmatprep.mubr.msk.bf16.mxu0 %vm928_vm3, %v23432_v39  ;;  %14211 = vmatprep.mubr.msk.bf16.mxu1 %vm928_vm3, %v16136_v23 }
  0xbd   : > { %14202 = vmatmul.mubr.msk.bf16.gmra.mxu0 %vm928_vm3, %v23433_v34  ;;  %14212 = vmatmul.mubr.msk.bf16.vlgmr.msra.gmra.mxu1 %vm928_vm3, %v16146_v57 }
  0xbe   : > { %14205 = vmatprep.mubr.msk.bf16.mxu0 %vm928_vm3, %v23434_v28  ;;  %14215 = vmatprep.mubr.msk.bf16.mxu1 %vm928_vm3, %v16152_v55 }
  0xbf   : > { %14278 = vmatpush3.bf16.msra.mxu1 %v2594_v14 }
  0xc5   : > { %14206 = vmatmul.mubr.msk.bf16.gmra.mxu0 %vm928_vm3, %v16399_v25  ;;  %14216 = vmatmul.mubr.msk.bf16.gmra.mxu1 %vm928_vm3, %v16211_v59 }
  0xc6   : > { %14245 = vmatprep.mubr.msk.bf16.mxu0 %vm928_vm3, %v16067_v2  ;;  %14219 = vmatprep.mubr.msk.bf16.mxu1 %vm928_vm3, %v16250_v9 }
  0xcd   : > { %14246 = vmatmul.mubr.msk.bf16.vlgmr.msra.gmra.mxu0 %vm928_vm3, %v16100_v45  ;;  %14220 = vmatmul.mubr.msk.bf16.gmra.mxu1 %vm928_vm3, %v16252_v19 }
  0xce   : > { %14312 = vmatpush3.bf16.msra.mxu0 %v2802_v33  ;;  %14249 = vmatprep.mubr.msk.bf16.mxu0 %vm928_vm3, %v16109_v6  ;;  %v16495_v6 = vld [vmem:[%s15741_s8 + $0x1a0] sm:$0xff] }
  0xcf   : > { %14223 = vmatprep.mubr.msk.bf16.mxu1 %vm928_vm3, %v16276_v18 }
  0xd5   : > { %14250 = vmatmul.mubr.msk.bf16.gmra.mxu0 %vm928_vm3, %v16134_v22  ;;  %14224 = vmatmul.mubr.msk.bf16.gmra.mxu1 %vm928_vm3, %v16278_v29  ;;  %v16492_v22 = vld [vmem:[%s15741_s8 + $0x198] sm:$0xff] }
  0xd6   : > { %14253 = vmatprep.mubr.msk.bf16.mxu0 %vm928_vm3, %v16144_v31  ;;  %14227 = vmatprep.mubr.msk.bf16.mxu1 %vm928_vm3, %v16293_v10 }
  0xdd   : > { %14254 = vmatmul.mubr.msk.bf16.gmra.mxu0 %vm928_vm3, %v16231_v40  ;;  %14228 = vmatmul.mubr.msk.bf16.gmra.mxu1 %vm928_vm3, %v16170_v15 }
  0xde   : > { %14257 = vmatprep.mubr.msk.bf16.mxu0 %vm928_vm3, %v16238_v53  ;;  %14231 = vmatprep.mubr.msk.bf16.mxu1 %vm928_vm3, %v16181_v41 }
  0xe5   : > { %v14043_v60 = vpop.f32.mrf.mxu0  ;;  %14258 = vmatmul.mubr.msk.bf16.gmra.mxu0 %vm928_vm3, %v16262_v61  ;;  %v16437_v52 = vpop.f32.mrf.mxu1  ;;  %14232 = vmatmul.mubr.msk.bf16.gmra.mxu1 %vm928_vm3, %v16189_v8 }
  0xe6   : > { %14261 = vmatprep.mubr.msk.bf16.mxu0 %vm928_vm3, %v16087_v0  ;;  %14235 = vmatprep.mubr.msk.bf16.mxu1 %vm928_vm3, %v16194_v38 }
  0xe7   : > { %v1018_v4 = vpop.f32.mrf.mxu0  ;;  %v16443_v47 = vpop.f32.mrf.mxu1 }
  0xe9   : > { %v14044_v14 = vpop.f32.mrf.mxu0  ;;  %v16445_v33 = vpop.f32.mrf.mxu1 }
  0xeb   : > { %v1021_v63 = vpop.f32.mrf.mxu0  ;;  %v16449_v49 = vpop.f32.mrf.mxu1 }
  0xec   : > { %23436 = vst [vmem:[#allocation56_spill] sm:$0xff] %v16449_v49 }
  0xed   : > { %v14047_v16 = vpop.f32.mrf.mxu0  ;;  %14262 = vmatmul.mubr.msk.bf16.gmra.mxu0 %vm928_vm3, %v16096_v44  ;;  %v16453_v46 = vpop.f32.mrf.mxu1  ;;  %14236 = vmatmul.mubr.msk.bf16.gmra.mxu1 %vm928_vm3, %v16217_v35 }
  0xee   : > { %14265 = vmatprep.mubr.msk.bf16.mxu0 %vm928_vm3, %v16115_v17  ;;  %14239 = vmatprep.mubr.msk.bf16.mxu1 %vm928_vm3, %v16227_v62  ;;  %v16465_v17 = vpack.c.bf16 %v2156_v30, %v2154_v48 }
  0xef   : > { %v1034_v23 = vpop.f32.mrf.mxu0  ;;  %v16461_v51 = vpop.f32.mrf.mxu1 }
  0xf0   : > { %23437 = vst [vmem:[#allocation57_spill] sm:$0xff] %v16465_v17 }
  0xf1   : > { %v14048_v0 = vpop.f32.mrf.mxu0  ;;  %v16463_v61 = vpop.f32.mrf.mxu1 }
  0xf3   : > { %v1037_v44 = vpop.f32.mrf.mxu0  ;;  %v16469_v40 = vpop.f32.mrf.mxu1 }
  0xf4   : > { %23438 = vst [vmem:[#allocation58_spill] sm:$0xff] %v16469_v40 }
  0xf5   : > { %v14051_v53 = vpop.f32.mrf.mxu0  ;;  %14266 = vmatmul.mubr.msk.bf16.gmra.mxu0 %vm928_vm3, %v16128_v27  ;;  %v16473_v5 = vpop.f32.mrf.mxu1  ;;  %14240 = vmatmul.mubr.msk.bf16.gmra.mxu1 %vm928_vm3, %v16465_v17 }
  0xf6   : > { %14269 = vmatprep.mubr.msk.bf16.mxu0 %vm928_vm3, %v16140_v26  ;;  %14279 = vmatprep.mubr.msk.bf16.mxu1 %vm928_vm3, %v23423_v54 }
  0xf7   : > { %v1050_v43 = vpop.f32.mrf.mxu0  ;;  %v16479_v48 = vpop.f32.mrf.mxu1 }
  0xf9   : > { %v14052_v7 = vpop.f32.mrf.mxu0  ;;  %v16481_v27 = vpop.f32.mrf.mxu1 }
  0xfb   : > { %v1053_v30 = vpop.f32.mrf.mxu0  ;;  %v16487_v26 = vpop.f32.mrf.mxu1 }
  0xfc   : > { %23439 = vst [vmem:[#allocation59_spill] sm:$0xff] %v16487_v26 }
  0xfd   : > { %v16483_v31 = vpop.f32.mrf.mxu0  ;;  %14270 = vmatmul.mubr.msk.bf16.gmra.mxu0 %vm928_vm3, %v16163_v21  ;;  %v14077_v54 = vpop.f32.mrf.mxu1  ;;  %14280 = vmatmul.mubr.msk.bf16.vlgmr.msra.gmra.mxu1 %vm928_vm3, %v23424_v12  ;;  %v16507_v21 = vpack.c.bf16 %v16495_v6, %v16492_v22 }
  0xfe   : > { %14273 = vmatprep.mubr.msk.bf16.mxu0 %vm928_vm3, %v16378_v42  ;;  %v1238_v50 = vadd.f32 %v14077_v54, %v14043_v60  ;;  %14283 = vmatprep.mubr.msk.bf16.mxu1 %vm928_vm3, %v23425_v56 }
  0xff   : > { %v16497_v45 = vpop.f32.mrf.mxu0  ;;  %23440 = vst [vmem:[#allocation60_spill] sm:$0xff] %v16507_v21  ;;  %v1229_v42 = vpop.f32.mrf.mxu1 }
 0x100   : > { %v1230_v13 = vadd.f32 %v1229_v42, %v1018_v4 }
 0x101   : > { %v16501_v2 = vpop.f32.mrf.mxu0  ;;  %v14078_v26 = vpop.f32.mrf.mxu1 }
 0x102   : > { %v1241_v40 = vadd.f32 %v14078_v26, %v14044_v14 }
 0x103   : > { %v16509_v11 = vpop.f32.mrf.mxu0  ;;  %v1232_v54 = vpop.f32.mrf.mxu1 }
 0x104   : > { %v1233_v60 = vadd.f32 %v1232_v54, %v1021_v63 }
 0x105   : > { %v16511_v49 = vpop.f32.mrf.mxu0  ;;  %14274 = vmatmul.mubr.msk.bf16.gmra.mxu0 %vm928_vm3, %v16507_v21  ;;  %v14081_v12 = vpop.f32.mrf.mxu1  ;;  %14284 = vmatmul.mubr.msk.bf16.gmra.mxu1 %vm928_vm3, %v23426_v20 }
 0x106   : > { %14313 = vmatprep.mubr.msk.bf16.mxu0 %vm928_vm3, %v16146_v57  ;;  %v1254_v42 = vadd.f32 %v14081_v12, %v14047_v16  ;;  %14287 = vmatprep.mubr.msk.bf16.mxu1 %vm928_vm3, %v23427_v24 }
 0x107   : > { %v16517_v56 = vpop.f32.mrf.mxu0  ;;  %v1245_v26 = vpop.f32.mrf.mxu1 }
 0x108   : > { %v1246_v14 = vadd.f32 %v1245_v26, %v1034_v23 }
 0x109   : > { %v16521_v4 = vpop.f32.mrf.mxu0  ;;  %v14082_v17 = vpop.f32.mrf.mxu1 }
 0x10a   : > { %v1257_v62 = vadd.f32 %v14082_v17, %v14048_v0 }
 0x10b   : > { %v16525_v21 = vpop.f32.mrf.mxu0  ;;  %v1248_v63 = vpop.f32.mrf.mxu1 }
 0x10c   : > { %v1249_v12 = vadd.f32 %v1248_v63, %v1037_v44 }
 0x10d   : > { %v14111_v57 = vpop.f32.mrf.mxu0  ;;  %14314 = vmatmul.mubr.msk.bf16.vlgmr.msra.gmra.mxu0 %vm928_vm3, %v16152_v55  ;;  %v14085_v20 = vpop.f32.mrf.mxu1  ;;  %14288 = vmatmul.mubr.msk.bf16.gmra.mxu1 %vm928_vm3, %v16048_v3 }
 0x10e   : > { %v16529_v54 = vadd.f32 %v14111_v57, %v1238_v50  ;;  %14317 = vmatprep.mubr.msk.bf16.mxu0 %vm928_vm3, %v16211_v59  ;;  %v1270_v26 = vadd.f32 %v14085_v20, %v14051_v53  ;;  %14291 = vmatprep.mubr.msk.bf16.mxu1 %vm928_vm3, %v16051_v58 }
 0x10f   : > { %v1573_v16 = vpop.f32.mrf.mxu0  ;;  %v1261_v0 = vpop.f32.mrf.mxu1 }
 0x110   : > { %v16535_v23 = vadd.f32 %v1573_v16, %v1230_v13  ;;  %v1262_v57 = vadd.f32 %v1261_v0, %v1050_v43 }
 0x111   : > { %v14112_v17 = vpop.f32.mrf.mxu0  ;;  %v14086_v24 = vpop.f32.mrf.mxu1 }
 0x112   : > { %v16539_v55 = vadd.f32 %v14112_v17, %v1241_v40  ;;  %v1273_v44 = vadd.f32 %v14086_v24, %v14052_v7 }
 0x113   : > { %v1576_v50 = vpop.f32.mrf.mxu0  ;;  %v1264_v13 = vpop.f32.mrf.mxu1 }
 0x114   : > { %v16541_v59 = vadd.f32 %v1576_v50, %v1233_v60  ;;  %v1265_v53 = vadd.f32 %v1264_v13, %v1053_v30 }
 0x115   : > { %v14115_v63 = vpop.f32.mrf.mxu0  ;;  %14318 = vmatmul.mubr.msk.bf16.gmra.mxu0 %vm928_vm3, %v16250_v9  ;;  %v14089_v40 = vpop.f32.mrf.mxu1  ;;  %14292 = vmatmul.mubr.msk.bf16.gmra.mxu1 %vm928_vm3, %v16076_v36 }
 0x116   : > { %v16545_v16 = vadd.f32 %v14115_v63, %v1254_v42  ;;  %14321 = vmatprep.mubr.msk.bf16.mxu0 %vm928_vm3, %v16252_v19  ;;  %v1286_v24 = vadd.f32 %v14089_v40, %v16483_v31  ;;  %14295 = vmatprep.mubr.msk.bf16.mxu1 %vm928_vm3, %v23428_v1 }
 0x117   : > { %v1589_v20 = vpop.f32.mrf.mxu0  ;;  %v1277_v60 = vpop.f32.mrf.mxu1 }
 0x118   : > { %v16551_v43 = vadd.f32 %v1589_v20, %v1246_v14  ;;  %v1278_v17 = vadd.f32 %v1277_v60, %v16497_v45 }
 0x119   : > { %v14116_v7 = vpop.f32.mrf.mxu0  ;;  %v14090_v30 = vpop.f32.mrf.mxu1 }
 0x11a   : > { %v16556_v42 = vadd.f32 %v14116_v7, %v1257_v62  ;;  %v1289_v63 = vadd.f32 %v14090_v30, %v16501_v2 }
 0x11b   : > { %v1592_v0 = vpop.f32.mrf.mxu0  ;;  %v1280_v31 = vpop.f32.mrf.mxu1 }
 0x11c   : > { %v16559_v50 = vadd.f32 %v1592_v0, %v1249_v12  ;;  %v1281_v62 = vadd.f32 %v1280_v31, %v16509_v11 }
 0x11d   : > { %v14119_v13 = vpop.f32.mrf.mxu0  ;;  %14322 = vmatmul.mubr.msk.bf16.gmra.mxu0 %vm928_vm3, %v16276_v18  ;;  %v14093_v45 = vpop.f32.mrf.mxu1  ;;  %14296 = vmatmul.mubr.msk.bf16.gmra.mxu1 %vm928_vm3, %v23429_v32 }
 0x11e   : > { %v16564_v14 = vadd.f32 %v14119_v13, %v1270_v26  ;;  %14325 = vmatprep.mubr.msk.bf16.mxu0 %vm928_vm3, %v16278_v29  ;;  %v1302_v2 = vadd.f32 %v14093_v45, %v16511_v49  ;;  %14299 = vmatprep.mubr.msk.bf16.mxu1 %vm928_vm3, %v23431_v37 }
 0x11f   : > { %v1605_v20 = vpop.f32.mrf.mxu0  ;;  %v1293_v26 = vpop.f32.mrf.mxu1 }
 0x120   : > { %v16571_v12 = vadd.f32 %v1605_v20, %v1262_v57  ;;  %v1294_v60 = vadd.f32 %v1293_v26, %v16517_v56 }
 0x121   : > { %v14120_v40 = vpop.f32.mrf.mxu0  ;;  %v14094_v11 = vpop.f32.mrf.mxu1 }
 0x122   : > { %v16576_v7 = vadd.f32 %v14120_v40, %v1273_v44  ;;  %v1305_v13 = vadd.f32 %v14094_v11, %v16521_v4  ;;  %v3309_v11 = vld [vmem:[%s23441_s12 + $0x10] sm:$0xff] }
 0x123   : > { %v1608_v0 = vpop.f32.mrf.mxu0  ;;  %v16584_v49 = vpop.f32.mrf.mxu1 }
 0x124   : > { %v16579_v30 = vadd.f32 %v1608_v0, %v1265_v53 }
 0x125   : > { %v14123_v57 = vpop.f32.mrf.mxu0  ;;  %14326 = vmatmul.mubr.msk.bf16.gmra.mxu0 %vm928_vm3, %v16293_v10  ;;  %v14097_v56 = vpop.f32.mrf.mxu1  ;;  %14300 = vmatmul.mubr.msk.bf16.gmra.mxu1 %vm928_vm3, %v23432_v39 }
 0x126   : > { %v16586_v31 = vadd.f32 %v14123_v57, %v1286_v24  ;;  %14329 = vmatprep.mubr.msk.bf16.mxu0 %vm928_vm3, %v16170_v15  ;;  %v1318_v4 = vadd.f32 %v14097_v56, %v16437_v52  ;;  %14303 = vmatprep.mubr.msk.bf16.mxu1 %vm928_vm3, %v23433_v34  ;;  %v16600_v24 = vld [vmem:[%s15741_s8 + $0x1a8] sm:$0x3]  ;;  %v3310_v52 = vld [vmem:[%s23441_s12 + $0x18] sm:$0xff]  ;;  %v2575_v56 = vrot.slane %v16495_v6, 1 }
 0x127   : > { %v1621_v44 = vpop.f32.mrf.mxu0  ;;  %v1309_v45 = vpop.f32.mrf.mxu1 }
 0x128   : > { %v16592_v53 = vadd.f32 %v1621_v44, %v1278_v17  ;;  %v1310_v26 = vadd.f32 %v1309_v45, %v16443_v47  ;;  %v3518_v44 = vpack.c.bf16 %v3310_v52, %v3309_v11  ;;  %v2577_v45 = vrot.slane %v16600_v24, 1 }
 0x129   : > { %v14124_v20 = vpop.f32.mrf.mxu0  ;;  %v14098_v17 = vpop.f32.mrf.mxu1 }
 0x12a   : > { %v16597_v40 = vadd.f32 %v14124_v20, %v1289_v63  ;;  %v2574_v63 = vrot.slane %v16492_v22, 1  ;;  %v1321_v20 = vadd.f32 %v14098_v17, %v16445_v33  ;;  %14345 = vmatprep.subr.bf16.mxu1 %v3518_v44  ;;  %v2578_v17 = vsel %vm791_vm2, %v2575_v56, %v2577_v45 }
 0x12b   : > { %v1624_v0 = vpop.f32.mrf.mxu0  ;;  %v16617_v15 = vpop.f32.mrf.mxu1  ;;  %14346 = vmatpush3.bf16.msra.mxu1 %v3518_v44  ;;  %v2789_v45 = vrot.slane %v16492_v22, 2 }
 0x12c   : > { %v16609_v57 = vadd.f32 %v1624_v0, %v1281_v62 }
 0x12d   : > { %v14127_v47 = vpop.f32.mrf.mxu0  ;;  %14330 = vmatmul.mubr.msk.bf16.gmra.mxu0 %vm928_vm3, %v16181_v41  ;;  %v14101_v0 = vpop.f32.mrf.mxu1  ;;  %14304 = vmatmul.mubr.msk.bf16.gmra.mxu1 %vm928_vm3, %v23434_v28 }
 0x12e   : > { %v16619_v10 = vadd.f32 %v14127_v47, %v1302_v2  ;;  %14333 = vmatprep.mubr.msk.bf16.mxu0 %vm928_vm3, %v16189_v8  ;;  %v1334_v11 = vadd.f32 %v14101_v0, %v16453_v46  ;;  %14307 = vmatprep.mubr.msk.bf16.mxu1 %vm928_vm3, %v16399_v25  ;;  %v2576_v2 = vsel %vm791_vm2, %v2574_v63, %v2575_v56 }
 0x12f   : > { %v1637_v62 = vpop.f32.mrf.mxu0  ;;  %v1325_v47 = vpop.f32.mrf.mxu1 }
 0x130   : > { %v16625_v33 = vadd.f32 %v1637_v62, %v1294_v60  ;;  %v1326_v44 = vadd.f32 %v1325_v47, %v16461_v51  ;;  %v16637_v60 = vpack.c.bf16 %v2578_v17, %v2576_v2  ;;  %v2792_v17 = vrot.slane %v16600_v24, 2 }
 0x131   : > { %v14128_v52 = vpop.f32.mrf.mxu0  ;;  %v14102_v29 = vpop.f32.mrf.mxu1 }
 0x132   : > { %v16632_v8 = vadd.f32 %v14128_v52, %v1305_v13  ;;  %23442 = vst [vmem:[#allocation61_spill] sm:$0xff] %v16637_v60  ;;  %v1337_v46 = vadd.f32 %v14102_v29, %v16463_v61  ;;  %v2790_v52 = vrot.slane %v16495_v6, 2  ;;  %v23444_v6 = vld [vmem:[#allocation57_spill] sm:$0xff] }
 0x133   : > { %v16635_v41 = vpop.f32.mrf.mxu0  ;;  %v16642_v0 = vpop.f32.mrf.mxu1 }
 0x134   : > { %v2791_v24 = vsel %vm1356_vm4, %v2789_v45, %v2790_v52 }
 0x135   : > { %v14131_v62 = vpop.f32.mrf.mxu0  ;;  %14334 = vmatmul.mubr.msk.bf16.gmra.mxu0 %vm928_vm3, %v16194_v38  ;;  %v14105_v51 = vpop.f32.mrf.mxu1  ;;  %14308 = vmatmul.mubr.msk.bf16.gmra.mxu1 %vm928_vm3, %v16637_v60  ;;  %v23443_v60 = vld [vmem:[#allocation48_spill] sm:$0xff] }
 0x136   : > { %v16644_v63 = vadd.f32 %v14131_v62, %v1318_v4  ;;  %14337 = vmatprep.mubr.msk.bf16.mxu0 %vm928_vm3, %v16217_v35  ;;  %v1350_v61 = vadd.f32 %v14105_v51, %v16473_v5 }
 0x137   : > { %v1653_v13 = vpop.f32.mrf.mxu0  ;;  %v1341_v2 = vpop.f32.mrf.mxu1 }
 0x138   : > { %v16650_v56 = vadd.f32 %v1653_v13, %v1310_v26  ;;  %v1342_v47 = vadd.f32 %v1341_v2, %v16479_v48  ;;  %v2793_v48 = vsel %vm1356_vm4, %v2790_v52, %v2792_v17 }
 0x139   : > { %v14132_v29 = vpop.f32.mrf.mxu0  ;;  %v14106_v25 = vpop.f32.mrf.mxu1  ;;  %v16675_v2 = vpack.c.bf16 %v2793_v48, %v2791_v24 }
 0x13a   : > { %v16655_v4 = vadd.f32 %v14132_v29, %v1321_v20  ;;  %v1353_v26 = vadd.f32 %v14106_v25, %v16481_v27 }
 0x13b   : > { %v16659_v62 = vpop.f32.mrf.mxu0  ;;  %v16664_v5 = vpop.f32.mrf.mxu1  ;;  %23445 = vst [vmem:[#allocation62_spill] sm:$0xff] %v16675_v2 }
 0x13d   : > { %v14135_v13 = vpop.f32.mrf.mxu0  ;;  %14338 = vmatmul.mubr.msk.bf16.gmra.mxu0 %vm928_vm3, %v23443_v60  ;;  %v14145_v51 = vpop.f32.mrf.mxu1 }
 0x13e   : > { %v16666_v22 = vadd.f32 %v14135_v13, %v1334_v11  ;;  %14341 = vmatprep.mubr.msk.bf16.mxu0 %vm928_vm3, %v23444_v6  ;;  %v1910_v27 = vadd.f32 %v14145_v51, %v16529_v54 }
 0x13f   : > { %v1669_v20 = vpop.f32.mrf.mxu0  ;;  %v1781_v60 = vpop.f32.mrf.mxu1 }
 0x140   : > { %v16672_v29 = vadd.f32 %v1669_v20, %v1326_v44  ;;  %v1908_v11 = vadd.f32 %v1781_v60, %v16535_v23 }
 0x141   : > { %v14136_v25 = vpop.f32.mrf.mxu0  ;;  %v14146_v6 = vpop.f32.mrf.mxu1 }
 0x142   : > { %v16677_v35 = vadd.f32 %v14136_v25, %v1337_v46  ;;  %v1911_v45 = vadd.f32 %v14146_v6, %v16539_v55 }
 0x143   : > { %v16680_v13 = vpop.f32.mrf.mxu0  ;;  %v16685_v44 = vpop.f32.mrf.mxu1 }
 0x145   : > { %v14139_v52 = vpop.f32.mrf.mxu0  ;;  %14342 = vmatmul.mubr.msk.bf16.gmra.mxu0 %vm928_vm3, %v16675_v2  ;;  %v14149_v24 = vpop.f32.mrf.mxu1  ;;  %v23138_v2 = vmov 0.0  }
 0x146   : > { %v16687_v54 = vadd.f32 %v14139_v52, %v1350_v61  ;;  %v16692_v46 = vadd.f32 %v14149_v24, %v16545_v16  ;;  %3076 = vst.msk [vmem:[#allocation2 + $0x30] sm:$0xff] %vm3068_vm5, %v23138_v2  ;;  %3077 = vst.msk [vmem:[#allocation2 + $0x38] sm:$0xff] %vm3068_vm5, %v23138_v2 }
 0x147   : > { %v1685_v17 = vpop.f32.mrf.mxu0  ;;  %v1797_v60 = vpop.f32.mrf.mxu1  ;;  %3069 = vst.msk [vmem:[#allocation2] sm:$0xff] %vm3068_vm5, %v23138_v2  ;;  %3070 = vst.msk [vmem:[#allocation2 + $0x8] sm:$0xff] %vm3068_vm5, %v23138_v2 }
 0x148   : > { %v16689_v48 = vadd.f32 %v1685_v17, %v1342_v47  ;;  %v16697_v55 = vadd.f32 %v1797_v60, %v16551_v43  ;;  %3073 = vst.msk [vmem:[#allocation2 + $0x18] sm:$0xff] %vm3068_vm5, %v23138_v2  ;;  %3074 = vst.msk [vmem:[#allocation2 + $0x20] sm:$0xff] %vm3068_vm5, %v23138_v2 }
 0x149   : > { %v14140_v23 = vpop.f32.mrf.mxu0  ;;  %v14150_v51 = vpop.f32.mrf.mxu1  ;;  %3079 = vst.msk [vmem:[#allocation2 + $0x48] sm:$0xff] %vm3068_vm5, %v23138_v2  ;;  %3080 = vst.msk [vmem:[#allocation2 + $0x50] sm:$0xff] %vm3068_vm5, %v23138_v2 }
 0x14a   : > { %v16694_v20 = vadd.f32 %v14140_v23, %v1353_v26  ;;  %v16702_v61 = vadd.f32 %v14150_v51, %v16556_v42  ;;  %3082 = vst.msk [vmem:[#allocation2 + $0x60] sm:$0xff] %vm3068_vm5, %v23138_v2  ;;  %3083 = vst.msk [vmem:[#allocation2 + $0x68] sm:$0xff] %vm3068_vm5, %v23138_v2 }
 0x14b   : > { %v16699_v6 = vpop.f32.mrf.mxu0  ;;  %v16704_v52 = vpop.f32.mrf.mxu1  ;;  %3085 = vst.msk [vmem:[#allocation2 + $0x78] sm:$0xff] %vm3068_vm5, %v23138_v2  ;;  %3086 = vst.msk [vmem:[#allocation2 + $0x80] sm:$0xff] %vm3068_vm5, %v23138_v2 }
 0x14c   : > { %3088 = vst.msk [vmem:[#allocation2 + $0x90] sm:$0xff] %vm3068_vm5, %v23138_v2  ;;  %3089 = vst.msk [vmem:[#allocation2 + $0x98] sm:$0xff] %vm3068_vm5, %v23138_v2 }
 0x14d   : > { %v14179_v25 = vpop.f32.mrf.mxu0  ;;  %v14153_v17 = vpop.f32.mrf.mxu1  ;;  %3091 = vst.msk [vmem:[#allocation2 + $0xa8] sm:$0xff] %vm3068_vm5, %v23138_v2  ;;  %3092 = vst.msk [vmem:[#allocation2 + $0xb0] sm:$0xff] %vm3068_vm5, %v23138_v2 }
 0x14e   : > { %v16706_v47 = vadd.f32 %v14179_v25, %v1910_v27  ;;  %v16711_v26 = vadd.f32 %v14153_v17, %v16564_v14  ;;  %3094 = vst.msk [vmem:[#allocation2 + $0xc0] sm:$0xff] %vm3068_vm5, %v23138_v2  ;;  %3095 = vst.msk [vmem:[#allocation2 + $0xc8] sm:$0xff] %vm3068_vm5, %v23138_v2 }
 0x14f   : > { %v1993_v16 = vpop.f32.mrf.mxu0  ;;  %v1813_v23 = vpop.f32.mrf.mxu1  ;;  %3097 = vst.msk [vmem:[#allocation2 + $0xd8] sm:$0xff] %vm3068_vm5, %v23138_v2  ;;  %3098 = vst.msk [vmem:[#allocation2 + $0xe0] sm:$0xff] %vm3068_vm5, %v23138_v2 }
 0x150   : > { %v16708_v24 = vadd.f32 %v1993_v16, %v1908_v11  ;;  %v16716_v42 = vadd.f32 %v1813_v23, %v16571_v12  ;;  %3100 = vst.msk [vmem:[#allocation2 + $0xf0] sm:$0xff] %vm3068_vm5, %v23138_v2  ;;  %3101 = vst.msk [vmem:[#allocation2 + $0xf8] sm:$0xff] %vm3068_vm5, %v23138_v2 }
 0x151   : > { %v14180_v43 = vpop.f32.mrf.mxu0  ;;  %3103 = vst.msk [vmem:[#allocation2 + $0x108] sm:$0xff] %vm3068_vm5, %v23138_v2  ;;  %3104 = vst.msk [vmem:[#allocation2 + $0x110] sm:$0xff] %vm3068_vm5, %v23138_v2  ;;  %v14154_v14 = vpop.f32.mrf.mxu1 }
 0x152   : > { %v16713_v60 = vadd.f32 %v14180_v43, %v1911_v45  ;;  %3106 = vst.msk [vmem:[#allocation2 + $0x120] sm:$0xff] %vm3068_vm5, %v23138_v2  ;;  %3107 = vst.msk [vmem:[#allocation2 + $0x128] sm:$0xff] %vm3068_vm5, %v23138_v2  ;;  %v1919_v12 = vadd.f32 %v14154_v14, %v16576_v7 }
 0x153   : > { %v16718_v51 = vpop.f32.mrf.mxu0  ;;  %3109 = vst.msk [vmem:[#allocation2 + $0x138] sm:$0xff] %vm3068_vm5, %v23138_v2  ;;  %3110 = vst.msk [vmem:[#allocation2 + $0x140] sm:$0xff] %vm3068_vm5, %v23138_v2  ;;  %v16865_v11 = vpop.f32.mrf.mxu1 }
 0x154   : > { %3112 = vst.msk [vmem:[#allocation2 + $0x150] sm:$0xff] %vm3068_vm5, %v23138_v2  ;;  %3113 = vst.msk [vmem:[#allocation2 + $0x158] sm:$0xff] %vm3068_vm5, %v23138_v2 }
 0x155   : > { %3115 = vst.msk [vmem:[#allocation2 + $0x168] sm:$0xff] %vm3068_vm5, %v23138_v2  ;;  %3116 = vst.msk [vmem:[#allocation2 + $0x170] sm:$0xff] %vm3068_vm5, %v23138_v2  ;;  %v14183_v27 = vpop.f32.mrf.mxu0  ;;  %v14157_v7 = vpop.f32.mrf.mxu1 }
 0x156   : > { %3118 = vst.msk [vmem:[#allocation2 + $0x180] sm:$0xff] %vm3068_vm5, %v23138_v2  ;;  %3119 = vst.msk [vmem:[#allocation2 + $0x188] sm:$0xff] %vm3068_vm5, %v23138_v2  ;;  %v16868_v45 = vadd.f32 %v14183_v27, %v16692_v46  ;;  %v1922_v16 = vadd.f32 %v14157_v7, %v16586_v31 }
 0x157   : > { %3121 = vst.msk [vmem:[#allocation2 + $0x198] sm:$0xff] %vm3068_vm5, %v23138_v2  ;;  %3122 = vst.msk [vmem:[#allocation2 + $0x1a0] sm:$0xff] %vm3068_vm5, %v23138_v2  ;;  %v2009_v25 = vpop.f32.mrf.mxu0  ;;  %v1829_v43 = vpop.f32.mrf.mxu1 }
 0x158   : > { %9769 = vst.msk [vmem:[#allocation4] sm:$0xff] %vm928_vm3, %v23138_v2  ;;  %9770 = vst.msk [vmem:[#allocation4 + $0x8] sm:$0xff] %vm928_vm3, %v23138_v2  ;;  %v16907_v46 = vadd.f32 %v2009_v25, %v16697_v55  ;;  %v1920_v14 = vadd.f32 %v1829_v43, %v16592_v53  ;;  %v3307_v53 = vld [vmem:[%s23441_s12] sm:$0xff] }
 0x159   : > { %9773 = vst.msk [vmem:[#allocation4 + $0x18] sm:$0xff] %vm928_vm3, %v23138_v2  ;;  %9774 = vst.msk [vmem:[#allocation4 + $0x20] sm:$0xff] %vm928_vm3, %v23138_v2  ;;  %v14184_v17 = vpop.f32.mrf.mxu0  ;;  %v14158_v38 = vpop.f32.mrf.mxu1 }
 0x15a   : > { %9776 = vst.msk [vmem:[#allocation4 + $0x30] sm:$0xff] %vm928_vm3, %v23138_v2  ;;  %9777 = vst.msk [vmem:[#allocation4 + $0x38] sm:$0xff] %vm928_vm3, %v23138_v2  ;;  %v16911_v23 = vadd.f32 %v14184_v17, %v16702_v61  ;;  %v1923_v18 = vadd.f32 %v14158_v38, %v16597_v40  ;;  %v3308_v61 = vld [vmem:[%s23441_s12 + $0x8] sm:$0xff] }
 0x15b   : > { %9779 = vst.msk [vmem:[#allocation4 + $0x48] sm:$0xff] %vm928_vm3, %v23138_v2  ;;  %9780 = vst.msk [vmem:[#allocation4 + $0x50] sm:$0xff] %vm928_vm3, %v23138_v2  ;;  %v16914_v27 = vpop.f32.mrf.mxu0  ;;  %v3341_v17 = vpack.c.bf16 %v3308_v61, %v3307_v53 }
 0x15c   : > { %9782 = vst.msk [vmem:[#allocation4 + $0x60] sm:$0xff] %vm928_vm3, %v23138_v2  ;;  %9783 = vst.msk [vmem:[#allocation4 + $0x68] sm:$0xff] %vm928_vm3, %v23138_v2 }
 0x15d   : > { %9785 = vst.msk [vmem:[#allocation4 + $0x78] sm:$0xff] %vm928_vm3, %v23138_v2  ;;  %9786 = vst.msk [vmem:[#allocation4 + $0x80] sm:$0xff] %vm928_vm3, %v23138_v2  ;;  %v14187_v19 = vpop.f32.mrf.mxu0  ;;  %14379 = vmatprep.subr.bf16.mxu0 %v3341_v17 }
 0x15e   : > { %9788 = vst.msk [vmem:[#allocation4 + $0x90] sm:$0xff] %vm928_vm3, %v23138_v2  ;;  %9789 = vst.msk [vmem:[#allocation4 + $0x98] sm:$0xff] %vm928_vm3, %v23138_v2  ;;  %v16920_v55 = vadd.f32 %v14187_v19, %v16711_v26  ;;  %14380 = vmatpush3.bf16.msra.mxu0 %v3341_v17 }
 0x15f   : > { %9791 = vst.msk [vmem:[#allocation4 + $0xa8] sm:$0xff] %vm928_vm3, %v23138_v2  ;;  %9792 = vst.msk [vmem:[#allocation4 + $0xb0] sm:$0xff] %vm928_vm3, %v23138_v2  ;;  %v2025_v25 = vpop.f32.mrf.mxu0 }
 0x160   : > { %9794 = vst.msk [vmem:[#allocation4 + $0xc0] sm:$0xff] %vm928_vm3, %v23138_v2  ;;  %9795 = vst.msk [vmem:[#allocation4 + $0xc8] sm:$0xff] %vm928_vm3, %v23138_v2  ;;  %v16923_v7 = vadd.f32 %v2025_v25, %v16716_v42  ;;  %v16937_v42 = vld [vmem:[#allocation2] sm:$0xff]  ;;  %v16939_v25 = vld [vmem:[#allocation2 + $0x8] sm:$0xff] }
 0x161   : > { %9797 = vst.msk [vmem:[#allocation4 + $0xd8] sm:$0xff] %vm928_vm3, %v23138_v2  ;;  %9798 = vst.msk [vmem:[#allocation4 + $0xe0] sm:$0xff] %vm928_vm3, %v23138_v2  ;;  %v14188_v40 = vpop.f32.mrf.mxu0 }
 0x162   : > { %9800 = vst.msk [vmem:[#allocation4 + $0xf0] sm:$0xff] %vm928_vm3, %v23138_v2  ;;  %9801 = vst.msk [vmem:[#allocation4 + $0xf8] sm:$0xff] %vm928_vm3, %v23138_v2  ;;  %v16932_v19 = vadd.f32 %v14188_v40, %v1919_v12  ;;  %v3391_v12 = vrot.slane %v16939_v25, 1 }
 0x163   : > { %9803 = vst.msk [vmem:[#allocation4 + $0x108] sm:$0xff] %vm928_vm3, %v23138_v2  ;;  %9804 = vst.msk [vmem:[#allocation4 + $0x110] sm:$0xff] %vm928_vm3, %v23138_v2  ;;  %v16935_v9 = vpop.f32.mrf.mxu0 }
 0x164   : > { %9806 = vst.msk [vmem:[#allocation4 + $0x120] sm:$0xff] %vm928_vm3, %v23138_v2  ;;  %9807 = vst.msk [vmem:[#allocation4 + $0x128] sm:$0xff] %vm928_vm3, %v23138_v2 }
 0x165   : > { %9809 = vst.msk [vmem:[#allocation4 + $0x138] sm:$0xff] %vm928_vm3, %v23138_v2  ;;  %9810 = vst.msk [vmem:[#allocation4 + $0x140] sm:$0xff] %vm928_vm3, %v23138_v2  ;;  %v14191_v53 = vpop.f32.mrf.mxu0 }
 0x166   : > { %9812 = vst.msk [vmem:[#allocation4 + $0x150] sm:$0xff] %vm928_vm3, %v23138_v2  ;;  %9813 = vst.msk [vmem:[#allocation4 + $0x158] sm:$0xff] %vm928_vm3, %v23138_v2 }
 0x167   : > { %9815 = vst.msk [vmem:[#allocation4 + $0x168] sm:$0xff] %vm928_vm3, %v23138_v2  ;;  %9816 = vst.msk [vmem:[#allocation4 + $0x170] sm:$0xff] %vm928_vm3, %v23138_v2  ;;  %v2041_v39 = vpop.f32.mrf.mxu0 }
 0x168   : > { %9818 = vst.msk [vmem:[#allocation4 + $0x180] sm:$0xff] %vm928_vm3, %v23138_v2  ;;  %9819 = vst.msk [vmem:[#allocation4 + $0x188] sm:$0xff] %vm928_vm3, %v23138_v2  ;;  %v16956_v1 = vadd.f32 %v2041_v39, %v1920_v14 }
 0x169   : > { %9821 = vst.msk [vmem:[#allocation4 + $0x198] sm:$0xff] %vm928_vm3, %v23138_v2  ;;  %9822 = vst.msk [vmem:[#allocation4 + $0x1a0] sm:$0xff] %vm928_vm3, %v23138_v2 }
 0x16a   : > { %3078 = vst.msk [vmem:[#allocation2 + $0x40] sm:$0x3] %vm3071_vm6, %v23138_v2  ;;  %3072 = vst.msk [vmem:[#allocation2 + $0x10] sm:$0x3] %vm3071_vm6, %v23138_v2 }
 0x16b   : > { %3075 = vst.msk [vmem:[#allocation2 + $0x28] sm:$0x3] %vm3071_vm6, %v23138_v2  ;;  %3081 = vst.msk [vmem:[#allocation2 + $0x58] sm:$0x3] %vm3071_vm6, %v23138_v2 }
 0x16c   : > { %3084 = vst.msk [vmem:[#allocation2 + $0x70] sm:$0x3] %vm3071_vm6, %v23138_v2  ;;  %3087 = vst.msk [vmem:[#allocation2 + $0x88] sm:$0x3] %vm3071_vm6, %v23138_v2 }
 0x16d   : > { %3090 = vst.msk [vmem:[#allocation2 + $0xa0] sm:$0x3] %vm3071_vm6, %v23138_v2  ;;  %3093 = vst.msk [vmem:[#allocation2 + $0xb8] sm:$0x3] %vm3071_vm6, %v23138_v2 }
 0x16e   : > { %3096 = vst.msk [vmem:[#allocation2 + $0xd0] sm:$0x3] %vm3071_vm6, %v23138_v2  ;;  %3099 = vst.msk [vmem:[#allocation2 + $0xe8] sm:$0x3] %vm3071_vm6, %v23138_v2 }
 0x16f   : > { %3102 = vst.msk [vmem:[#allocation2 + $0x100] sm:$0x3] %vm3071_vm6, %v23138_v2  ;;  %3105 = vst.msk [vmem:[#allocation2 + $0x118] sm:$0x3] %vm3071_vm6, %v23138_v2 }
 0x170   : > { %3108 = vst.msk [vmem:[#allocation2 + $0x130] sm:$0x3] %vm3071_vm6, %v23138_v2  ;;  %3111 = vst.msk [vmem:[#allocation2 + $0x148] sm:$0x3] %vm3071_vm6, %v23138_v2 }
 0x171   : > { %3114 = vst.msk [vmem:[#allocation2 + $0x160] sm:$0x3] %vm3071_vm6, %v23138_v2  ;;  %3117 = vst.msk [vmem:[#allocation2 + $0x178] sm:$0x3] %vm3071_vm6, %v23138_v2  ;;  %v16941_v28 = vld [vmem:[#allocation2 + $0x10] sm:$0x3] }
 0x172   : > { %3120 = vst.msk [vmem:[#allocation2 + $0x190] sm:$0x3] %vm3071_vm6, %v23138_v2  ;;  %3123 = vst.msk [vmem:[#allocation2 + $0x1a8] sm:$0x3] %vm3071_vm6, %v23138_v2  ;;  %v16917_v2 = vpop.f32.mrf.mxu1  ;;  %v3393_v61 = vrot.slane %v16941_v28, 1 }
 0x173   : > { %23446 = vst [vmem:[#allocation63_spill] sm:$0xff] %v16932_v19  ;;  %23448 = vst [vmem:[#allocation65_spill] sm:$0xff] %v16956_v1 }
 0x174   : > { %v14161_v31 = vpop.f32.mrf.mxu1  ;;  %v3394_v37 = vsel %vm791_vm2, %v3391_v12, %v3393_v61 }
 0x175   : > { %v1926_v38 = vadd.f32 %v14161_v31, %v16619_v10  ;;  %v3325_v10 = vpack.c.bf16 %v16939_v25, %v16937_v42  ;;  %v3390_v31 = vrot.slane %v16937_v42, 1 }
 0x176   : > { %v1845_v43 = vpop.f32.mrf.mxu1 }
 0x177   : > { %v1924_v26 = vadd.f32 %v1845_v43, %v16625_v33  ;;  %v16951_v43 = vadd.f32 %v14191_v53, %v1922_v16  ;;  %14381 = vmatprep.mubr.msk.bf16.mxu0 %vm3068_vm5, %v3325_v10  ;;  %v3392_v17 = vsel %vm791_vm2, %v3390_v31, %v3391_v12 }
 0x178   : > { %v14162_v34 = vpop.f32.mrf.mxu1  ;;  %v3502_v36 = vpack.c.bf16 %v3394_v37, %v3392_v17 }
 0x179   : > { %v1927_v33 = vadd.f32 %v14162_v34, %v16632_v8  ;;  %23447 = vst [vmem:[#allocation64_spill] sm:$0xff] %v16951_v43  ;;  %v14192_v34 = vpop.f32.mrf.mxu0 }
 0x17a   : > { %v16949_v40 = vpop.f32.mrf.mxu1  ;;  %v16959_v3 = vadd.f32 %v14192_v34, %v1923_v18  ;;  %14347 = vmatprep.mubr.msk.bf16.mxu1 %vm3068_vm5, %v3502_v36  ;;  %v3312_v36 = vld [vmem:[%s23441_s12 + $0x28] sm:$0xff] }
 0x17b   : > { %v16963_v10 = vpop.f32.mrf.mxu0 }
 0x17c   : > { %v14165_v32 = vpop.f32.mrf.mxu1  ;;  %23449 = vst [vmem:[#allocation66_spill] sm:$0xff] %v16959_v3 }
 0x17d   : > { %v1930_v8 = vadd.f32 %v14165_v32, %v16644_v63  ;;  %v14195_v12 = vpop.f32.mrf.mxu0  ;;  %v3311_v32 = vld [vmem:[%s23441_s12 + $0x20] sm:$0xff] }
 0x17e   : > { %v1861_v58 = vpop.f32.mrf.mxu1  ;;  %v16968_v39 = vadd.f32 %v14195_v12, %v1926_v38 }
 0x17f   : > { %v1928_v16 = vadd.f32 %v1861_v58, %v16650_v56  ;;  %v2057_v18 = vpop.f32.mrf.mxu0  ;;  %v16976_v58 = vpack.c.bf16 %v3312_v36, %v3311_v32 }
 0x180   : > { %v14166_v31 = vpop.f32.mrf.mxu1  ;;  %23450 = vst [vmem:[#allocation67_spill] sm:$0xff] %v16968_v39  ;;  %v16978_v63 = vadd.f32 %v2057_v18, %v1924_v26 }
 0x181   : > { %v1931_v53 = vadd.f32 %v14166_v31, %v16655_v4  ;;  %23451 = vst [vmem:[#allocation68_spill] sm:$0xff] %v16976_v58  ;;  %v14196_v4 = vpop.f32.mrf.mxu0  ;;  %14413 = vmatprep.subr.bf16.mxu1 %v16976_v58 }
 0x182   : > { %v16966_v61 = vpop.f32.mrf.mxu1  ;;  %23452 = vst [vmem:[#allocation69_spill] sm:$0xff] %v16978_v63  ;;  %v16982_v38 = vadd.f32 %v14196_v4, %v1927_v33 }
 0x183   : > { %v16985_v34 = vpop.f32.mrf.mxu0 }
 0x184   : > { %v14169_v37 = vpop.f32.mrf.mxu1  ;;  %23453 = vst [vmem:[#allocation70_spill] sm:$0xff] %v16982_v38 }
 0x185   : > { %v1934_v56 = vadd.f32 %v14169_v37, %v16666_v22  ;;  %v14199_v32 = vpop.f32.mrf.mxu0 }
 0x186   : > { %v1877_v14 = vpop.f32.mrf.mxu1  ;;  %v16990_v26 = vadd.f32 %v14199_v32, %v1930_v8 }
 0x187   : > { %v1932_v17 = vadd.f32 %v1877_v14, %v16672_v29  ;;  %v2073_v18 = vpop.f32.mrf.mxu0 }
 0x188   : > { %v14170_v31 = vpop.f32.mrf.mxu1  ;;  %23454 = vst [vmem:[#allocation71_spill] sm:$0xff] %v16990_v26  ;;  %v16992_v37 = vadd.f32 %v2073_v18, %v1928_v16 }
 0x189   : > { %v1935_v12 = vadd.f32 %v14170_v31, %v16677_v35  ;;  %v14200_v33 = vpop.f32.mrf.mxu0 }
 0x18a   : > { %v16988_v36 = vpop.f32.mrf.mxu1  ;;  %23455 = vst [vmem:[#allocation72_spill] sm:$0xff] %v16992_v37  ;;  %v16995_v38 = vadd.f32 %v14200_v33, %v1931_v53 }
 0x18b   : > { %v16998_v14 = vpop.f32.mrf.mxu0 }
 0x18c   : > { %v14173_v22 = vpop.f32.mrf.mxu1  ;;  %23456 = vst [vmem:[#allocation73_spill] sm:$0xff] %v16995_v38 }
 0x18d   : > { %v1938_v58 = vadd.f32 %v14173_v22, %v16687_v54  ;;  %v14203_v63 = vpop.f32.mrf.mxu0 }
 0x18e   : > { %v1893_v4 = vpop.f32.mrf.mxu1  ;;  %v17003_v32 = vadd.f32 %v14203_v63, %v1934_v56 }
 0x18f   : > { %v1936_v29 = vadd.f32 %v1893_v4, %v16689_v48  ;;  %v2089_v16 = vpop.f32.mrf.mxu0 }
 0x190   : > { %v14174_v35 = vpop.f32.mrf.mxu1  ;;  %23457 = vst [vmem:[#allocation74_spill] sm:$0xff] %v17003_v32  ;;  %v17007_v54 = vadd.f32 %v2089_v16, %v1932_v17 }
 0x191   : > { %v1939_v31 = vadd.f32 %v14174_v35, %v16694_v20  ;;  %v14204_v22 = vpop.f32.mrf.mxu0 }
 0x192   : > { %v17001_v8 = vpop.f32.mrf.mxu1  ;;  %23458 = vst [vmem:[#allocation75_spill] sm:$0xff] %v17007_v54  ;;  %v17011_v33 = vadd.f32 %v14204_v22, %v1935_v12 }
 0x193   : > { %v17013_v48 = vpop.f32.mrf.mxu0 }
 0x194   : > { %v17005_v18 = vpop.f32.mrf.mxu1  ;;  %23459 = vst [vmem:[#allocation76_spill] sm:$0xff] %v17011_v33 }
 0x195   : > { %v14207_v20 = vpop.f32.mrf.mxu0 }
 0x196   : > { %v17009_v53 = vpop.f32.mrf.mxu1  ;;  %v17019_v38 = vadd.f32 %v14207_v20, %v1938_v58 }
 0x197   : > { %v2105_v63 = vpop.f32.mrf.mxu0 }
 0x198   : > { %v17015_v4 = vpop.f32.mrf.mxu1  ;;  %23460 = vst [vmem:[#allocation77_spill] sm:$0xff] %v17019_v38  ;;  %v17023_v32 = vadd.f32 %v2105_v63, %v1936_v29 }
 0x199   : > { %v14208_v17 = vpop.f32.mrf.mxu0 }
 0x19a   : > { %v17017_v35 = vpop.f32.mrf.mxu1  ;;  %23461 = vst [vmem:[#allocation78_spill] sm:$0xff] %v17023_v32  ;;  %v17027_v54 = vadd.f32 %v14208_v17, %v1939_v31 }
 0x19b   : > { %v17029_v12 = vpop.f32.mrf.mxu0 }
 0x19c   : > { %v17021_v56 = vpop.f32.mrf.mxu1  ;;  %23462 = vst [vmem:[#allocation79_spill] sm:$0xff] %v17027_v54 }
 0x19d   : > { %v17033_v33 = vpop.f32.mrf.mxu0 }
 0x19e   : > { %v17025_v16 = vpop.f32.mrf.mxu1 }
 0x19f   : > { %v17037_v58 = vpop.f32.mrf.mxu0 }
 0x1a0   : > { %v17031_v22 = vpop.f32.mrf.mxu1 }
 0x1a1   : > { %v17041_v38 = vpop.f32.mrf.mxu0 }
 0x1a2   : > { %v17035_v37 = vpop.f32.mrf.mxu1 }
 0x1a3   : > { %v17045_v63 = vpop.f32.mrf.mxu0 }
 0x1a4   : > { %v17039_v20 = vpop.f32.mrf.mxu1  ;;  %23463 = vst [vmem:[#allocation80_spill] sm:$0xff] %v17045_v63 }
 0x1a5   : > { %v17049_v17 = vpop.f32.mrf.mxu0 }
 0x1a6   : > { %v17043_v29 = vpop.f32.mrf.mxu1  ;;  %23465 = vst [vmem:[#allocation82_spill] sm:$0xff] %v17049_v17 }
 0x1a7   : > { %v17053_v32 = vpop.f32.mrf.mxu0 }
 0x1a8   : > { %v17047_v31 = vpop.f32.mrf.mxu1  ;;  %23467 = vst [vmem:[#allocation84_spill] sm:$0xff] %v17053_v32 }
 0x1a9   : > { %23464 = vst [vmem:[#allocation81_spill] sm:$0xff] %v17047_v31  ;;  %v17057_v39 = vpop.f32.mrf.mxu0 }
 0x1aa   : > { %v17051_v54 = vpop.f32.mrf.mxu1  ;;  %23469 = vst [vmem:[#allocation86_spill] sm:$0xff] %v17057_v39  ;;  %v3937_v39 = vrot.slane %v16937_v42, 2 }
 0x1ab   : > { %23466 = vst [vmem:[#allocation83_spill] sm:$0xff] %v17051_v54  ;;  %v17061_v1 = vpop.f32.mrf.mxu0 }
 0x1ac   : > { %v17055_v26 = vpop.f32.mrf.mxu1  ;;  %23471 = vst [vmem:[#allocation88_spill] sm:$0xff] %v17061_v1 }
 0x1ad   : > { %23468 = vst [vmem:[#allocation85_spill] sm:$0xff] %v17055_v26  ;;  %v17065_v19 = vpop.f32.mrf.mxu0 }
 0x1ae   : > { %v17059_v3 = vpop.f32.mrf.mxu1  ;;  %23473 = vst [vmem:[#allocation90_spill] sm:$0xff] %v17065_v19 }
 0x1af   : > { %23470 = vst [vmem:[#allocation87_spill] sm:$0xff] %v17059_v3  ;;  %v17069_v31 = vpop.f32.mrf.mxu0  ;;  %v3938_v3 = vrot.slane %v16939_v25, 2  ;;  %v3940_v25 = vrot.slane %v16941_v28, 2 }
 0x1b0   : > { %v17063_v43 = vpop.f32.mrf.mxu1  ;;  %23475 = vst [vmem:[#allocation92_spill] sm:$0xff] %v17069_v31  ;;  %v3314_v31 = vld [vmem:[%s23441_s12 + $0x38] sm:$0xff] }
 0x1b1   : > { %23472 = vst [vmem:[#allocation89_spill] sm:$0xff] %v17063_v43  ;;  %v17073_v54 = vpop.f32.mrf.mxu0  ;;  %v17096_v42 = vsel %vm1356_vm4, %v3937_v39, %v3938_v3  ;;  %v17105_v19 = vsel %vm1356_vm4, %v3938_v3, %v3940_v25 }
 0x1b2   : > { %v17067_v63 = vpop.f32.mrf.mxu1  ;;  %23477 = vst [vmem:[#allocation94_spill] sm:$0xff] %v17073_v54  ;;  %23483 = vst [vmem:[#allocation100_spill] sm:$0xff] %v17096_v42 }
 0x1b3   : > { %23474 = vst [vmem:[#allocation91_spill] sm:$0xff] %v17067_v63  ;;  %v17079_v26 = vpop.f32.mrf.mxu0  ;;  %v3313_v63 = vld [vmem:[%s23441_s12 + $0x30] sm:$0xff]  ;;  %23486 = vst [vmem:[#allocation103_spill] sm:$0xff] %v17105_v19 }
 0x1b4   : > { %v17071_v17 = vpop.f32.mrf.mxu1  ;;  %23479 = vst [vmem:[#allocation96_spill] sm:$0xff] %v17079_v26  ;;  %v17091_v54 = vpack.c.bf16 %v3314_v31, %v3313_v63 }
 0x1b5   : > { %23476 = vst [vmem:[#allocation93_spill] sm:$0xff] %v17071_v17  ;;  %v17089_v17 = vpop.f32.mrf.mxu0 }
 0x1b6   : > { %v17075_v32 = vpop.f32.mrf.mxu1  ;;  %23481 = vst [vmem:[#allocation98_spill] sm:$0xff] %v17089_v17  ;;  %23482 = vst [vmem:[#allocation99_spill] sm:$0xff] %v17091_v54  ;;  %14447 = vmatprep.subr.bf16.mxu0 %v17091_v54 }
 0x1b7   : > { %23478 = vst [vmem:[#allocation95_spill] sm:$0xff] %v17075_v32  ;;  %v17099_v26 = vpop.f32.mrf.mxu0 }
 0x1b8   : > { %v17081_v1 = vpop.f32.mrf.mxu1  ;;  %23484 = vst [vmem:[#allocation101_spill] sm:$0xff] %v17099_v26 }
 0x1b9   : > { %23480 = vst [vmem:[#allocation97_spill] sm:$0xff] %v17081_v1  ;;  %v17107_v43 = vpop.f32.mrf.mxu0 }
 0x1ba   : > { %v17093_v32 = vpop.f32.mrf.mxu1  ;;  %23487 = vst [vmem:[#allocation104_spill] sm:$0xff] %v17107_v43 }
 0x1bb   : > { %v17113_v39 = vpop.f32.mrf.mxu0 }
 0x1bc   : > { %v17102_v1 = vpop.f32.mrf.mxu1  ;;  %23488 = vst [vmem:[#allocation105_spill] sm:$0xff] %v17113_v39 }
 0x1bd   : > { %23485 = vst [vmem:[#allocation102_spill] sm:$0xff] %v17102_v1  ;;  %v17117_v28 = vpop.f32.mrf.mxu0 }
 0x1be   : > { %v17111_v31 = vpop.f32.mrf.mxu1  ;;  %23490 = vst [vmem:[#allocation107_spill] sm:$0xff] %v17117_v28 }
 0x1bf   : > { %v17121_v54 = vpop.f32.mrf.mxu0 }
 0x1c0   : > { %v17115_v17 = vpop.f32.mrf.mxu1  ;;  %23492 = vst [vmem:[#allocation109_spill] sm:$0xff] %v17121_v54 }
 0x1c1   : > { %23489 = vst [vmem:[#allocation106_spill] sm:$0xff] %v17115_v17  ;;  %v17125_v3 = vpop.f32.mrf.mxu0 }
 0x1c2   : > { %v17119_v26 = vpop.f32.mrf.mxu1  ;;  %23494 = vst [vmem:[#allocation111_spill] sm:$0xff] %v17125_v3 }
 0x1c3   : > { %23491 = vst [vmem:[#allocation108_spill] sm:$0xff] %v17119_v26  ;;  %v17129_v43 = vpop.f32.mrf.mxu0 }
 0x1c4   : > { %v17123_v1 = vpop.f32.mrf.mxu1  ;;  %23496 = vst [vmem:[#allocation113_spill] sm:$0xff] %v17129_v43  ;;  %v1297_v43 = vadd.f32 %v16584_v49, %v16525_v21  ;;  %v1909_v21 = vadd.f32 %v16685_v44, %v16541_v59 }
 0x1c5   : > { %23493 = vst [vmem:[#allocation110_spill] sm:$0xff] %v17123_v1  ;;  %v17133_v42 = vpop.f32.mrf.mxu0 }
 0x1c6   : > { %v17127_v25 = vpop.f32.mrf.mxu1  ;;  %23498 = vst [vmem:[#allocation115_spill] sm:$0xff] %v17133_v42  ;;  %v23506_v42 = vld [vmem:[#allocation56_spill] sm:$0xff]  ;;  %v2121_v59 = vadd.f32 %v16718_v51, %v1909_v21  ;;  %v2338_v51 = vadd.f32 %v17005_v18, %v16706_v47  ;;  %v2340_v47 = vadd.f32 %v17025_v16, %v16907_v46  ;;  %v2344_v46 = vadd.f32 %v17043_v29, %v16923_v7  ;;  %v23518_v29 = vld [vmem:[#allocation65_spill] sm:$0xff] }
 0x1c7   : > { %23495 = vst [vmem:[#allocation112_spill] sm:$0xff] %v17127_v25  ;;  %v17137_v39 = vpop.f32.mrf.mxu0 }
 0x1c8   : > { %v17131_v63 = vpop.f32.mrf.mxu1  ;;  %23500 = vst [vmem:[#allocation117_spill] sm:$0xff] %v17137_v39  ;;  %v23507_v39 = vld [vmem:[#allocation58_spill] sm:$0xff] }
 0x1c9   : > { %23497 = vst [vmem:[#allocation114_spill] sm:$0xff] %v17131_v63  ;;  %v17141_v26 = vpop.f32.mrf.mxu0 }
 0x1ca   : > { %v17135_v19 = vpop.f32.mrf.mxu1  ;;  %23502 = vst [vmem:[#allocation119_spill] sm:$0xff] %v17141_v26  ;;  %v1717_v26 = vadd.f32 %v16635_v41, %v1297_v43  ;;  %v1921_v41 = vadd.f32 %v16917_v2, %v16609_v57 }
 0x1cb   : > { %23499 = vst [vmem:[#allocation116_spill] sm:$0xff] %v17135_v19  ;;  %v17145_v1 = vpop.f32.mrf.mxu0  ;;  %v1313_v19 = vadd.f32 %v16617_v15, %v23506_v42  ;;  %v1913_v15 = vadd.f32 %v16704_v52, %v16559_v50 }
 0x1cc   : > { %v17139_v28 = vpop.f32.mrf.mxu1  ;;  %23504 = vst [vmem:[#allocation121_spill] sm:$0xff] %v17145_v1  ;;  %v23508_v1 = vld [vmem:[#allocation59_spill] sm:$0xff]  ;;  %v1925_v43 = vadd.f32 %v16949_v40, %v1717_v26 }
 0x1cd   : > { %23501 = vst [vmem:[#allocation118_spill] sm:$0xff] %v17139_v28  ;;  %v17151_v63 = vpop.f32.mrf.mxu0  ;;  %v1329_v28 = vadd.f32 %v16642_v0, %v23507_v39  ;;  %v1721_v17 = vadd.f32 %v16659_v62, %v1313_v19  ;;  %v1917_v0 = vadd.f32 %v16865_v11, %v16579_v30  ;;  %v2133_v30 = vadd.f32 %v16963_v10, %v1921_v41  ;;  %v23517_v39 = vld [vmem:[#allocation86_spill] sm:$0xff]  ;;  %v23522_v41 = vld [vmem:[#allocation88_spill] sm:$0xff] }
 0x1ce   : > { %v17143_v54 = vpop.f32.mrf.mxu1  ;;  %v2137_v57 = vadd.f32 %v16985_v34, %v1925_v43  ;;  %v2337_v10 = vadd.f32 %v17017_v35, %v2121_v59  ;;  %v23511_v35 = vld [vmem:[#allocation80_spill] sm:$0xff] }
 0x1cf   : > { %23503 = vst [vmem:[#allocation120_spill] sm:$0xff] %v17143_v54  ;;  %v17160_v54 = vpop.f32.mrf.mxu0  ;;  %v1725_v42 = vadd.f32 %v16680_v13, %v1329_v28  ;;  %v1929_v50 = vadd.f32 %v16966_v61, %v1721_v17  ;;  %v2129_v13 = vadd.f32 %v16935_v9, %v1917_v0  ;;  %v2339_v9 = vadd.f32 %v17015_v4, %v16713_v60  ;;  %v23516_v17 = vld [vmem:[#allocation84_spill] sm:$0xff] }
 0x1d0   : > { %v17147_v3 = vpop.f32.mrf.mxu1  ;;  %v2342_v61 = vadd.f32 %v17021_v56, %v16868_v45  ;;  %v2541_v60 = vadd.f32 %v17033_v33, %v2338_v51  ;;  %v2540_v33 = vadd.f32 %v23511_v35, %v2337_v10  ;;  %v23512_v56 = vld [vmem:[#allocation82_spill] sm:$0xff] }
 0x1d1   : > { %23505 = vst [vmem:[#allocation122_spill] sm:$0xff] %v17147_v3  ;;  %v1345_v3 = vadd.f32 %v16664_v5, %v23508_v1  ;;  %v17175_v1 = vpop.f32.mrf.mxu0  ;;  %v2125_v5 = vadd.f32 %v16914_v27, %v1913_v15  ;;  %v1933_v52 = vadd.f32 %v16988_v36, %v1725_v42  ;;  %v2336_v27 = vadd.f32 %v17009_v53, %v16708_v24  ;;  %v23520_v15 = vld [vmem:[#allocation66_spill] sm:$0xff]  ;;  %v23521_v42 = vld [vmem:[#allocation89_spill] sm:$0xff] }
 0x1d2   : > { %v17155_v25 = vpop.f32.mrf.mxu1  ;;  %v2343_v24 = vadd.f32 %v17031_v22, %v16911_v23  ;;  %v2542_v18 = vadd.f32 %v17041_v38, %v2339_v9  ;;  %v23509_v23 = vld [vmem:[#allocation63_spill] sm:$0xff]  ;;  %v2545_v16 = vadd.f32 %v23512_v56, %v2342_v61  ;;  %v17228_v38 = vadd.f32 %v23516_v17, %v2340_v47  ;;  %v23528_v10 = vld [vmem:[#allocation94_spill] sm:$0xff]  ;;  %v23533_v56 = vld [vmem:[#allocation96_spill] sm:$0xff] }
 0x1d3   : > { %v1729_v62 = vadd.f32 %v16699_v6, %v1345_v3  ;;  %v17185_v2 = vpop.f32.mrf.mxu0  ;;  %v2141_v6 = vadd.f32 %v16998_v14, %v1929_v50  ;;  %v17196_v40 = vadd.f32 %v17013_v48, %v1933_v52  ;;  %v2341_v14 = vadd.f32 %v17035_v37, %v2125_v5  ;;  %v23510_v48 = vld [vmem:[#allocation81_spill] sm:$0xff]  ;;  %v23519_v3 = vld [vmem:[#allocation87_spill] sm:$0xff] }
 0x1d4   : > { %v14281_v49 = vpop.f32.mrf.mxu1  ;;  %v2539_v45 = vadd.f32 %v17037_v58, %v2336_v27  ;;  %v2347_v4 = vadd.f32 %v23510_v48, %v23509_v23  ;;  %v17231_v28 = vadd.f32 %v23517_v39, %v2343_v24  ;;  %v2348_v21 = vadd.f32 %v23519_v3, %v23518_v29  ;;  %v23524_v50 = vld [vmem:[#allocation91_spill] sm:$0xff]  ;;  %v23527_v27 = vld [vmem:[#allocation92_spill] sm:$0xff]  ;;  %v23529_v24 = vld [vmem:[#allocation69_spill] sm:$0xff] }
 0x1d5   : > { %v1937_v11 = vadd.f32 %v17001_v8, %v1729_v62  ;;  %v17201_v34 = vpop.f32.mrf.mxu0  ;;  %v2346_v8 = vadd.f32 %v17039_v20, %v16920_v55  ;;  %v23514_v55 = vld [vmem:[#allocation64_spill] sm:$0xff]  ;;  %v23515_v20 = vld [vmem:[#allocation85_spill] sm:$0xff]  ;;  %v2351_v0 = vadd.f32 %v23521_v42, %v23520_v15  ;;  %v17240_v43 = vadd.f32 %v23522_v41, %v2341_v14  ;;  %v23523_v62 = vld [vmem:[#allocation90_spill] sm:$0xff] }
 0x1d6   : > { %v2630_v44 = vpop.f32.mrf.mxu1  ;;  %v2350_v58 = vadd.f32 %v23515_v20, %v23514_v55  ;;  %v23525_v52 = vld [vmem:[#allocation67_spill] sm:$0xff]  ;;  %v17249_v9 = vadd.f32 %v23527_v27, %v2344_v46  ;;  %v17252_v61 = vadd.f32 %v23528_v10, %v2347_v4  ;;  %v23531_v48 = vld [vmem:[#allocation70_spill] sm:$0xff]  ;;  %v3316_v4 = vld [vmem:[%s23441_s12 + $0x48] sm:$0xff]  ;;  %v2353_v20 = vadd.f32 %v17093_v32, %v2137_v57 }
 0x1d7   : > { %v17208_v36 = vadd.f32 %v17029_v12, %v1937_v11  ;;  %v17216_v53 = vpop.f32.mrf.mxu0  ;;  %v23513_v12 = vld [vmem:[#allocation83_spill] sm:$0xff]  ;;  %v17243_v59 = vadd.f32 %v23523_v62, %v2346_v8  ;;  %v23526_v11 = vld [vmem:[#allocation93_spill] sm:$0xff]  ;;  %v23535_v39 = vld [vmem:[#allocation102_spill] sm:$0xff]  ;;  %v2757_v57 = vadd.f32 %v2630_v44, %v2539_v45 }
 0x1d8   : > { %v14282_v19 = vpop.f32.mrf.mxu1  ;;  %v2345_v22 = vadd.f32 %v23513_v12, %v2129_v13  ;;  %v2349_v13 = vadd.f32 %v23524_v50, %v2133_v30  ;;  %v2354_v51 = vadd.f32 %v23526_v11, %v23525_v52  ;;  %v23530_v14 = vld [vmem:[#allocation95_spill] sm:$0xff]  ;;  %v23532_v8 = vld [vmem:[#allocation97_spill] sm:$0xff]  ;;  %v2759_v30 = vadd.f32 %v14281_v49, %v2541_v60  ;;  %v23536_v3 = vld [vmem:[#allocation98_spill] sm:$0xff] }
 0x1d9   : > { %v17233_v7 = vpop.f32.mrf.mxu0  ;;  %v2352_v23 = vadd.f32 %v23530_v14, %v23529_v24  ;;  %v2355_v35 = vadd.f32 %v23532_v8, %v23531_v48  ;;  %v3315_v46 = vld [vmem:[%s23441_s12 + $0x40] sm:$0xff]  ;;  %v17273_v15 = vadd.f32 %v23536_v3, %v2350_v58  ;;  %v23539_v41 = vld [vmem:[#allocation72_spill] sm:$0xff]  ;;  %v23541_v58 = vld [vmem:[#allocation73_spill] sm:$0xff] }
 0x1da   : > { %v2633_v26 = vpop.f32.mrf.mxu1  ;;  %v17261_v12 = vadd.f32 %v23533_v56, %v2345_v22  ;;  %v23534_v17 = vld [vmem:[#allocation71_spill] sm:$0xff]  ;;  %v23537_v22 = vld [vmem:[#allocation101_spill] sm:$0xff]  ;;  %v2356_v62 = vadd.f32 %v17111_v31, %v23539_v41  ;;  %v23540_v50 = vld [vmem:[#allocation104_spill] sm:$0xff]  ;;  %v17296_v56 = vpack.c.bf16 %v3316_v4, %v3315_v46 }
 0x1db   : > { %v17254_v47 = vpop.f32.mrf.mxu0  ;;  %v2358_v29 = vadd.f32 %v23535_v39, %v23534_v17  ;;  %v17276_v42 = vadd.f32 %v23537_v22, %v2348_v21  ;;  %v17281_v60 = vld [vmem:[%s23538_s30] ss:$0 sm:$0xff]  ;;  %v17286_v32 = vadd.f32 %v23540_v50, %v2351_v0  ;;  %v23542_v27 = vld [vmem:[#allocation106_spill] sm:$0xff]  ;;  %v23543_v21 = vld [vmem:[#allocation105_spill] sm:$0xff]  ;;  %v2760_v39 = vadd.f32 %v14282_v19, %v2542_v18  ;;  %s13269_s30 = sshll.u32 %s24467_s28, 8 }
 0x1dc   : > { %v14285_v37 = vpop.f32.mrf.mxu1  ;;  %v2359_v10 = vadd.f32 %v23542_v27, %v23541_v58  ;;  %v17291_v24 = vadd.f32 %v23543_v21, %v2349_v13  ;;  %v23544_v14 = vld [vmem:[#allocation107_spill] sm:$0xff]  ;;  %23545 = vst [vmem:[#allocation56_spill] sm:$0xff] %v17296_v56  ;;  %v23546_v17 = vld [vmem:[#allocation108_spill] sm:$0xff]  ;;  %v23548_v3 = vld [vmem:[#allocation110_spill] sm:$0xff]  ;;  %v2758_v4 = vadd.f32 %v2633_v26, %v2540_v33  ;;  %s21322_s3 = scalar_lea.vmem %s23027_s19, %s13269_s30 }
 0x1dd   : > { %v14315_v49 = vpop.f32.mrf.mxu0  ;;  %v17294_v48 = vadd.f32 %v23544_v14, %v2354_v51  ;;  %v2357_v31 = vadd.f32 %v23546_v17, %v2141_v6  ;;  %v23550_v41 = vld [vmem:[#allocation112_spill] sm:$0xff]  ;;  %v23551_v50 = vld [vmem:[#allocation109_spill] sm:$0xff]  ;;  %v23552_v51 = vld [vmem:[#allocation111_spill] sm:$0xff] }
 0x1de   : > { %v2646_v5 = vpop.f32.mrf.mxu1  ;;  %v2967_v11 = vadd.f32 %v14315_v49, %v2759_v30  ;;  %v23547_v30 = vld [vmem:[#allocation74_spill] sm:$0xff]  ;;  %v23549_v49 = vld [vmem:[#allocation75_spill] sm:$0xff]  ;;  %v17305_v58 = vadd.f32 %v23551_v50, %v2352_v23  ;;  %v17308_v27 = vadd.f32 %v23552_v51, %v2355_v35 }
 0x1df   : > { %v2838_v8 = vpop.f32.mrf.mxu0  ;;  %v2362_v22 = vadd.f32 %v23548_v3, %v23547_v30  ;;  %v2360_v13 = vadd.f32 %v23550_v41, %v23549_v49  ;;  %v23554_v21 = vld [vmem:[#allocation114_spill] sm:$0xff]  ;;  %v23556_v30 = vld [vmem:[#allocation113_spill] sm:$0xff]  ;;  %v23557_v23 = vld [vmem:[#allocation115_spill] sm:$0xff]  ;;  %v2763_v41 = vadd.f32 %v14285_v37, %v2545_v16  ;;  %v2761_v37 = vadd.f32 %v2646_v5, %v17228_v38 }
 0x1e0   : > { %v14286_v55 = vpop.f32.mrf.mxu1  ;;  %v3006_v44 = vadd.f32 %v17281_v60, %v2967_v11  ;;  %v2965_v45 = vadd.f32 %v2838_v8, %v2757_v57  ;;  %v23553_v57 = vld [vmem:[#allocation76_spill] sm:$0xff]  ;;  %v17316_v3 = vadd.f32 %v23556_v30, %v2353_v20  ;;  %v17319_v49 = vadd.f32 %v23557_v23, %v2358_v29  ;;  %v23559_v50 = vld [vmem:[#allocation118_spill] sm:$0xff]  ;;  %v23562_v20 = vld [vmem:[#allocation117_spill] sm:$0xff] }
 0x1e1   : > { %v14316_v46 = vpop.f32.mrf.mxu0  ;;  %v2363_v14 = vadd.f32 %v23554_v21, %v23553_v57  ;;  %v23555_v8 = vld [vmem:[#allocation116_spill] sm:$0xff]  ;;  %v17328_v21 = vadd.f32 %v23562_v20, %v2356_v62  ;;  %v23563_v29 = vld [vmem:[#allocation119_spill] sm:$0xff]  ;;  %v23565_v23 = vld [vmem:[#allocation122_spill] sm:$0xff]  ;;  %v2365_v62 = vadd.f32 %v17155_v25, %v17208_v36  ;;  %v2764_v5 = vadd.f32 %v14286_v55, %v17231_v28 }
 0x1e2   : > { %v2649_v52 = vpop.f32.mrf.mxu1  ;;  %v3038_v6 = vmax.f32 %v3006_v44, 0.0  ;;  %v3004_v18 = vadd.f32 %v17281_v60, %v2965_v45  ;;  %v2968_v11 = vadd.f32 %v14316_v46, %v2760_v39  ;;  %v2361_v17 = vadd.f32 %v23555_v8, %v17196_v40  ;;  %v23558_v45 = vld [vmem:[#allocation77_spill] sm:$0xff]  ;;  %v23560_v46 = vld [vmem:[#allocation78_spill] sm:$0xff]  ;;  %v23561_v40 = vld [vmem:[#allocation120_spill] sm:$0xff] }
 0x1e3   : > { %v2841_v35 = vpop.f32.mrf.mxu0  ;;  %v2366_v51 = vadd.f32 %v23559_v50, %v23558_v45  ;;  %v2364_v57 = vadd.f32 %v23561_v40, %v23560_v46  ;;  %v17331_v8 = vadd.f32 %v23563_v29, %v2359_v10  ;;  %v23564_v30 = vld [vmem:[#allocation79_spill] sm:$0xff]  ;;  %v23566_v45 = vld [vmem:[#allocation121_spill] sm:$0xff]  ;;  %v17344_v10 = vadd.f32 %v17151_v63, %v2362_v22 }
 0x1e4   : > { %v14289_v0 = vpop.f32.mrf.mxu1  ;;  %3127 = vst.msk [vmem:[#allocation2 + $0x31] sm:$0xff] %vm3068_vm5, %v3038_v6  ;;  %v3036_v26 = vmax.f32 %v3004_v18, 0.0  ;;  %v3007_v39 = vadd.f32 %v17281_v60, %v2968_v11  ;;  %v2966_v44 = vadd.f32 %v2841_v35, %v2758_v4  ;;  %v2367_v35 = vadd.f32 %v23565_v23, %v23564_v30 }
 0x1e5   : > { %v14319_v16 = vpop.f32.mrf.mxu0  ;;  %v17341_v50 = vadd.f32 %v23566_v45, %v2357_v31  ;;  %v17350_v46 = vadd.f32 %v17160_v54, %v2360_v13  ;;  %v17353_v25 = vadd.f32 %v17175_v1, %v2363_v14  ;;  %v17356_v36 = vadd.f32 %v17185_v2, %v2361_v17 }
 0x1e6   : > { %v2662_v19 = vpop.f32.mrf.mxu1  ;;  %3125 = vst.msk [vmem:[#allocation2 + $0x19] sm:$0xff] %vm3068_vm5, %v3036_v26  ;;  %v3039_v6 = vmax.f32 %v3007_v39, 0.0  ;;  %v3005_v4 = vadd.f32 %v17281_v60, %v2966_v44  ;;  %v2971_v11 = vadd.f32 %v14319_v16, %v2763_v41  ;;  %v17359_v63 = vadd.f32 %v17201_v34, %v2366_v51 }
 0x1e7   : > { %v2854_v38 = vpop.f32.mrf.mxu0  ;;  %v2762_v55 = vadd.f32 %v2649_v52, %v17240_v43  ;;  %v17365_v13 = vadd.f32 %v17216_v53, %v2364_v57  ;;  %v17368_v1 = vadd.f32 %v17233_v7, %v2367_v35  ;;  %v17371_v2 = vadd.f32 %v17254_v47, %v2365_v62 }
 0x1e8   : > { %v14290_v33 = vpop.f32.mrf.mxu1  ;;  %3128 = vst.msk [vmem:[#allocation2 + $0x39] sm:$0xff] %vm3068_vm5, %v3039_v6  ;;  %v3037_v26 = vmax.f32 %v3005_v4, 0.0  ;;  %v3010_v41 = vadd.f32 %v17281_v60, %v2971_v11  ;;  %v2969_v44 = vadd.f32 %v2854_v38, %v2761_v37  ;;  %v2767_v34 = vadd.f32 %v14289_v0, %v17243_v59 }
 0x1e9   : > { %v14320_v28 = vpop.f32.mrf.mxu0  ;;  %v2765_v52 = vadd.f32 %v2662_v19, %v17249_v9  ;;  %v2768_v7 = vadd.f32 %v14290_v33, %v17252_v61 }
 0x1ea   : > { %v2665_v18 = vpop.f32.mrf.mxu1  ;;  %3126 = vst.msk [vmem:[#allocation2 + $0x21] sm:$0xff] %vm3068_vm5, %v3037_v26  ;;  %v3042_v31 = vmax.f32 %v3010_v41, 0.0  ;;  %v3008_v40 = vadd.f32 %v17281_v60, %v2969_v44  ;;  %v2972_v54 = vadd.f32 %v14320_v28, %v2764_v5 }
 0x1eb   : > { %v2857_v14 = vpop.f32.mrf.mxu0  ;;  %v17374_v43 = vld [vmem:[#allocation2 + $0x30] sm:$0xff]  ;;  %v2766_v20 = vadd.f32 %v2665_v18, %v17261_v12 }
 0x1ec   : > { %v14293_v39 = vpop.f32.mrf.mxu1  ;;  %3131 = vst.msk [vmem:[#allocation2 + $0x61] sm:$0xff] %vm3068_vm5, %v3042_v31  ;;  %v3040_v17 = vmax.f32 %v3008_v40, 0.0  ;;  %v3011_v53 = vadd.f32 %v17281_v60, %v2972_v54  ;;  %v2970_v57 = vadd.f32 %v2857_v14, %v2762_v55  ;;  %v3400_v6 = vrot.slane %v17374_v43, 1 }
 0x1ed   : > { %v2771_v47 = vadd.f32 %v14293_v39, %v17273_v15  ;;  %v14323_v0 = vpop.f32.mrf.mxu0  ;;  %v17385_v29 = vld [vmem:[#allocation2 + $0x18] sm:$0xff] }
 0x1ee   : > { %v2678_v22 = vpop.f32.mrf.mxu1  ;;  %3129 = vst.msk [vmem:[#allocation2 + $0x49] sm:$0xff] %vm3068_vm5, %v3040_v17  ;;  %v3043_v9 = vmax.f32 %v3011_v53, 0.0  ;;  %v3009_v16 = vadd.f32 %v17281_v60, %v2970_v57  ;;  %v2975_v37 = vadd.f32 %v14323_v0, %v2767_v34 }
 0x1ef   : > { %v17383_v59 = vadd.f32 %v2678_v22, %v17276_v42  ;;  %v2870_v15 = vpop.f32.mrf.mxu0  ;;  %v3395_v42 = vrot.slane %v17385_v29, 1  ;;  %v17397_v33 = vld [vmem:[#allocation2 + $0x38] sm:$0xff]  ;;  %v17400_v4 = vld [vmem:[#allocation2 + $0x40] sm:$0x3] }
 0x1f0   : > { %v14294_v51 = vpop.f32.mrf.mxu1  ;;  %3132 = vst.msk [vmem:[#allocation2 + $0x69] sm:$0xff] %vm3068_vm5, %v3043_v9  ;;  %v3041_v11 = vmax.f32 %v3009_v16, 0.0  ;;  %v3014_v23 = vadd.f32 %v17281_v60, %v2975_v37  ;;  %v17412_v38 = vpack.c.bf16 %v17397_v33, %v17374_v43  ;;  %v3401_v5 = vrot.slane %v17397_v33, 1 }
 0x1f1   : > { %v17391_v61 = vadd.f32 %v14294_v51, %v17286_v32  ;;  %v2973_v32 = vadd.f32 %v2870_v15, %v2765_v52  ;;  %v14324_v62 = vpop.f32.mrf.mxu0  ;;  %v17408_v45 = vld [vmem:[#allocation2 + $0x20] sm:$0xff]  ;;  %v17415_v26 = vld [vmem:[#allocation2 + $0x28] sm:$0x3]  ;;  %v3403_v39 = vrot.slane %v17400_v4, 1 }
 0x1f2   : > { %v2681_v19 = vpop.f32.mrf.mxu1  ;;  %3130 = vst.msk [vmem:[#allocation2 + $0x51] sm:$0xff] %vm3068_vm5, %v3041_v11  ;;  %v3046_v41 = vmax.f32 %v3014_v23, 0.0  ;;  %v2976_v28 = vadd.f32 %v14324_v62, %v2768_v7  ;;  %v17422_v55 = vpack.c.bf16 %v17408_v45, %v17385_v29  ;;  %v3396_v40 = vrot.slane %v17408_v45, 1 }
 0x1f3   : > { %v17394_v12 = vadd.f32 %v2681_v19, %v17291_v24  ;;  %v2873_v22 = vpop.f32.mrf.mxu0  ;;  %v3398_v34 = vrot.slane %v17415_v26, 1  ;;  %v3404_v9 = vsel %vm791_vm2, %v3401_v5, %v3403_v39  ;;  %v17447_v11 = vld [vmem:[#allocation2 + $0x60] sm:$0xff] }
 0x1f4   : > { %v14297_v30 = vpop.f32.mrf.mxu1  ;;  %3135 = vst.msk [vmem:[#allocation2 + $0x91] sm:$0xff] %vm3068_vm5, %v3046_v41  ;;  %v3015_v17 = vadd.f32 %v17281_v60, %v2976_v28  ;;  %v2974_v51 = vadd.f32 %v2873_v22, %v2766_v20  ;;  %14382 = vmatmul.mubr.msk.bf16.vlgmr.msra.gmra.mxu0 %vm3068_vm5, %v17422_v55  ;;  %v3397_v7 = vsel %vm791_vm2, %v3395_v42, %v3396_v40  ;;  %v23570_v28 = vld [vmem:[#allocation68_spill] sm:$0xff] }
 0x1f5   : > { %v17406_v24 = vadd.f32 %v14297_v30, %v17294_v48  ;;  %v3012_v48 = vadd.f32 %v17281_v60, %v2973_v32  ;;  %v14327_v57 = vpop.f32.mrf.mxu0  ;;  %14385 = vmatprep.mubr.msk.bf16.mxu0 %vm3068_vm5, %v17412_v38  ;;  %v3399_v0 = vsel %vm791_vm2, %v3396_v40, %v3398_v34  ;;  %v17441_v19 = vld [vmem:[#allocation2 + $0x48] sm:$0xff]  ;;  %v23568_v30 = vld [vmem:[#allocation99_spill] sm:$0xff] }
 0x1f6   : > { %v2694_v44 = vpop.f32.mrf.mxu1  ;;  %v3047_v20 = vmax.f32 %v3015_v17, 0.0  ;;  %v3013_v37 = vadd.f32 %v17281_v60, %v2974_v51  ;;  %v17445_v15 = vpack.c.bf16 %v3399_v0, %v3397_v7  ;;  %14448 = vmatpush3.bf16.msra.mxu0 %v23568_v30 }
 0x1f7   : > { %v17425_v31 = vadd.f32 %v2694_v44, %v17305_v58  ;;  %v3044_v14 = vmax.f32 %v3012_v48, 0.0  ;;  %v3402_v58 = vsel %vm791_vm2, %v3400_v6, %v3401_v5  ;;  %v2979_v6 = vadd.f32 %v14327_v57, %v2771_v47  ;;  %v2886_v32 = vpop.f32.mrf.mxu0  ;;  %v17459_v39 = vld [vmem:[#allocation2 + $0x68] sm:$0xff]  ;;  %v17490_v7 = vld [vmem:[#allocation2 + $0x70] sm:$0x3] }
 0x1f8   : > { %v14298_v52 = vpop.f32.mrf.mxu1  ;;  %23567 = vst [vmem:[#allocation58_spill] sm:$0xff] %v17445_v15  ;;  %v17456_v62 = vpack.c.bf16 %v3404_v9, %v3402_v58  ;;  %v3405_v5 = vrot.slane %v17441_v19, 1  ;;  %3136 = vst.msk [vmem:[#allocation2 + $0x99] sm:$0xff] %vm3068_vm5, %v3047_v20  ;;  %v3045_v47 = vmax.f32 %v3013_v37, 0.0  ;;  %v2977_v48 = vadd.f32 %v2886_v32, %v17383_v59  ;;  %14348 = vmatmul.mubr.msk.bf16.vlgmr.msra.gmra.mxu1 %vm3068_vm5, %v17445_v15 }
 0x1f9   : > { %3133 = vst.msk [vmem:[#allocation2 + $0x79] sm:$0xff] %vm3068_vm5, %v3044_v14  ;;  %v17451_v42 = vadd.f32 %v14298_v52, %v17308_v27  ;;  %v3018_v44 = vadd.f32 %v17281_v60, %v2979_v6  ;;  %14414 = vmatpush3.bf16.msra.mxu1 %v23570_v28  ;;  %v14328_v22 = vpop.f32.mrf.mxu0  ;;  %v17473_v40 = vld [vmem:[#allocation2 + $0x50] sm:$0xff]  ;;  %v17477_v34 = vpack.c.bf16 %v17459_v39, %v17447_v11  ;;  %v3410_v59 = vrot.slane %v17447_v11, 1  ;;  %v17481_v52 = vld [vmem:[#allocation2 + $0x58] sm:$0x3] }
 0x1fa   : > { %v2697_v16 = vpop.f32.mrf.mxu1  ;;  %23569 = vst [vmem:[#allocation59_spill] sm:$0xff] %v17456_v62  ;;  %14351 = vmatprep.mubr.msk.bf16.mxu1 %vm3068_vm5, %v17456_v62  ;;  %v3411_v14 = vrot.slane %v17459_v39, 1  ;;  %3134 = vst.msk [vmem:[#allocation2 + $0x81] sm:$0xff] %vm3068_vm5, %v3045_v47  ;;  %v3016_v51 = vadd.f32 %v17281_v60, %v2977_v48  ;;  %v2980_v58 = vadd.f32 %v14328_v22, %v17391_v61  ;;  %14481 = vmatprep.subr.bf16.mxu1 %v17296_v56 }
 0x1fb   : > { %v17454_v23 = vadd.f32 %v2697_v16, %v17316_v3  ;;  %23571 = vst [vmem:[#allocation63_spill] sm:$0xff] %v17477_v34  ;;  %v17488_v57 = vpack.c.bf16 %v17473_v40, %v17441_v19  ;;  %v2889_v9 = vpop.f32.mrf.mxu0  ;;  %v3406_v20 = vrot.slane %v17473_v40, 1  ;;  %v3413_v28 = vrot.slane %v17490_v7, 1 }
 0x1fc   : > { %v14301_v41 = vpop.f32.mrf.mxu1  ;;  %v3048_v61 = vmax.f32 %v3016_v51, 0.0  ;;  %v3019_v30 = vadd.f32 %v17281_v60, %v2980_v58  ;;  %v2978_v32 = vadd.f32 %v2889_v9, %v17394_v12  ;;  %v3412_v48 = vsel %vm791_vm2, %v3410_v59, %v3411_v14 }
 0x1fd   : > { %v17468_v3 = vadd.f32 %v14301_v41, %v17319_v49  ;;  %v3050_v49 = vmax.f32 %v3018_v44, 0.0  ;;  %14386 = vmatmul.mubr.msk.bf16.gmra.mxu0 %vm3068_vm5, %v17488_v57  ;;  %v14331_v47 = vpop.f32.mrf.mxu0  ;;  %v3407_v44 = vsel %vm791_vm2, %v3405_v5, %v3406_v20  ;;  %v23593_v56 = vrot.slane %v17441_v19, 2 }
 0x1fe   : > { %v2710_v17 = vpop.f32.mrf.mxu1  ;;  %14389 = vmatprep.mubr.msk.bf16.mxu0 %vm3068_vm5, %v17477_v34  ;;  %3137 = vst.msk [vmem:[#allocation2 + $0xa9] sm:$0xff] %vm3068_vm5, %v3048_v61  ;;  %v3051_v12 = vmax.f32 %v3019_v30, 0.0  ;;  %v3414_v61 = vsel %vm791_vm2, %v3411_v14, %v3413_v28  ;;  %v3950_v34 = vrot.slane %v17400_v4, 2  ;;  %v23594_v4 = vrot.slane %v17408_v45, 2 }
 0x1ff   : > { %v17494_v0 = vadd.f32 %v2710_v17, %v17328_v21  ;;  %3139 = vst.msk [vmem:[#allocation2 + $0xc1] sm:$0xff] %vm3068_vm5, %v3050_v49  ;;  %v3408_v21 = vrot.slane %v17481_v52, 1  ;;  %v3017_v49 = vadd.f32 %v17281_v60, %v2978_v32  ;;  %v2983_v17 = vadd.f32 %v14331_v47, %v17406_v24  ;;  %v2902_v59 = vpop.f32.mrf.mxu0  ;;  %v17526_v30 = vld [vmem:[#allocation2 + $0x98] sm:$0xff] }
 0x200   : > { %v14302_v6 = vpop.f32.mrf.mxu1  ;;  %v17515_v58 = vld [vmem:[#allocation2 + $0x78] sm:$0xff]  ;;  %3140 = vst.msk [vmem:[#allocation2 + $0xc9] sm:$0xff] %vm3068_vm5, %v3051_v12  ;;  %v3955_v19 = vrot.slane %v17481_v52, 2  ;;  %v23597_v52 = vrot.slane %v17459_v39, 2 }
 0x201   : > { %v3409_v51 = vsel %vm791_vm2, %v3406_v20, %v3408_v21  ;;  %v17518_v9 = vadd.f32 %v14302_v6, %v17331_v8  ;;  %v3049_v24 = vmax.f32 %v3017_v49, 0.0  ;;  %v3022_v20 = vadd.f32 %v17281_v60, %v2983_v17  ;;  %v17533_v6 = vld [vmem:[#allocation2 + $0x90] sm:$0xff]  ;;  %v14332_v14 = vpop.f32.mrf.mxu0  ;;  %v17540_v47 = vld [vmem:[#allocation2 + $0x80] sm:$0xff]  ;;  %v17557_v17 = vld [vmem:[#allocation2 + $0x88] sm:$0x3] }
 0x202   : > { %v2713_v22 = vpop.f32.mrf.mxu1  ;;  %v17523_v37 = vpack.c.bf16 %v3409_v51, %v3407_v44  ;;  %v2981_v21 = vadd.f32 %v2902_v59, %v17425_v31  ;;  %v17531_v8 = vpack.c.bf16 %v3414_v61, %v3412_v48  ;;  %v3415_v44 = vrot.slane %v17515_v58, 1 }
 0x203   : > { %v17521_v5 = vadd.f32 %v2713_v22, %v17341_v50  ;;  %v17546_v31 = vpack.c.bf16 %v17526_v30, %v17533_v6  ;;  %3138 = vst.msk [vmem:[#allocation2 + $0xb1] sm:$0xff] %vm3068_vm5, %v3049_v24  ;;  %v3054_v48 = vmax.f32 %v3022_v20, 0.0  ;;  %v2984_v22 = vadd.f32 %v14332_v14, %v17451_v42  ;;  %v2905_v59 = vpop.f32.mrf.mxu0 }
 0x204   : > { %23572 = vst [vmem:[#allocation81_spill] sm:$0xff] %v17523_v37  ;;  %v14305_v32 = vpop.f32.mrf.mxu1  ;;  %23573 = vst [vmem:[#allocation80_spill] sm:$0xff] %v17531_v8  ;;  %14352 = vmatmul.mubr.msk.bf16.gmra.mxu1 %vm3068_vm5, %v17523_v37  ;;  %v17555_v49 = vpack.c.bf16 %v17540_v47, %v17515_v58  ;;  %v3416_v61 = vrot.slane %v17540_v47, 1  ;;  %v3420_v24 = vrot.slane %v17533_v6, 1  ;;  %v2982_v14 = vadd.f32 %v2905_v59, %v17454_v23 }
 0x205   : > { %v17536_v50 = vadd.f32 %v14305_v32, %v17344_v10  ;;  %23574 = vst [vmem:[#allocation82_spill] sm:$0xff] %v17546_v31  ;;  %v3020_v10 = vadd.f32 %v17281_v60, %v2981_v21  ;;  %14355 = vmatprep.mubr.msk.bf16.mxu1 %vm3068_vm5, %v17531_v8  ;;  %v3421_v32 = vrot.slane %v17526_v30, 1  ;;  %3143 = vst.msk [vmem:[#allocation2 + $0xf1] sm:$0xff] %vm3068_vm5, %v3054_v48  ;;  %v14335_v41 = vpop.f32.mrf.mxu0  ;;  %v3418_v23 = vrot.slane %v17557_v17, 1 }
 0x206   : > { %v2726_v12 = vpop.f32.mrf.mxu1  ;;  %23575 = vst [vmem:[#allocation83_spill] sm:$0xff] %v17555_v49  ;;  %v3023_v21 = vadd.f32 %v17281_v60, %v2984_v22  ;;  %14390 = vmatmul.mubr.msk.bf16.gmra.mxu0 %vm3068_vm5, %v17555_v49  ;;  %v2987_v27 = vadd.f32 %v14335_v41, %v17468_v3 }
 0x207   : > { %v17560_v51 = vadd.f32 %v2726_v12, %v17350_v46  ;;  %v3052_v20 = vmax.f32 %v3020_v10, 0.0  ;;  %v17571_v12 = vld [vmem:[#allocation2 + $0xa0] sm:$0x3]  ;;  %14393 = vmatprep.mubr.msk.bf16.mxu0 %vm3068_vm5, %v17546_v31  ;;  %v3417_v10 = vsel %vm791_vm2, %v3415_v44, %v3416_v61  ;;  %v3021_v46 = vadd.f32 %v17281_v60, %v2982_v14  ;;  %v2918_v48 = vpop.f32.mrf.mxu0  ;;  %v17598_v54 = vld [vmem:[#allocation2 + $0xc8] sm:$0xff] }
 0x208   : > { %v14306_v42 = vpop.f32.mrf.mxu1  ;;  %v3055_v22 = vmax.f32 %v3023_v21, 0.0  ;;  %v3419_v44 = vsel %vm791_vm2, %v3416_v61, %v3418_v23  ;;  %v3422_v18 = vsel %vm791_vm2, %v3420_v24, %v3421_v32  ;;  %v3026_v3 = vadd.f32 %v17281_v60, %v2987_v27 }
 0x209   : > { %v17574_v28 = vadd.f32 %v14306_v42, %v17353_v25  ;;  %3141 = vst.msk [vmem:[#allocation2 + $0xd9] sm:$0xff] %vm3068_vm5, %v3052_v20  ;;  %v17585_v42 = vld [vmem:[#allocation2 + $0xa8] sm:$0xff]  ;;  %v3423_v20 = vrot.slane %v17571_v12, 1  ;;  %v3053_v21 = vmax.f32 %v3021_v46, 0.0  ;;  %v2985_v41 = vadd.f32 %v2918_v48, %v17494_v0  ;;  %v14336_v24 = vpop.f32.mrf.mxu0 }
 0x20a   : > { %v2729_v59 = vpop.f32.mrf.mxu1  ;;  %3144 = vst.msk [vmem:[#allocation2 + $0xf9] sm:$0xff] %vm3068_vm5, %v3055_v22  ;;  %v17596_v25 = vpack.c.bf16 %v3419_v44, %v3417_v10  ;;  %v17604_v23 = vld [vmem:[#allocation2 + $0xb0] sm:$0xff]  ;;  %v3425_v22 = vrot.slane %v17585_v42, 1  ;;  %v3058_v27 = vmax.f32 %v3026_v3, 0.0  ;;  %v17615_v10 = vld [vmem:[#allocation2 + $0xc0] sm:$0xff]  ;;  %v3431_v46 = vrot.slane %v17598_v54, 1 }
 0x20b   : > { %v17588_v16 = vadd.f32 %v2729_v59, %v17356_v36  ;;  %v3424_v61 = vsel %vm791_vm2, %v3421_v32, %v3423_v20  ;;  %3142 = vst.msk [vmem:[#allocation2 + $0xe1] sm:$0xff] %vm3068_vm5, %v3053_v21  ;;  %v3024_v48 = vadd.f32 %v17281_v60, %v2985_v41  ;;  %v2988_v32 = vadd.f32 %v14336_v24, %v17518_v9  ;;  %v2921_v44 = vpop.f32.mrf.mxu0  ;;  %v17637_v24 = vld [vmem:[#allocation2 + $0xd0] sm:$0x3] }
 0x20c   : > { %v14309_v14 = vpop.f32.mrf.mxu1  ;;  %23576 = vst [vmem:[#allocation64_spill] sm:$0xff] %v17596_v25  ;;  %14356 = vmatmul.mubr.msk.bf16.gmra.mxu1 %vm3068_vm5, %v17596_v25  ;;  %v17622_v20 = vpack.c.bf16 %v17604_v23, %v17585_v42  ;;  %v3426_v21 = vrot.slane %v17604_v23, 1  ;;  %3147 = vst.msk [vmem:[#allocation2 + $0x121] sm:$0xff] %vm3068_vm5, %v3058_v27  ;;  %v2986_v3 = vadd.f32 %v2921_v44, %v17521_v5  ;;  %v17673_v15 = vld [vmem:[#allocation2 + $0xf0] sm:$0xff] }
 0x20d   : > { %v17601_v36 = vadd.f32 %v14309_v14, %v17359_v63  ;;  %v17612_v63 = vpack.c.bf16 %v3424_v61, %v3422_v18  ;;  %v17627_v14 = vpack.c.bf16 %v17598_v54, %v17615_v10  ;;  %v3056_v18 = vmax.f32 %v3024_v48, 0.0  ;;  %v17635_v61 = vld [vmem:[#allocation2 + $0xb8] sm:$0x3]  ;;  %v14339_v27 = vpop.f32.mrf.mxu0 }
 0x20e   : > { %v2742_v0 = vpop.f32.mrf.mxu1  ;;  %23578 = vst [vmem:[#allocation84_spill] sm:$0xff] %v17622_v20  ;;  %14394 = vmatmul.mubr.msk.bf16.gmra.mxu0 %vm3068_vm5, %v17622_v20  ;;  %v3430_v48 = vrot.slane %v17615_v10, 1  ;;  %v3025_v41 = vadd.f32 %v17281_v60, %v2986_v3  ;;  %v2991_v35 = vadd.f32 %v14339_v27, %v17536_v50 }
 0x20f   : > { %23577 = vst [vmem:[#allocation85_spill] sm:$0xff] %v17612_v63  ;;  %v17618_v59 = vadd.f32 %v2742_v0, %v17365_v13  ;;  %23579 = vst [vmem:[#allocation86_spill] sm:$0xff] %v17627_v14  ;;  %14359 = vmatprep.mubr.msk.bf16.mxu1 %vm3068_vm5, %v17612_v63  ;;  %v3027_v13 = vadd.f32 %v17281_v60, %v2988_v32  ;;  %14397 = vmatprep.mubr.msk.bf16.mxu0 %vm3068_vm5, %v17627_v14  ;;  %v2934_v63 = vpop.f32.mrf.mxu0 }
 0x210   : > { %v14310_v9 = vpop.f32.mrf.mxu1  ;;  %3145 = vst.msk [vmem:[#allocation2 + $0x109] sm:$0xff] %vm3068_vm5, %v3056_v18  ;;  %v3427_v32 = vsel %vm791_vm2, %v3425_v22, %v3426_v21  ;;  %v3428_v18 = vrot.slane %v17635_v61, 1  ;;  %v3057_v50 = vmax.f32 %v3025_v41, 0.0  ;;  %v3030_v27 = vadd.f32 %v17281_v60, %v2991_v35 }
 0x211   : > { %v17640_v0 = vadd.f32 %v14310_v9, %v17368_v1  ;;  %v3059_v5 = vmax.f32 %v3027_v13, 0.0  ;;  %v17653_v9 = vld [vmem:[#allocation2 + $0xd8] sm:$0xff]  ;;  %v3433_v13 = vrot.slane %v17637_v24, 1  ;;  %v2989_v1 = vadd.f32 %v2934_v63, %v17560_v51  ;;  %v14340_v22 = vpop.f32.mrf.mxu0 }
 0x212   : > { %v2745_v44 = vpop.f32.mrf.mxu1  ;;  %v17661_v3 = vld [vmem:[#allocation2 + $0xf8] sm:$0xff]  ;;  %v3432_v25 = vsel %vm791_vm2, %v3430_v48, %v3431_v46  ;;  %v17669_v8 = vld [vmem:[#allocation2 + $0xe0] sm:$0xff]  ;;  %v3435_v37 = vrot.slane %v17653_v9, 1  ;;  %3146 = vst.msk [vmem:[#allocation2 + $0x111] sm:$0xff] %vm3068_vm5, %v3057_v50  ;;  %v3062_v35 = vmax.f32 %v3030_v27, 0.0  ;;  %v2992_v41 = vadd.f32 %v14340_v22, %v17574_v28 }
 0x213   : > { %v17656_v53 = vadd.f32 %v2745_v44, %v17371_v2  ;;  %3148 = vst.msk [vmem:[#allocation2 + $0x129] sm:$0xff] %vm3068_vm5, %v3059_v5  ;;  %v3429_v2 = vsel %vm791_vm2, %v3426_v21, %v3428_v18  ;;  %v3434_v44 = vsel %vm791_vm2, %v3431_v46, %v3433_v13  ;;  %v3028_v51 = vadd.f32 %v17281_v60, %v2989_v1  ;;  %v2937_v48 = vpop.f32.mrf.mxu0  ;;  %v17691_v13 = vld [vmem:[#allocation2 + $0xe8] sm:$0x3]  ;;  %v17699_v50 = vld [vmem:[#allocation2 + $0x100] sm:$0x3] }
 0x214   : > { %v17677_v63 = vpack.c.bf16 %v3429_v2, %v3427_v32  ;;  %v17681_v21 = vpack.c.bf16 %v17661_v3, %v17673_v15  ;;  %v17683_v46 = vpack.c.bf16 %v3434_v44, %v3432_v25  ;;  %v17688_v5 = vpack.c.bf16 %v17669_v8, %v17653_v9  ;;  %3151 = vst.msk [vmem:[#allocation2 + $0x151] sm:$0xff] %vm3068_vm5, %v3062_v35 }
 0x215   : > { %v3436_v18 = vrot.slane %v17669_v8, 1  ;;  %v3060_v32 = vmax.f32 %v3028_v51, 0.0  ;;  %v2990_v25 = vadd.f32 %v2937_v48, %v17588_v16  ;;  %v3441_v28 = vrot.slane %v17661_v3, 1  ;;  %v14343_v2 = vpop.f32.mrf.mxu0 }
 0x216   : > { %23580 = vst [vmem:[#allocation65_spill] sm:$0xff] %v17677_v63  ;;  %23581 = vst [vmem:[#allocation87_spill] sm:$0xff] %v17681_v21  ;;  %14360 = vmatmul.mubr.msk.bf16.gmra.mxu1 %vm3068_vm5, %v17677_v63  ;;  %v3031_v27 = vadd.f32 %v17281_v60, %v2992_v41  ;;  %14398 = vmatmul.mubr.msk.bf16.gmra.mxu0 %vm3068_vm5, %v17688_v5  ;;  %v3440_v44 = vrot.slane %v17673_v15, 1  ;;  %v2995_v48 = vadd.f32 %v14343_v2, %v17601_v36 }
 0x217   : > { %23582 = vst [vmem:[#allocation66_spill] sm:$0xff] %v17683_v46  ;;  %23583 = vst [vmem:[#allocation89_spill] sm:$0xff] %v17688_v5  ;;  %14363 = vmatprep.mubr.msk.bf16.mxu1 %vm3068_vm5, %v17683_v46  ;;  %v17709_v35 = vld [vmem:[#allocation2 + $0x108] sm:$0xff]  ;;  %v3029_v51 = vadd.f32 %v17281_v60, %v2990_v25  ;;  %14401 = vmatprep.mubr.msk.bf16.mxu0 %vm3068_vm5, %v17681_v21  ;;  %v3437_v41 = vsel %vm791_vm2, %v3435_v37, %v3436_v18  ;;  %v3438_v62 = vrot.slane %v17691_v13, 1  ;;  %v2950_v46 = vpop.f32.mrf.mxu0 }
 0x218   : > { %3149 = vst.msk [vmem:[#allocation2 + $0x139] sm:$0xff] %vm3068_vm5, %v3060_v32  ;;  %v3063_v1 = vmax.f32 %v3031_v27, 0.0  ;;  %v3442_v22 = vsel %vm791_vm2, %v3440_v44, %v3441_v28  ;;  %v3443_v16 = vrot.slane %v17699_v50, 1  ;;  %v3445_v63 = vrot.slane %v17709_v35, 1  ;;  %v17721_v32 = vld [vmem:[#allocation2 + $0x120] sm:$0xff] }
 0x219   : > { %v3061_v36 = vmax.f32 %v3029_v51, 0.0  ;;  %v3034_v2 = vadd.f32 %v17281_v60, %v2995_v48  ;;  %v2993_v21 = vadd.f32 %v2950_v46, %v17618_v59  ;;  %v3439_v37 = vsel %vm791_vm2, %v3436_v18, %v3438_v62  ;;  %v14344_v5 = vpop.f32.mrf.mxu0  ;;  %v17732_v14 = vld [vmem:[#allocation2 + $0x110] sm:$0xff] }
 0x21a   : > { %v17723_v25 = vld [vmem:[#allocation2 + $0x128] sm:$0xff]  ;;  %3152 = vst.msk [vmem:[#allocation2 + $0x159] sm:$0xff] %vm3068_vm5, %v3063_v1  ;;  %v17729_v27 = vpack.c.bf16 %v3439_v37, %v3437_v41  ;;  %v3444_v44 = vsel %vm791_vm2, %v3441_v28, %v3443_v16  ;;  %v2996_v46 = vadd.f32 %v14344_v5, %v17640_v0  ;;  %v3450_v18 = vrot.slane %v17721_v32, 1  ;;  %v17743_v1 = vld [vmem:[#allocation2 + $0x118] sm:$0x3] }
 0x21b   : > { %v17737_v51 = vpack.c.bf16 %v17723_v25, %v17721_v32  ;;  %3150 = vst.msk [vmem:[#allocation2 + $0x141] sm:$0xff] %vm3068_vm5, %v3061_v36  ;;  %v3066_v59 = vmax.f32 %v3034_v2, 0.0  ;;  %v3032_v62 = vadd.f32 %v17281_v60, %v2993_v21  ;;  %v17745_v28 = vpack.c.bf16 %v3444_v44, %v3442_v22  ;;  %v2953_v16 = vpop.f32.mrf.mxu0  ;;  %v17753_v2 = vld [vmem:[#allocation2 + $0x130] sm:$0x3] }
 0x21c   : > { %23584 = vst [vmem:[#allocation88_spill] sm:$0xff] %v17729_v27  ;;  %v17749_v48 = vpack.c.bf16 %v17732_v14, %v17709_v35  ;;  %v3446_v41 = vrot.slane %v17732_v14, 1  ;;  %v3451_v36 = vrot.slane %v17723_v25, 1  ;;  %v3035_v21 = vadd.f32 %v17281_v60, %v2996_v46  ;;  %v17761_v37 = vld [vmem:[#allocation2 + $0x150] sm:$0xff] }
 0x21d   : > { %23585 = vst [vmem:[#allocation90_spill] sm:$0xff] %v17737_v51  ;;  %23586 = vst [vmem:[#allocation91_spill] sm:$0xff] %v17745_v28  ;;  %v3064_v0 = vmax.f32 %v3032_v62, 0.0  ;;  %v2994_v5 = vadd.f32 %v2953_v16, %v17656_v53  ;;  %v3448_v46 = vrot.slane %v17743_v1, 1  ;;  %v3453_v44 = vrot.slane %v17753_v2, 1 }
 0x21e   : > { %23587 = vst [vmem:[#allocation67_spill] sm:$0xff] %v17749_v48  ;;  %3155 = vst.msk [vmem:[#allocation2 + $0x181] sm:$0xff] %vm3068_vm5, %v3066_v59  ;;  %14364 = vmatmul.mubr.msk.bf16.gmra.mxu1 %vm3068_vm5, %v17729_v27  ;;  %14402 = vmatmul.mubr.msk.bf16.gmra.mxu0 %vm3068_vm5, %v17749_v48  ;;  %v3447_v62 = vsel %vm791_vm2, %v3445_v63, %v3446_v41  ;;  %v3067_v53 = vmax.f32 %v3035_v21, 0.0  ;;  %v3452_v22 = vsel %vm791_vm2, %v3450_v18, %v3451_v36 }
 0x21f   : > { %14367 = vmatprep.mubr.msk.bf16.mxu1 %vm3068_vm5, %v17745_v28  ;;  %v17771_v20 = vld [vmem:[#allocation2 + $0x138] sm:$0xff]  ;;  %3153 = vst.msk [vmem:[#allocation2 + $0x169] sm:$0xff] %vm3068_vm5, %v3064_v0  ;;  %v3033_v16 = vadd.f32 %v17281_v60, %v2994_v5  ;;  %14405 = vmatprep.mubr.msk.bf16.mxu0 %vm3068_vm5, %v17737_v51  ;;  %v3449_v59 = vsel %vm791_vm2, %v3446_v41, %v3448_v46  ;;  %v3460_v27 = vrot.slane %v17761_v37, 1  ;;  %v23588_v51 = vrot.slane %v17408_v45, 2 }
 0x220   : > { %v3455_v63 = vrot.slane %v17771_v20, 1  ;;  %3156 = vst.msk [vmem:[#allocation2 + $0x189] sm:$0xff] %vm3068_vm5, %v3067_v53  ;;  %v17784_v21 = vpack.c.bf16 %v3449_v59, %v3447_v62  ;;  %v3454_v60 = vsel %vm791_vm2, %v3451_v36, %v3453_v44  ;;  %v23589_v41 = vrot.slane %v17385_v29, 2 }
 0x221   : > { %v3065_v0 = vmax.f32 %v3033_v16, 0.0  ;;  %v17787_v5 = vld [vmem:[#allocation2 + $0x158] sm:$0xff]  ;;  %v17789_v18 = vld [vmem:[#allocation2 + $0x160] sm:$0x3]  ;;  %v17796_v28 = vpack.c.bf16 %v3454_v60, %v3452_v22  ;;  %v23590_v44 = vrot.slane %v17397_v33, 2  ;;  %v23596_v45 = vrot.slane %v17473_v40, 2 }
 0x222   : > { %v3944_v46 = vsel %vm1356_vm4, %v23589_v41, %v23588_v51  ;;  %v17798_v48 = vld [vmem:[#allocation2 + $0x140] sm:$0xff]  ;;  %v17802_v59 = vpack.c.bf16 %v17787_v5, %v17761_v37  ;;  %v3461_v36 = vrot.slane %v17787_v5, 1  ;;  %v17806_v62 = vld [vmem:[#allocation2 + $0x148] sm:$0x3]  ;;  %v3463_v60 = vrot.slane %v17789_v18, 1 }
 0x223   : > { %3154 = vst.msk [vmem:[#allocation2 + $0x171] sm:$0xff] %vm3068_vm5, %v3065_v0  ;;  %v17811_v29 = vpack.c.bf16 %v17798_v48, %v17771_v20  ;;  %v3456_v51 = vrot.slane %v17798_v48, 1  ;;  %v3458_v53 = vrot.slane %v17806_v62, 1  ;;  %v3945_v41 = vrot.slane %v17415_v26, 2 }
 0x224   : > { %v3462_v16 = vsel %vm791_vm2, %v3460_v27, %v3461_v36  ;;  %v23591_v0 = vrot.slane %v17374_v43, 2  ;;  %v23592_v27 = vrot.slane %v17473_v40, 2  ;;  %v4003_v43 = vrot.slane %v17798_v48, 2 }
 0x225   : > { %v3457_v49 = vsel %vm791_vm2, %v3455_v63, %v3456_v51  ;;  %v3459_v22 = vsel %vm791_vm2, %v3456_v51, %v3458_v53  ;;  %v3464_v63 = vsel %vm791_vm2, %v3461_v36, %v3463_v60  ;;  %v3946_v51 = vsel %vm1356_vm4, %v23594_v4, %v3945_v41 }
 0x226   : > { %v3949_v31 = vsel %vm1356_vm4, %v23591_v0, %v23590_v44  ;;  %14368 = vmatmul.mubr.msk.bf16.gmra.mxu1 %vm3068_vm5, %v17784_v21  ;;  %v3954_v26 = vsel %vm1356_vm4, %v23593_v56, %v23592_v27  ;;  %14406 = vmatmul.mubr.msk.bf16.gmra.mxu0 %vm3068_vm5, %v17811_v29  ;;  %v17840_v44 = vld [vmem:[#allocation2 + $0x168] sm:$0xff]  ;;  %v17848_v56 = vpack.c.bf16 %v3459_v22, %v3457_v49  ;;  %v23595_v36 = vrot.slane %v17397_v33, 2 }
 0x227   : > { %14371 = vmatprep.mubr.msk.bf16.mxu1 %vm3068_vm5, %v17796_v28  ;;  %14409 = vmatprep.mubr.msk.bf16.mxu0 %vm3068_vm5, %v17802_v59  ;;  %v17850_v53 = vpack.c.bf16 %v3464_v63, %v3462_v16  ;;  %v3465_v0 = vrot.slane %v17840_v44, 1  ;;  %v17853_v27 = vpack.c.bf16 %v3946_v51, %v3944_v46  ;;  %v3956_v41 = vsel %vm1356_vm4, %v23596_v45, %v3955_v19 }
 0x228   : > { %v3951_v60 = vsel %vm1356_vm4, %v23595_v36, %v3950_v34  ;;  %v23598_v4 = vrot.slane %v17447_v11, 2  ;;  %v3960_v22 = vrot.slane %v17490_v7, 2  ;;  %v17869_v46 = vpack.c.bf16 %v3956_v41, %v3954_v26 }
 0x229   : > { %v17867_v16 = vpack.c.bf16 %v3951_v60, %v3949_v31  ;;  %v23599_v33 = vrot.slane %v17540_v47, 2  ;;  %v23600_v34 = vrot.slane %v17515_v58, 2  ;;  %v3965_v63 = vrot.slane %v17557_v17, 2 }
 0x22a   : > { %v3959_v49 = vsel %vm1356_vm4, %v23598_v4, %v23597_v52  ;;  %v17877_v51 = vld [vmem:[#allocation2 + $0x170] sm:$0xff]  ;;  %v17879_v19 = vld [vmem:[#allocation2 + $0x178] sm:$0x3]  ;;  %v23601_v11 = vmov %v23597_v52  ;;  %v23602_v31 = vrot.slane %v17526_v30, 2  ;;  %v23603_v26 = vrot.slane %v17533_v6, 2 }
 0x22b   : > { %v3964_v40 = vsel %vm1356_vm4, %v23600_v34, %v23599_v33  ;;  %v3961_v7 = vsel %vm1356_vm4, %v23601_v11, %v3960_v22  ;;  %v3970_v58 = vrot.slane %v17571_v12, 2  ;;  %v23604_v60 = vrot.slane %v17604_v23, 2 }
 0x22c   : > { %v3969_v36 = vsel %vm1356_vm4, %v23603_v26, %v23602_v31  ;;  %v23605_v17 = vrot.slane %v17585_v42, 2  ;;  %v17897_v41 = vpack.c.bf16 %v17877_v51, %v17840_v44  ;;  %v3466_v39 = vrot.slane %v17877_v51, 1 }
 0x22d   : > { %v4013_v52 = vrot.slane %v17877_v51, 2  ;;  %v3468_v6 = vrot.slane %v17879_v19, 1  ;;  %v17902_v4 = vpack.c.bf16 %v3961_v7, %v3959_v49  ;;  %v23606_v12 = vmov %v23599_v33  ;;  %v23642_v51 = vld [vmem:[#allocation56_spill] sm:$0xff] }
 0x22e   : > { %v3974_v45 = vsel %vm1356_vm4, %v23605_v17, %v23604_v60  ;;  %v3966_v22 = vsel %vm1356_vm4, %v23606_v12, %v3965_v63  ;;  %v23607_v42 = vmov %v23602_v31  ;;  %v3975_v34 = vrot.slane %v17635_v61, 2  ;;  %14372 = vmatmul.mubr.msk.bf16.gmra.mxu1 %vm3068_vm5, %v17848_v56  ;;  %14410 = vmatmul.mubr.msk.bf16.gmra.mxu0 %vm3068_vm5, %v17897_v41 }
 0x22f   : > { %v3971_v33 = vsel %vm1356_vm4, %v23607_v42, %v3970_v58  ;;  %v3467_v11 = vsel %vm791_vm2, %v3465_v0, %v3466_v39  ;;  %v3469_v31 = vsel %vm791_vm2, %v3466_v39, %v3468_v6  ;;  %v17915_v26 = vpack.c.bf16 %v3966_v22, %v3964_v40  ;;  %14375 = vmatprep.mubr.msk.bf16.mxu1 %vm3068_vm5, %v17850_v53 }
 0x230   : > { %v17917_v49 = vpack.c.bf16 %v3971_v33, %v3969_v36  ;;  %v17923_v30 = vpack.c.bf16 %v3469_v31, %v3467_v11  ;;  %v23610_v47 = vmov %v23604_v60  ;;  %v23611_v0 = vrot.slane %v17598_v54, 2  ;;  %14449 = vmatprep.mubr.msk.bf16.mxu0 %vm3068_vm5, %v17422_v55 }
 0x231   : > { %23608 = vst [vmem:[#allocation93_spill] sm:$0xff] %v17915_v26  ;;  %v3976_v61 = vsel %vm1356_vm4, %v23610_v47, %v3975_v34  ;;  %v23612_v63 = vrot.slane %v17615_v10, 2  ;;  %v3980_v7 = vrot.slane %v17637_v24, 2  ;;  %v23614_v58 = vrot.slane %v17669_v8, 2 }
 0x232   : > { %23609 = vst [vmem:[#allocation92_spill] sm:$0xff] %v17917_v49  ;;  %v17936_v36 = vpack.c.bf16 %v3976_v61, %v3974_v45  ;;  %v23615_v60 = vrot.slane %v17653_v9, 2  ;;  %v3985_v17 = vrot.slane %v17691_v13, 2  ;;  %v23616_v39 = vrot.slane %v17661_v3, 2 }
 0x233   : > { %v3979_v40 = vsel %vm1356_vm4, %v23612_v63, %v23611_v0  ;;  %v23617_v10 = vrot.slane %v17673_v15, 2  ;;  %v23618_v24 = vmov %v23611_v0  ;;  %v3990_v45 = vrot.slane %v17699_v50, 2  ;;  %v17983_v0 = vld [vmem:[#allocation2 + $0x188] sm:$0xff] }
 0x234   : > { %23613 = vst [vmem:[#allocation94_spill] sm:$0xff] %v17936_v36  ;;  %v3984_v23 = vsel %vm1356_vm4, %v23615_v60, %v23614_v58  ;;  %v3981_v55 = vsel %vm1356_vm4, %v23618_v24, %v3980_v7  ;;  %v23619_v12 = vrot.slane %v17732_v14, 2  ;;  %v23620_v9 = vrot.slane %v17709_v35, 2  ;;  %v17993_v7 = vld [vmem:[#allocation2 + $0x180] sm:$0xff] }
 0x235   : > { %v3989_v6 = vsel %vm1356_vm4, %v23617_v10, %v23616_v39  ;;  %v3995_v13 = vrot.slane %v17743_v1, 2  ;;  %v17959_v42 = vpack.c.bf16 %v3981_v55, %v3979_v40  ;;  %v23622_v15 = vmov %v23614_v58  ;;  %v18016_v10 = vld [vmem:[#allocation2 + $0x190] sm:$0x3] }
 0x236   : > { %v3994_v22 = vsel %vm1356_vm4, %v23620_v9, %v23619_v12  ;;  %v3986_v33 = vsel %vm1356_vm4, %v23622_v15, %v3985_v17  ;;  %v23623_v54 = vrot.slane %v17723_v25, 2  ;;  %v23624_v34 = vrot.slane %v17721_v32, 2  ;;  %v3317_v25 = vld [vmem:[%s23441_s12 + $0x50] sm:$0xff]  ;;  %14376 = vmatmul.mubr.msk.bf16.gmra.mxu1 %vm3068_vm5, %v17923_v30  ;;  %14450 = vmatmul.mubr.msk.bf16.vlgmr.msra.gmra.mxu0 %vm3068_vm5, %v17412_v38 }
 0x237   : > { %23621 = vst [vmem:[#allocation69_spill] sm:$0xff] %v17959_v42  ;;  %v4000_v11 = vrot.slane %v17753_v2, 2  ;;  %v17970_v31 = vpack.c.bf16 %v3986_v33, %v3984_v23  ;;  %v23626_v35 = vmov %v23616_v39  ;;  %v23627_v47 = vmov %v23619_v12  ;;  %v3321_v9 = vld [vmem:[%s23441_s12 + $0x70] sm:$0xff]  ;;  %14453 = vmatprep.mubr.msk.bf16.mxu0 %vm3068_vm5, %v17488_v57  ;;  %v3319_v33 = vld [vmem:[%s23441_s12 + $0x60] sm:$0xff] }
 0x238   : > { %v3999_v50 = vsel %vm1356_vm4, %v23624_v34, %v23623_v54  ;;  %v3991_v1 = vsel %vm1356_vm4, %v23626_v35, %v3990_v45  ;;  %v3996_v8 = vsel %vm1356_vm4, %v23627_v47, %v3995_v13  ;;  %v23628_v61 = vrot.slane %v17771_v20, 2 }
 0x239   : > { %23625 = vst [vmem:[#allocation95_spill] sm:$0xff] %v17970_v31  ;;  %v17985_v63 = vpack.c.bf16 %v3991_v1, %v3989_v6  ;;  %v17987_v2 = vpack.c.bf16 %v3996_v8, %v3994_v22  ;;  %v23631_v3 = vmov %v23623_v54  ;;  %v4005_v14 = vrot.slane %v17806_v62, 2  ;;  %v3318_v62 = vld [vmem:[%s23441_s12 + $0x58] sm:$0xff]  ;;  %v23636_v6 = vld [vmem:[#allocation100_spill] sm:$0xff] }
 0x23a   : > { %v4004_v32 = vsel %vm1356_vm4, %v23628_v61, %v4003_v43  ;;  %v4001_v40 = vsel %vm1356_vm4, %v23631_v3, %v4000_v11  ;;  %v4012_v58 = vrot.slane %v17840_v44, 2  ;;  %v23633_v20 = vrot.slane %v17787_v5, 2  ;;  %v3322_v22 = vld [vmem:[%s23441_s12 + $0x78] sm:$0xff]  ;;  %v3320_v54 = vld [vmem:[%s23441_s12 + $0x68] sm:$0xff]  ;;  %v23644_v61 = vld [vmem:[#allocation83_spill] sm:$0xff] }
 0x23b   : > { %23629 = vst [vmem:[#allocation70_spill] sm:$0xff] %v17985_v63  ;;  %23630 = vst [vmem:[#allocation97_spill] sm:$0xff] %v17987_v2  ;;  %v17996_v60 = vpack.c.bf16 %v4001_v40, %v3999_v50  ;;  %v23634_v23 = vrot.slane %v17761_v37, 2  ;;  %v4010_v39 = vrot.slane %v17789_v18, 2  ;;  %v4006_v44 = vsel %vm1356_vm4, %v4003_v43, %v4005_v14  ;;  %v23635_v18 = vld [vmem:[#allocation103_spill] sm:$0xff]  ;;  %v23646_v3 = vld [vmem:[#allocation84_spill] sm:$0xff] }
 0x23c   : > { %v4509_v37 = vrot.slane %v17983_v0, 1  ;;  %v23637_v24 = vpack.c.bf16 %v23635_v18, %v23636_v6  ;;  %v18024_v55 = vpack.c.bf16 %v4006_v44, %v4004_v32  ;;  %v23639_v45 = vmov %v23633_v20  ;;  %v23645_v32 = vld [vmem:[#allocation82_spill] sm:$0xff]  ;;  %v23648_v14 = vld [vmem:[#allocation89_spill] sm:$0xff]  ;;  %v23653_v18 = vld [vmem:[#allocation59_spill] sm:$0xff] }
 0x23d   : > { %23632 = vst [vmem:[#allocation96_spill] sm:$0xff] %v17996_v60  ;;  %v4009_v17 = vsel %vm1356_vm4, %v23634_v23, %v23633_v20  ;;  %v4011_v48 = vsel %vm1356_vm4, %v23639_v45, %v4010_v39  ;;  %v4508_v43 = vrot.slane %v17993_v7, 1  ;;  %v4014_v12 = vsel %vm1356_vm4, %v4012_v58, %v4013_v52  ;;  %v23647_v40 = vld [vmem:[#allocation86_spill] sm:$0xff]  ;;  %v23649_v58 = vld [vmem:[#allocation87_spill] sm:$0xff] }
 0x23e   : > { %14415 = vmatprep.mubr.msk.bf16.mxu1 %vm3068_vm5, %v23637_v24  ;;  %23638 = vst [vmem:[#allocation71_spill] sm:$0xff] %v18024_v55  ;;  %v18041_v5 = vpack.c.bf16 %v4011_v48, %v4009_v17  ;;  %v4015_v13 = vrot.slane %v17879_v19, 2  ;;  %v4721_v15 = vpack.c.bf16 %v3318_v62, %v3317_v25  ;;  %v4511_v50 = vrot.slane %v18016_v10, 1  ;;  %v23650_v20 = vld [vmem:[#allocation67_spill] sm:$0xff]  ;;  %v23651_v23 = vld [vmem:[#allocation90_spill] sm:$0xff]  ;;  %v5584_v62 = vld [vmem:[%s23013_s5 + $0x8] sm:$0xff] }
 0x23f   : > { %v4510_v34 = vsel %vm791_vm2, %v4508_v43, %v4509_v37  ;;  %v5127_v35 = vpack.c.bf16 %v3322_v22, %v3321_v9  ;;  %v18058_v47 = vpack.c.bf16 %v3320_v54, %v3319_v33  ;;  %14416 = vmatmul.mubr.msk.bf16.vlgmr.msra.gmra.mxu1 %vm3068_vm5, %v17853_v27  ;;  %v18116_v17 = vpack.c.bf16 %v17983_v0, %v17993_v7  ;;  %v23652_v39 = vld [vmem:[#allocation58_spill] sm:$0xff]  ;;  %v3323_v25 = vld [vmem:[%s23441_s12 + $0x80] sm:$0xff]  ;;  %v23655_v24 = vld [vmem:[#allocation81_spill] sm:$0xff] }
 0x240   : > { %23640 = vst [vmem:[#allocation102_spill] sm:$0xff] %v18041_v5  ;;  %v4016_v11 = vsel %vm1356_vm4, %v4013_v52, %v4015_v13  ;;  %14515 = vmatprep.subr.bf16.mxu0 %v4721_v15  ;;  %v4512_v1 = vsel %vm791_vm2, %v4509_v37, %v4511_v50  ;;  %14419 = vmatprep.mubr.msk.bf16.mxu1 %vm3068_vm5, %v17867_v16  ;;  %v23643_v52 = vld [vmem:[#allocation63_spill] sm:$0xff]  ;;  %v23654_v6 = vmov 0.0   ;;  %v23657_v48 = vld [vmem:[#allocation80_spill] sm:$0xff]  ;;  %v23660_v9 = vld [vmem:[#allocation65_spill] sm:$0xff]  ;;  %v4714_v33 = vrot.slane %v17983_v0, 2 }
 0x241   : > { %v18055_v19 = vpack.c.bf16 %v4016_v11, %v4014_v12  ;;  %14516 = vmatpush3.bf16.msra.mxu0 %v4721_v15  ;;  %v18060_v8 = vpack.c.bf16 %v4512_v1, %v4510_v34  ;;  %14482 = vmatpush3.bf16.msra.mxu1 %v23642_v51  ;;  %v18143_v37 = vpack.c.bf16 %v5584_v62, %v5584_v62  ;;  %v12687_v45 = vld [vmem:[%s652_s24] ss:$0 sm:$0xff]  ;;  %v23658_v43 = vld [vmem:[#allocation64_spill] sm:$0xff]  ;;  %v23659_v12 = vld [vmem:[#allocation85_spill] sm:$0xff]  ;;  %v4716_v54 = vrot.slane %v18016_v10, 2  ;;  %s21317_s24 = scalar_lea.vmem %s23026_s18, %s13269_s30 }
 0x242   : > { %14583 = vmatprep.subr.bf16.mxu0 %v5127_v35  ;;  %14454 = vmatmul.mubr.msk.bf16.gmra.mxu0 %vm3068_vm5, %v23643_v52  ;;  %3159 = vst.msk [vmem:[#allocation3] sm:$0xff] %vm3158_vm8, %v23654_v6  ;;  %3160 = vst.msk [vmem:[#allocation3 + $0x8] sm:$0xff] %vm3158_vm8, %v23654_v6  ;;  %v23661_v22 = vld [vmem:[#allocation66_spill] sm:$0xff]  ;;  %v23662_v13 = vld [vmem:[#allocation88_spill] sm:$0xff]  ;;  %v4713_v34 = vrot.slane %v17993_v7, 2 }
 0x243   : > { %23641 = vst [vmem:[#allocation98_spill] sm:$0xff] %v18055_v19  ;;  %14549 = vmatprep.subr.bf16.mxu1 %v18058_v47  ;;  %14457 = vmatprep.mubr.msk.bf16.mxu0 %vm3068_vm5, %v23644_v61  ;;  %3162 = vst.msk [vmem:[#allocation3 + $0x10] sm:$0x3] %vm3161_vm9, %v23654_v6  ;;  %v23663_v15 = vld [vmem:[#allocation91_spill] sm:$0xff]  ;;  %v4717_v11 = vsel %vm1356_vm4, %v4714_v33, %v4716_v54  ;;  %v18356_v7 = vld [vmem:[#allocation2 + $0x198] sm:$0xff] }
 0x244   : > { %3163 = vst.msk [vmem:[#allocation3 + $0x18] sm:$0xff] %vm3158_vm8, %v23654_v6  ;;  %3164 = vst.msk [vmem:[#allocation3 + $0x20] sm:$0xff] %vm3158_vm8, %v23654_v6  ;;  %v4715_v50 = vsel %vm1356_vm4, %v4713_v34, %v4714_v33  ;;  %v18358_v10 = vld [vmem:[#allocation2 + $0x1a0] sm:$0xff]  ;;  %v18364_v51 = vld [vmem:[#allocation2 + $0x1a8] sm:$0x3] }
 0x245   : > { %3165 = vst.msk [vmem:[#allocation3 + $0x28] sm:$0x3] %vm3161_vm9, %v23654_v6  ;;  %3168 = vst.msk [vmem:[#allocation3 + $0x40] sm:$0x3] %vm3161_vm9, %v23654_v6  ;;  %v18348_v0 = vpack.c.bf16 %v4717_v11, %v4715_v50  ;;  %v5325_v1 = vrot.slane %v18358_v10, 2 }
 0x246   : > { %3166 = vst.msk [vmem:[#allocation3 + $0x30] sm:$0xff] %vm3158_vm8, %v23654_v6  ;;  %3167 = vst.msk [vmem:[#allocation3 + $0x38] sm:$0xff] %vm3158_vm8, %v23654_v6 }
 0x247   : > { %14420 = vmatmul.mubr.msk.bf16.gmra.mxu1 %vm3068_vm5, %v17869_v46  ;;  %3169 = vst.msk [vmem:[#allocation3 + $0x48] sm:$0xff] %vm3158_vm8, %v23654_v6  ;;  %3170 = vst.msk [vmem:[#allocation3 + $0x50] sm:$0xff] %vm3158_vm8, %v23654_v6 }
 0x248   : > { %14423 = vmatprep.mubr.msk.bf16.mxu1 %vm3068_vm5, %v17902_v4  ;;  %3171 = vst.msk [vmem:[#allocation3 + $0x58] sm:$0x3] %vm3161_vm9, %v23654_v6  ;;  %3174 = vst.msk [vmem:[#allocation3 + $0x70] sm:$0x3] %vm3161_vm9, %v23654_v6 }
 0x249   : > { %3172 = vst.msk [vmem:[#allocation3 + $0x60] sm:$0xff] %vm3158_vm8, %v23654_v6  ;;  %3173 = vst.msk [vmem:[#allocation3 + $0x68] sm:$0xff] %vm3158_vm8, %v23654_v6  ;;  %v18391_v50 = vld [vmem:[#allocation3] sm:$0xff]  ;;  %v18393_v11 = vld [vmem:[#allocation3 + $0x8] sm:$0xff] }
 0x24a   : > { %14458 = vmatmul.mubr.msk.bf16.gmra.mxu0 %vm3068_vm5, %v23645_v32  ;;  %3175 = vst.msk [vmem:[#allocation3 + $0x78] sm:$0xff] %vm3158_vm8, %v23654_v6  ;;  %3176 = vst.msk [vmem:[#allocation3 + $0x80] sm:$0xff] %vm3158_vm8, %v23654_v6  ;;  %v6212_v33 = vrot.slane %v18393_v11, 2 }
 0x24b   : > { %14461 = vmatprep.mubr.msk.bf16.mxu0 %vm3068_vm5, %v23646_v3  ;;  %3177 = vst.msk [vmem:[#allocation3 + $0x88] sm:$0x3] %vm3161_vm9, %v23654_v6  ;;  %3180 = vst.msk [vmem:[#allocation3 + $0xa0] sm:$0x3] %vm3161_vm9, %v23654_v6 }
 0x24c   : > { %3178 = vst.msk [vmem:[#allocation3 + $0x90] sm:$0xff] %vm3158_vm8, %v23654_v6  ;;  %3179 = vst.msk [vmem:[#allocation3 + $0x98] sm:$0xff] %vm3158_vm8, %v23654_v6 }
 0x24d   : > { %3181 = vst.msk [vmem:[#allocation3 + $0xa8] sm:$0xff] %vm3158_vm8, %v23654_v6  ;;  %3182 = vst.msk [vmem:[#allocation3 + $0xb0] sm:$0xff] %vm3158_vm8, %v23654_v6 }
 0x24e   : > { %3183 = vst.msk [vmem:[#allocation3 + $0xb8] sm:$0x3] %vm3161_vm9, %v23654_v6  ;;  %3186 = vst.msk [vmem:[#allocation3 + $0xd0] sm:$0x3] %vm3161_vm9, %v23654_v6 }
 0x24f   : > { %14424 = vmatmul.mubr.msk.bf16.gmra.mxu1 %vm3068_vm5, %v17915_v26  ;;  %3184 = vst.msk [vmem:[#allocation3 + $0xc0] sm:$0xff] %vm3158_vm8, %v23654_v6  ;;  %3185 = vst.msk [vmem:[#allocation3 + $0xc8] sm:$0xff] %vm3158_vm8, %v23654_v6 }
 0x250   : > { %14427 = vmatprep.mubr.msk.bf16.mxu1 %vm3068_vm5, %v17917_v49  ;;  %3187 = vst.msk [vmem:[#allocation3 + $0xd8] sm:$0xff] %vm3158_vm8, %v23654_v6  ;;  %3188 = vst.msk [vmem:[#allocation3 + $0xe0] sm:$0xff] %vm3158_vm8, %v23654_v6 }
 0x251   : > { %3189 = vst.msk [vmem:[#allocation3 + $0xe8] sm:$0x3] %vm3161_vm9, %v23654_v6  ;;  %3192 = vst.msk [vmem:[#allocation3 + $0x100] sm:$0x3] %vm3161_vm9, %v23654_v6 }
 0x252   : > { %14462 = vmatmul.mubr.msk.bf16.gmra.mxu0 %vm3068_vm5, %v23647_v40  ;;  %3190 = vst.msk [vmem:[#allocation3 + $0xf0] sm:$0xff] %vm3158_vm8, %v23654_v6  ;;  %3191 = vst.msk [vmem:[#allocation3 + $0xf8] sm:$0xff] %vm3158_vm8, %v23654_v6 }
 0x253   : > { %14465 = vmatprep.mubr.msk.bf16.mxu0 %vm3068_vm5, %v23648_v14  ;;  %3193 = vst.msk [vmem:[#allocation3 + $0x108] sm:$0xff] %vm3158_vm8, %v23654_v6  ;;  %3194 = vst.msk [vmem:[#allocation3 + $0x110] sm:$0xff] %vm3158_vm8, %v23654_v6 }
 0x254   : > { %3195 = vst.msk [vmem:[#allocation3 + $0x118] sm:$0x3] %vm3161_vm9, %v23654_v6  ;;  %3198 = vst.msk [vmem:[#allocation3 + $0x130] sm:$0x3] %vm3161_vm9, %v23654_v6 }
 0x255   : > { %3196 = vst.msk [vmem:[#allocation3 + $0x120] sm:$0xff] %vm3158_vm8, %v23654_v6  ;;  %3197 = vst.msk [vmem:[#allocation3 + $0x128] sm:$0xff] %vm3158_vm8, %v23654_v6 }
 0x256   : > { %3199 = vst.msk [vmem:[#allocation3 + $0x138] sm:$0xff] %vm3158_vm8, %v23654_v6  ;;  %3200 = vst.msk [vmem:[#allocation3 + $0x140] sm:$0xff] %vm3158_vm8, %v23654_v6 }
 0x257   : > { %14428 = vmatmul.mubr.msk.bf16.gmra.mxu1 %vm3068_vm5, %v17936_v36  ;;  %3201 = vst.msk [vmem:[#allocation3 + $0x148] sm:$0x3] %vm3161_vm9, %v23654_v6  ;;  %3204 = vst.msk [vmem:[#allocation3 + $0x160] sm:$0x3] %vm3161_vm9, %v23654_v6 }
 0x258   : > { %14431 = vmatprep.mubr.msk.bf16.mxu1 %vm3068_vm5, %v17959_v42  ;;  %3202 = vst.msk [vmem:[#allocation3 + $0x150] sm:$0xff] %vm3158_vm8, %v23654_v6  ;;  %3203 = vst.msk [vmem:[#allocation3 + $0x158] sm:$0xff] %vm3158_vm8, %v23654_v6 }
 0x259   : > { %3205 = vst.msk [vmem:[#allocation3 + $0x168] sm:$0xff] %vm3158_vm8, %v23654_v6  ;;  %3206 = vst.msk [vmem:[#allocation3 + $0x170] sm:$0xff] %vm3158_vm8, %v23654_v6 }
 0x25a   : > { %14466 = vmatmul.mubr.msk.bf16.gmra.mxu0 %vm3068_vm5, %v23649_v58  ;;  %3207 = vst.msk [vmem:[#allocation3 + $0x178] sm:$0x3] %vm3161_vm9, %v23654_v6  ;;  %3210 = vst.msk [vmem:[#allocation3 + $0x190] sm:$0x3] %vm3161_vm9, %v23654_v6 }
 0x25b   : > { %14469 = vmatprep.mubr.msk.bf16.mxu0 %vm3068_vm5, %v23650_v20  ;;  %3208 = vst.msk [vmem:[#allocation3 + $0x180] sm:$0xff] %vm3158_vm8, %v23654_v6  ;;  %3209 = vst.msk [vmem:[#allocation3 + $0x188] sm:$0xff] %vm3158_vm8, %v23654_v6 }
 0x25c   : > { %3211 = vst.msk [vmem:[#allocation3 + $0x198] sm:$0xff] %vm3158_vm8, %v23654_v6  ;;  %3212 = vst.msk [vmem:[#allocation3 + $0x1a0] sm:$0xff] %vm3158_vm8, %v23654_v6 }
 0x25d   : > { %3213 = vst.msk [vmem:[#allocation3 + $0x1a8] sm:$0x3] %vm3161_vm9, %v23654_v6  ;;  %23664 = vst [vmem:[#allocation101_spill] sm:$0xff] %v18348_v0 }
 0x25e   : > { %3221 = vst.msk [vmem:[#allocation3 + $0x19] sm:$0xff] %vm3158_vm8, %v12687_v45  ;;  %3222 = vst.msk [vmem:[#allocation3 + $0x21] sm:$0xff] %vm3158_vm8, %v12687_v45 }
 0x25f   : > { %14432 = vmatmul.mubr.msk.bf16.gmra.mxu1 %vm3068_vm5, %v17970_v31  ;;  %3223 = vst.msk [vmem:[#allocation3 + $0x31] sm:$0xff] %vm3158_vm8, %v12687_v45  ;;  %3224 = vst.msk [vmem:[#allocation3 + $0x39] sm:$0xff] %vm3158_vm8, %v12687_v45 }
 0x260   : > { %14435 = vmatprep.mubr.msk.bf16.mxu1 %vm3068_vm5, %v17985_v63  ;;  %3225 = vst.msk [vmem:[#allocation3 + $0x49] sm:$0xff] %vm3158_vm8, %v12687_v45  ;;  %3226 = vst.msk [vmem:[#allocation3 + $0x51] sm:$0xff] %vm3158_vm8, %v12687_v45 }
 0x261   : > { %3227 = vst.msk [vmem:[#allocation3 + $0x61] sm:$0xff] %vm3158_vm8, %v12687_v45  ;;  %3228 = vst.msk [vmem:[#allocation3 + $0x69] sm:$0xff] %vm3158_vm8, %v12687_v45 }
 0x262   : > { %14470 = vmatmul.mubr.msk.bf16.gmra.mxu0 %vm3068_vm5, %v23651_v23  ;;  %3229 = vst.msk [vmem:[#allocation3 + $0x79] sm:$0xff] %vm3158_vm8, %v12687_v45  ;;  %3230 = vst.msk [vmem:[#allocation3 + $0x81] sm:$0xff] %vm3158_vm8, %v12687_v45 }
 0x263   : > { %14473 = vmatprep.mubr.msk.bf16.mxu0 %vm3068_vm5, %v17811_v29  ;;  %3231 = vst.msk [vmem:[#allocation3 + $0x91] sm:$0xff] %vm3158_vm8, %v12687_v45  ;;  %3232 = vst.msk [vmem:[#allocation3 + $0x99] sm:$0xff] %vm3158_vm8, %v12687_v45 }
 0x264   : > { %3233 = vst.msk [vmem:[#allocation3 + $0xa9] sm:$0xff] %vm3158_vm8, %v12687_v45  ;;  %3234 = vst.msk [vmem:[#allocation3 + $0xb1] sm:$0xff] %vm3158_vm8, %v12687_v45 }
 0x265   : > { %3235 = vst.msk [vmem:[#allocation3 + $0xc1] sm:$0xff] %vm3158_vm8, %v12687_v45  ;;  %3236 = vst.msk [vmem:[#allocation3 + $0xc9] sm:$0xff] %vm3158_vm8, %v12687_v45 }
 0x266   : > { %3237 = vst.msk [vmem:[#allocation3 + $0xd9] sm:$0xff] %vm3158_vm8, %v12687_v45  ;;  %3238 = vst.msk [vmem:[#allocation3 + $0xe1] sm:$0xff] %vm3158_vm8, %v12687_v45 }
 0x267   : > { %14436 = vmatmul.mubr.msk.bf16.gmra.mxu1 %vm3068_vm5, %v17987_v2  ;;  %3239 = vst.msk [vmem:[#allocation3 + $0xf1] sm:$0xff] %vm3158_vm8, %v12687_v45  ;;  %3240 = vst.msk [vmem:[#allocation3 + $0xf9] sm:$0xff] %vm3158_vm8, %v12687_v45 }
 0x268   : > { %14439 = vmatprep.mubr.msk.bf16.mxu1 %vm3068_vm5, %v17996_v60  ;;  %3241 = vst.msk [vmem:[#allocation3 + $0x109] sm:$0xff] %vm3158_vm8, %v12687_v45  ;;  %3242 = vst.msk [vmem:[#allocation3 + $0x111] sm:$0xff] %vm3158_vm8, %v12687_v45 }
 0x269   : > { %3243 = vst.msk [vmem:[#allocation3 + $0x121] sm:$0xff] %vm3158_vm8, %v12687_v45  ;;  %3244 = vst.msk [vmem:[#allocation3 + $0x129] sm:$0xff] %vm3158_vm8, %v12687_v45 }
 0x26a   : > { %14474 = vmatmul.mubr.msk.bf16.gmra.mxu0 %vm3068_vm5, %v17802_v59  ;;  %3245 = vst.msk [vmem:[#allocation3 + $0x139] sm:$0xff] %vm3158_vm8, %v12687_v45  ;;  %3246 = vst.msk [vmem:[#allocation3 + $0x141] sm:$0xff] %vm3158_vm8, %v12687_v45 }
 0x26b   : > { %14477 = vmatprep.mubr.msk.bf16.mxu0 %vm3068_vm5, %v17897_v41  ;;  %3247 = vst.msk [vmem:[#allocation3 + $0x151] sm:$0xff] %vm3158_vm8, %v12687_v45  ;;  %3248 = vst.msk [vmem:[#allocation3 + $0x159] sm:$0xff] %vm3158_vm8, %v12687_v45 }
 0x26c   : > { %3249 = vst.msk [vmem:[#allocation3 + $0x169] sm:$0xff] %vm3158_vm8, %v12687_v45  ;;  %3250 = vst.msk [vmem:[#allocation3 + $0x171] sm:$0xff] %vm3158_vm8, %v12687_v45 }
 0x26d   : > { %3251 = vst.msk [vmem:[#allocation3 + $0x181] sm:$0xff] %vm3158_vm8, %v12687_v45  ;;  %3252 = vst.msk [vmem:[#allocation3 + $0x189] sm:$0xff] %vm3158_vm8, %v12687_v45 }
 0x26e   : > { %23667 = vst [vmem:[#allocation73_spill] sm:$0xff] %v18391_v50  ;;  %23668 = vst [vmem:[#allocation106_spill] sm:$0xff] %v18393_v11 }
 0x26f   : > { %14440 = vmatmul.mubr.msk.bf16.gmra.mxu1 %vm3068_vm5, %v18024_v55 }
 0x270   : > { %14443 = vmatprep.mubr.msk.bf16.mxu1 %vm3068_vm5, %v18041_v5 }
 0x272   : > { %14478 = vmatmul.mubr.msk.bf16.gmra.mxu0 %vm3068_vm5, %v18116_v17 }
 0x273   : > { %14517 = vmatprep.mubr.msk.bf16.mxu0 %vm3068_vm5, %v17853_v27  ;;  %v3324_v27 = vld [vmem:[%s23441_s12 + $0x88] sm:$0xff] }
 0x274   : > { %v18141_v44 = vpack.c.bf16 %v3324_v27, %v3323_v25  ;;  %v5327_v27 = vrot.slane %v18364_v51, 2 }
 0x277   : > { %14444 = vmatmul.mubr.msk.bf16.gmra.mxu1 %vm3068_vm5, %v18055_v19 }
 0x278   : > { %14483 = vmatprep.mubr.msk.bf16.mxu1 %vm3068_vm5, %v23652_v39  ;;  %v5836_v39 = vsel %vm5834_vm7, %v18143_v37, 0 }
 0x27a   : > { %14518 = vmatmul.mubr.msk.bf16.vlgmr.msra.gmra.mxu0 %vm3068_vm5, %v17867_v16 }
 0x27b   : > { %14521 = vmatprep.mubr.msk.bf16.mxu0 %vm3068_vm5, %v17869_v46  ;;  %14584 = vmatpush3.bf16.msra.mxu0 %v5127_v35  ;;  %v5324_v35 = vrot.slane %v18356_v7, 2 }
 0x27c   : > { %15578 = vmatprep.subr.msk.bf16.mxu0 %vm5834_vm7, %v18143_v37  ;;  %v5583_v37 = vld [vmem:[%s23013_s5] sm:$0xff] }
 0x27d   : > { %v18371_v25 = vsel %vm1356_vm4, %v5324_v35, %v5325_v1  ;;  %v18395_v35 = vpack.c.bf16 %v5583_v37, %v5583_v37  ;;  %v18409_v37 = vld [vmem:[#allocation3 + $0x18] sm:$0xff] }
 0x27e   : > { %23665 = vst [vmem:[#allocation72_spill] sm:$0xff] %v18371_v25 }
 0x27f   : > { %14484 = vmatmul.mubr.msk.bf16.vlgmr.msra.gmra.mxu1 %vm3068_vm5, %v23653_v18 }
 0x280   : > { %14487 = vmatprep.mubr.msk.bf16.mxu1 %vm3068_vm5, %v23655_v24  ;;  %14550 = vmatpush3.bf16.msra.mxu1 %v18058_v47 }
 0x281   : > { %14617 = vmatprep.subr.bf16.mxu1 %v18141_v44 }
 0x282   : > { %14522 = vmatmul.mubr.msk.bf16.gmra.mxu0 %vm3068_vm5, %v17902_v4 }
 0x283   : > { %14525 = vmatprep.mubr.msk.bf16.mxu0 %vm3068_vm5, %v17915_v26  ;;  %v18550_v26 = vld [vmem:[#allocation3 + $0x90] sm:$0xff] }
 0x287   : > { %14488 = vmatmul.mubr.msk.bf16.gmra.mxu1 %vm3068_vm5, %v23657_v48 }
 0x288   : > { %14491 = vmatprep.mubr.msk.bf16.mxu1 %vm3068_vm5, %v23658_v43 }
 0x28a   : > { %14526 = vmatmul.mubr.msk.bf16.gmra.mxu0 %vm3068_vm5, %v17917_v49 }
 0x28b   : > { %14529 = vmatprep.mubr.msk.bf16.mxu0 %vm3068_vm5, %v17936_v36 }
 0x28f   : > { %14492 = vmatmul.mubr.msk.bf16.gmra.mxu1 %vm3068_vm5, %v23659_v12 }
 0x290   : > { %14495 = vmatprep.mubr.msk.bf16.mxu1 %vm3068_vm5, %v23660_v9 }
 0x292   : > { %14530 = vmatmul.mubr.msk.bf16.gmra.mxu0 %vm3068_vm5, %v17959_v42 }
 0x293   : > { %14533 = vmatprep.mubr.msk.bf16.mxu0 %vm3068_vm5, %v17970_v31 }
 0x297   : > { %14496 = vmatmul.mubr.msk.bf16.gmra.mxu1 %vm3068_vm5, %v23661_v22 }
 0x298   : > { %14499 = vmatprep.mubr.msk.bf16.mxu1 %vm3068_vm5, %v23662_v13 }
 0x29a   : > { %14534 = vmatmul.mubr.msk.bf16.gmra.mxu0 %vm3068_vm5, %v17985_v63  ;;  %v18452_v63 = vld [vmem:[#allocation3 + $0x30] sm:$0xff] }
 0x29b   : > { %14537 = vmatprep.mubr.msk.bf16.mxu0 %vm3068_vm5, %v17987_v2 }
 0x29f   : > { %14500 = vmatmul.mubr.msk.bf16.gmra.mxu1 %vm3068_vm5, %v23663_v15 }
 0x2a0   : > { %14503 = vmatprep.mubr.msk.bf16.mxu1 %vm3068_vm5, %v17784_v21 }
 0x2a2   : > { %14538 = vmatmul.mubr.msk.bf16.gmra.mxu0 %vm3068_vm5, %v17996_v60 }
 0x2a3   : > { %14541 = vmatprep.mubr.msk.bf16.mxu0 %vm3068_vm5, %v18024_v55 }
 0x2a7   : > { %14504 = vmatmul.mubr.msk.bf16.gmra.mxu1 %vm3068_vm5, %v17796_v28 }
 0x2a8   : > { %14507 = vmatprep.mubr.msk.bf16.mxu1 %vm3068_vm5, %v17848_v56 }
 0x2aa   : > { %14542 = vmatmul.mubr.msk.bf16.gmra.mxu0 %vm3068_vm5, %v18041_v5 }
 0x2ab   : > { %14545 = vmatprep.mubr.msk.bf16.mxu0 %vm3068_vm5, %v18055_v19 }
 0x2af   : > { %14508 = vmatmul.mubr.msk.bf16.gmra.mxu1 %vm3068_vm5, %v17850_v53 }
 0x2b0   : > { %14511 = vmatprep.mubr.msk.bf16.mxu1 %vm3068_vm5, %v17923_v30 }
 0x2b2   : > { %14546 = vmatmul.mubr.msk.bf16.gmra.mxu0 %vm3068_vm5, %v18348_v0  ;;  %v6216_v0 = vrot.slane %v18409_v37, 2 }
 0x2b3   : > { %14585 = vmatprep.mubr.msk.bf16.mxu0 %vm3068_vm5, %v23653_v18  ;;  %v18382_v18 = vsel %vm1356_vm4, %v5325_v1, %v5327_v27  ;;  %v18401_v27 = vld [vmem:[#allocation3 + $0x10] sm:$0x3] }
 0x2b4   : > { %v14383_v47 = vpop.f32.mrf.mxu0  ;;  %23666 = vst [vmem:[#allocation104_spill] sm:$0xff] %v18382_v18 }
 0x2b6   : > { %v3810_v62 = vpop.f32.mrf.mxu0 }
 0x2b7   : > { %14512 = vmatmul.mubr.msk.bf16.gmra.mxu1 %vm3068_vm5, %v18060_v8 }
 0x2b8   : > { %14551 = vmatprep.mubr.msk.bf16.mxu1 %vm3068_vm5, %v17412_v38  ;;  %v14349_v38 = vpop.f32.mrf.mxu1  ;;  %v14384_v45 = vpop.f32.mrf.mxu0 }
 0x2b9   : > { %v18386_v54 = vadd.f32 %v14383_v47, %v14349_v38  ;;  %v6211_v38 = vrot.slane %v18391_v50, 2  ;;  %v18421_v47 = vld [vmem:[#allocation3 + $0x28] sm:$0x3] }
 0x2ba   : > { %14586 = vmatmul.mubr.msk.bf16.vlgmr.msra.gmra.mxu0 %vm3068_vm5, %v23655_v24  ;;  %v5585_v24 = vld [vmem:[%s23013_s5 + $0x10] sm:$0xff]  ;;  %v3813_v34 = vpop.f32.mrf.mxu0 }
 0x2bb   : > { %14589 = vmatprep.mubr.msk.bf16.mxu0 %vm3068_vm5, %v23657_v48  ;;  %14652 = vmatpush3.bf16.msra.mxu0 %v5836_v39  ;;  %v3601_v48 = vpop.f32.mrf.mxu1  ;;  %v18397_v1 = vpack.c.bf16 %v5585_v24, %v5585_v24  ;;  %v18411_v24 = vld [vmem:[#allocation3 + $0x20] sm:$0xff] }
 0x2bc   : > { %v18399_v39 = vadd.f32 %v3810_v62, %v3601_v48  ;;  %v6214_v62 = vrot.slane %v18401_v27, 2  ;;  %v18428_v18 = vpack.c.bf16 %v18411_v24, %v18409_v37 }
 0x2bd   : > { %v14350_v6 = vpop.f32.mrf.mxu1  ;;  %v14387_v25 = vpop.f32.mrf.mxu0  ;;  %15580 = vmatprep.subr.msk.bf16.mxu0 %vm5834_vm7, %v18397_v1 }
 0x2be   : > { %v18419_v48 = vadd.f32 %v14384_v45, %v14350_v6  ;;  %23670 = vst [vmem:[#allocation107_spill] sm:$0xff] %v18428_v18  ;;  %v6217_v6 = vrot.slane %v18411_v24, 2  ;;  %v6219_v45 = vrot.slane %v18421_v47, 2 }
 0x2bf   : > { %14552 = vmatmul.mubr.msk.bf16.vlgmr.msra.gmra.mxu1 %vm3068_vm5, %v17488_v57  ;;  %v18424_v57 = vsel %vm1356_vm4, %v6211_v38, %v6212_v33  ;;  %v3604_v19 = vpop.f32.mrf.mxu1 }
 0x2c0   : > { %14555 = vmatprep.mubr.msk.bf16.mxu1 %vm3068_vm5, %v23643_v52  ;;  %14618 = vmatpush3.bf16.msra.mxu1 %v18141_v44  ;;  %23669 = vst [vmem:[#allocation105_spill] sm:$0xff] %v18424_v57  ;;  %v3826_v52 = vpop.f32.mrf.mxu0  ;;  %v18436_v44 = vsel %vm1356_vm4, %v6212_v33, %v6214_v62  ;;  %v18440_v38 = vadd.f32 %v3813_v34, %v3604_v19  ;;  %v18454_v19 = vld [vmem:[#allocation3 + $0x38] sm:$0xff]  ;;  %v18456_v34 = vld [vmem:[#allocation3 + $0x40] sm:$0x3] }
 0x2c1   : > { %15579 = vmatprep.subr.msk.bf16.mxu1 %vm5834_vm7, %v18395_v35  ;;  %23671 = vst [vmem:[#allocation108_spill] sm:$0xff] %v18436_v44  ;;  %v6218_v5 = vsel %vm1356_vm4, %v6216_v0, %v6217_v6  ;;  %v6220_v55 = vsel %vm1356_vm4, %v6217_v6, %v6219_v45  ;;  %v6221_v0 = vrot.slane %v18452_v63, 2  ;;  %v6222_v6 = vrot.slane %v18454_v19, 2  ;;  %v18471_v45 = vld [vmem:[#allocation3 + $0x50] sm:$0xff] }
 0x2c2   : > { %14590 = vmatmul.mubr.msk.bf16.gmra.mxu0 %vm3068_vm5, %v23658_v43  ;;  %23672 = vst [vmem:[#allocation74_spill] sm:$0xff] %v18440_v38  ;;  %v14388_v18 = vpop.f32.mrf.mxu0  ;;  %v18448_v33 = vpack.c.bf16 %v6220_v55, %v6218_v5  ;;  %v18460_v43 = vpack.c.bf16 %v18454_v19, %v18452_v63  ;;  %v6224_v55 = vrot.slane %v18456_v34, 2  ;;  %v6227_v42 = vrot.slane %v18471_v45, 2  ;;  %v18598_v38 = vld [vmem:[#allocation3 + $0xc0] sm:$0xff] }
 0x2c3   : > { %14593 = vmatprep.mubr.msk.bf16.mxu0 %vm3068_vm5, %v23659_v12  ;;  %v6223_v57 = vsel %vm1356_vm4, %v6221_v0, %v6222_v6 }
 0x2c4   : > { %v14353_v60 = vpop.f32.mrf.mxu1  ;;  %23673 = vst [vmem:[#allocation110_spill] sm:$0xff] %v18448_v33  ;;  %v3829_v2 = vpop.f32.mrf.mxu0  ;;  %23675 = vst [vmem:[#allocation112_spill] sm:$0xff] %v18460_v43  ;;  %v18475_v33 = vld [vmem:[#allocation3 + $0x58] sm:$0x3]  ;;  %v6225_v44 = vsel %vm1356_vm4, %v6222_v6, %v6224_v55 }
 0x2c5   : > { %v18450_v62 = vadd.f32 %v14387_v25, %v14353_v60  ;;  %v18469_v25 = vld [vmem:[#allocation3 + $0x48] sm:$0xff]  ;;  %v6229_v0 = vrot.slane %v18475_v33, 2 }
 0x2c6   : > { %v3617_v12 = vpop.f32.mrf.mxu1  ;;  %v14391_v5 = vpop.f32.mrf.mxu0 }
 0x2c7   : > { %23674 = vst [vmem:[#allocation75_spill] sm:$0xff] %v18450_v62  ;;  %14556 = vmatmul.mubr.msk.bf16.gmra.mxu1 %vm3068_vm5, %v23644_v61  ;;  %v18467_v60 = vadd.f32 %v3826_v52, %v3617_v12  ;;  %v18481_v61 = vpack.c.bf16 %v18471_v45, %v18469_v25  ;;  %v6226_v52 = vrot.slane %v18469_v25, 2 }
 0x2c8   : > { %14559 = vmatprep.mubr.msk.bf16.mxu1 %vm3068_vm5, %v23645_v32  ;;  %v14354_v43 = vpop.f32.mrf.mxu1  ;;  %v3842_v31 = vpop.f32.mrf.mxu0  ;;  %v18488_v32 = vpack.c.bf16 %v6225_v44, %v6223_v57  ;;  %v18500_v44 = vld [vmem:[#allocation3 + $0x60] sm:$0xff] }
 0x2c9   : > { %23676 = vst [vmem:[#allocation109_spill] sm:$0xff] %v18467_v60  ;;  %23677 = vst [vmem:[#allocation111_spill] sm:$0xff] %v18481_v61  ;;  %v18484_v12 = vadd.f32 %v14388_v18, %v14354_v43  ;;  %v6228_v18 = vsel %vm1356_vm4, %v6226_v52, %v6227_v42  ;;  %v6230_v43 = vsel %vm1356_vm4, %v6227_v42, %v6229_v0  ;;  %v18506_v60 = vld [vmem:[#allocation3 + $0x70] sm:$0x3]  ;;  %v18516_v52 = vld [vmem:[#allocation3 + $0x78] sm:$0xff] }
 0x2ca   : > { %14594 = vmatmul.mubr.msk.bf16.gmra.mxu0 %vm3068_vm5, %v23660_v9  ;;  %23679 = vst [vmem:[#allocation114_spill] sm:$0xff] %v18488_v32  ;;  %v3620_v36 = vpop.f32.mrf.mxu1  ;;  %v14392_v55 = vpop.f32.mrf.mxu0  ;;  %v18498_v61 = vpack.c.bf16 %v6230_v43, %v6228_v18  ;;  %v18502_v32 = vld [vmem:[#allocation3 + $0x68] sm:$0xff]  ;;  %v18518_v0 = vld [vmem:[#allocation3 + $0x80] sm:$0xff] }
 0x2cb   : > { %23678 = vst [vmem:[#allocation76_spill] sm:$0xff] %v18484_v12  ;;  %14597 = vmatprep.mubr.msk.bf16.mxu0 %vm3068_vm5, %v23661_v22  ;;  %v18494_v6 = vadd.f32 %v3829_v2, %v3620_v36  ;;  %v18510_v36 = vpack.c.bf16 %v18502_v32, %v18500_v44  ;;  %v6231_v2 = vrot.slane %v18500_v44, 2  ;;  %v6232_v42 = vrot.slane %v18502_v32, 2 }
 0x2cc   : > { %23681 = vst [vmem:[#allocation113_spill] sm:$0xff] %v18498_v61  ;;  %v14357_v9 = vpop.f32.mrf.mxu1  ;;  %v3845_v57 = vpop.f32.mrf.mxu0  ;;  %v6236_v61 = vrot.slane %v18516_v52, 2 }
 0x2cd   : > { %23680 = vst [vmem:[#allocation116_spill] sm:$0xff] %v18494_v6  ;;  %v18504_v12 = vadd.f32 %v14391_v5, %v14357_v9  ;;  %23683 = vst [vmem:[#allocation77_spill] sm:$0xff] %v18510_v36  ;;  %v6234_v5 = vrot.slane %v18506_v60, 2  ;;  %v18525_v9 = vld [vmem:[#allocation3 + $0x88] sm:$0x3]  ;;  %v6233_v36 = vsel %vm1356_vm4, %v6231_v2, %v6232_v42 }
 0x2ce   : > { %v3633_v22 = vpop.f32.mrf.mxu1  ;;  %v14395_v43 = vpop.f32.mrf.mxu0 }
 0x2cf   : > { %23682 = vst [vmem:[#allocation115_spill] sm:$0xff] %v18504_v12  ;;  %14560 = vmatmul.mubr.msk.bf16.gmra.mxu1 %vm3068_vm5, %v23646_v3  ;;  %v18523_v18 = vadd.f32 %v3842_v31, %v3633_v22  ;;  %v18530_v3 = vpack.c.bf16 %v18518_v0, %v18516_v52  ;;  %v6235_v6 = vsel %vm1356_vm4, %v6232_v42, %v6234_v5  ;;  %v6237_v31 = vrot.slane %v18518_v0, 2 }
 0x2d0   : > { %14563 = vmatprep.mubr.msk.bf16.mxu1 %vm3068_vm5, %v23647_v40  ;;  %v14358_v12 = vpop.f32.mrf.mxu1  ;;  %v6239_v40 = vrot.slane %v18525_v9, 2  ;;  %v3858_v2 = vpop.f32.mrf.mxu0 }
 0x2d1   : > { %23684 = vst [vmem:[#allocation118_spill] sm:$0xff] %v18523_v18  ;;  %23685 = vst [vmem:[#allocation78_spill] sm:$0xff] %v18530_v3  ;;  %v18538_v22 = vadd.f32 %v14392_v55, %v14358_v12  ;;  %v18542_v18 = vpack.c.bf16 %v6235_v6, %v6233_v36  ;;  %v6238_v49 = vsel %vm1356_vm4, %v6236_v61, %v6237_v31  ;;  %v18552_v12 = vld [vmem:[#allocation3 + $0x98] sm:$0xff]  ;;  %v18554_v55 = vld [vmem:[#allocation3 + $0xa0] sm:$0x3]  ;;  %v6241_v61 = vrot.slane %v18550_v26, 2 }
 0x2d2   : > { %14598 = vmatmul.mubr.msk.bf16.gmra.mxu0 %vm3068_vm5, %v23662_v13  ;;  %v3636_v3 = vpop.f32.mrf.mxu1  ;;  %v6240_v62 = vsel %vm1356_vm4, %v6237_v31, %v6239_v40  ;;  %v14396_v42 = vpop.f32.mrf.mxu0  ;;  %v18558_v6 = vpack.c.bf16 %v18552_v12, %v18550_v26  ;;  %v6242_v36 = vrot.slane %v18552_v12, 2 }
 0x2d3   : > { %23686 = vst [vmem:[#allocation120_spill] sm:$0xff] %v18538_v22  ;;  %14601 = vmatprep.mubr.msk.bf16.mxu0 %vm3068_vm5, %v23663_v15  ;;  %23687 = vst [vmem:[#allocation117_spill] sm:$0xff] %v18542_v18  ;;  %v18546_v13 = vadd.f32 %v3845_v57, %v3636_v3  ;;  %v18548_v5 = vpack.c.bf16 %v6240_v62, %v6238_v49  ;;  %v6244_v57 = vrot.slane %v18554_v55, 2  ;;  %v18565_v49 = vld [vmem:[#allocation3 + $0xa8] sm:$0xff]  ;;  %v18567_v62 = vld [vmem:[#allocation3 + $0xb0] sm:$0xff] }
 0x2d4   : > { %v3861_v15 = vpop.f32.mrf.mxu0  ;;  %23690 = vst [vmem:[#allocation122_spill] sm:$0xff] %v18558_v6  ;;  %v18573_v6 = vld [vmem:[#allocation3 + $0xb8] sm:$0x3] }
 0x2d5   : > { %23688 = vst [vmem:[#allocation119_spill] sm:$0xff] %v18546_v13  ;;  %23689 = vst [vmem:[#allocation79_spill] sm:$0xff] %v18548_v5  ;;  %v6243_v5 = vsel %vm1356_vm4, %v6241_v61, %v6242_v36  ;;  %v6245_v18 = vsel %vm1356_vm4, %v6242_v36, %v6244_v57  ;;  %v18579_v13 = vpack.c.bf16 %v18567_v62, %v18565_v49 }
 0x2d6   : > { %v14361_v3 = vpop.f32.mrf.mxu1  ;;  %v14399_v40 = vpop.f32.mrf.mxu0  ;;  %23692 = vst [vmem:[#allocation99_spill] sm:$0xff] %v18573_v6 }
 0x2d7   : > { %14564 = vmatmul.mubr.msk.bf16.gmra.mxu1 %vm3068_vm5, %v23648_v14  ;;  %v18569_v31 = vadd.f32 %v14395_v43, %v14361_v3  ;;  %23693 = vst [vmem:[#allocation68_spill] sm:$0xff] %v18579_v13  ;;  %v18583_v43 = vpack.c.bf16 %v6245_v18, %v6243_v5  ;;  %v6246_v3 = vrot.slane %v18565_v49, 2 }
 0x2d8   : > { %14567 = vmatprep.mubr.msk.bf16.mxu1 %vm3068_vm5, %v23649_v58  ;;  %v3649_v14 = vpop.f32.mrf.mxu1  ;;  %v6247_v58 = vrot.slane %v18567_v62, 2  ;;  %v3874_v61 = vpop.f32.mrf.mxu0 }
 0x2d9   : > { %23691 = vst [vmem:[#allocation121_spill] sm:$0xff] %v18569_v31  ;;  %23694 = vst [vmem:[#allocation103_spill] sm:$0xff] %v18583_v43  ;;  %v6249_v31 = vrot.slane %v18573_v6, 2  ;;  %v18588_v22 = vadd.f32 %v3858_v2, %v3649_v14  ;;  %v18600_v6 = vld [vmem:[#allocation3 + $0xc8] sm:$0xff] }
 0x2da   : > { %14602 = vmatmul.mubr.msk.bf16.gmra.mxu0 %vm3068_vm5, %v17784_v21  ;;  %v14362_v36 = vpop.f32.mrf.mxu1  ;;  %v6248_v57 = vsel %vm1356_vm4, %v6246_v3, %v6247_v58  ;;  %v14400_v18 = vpop.f32.mrf.mxu0  ;;  %23698 = vst [vmem:[#allocation83_spill] sm:$0xff] %v18600_v6  ;;  %v18608_v3 = vpack.c.bf16 %v18600_v6, %v18598_v38 }
 0x2db   : > { %23695 = vst [vmem:[#allocation100_spill] sm:$0xff] %v18588_v22  ;;  %14605 = vmatprep.mubr.msk.bf16.mxu0 %vm3068_vm5, %v17796_v28  ;;  %v6250_v13 = vsel %vm1356_vm4, %v6247_v58, %v6249_v31  ;;  %v18594_v21 = vadd.f32 %v14396_v42, %v14362_v36  ;;  %v18604_v28 = vld [vmem:[#allocation3 + $0xd0] sm:$0x3]  ;;  %v6251_v42 = vrot.slane %v18598_v38, 2  ;;  %v6252_v31 = vrot.slane %v18600_v6, 2  ;;  %v18614_v58 = vld [vmem:[#allocation3 + $0xd8] sm:$0xff] }
 0x2dc   : > { %v18596_v5 = vpack.c.bf16 %v6250_v13, %v6248_v57  ;;  %v3652_v43 = vpop.f32.mrf.mxu1  ;;  %v3877_v14 = vpop.f32.mrf.mxu0  ;;  %23700 = vst [vmem:[#allocation84_spill] sm:$0xff] %v18604_v28  ;;  %23701 = vst [vmem:[#allocation86_spill] sm:$0xff] %v18608_v3  ;;  %v18616_v36 = vld [vmem:[#allocation3 + $0xe0] sm:$0xff]  ;;  %v18623_v3 = vld [vmem:[#allocation3 + $0xe8] sm:$0x3]  ;;  %v5657_v6 = vrot.slane %v18391_v50, 1 }
 0x2dd   : > { %23696 = vst [vmem:[#allocation56_spill] sm:$0xff] %v18594_v21  ;;  %v18602_v2 = vadd.f32 %v3861_v15, %v3652_v43  ;;  %23702 = vst [vmem:[#allocation89_spill] sm:$0xff] %v18614_v58  ;;  %v6254_v15 = vrot.slane %v18604_v28, 2  ;;  %v18660_v50 = vld [vmem:[#allocation3 + $0x100] sm:$0x3] }
 0x2de   : > { %23697 = vst [vmem:[#allocation63_spill] sm:$0xff] %v18596_v5  ;;  %v14365_v13 = vpop.f32.mrf.mxu1  ;;  %23703 = vst [vmem:[#allocation87_spill] sm:$0xff] %v18616_v36  ;;  %v14403_v57 = vpop.f32.mrf.mxu0  ;;  %v6253_v5 = vsel %vm1356_vm4, %v6251_v42, %v6252_v31 }
 0x2df   : > { %23699 = vst [vmem:[#allocation82_spill] sm:$0xff] %v18602_v2  ;;  %14568 = vmatmul.mubr.msk.bf16.gmra.mxu1 %vm3068_vm5, %v23650_v20  ;;  %v18619_v43 = vadd.f32 %v14399_v40, %v14365_v13  ;;  %23705 = vst [vmem:[#allocation90_spill] sm:$0xff] %v18623_v3  ;;  %v18628_v2 = vpack.c.bf16 %v18616_v36, %v18614_v58  ;;  %v6256_v20 = vrot.slane %v18614_v58, 2  ;;  %v5119_v40 = vrot.slane %v18356_v7, 1 }
 0x2e0   : > { %14571 = vmatprep.mubr.msk.bf16.mxu1 %vm3068_vm5, %v23651_v23  ;;  %v3665_v21 = vpop.f32.mrf.mxu1  ;;  %v6255_v13 = vsel %vm1356_vm4, %v6252_v31, %v6254_v15  ;;  %v6257_v23 = vrot.slane %v18616_v36, 2  ;;  %v3890_v42 = vpop.f32.mrf.mxu0  ;;  %v5122_v58 = vrot.slane %v18364_v51, 1  ;;  %v5658_v31 = vrot.slane %v18393_v11, 1  ;;  %v18654_v51 = vld [vmem:[#allocation3 + $0xf0] sm:$0xff] }
 0x2e1   : > { %23704 = vst [vmem:[#allocation67_spill] sm:$0xff] %v18619_v43  ;;  %23706 = vst [vmem:[#allocation58_spill] sm:$0xff] %v18628_v2  ;;  %v6259_v43 = vrot.slane %v18623_v3, 2  ;;  %v18637_v22 = vadd.f32 %v3874_v61, %v3665_v21  ;;  %v5120_v2 = vrot.slane %v18358_v10, 1  ;;  %v18643_v28 = vpack.c.bf16 %v6255_v13, %v6253_v5  ;;  %v18656_v5 = vld [vmem:[#allocation3 + $0xf8] sm:$0xff] }
 0x2e2   : > { %14606 = vmatmul.mubr.msk.bf16.gmra.mxu0 %vm3068_vm5, %v17848_v56  ;;  %v14366_v56 = vpop.f32.mrf.mxu1  ;;  %v6258_v15 = vsel %vm1356_vm4, %v6256_v20, %v6257_v23  ;;  %v5660_v36 = vrot.slane %v18401_v27, 1  ;;  %v6262_v20 = vrot.slane %v18656_v5, 2 }
 0x2e3   : > { %23707 = vst [vmem:[#allocation59_spill] sm:$0xff] %v18637_v22  ;;  %14609 = vmatprep.mubr.msk.bf16.mxu0 %vm3068_vm5, %v17850_v53  ;;  %23708 = vst [vmem:[#allocation81_spill] sm:$0xff] %v18643_v28  ;;  %v6260_v61 = vsel %vm1356_vm4, %v6257_v23, %v6259_v43  ;;  %v18649_v21 = vadd.f32 %v14400_v18, %v14366_v56  ;;  %v14404_v22 = vpop.f32.mrf.mxu0  ;;  %v18664_v43 = vpack.c.bf16 %v18656_v5, %v18654_v51  ;;  %v18675_v56 = vld [vmem:[#allocation3 + $0x108] sm:$0xff] }
 0x2e4   : > { %v18651_v53 = vpack.c.bf16 %v6260_v61, %v6258_v15  ;;  %v3668_v3 = vpop.f32.mrf.mxu1  ;;  %v6261_v18 = vrot.slane %v18654_v51, 2  ;;  %v5121_v27 = vsel %vm791_vm2, %v5119_v40, %v5120_v2  ;;  %v18677_v15 = vld [vmem:[#allocation3 + $0x110] sm:$0xff]  ;;  %v6264_v61 = vrot.slane %v18660_v50, 2 }
 0x2e5   : > { %23709 = vst [vmem:[#allocation80_spill] sm:$0xff] %v18649_v21  ;;  %v18658_v13 = vadd.f32 %v3877_v14, %v3668_v3  ;;  %v3893_v28 = vpop.f32.mrf.mxu0  ;;  %23712 = vst [vmem:[#allocation65_spill] sm:$0xff] %v18664_v43  ;;  %v5123_v14 = vsel %vm791_vm2, %v5120_v2, %v5122_v58  ;;  %v18673_v3 = vsel %vm791_vm2, %v5657_v6, %v5658_v31  ;;  %v6266_v2 = vrot.slane %v18675_v56, 2 }
 0x2e6   : > { %23710 = vst [vmem:[#allocation64_spill] sm:$0xff] %v18651_v53  ;;  %v14369_v23 = vpop.f32.mrf.mxu1  ;;  %v6263_v40 = vsel %vm1356_vm4, %v6261_v18, %v6262_v20  ;;  %v18689_v6 = vpack.c.bf16 %v18677_v15, %v18675_v56  ;;  %v5662_v21 = vrot.slane %v18409_v37, 1  ;;  %v5668_v37 = vrot.slane %v18454_v19, 1 }
 0x2e7   : > { %23711 = vst [vmem:[#allocation85_spill] sm:$0xff] %v18658_v13  ;;  %14572 = vmatmul.mubr.msk.bf16.gmra.mxu1 %vm3068_vm5, %v17811_v29  ;;  %v18680_v43 = vadd.f32 %v14403_v57, %v14369_v23  ;;  %v14407_v53 = vpop.f32.mrf.mxu0  ;;  %v18684_v29 = vld [vmem:[#allocation3 + $0x118] sm:$0x3]  ;;  %v5661_v57 = vsel %vm791_vm2, %v5658_v31, %v5660_v36  ;;  %v6265_v23 = vsel %vm1356_vm4, %v6262_v20, %v6264_v61 }
 0x2e8   : > { %14575 = vmatprep.mubr.msk.bf16.mxu1 %vm3068_vm5, %v17802_v59  ;;  %23714 = vst [vmem:[#allocation88_spill] sm:$0xff] %v18689_v6  ;;  %v3681_v58 = vpop.f32.mrf.mxu1  ;;  %v6267_v59 = vrot.slane %v18677_v15, 2  ;;  %v6269_v11 = vrot.slane %v18684_v29, 2  ;;  %v18702_v6 = vpack.c.bf16 %v6265_v23, %v6263_v40  ;;  %v5665_v40 = vrot.slane %v18421_v47, 1 }
 0x2e9   : > { %23713 = vst [vmem:[#allocation66_spill] sm:$0xff] %v18680_v43  ;;  %v18698_v43 = vadd.f32 %v3890_v42, %v3681_v58  ;;  %v3906_v18 = vpop.f32.mrf.mxu0  ;;  %v5126_v42 = vpack.c.bf16 %v5123_v14, %v5121_v27  ;;  %v5769_v58 = vpack.c.bf16 %v5661_v57, %v18673_v3  ;;  %v5667_v23 = vrot.slane %v18452_v63, 1  ;;  %v18723_v27 = vld [vmem:[#allocation3 + $0x130] sm:$0x3]  ;;  %v18734_v3 = vld [vmem:[#allocation3 + $0x138] sm:$0xff] }
 0x2ea   : > { %14610 = vmatmul.mubr.msk.bf16.gmra.mxu0 %vm3068_vm5, %v17923_v30  ;;  %23716 = vst [vmem:[#allocation123_spill] sm:$0xff] %v18702_v6  ;;  %v14370_v13 = vpop.f32.mrf.mxu1  ;;  %v5663_v30 = vrot.slane %v18411_v24, 1  ;;  %v6268_v36 = vsel %vm1356_vm4, %v6266_v2, %v6267_v59  ;;  %v6270_v31 = vsel %vm1356_vm4, %v6267_v59, %v6269_v11  ;;  %v5670_v24 = vrot.slane %v18456_v34, 1  ;;  %v18717_v2 = vld [vmem:[#allocation3 + $0x120] sm:$0xff]  ;;  %v18719_v11 = vld [vmem:[#allocation3 + $0x128] sm:$0xff] }
 0x2eb   : > { %23715 = vst [vmem:[#allocation91_spill] sm:$0xff] %v18698_v43  ;;  %14613 = vmatprep.mubr.msk.bf16.mxu0 %vm3068_vm5, %v18060_v8  ;;  %v18708_v20 = vadd.f32 %v14404_v22, %v14370_v13  ;;  %v14408_v61 = vpop.f32.mrf.mxu0  ;;  %v18711_v43 = vpack.c.bf16 %v6270_v31, %v6268_v36  ;;  %v18727_v14 = vpack.c.bf16 %v18719_v11, %v18717_v2  ;;  %v6271_v47 = vrot.slane %v18717_v2, 2  ;;  %v18743_v31 = vld [vmem:[#allocation3 + $0x148] sm:$0x3] }
 0x2ec   : > { %v3684_v8 = vpop.f32.mrf.mxu1  ;;  %v6272_v63 = vrot.slane %v18719_v11, 2  ;;  %v5664_v34 = vsel %vm791_vm2, %v5662_v21, %v5663_v30  ;;  %v6274_v57 = vrot.slane %v18723_v27, 2  ;;  %v6276_v21 = vrot.slane %v18734_v3, 2 }
 0x2ed   : > { %23717 = vst [vmem:[#allocation124_spill] sm:$0xff] %v18711_v43  ;;  %v18721_v22 = vadd.f32 %v3893_v28, %v3684_v8  ;;  %v3909_v13 = vpop.f32.mrf.mxu0  ;;  %23719 = vst [vmem:[#allocation126_spill] sm:$0xff] %v18727_v14  ;;  %v18736_v28 = vld [vmem:[#allocation3 + $0x140] sm:$0xff]  ;;  %v6279_v43 = vrot.slane %v18743_v31, 2 }
 0x2ee   : > { %v14373_v19 = vpop.f32.mrf.mxu1  ;;  %v6273_v8 = vsel %vm1356_vm4, %v6271_v47, %v6272_v63 }
 0x2ef   : > { %23718 = vst [vmem:[#allocation125_spill] sm:$0xff] %v18721_v22  ;;  %14576 = vmatmul.mubr.msk.bf16.gmra.mxu1 %vm3068_vm5, %v17897_v41  ;;  %v18739_v59 = vadd.f32 %v14407_v53, %v14373_v19  ;;  %v14411_v36 = vpop.f32.mrf.mxu0  ;;  %v18748_v41 = vpack.c.bf16 %v18736_v28, %v18734_v3  ;;  %v5666_v53 = vsel %vm791_vm2, %v5663_v30, %v5665_v40 }
 0x2f0   : > { %14579 = vmatprep.mubr.msk.bf16.mxu1 %vm3068_vm5, %v18116_v17  ;;  %v3697_v14 = vpop.f32.mrf.mxu1  ;;  %v6275_v19 = vsel %vm1356_vm4, %v6272_v63, %v6274_v57  ;;  %v6277_v17 = vrot.slane %v18736_v28, 2  ;;  %v4918_v30 = vpack.c.bf16 %v18358_v10, %v18356_v7  ;;  %v5675_v7 = vrot.slane %v18475_v33, 1 }
 0x2f1   : > { %23720 = vst [vmem:[#allocation127_spill] sm:$0xff] %v18739_v59  ;;  %23721 = vst [vmem:[#allocation128_spill] sm:$0xff] %v18748_v41  ;;  %v18756_v6 = vadd.f32 %v3906_v18, %v3697_v14  ;;  %v3922_v47 = vpop.f32.mrf.mxu0  ;;  %v5669_v41 = vsel %vm791_vm2, %v5667_v23, %v5668_v37  ;;  %v5671_v59 = vsel %vm791_vm2, %v5668_v37, %v5670_v24  ;;  %v5672_v14 = vrot.slane %v18469_v25, 1 }
 0x2f2   : > { %14614 = vmatmul.mubr.msk.bf16.gmra.mxu0 %vm3068_vm5, %v5126_v42  ;;  %v18761_v22 = vpack.c.bf16 %v6275_v19, %v6273_v8  ;;  %v14374_v42 = vpop.f32.mrf.mxu1  ;;  %v6278_v40 = vsel %vm1356_vm4, %v6276_v21, %v6277_v17  ;;  %v6280_v63 = vsel %vm1356_vm4, %v6277_v17, %v6279_v43  ;;  %v18773_v24 = vpack.c.bf16 %v5666_v53, %v5664_v34  ;;  %v18779_v21 = vld [vmem:[#allocation3 + $0x150] sm:$0xff]  ;;  %v18781_v43 = vld [vmem:[#allocation3 + $0x158] sm:$0xff]  ;;  %v18785_v19 = vld [vmem:[#allocation3 + $0x160] sm:$0x3] }
 0x2f3   : > { %14653 = vmatprep.mubr.msk.bf16.mxu0 %vm3158_vm8, %v5769_v58  ;;  %v18767_v57 = vadd.f32 %v14408_v61, %v14374_v42  ;;  %v14412_v18 = vpop.f32.mrf.mxu0  ;;  %v5673_v58 = vrot.slane %v18471_v45, 1  ;;  %v18771_v23 = vpack.c.bf16 %v6280_v63, %v6278_v40  ;;  %v18775_v8 = vpack.c.bf16 %v5671_v59, %v5669_v41  ;;  %v18798_v53 = vld [vmem:[#allocation3 + $0x170] sm:$0xff] }
 0x2f4   : > { %23722 = vst [vmem:[#allocation129_spill] sm:$0xff] %v18761_v22  ;;  %v3700_v37 = vpop.f32.mrf.mxu1  ;;  %23724 = vst [vmem:[#allocation131_spill] sm:$0xff] %v18773_v24  ;;  %v5677_v10 = vrot.slane %v18500_v44, 1  ;;  %v18789_v45 = vpack.c.bf16 %v18781_v43, %v18779_v21  ;;  %v6281_v34 = vrot.slane %v18779_v21, 2  ;;  %v6282_v59 = vrot.slane %v18781_v43, 2 }
 0x2f5   : > { %23723 = vst [vmem:[#allocation130_spill] sm:$0xff] %v18771_v23  ;;  %23725 = vst [vmem:[#allocation132_spill] sm:$0xff] %v18775_v8  ;;  %v18783_v61 = vadd.f32 %v3909_v13, %v3700_v37  ;;  %v3925_v25 = vpop.f32.mrf.mxu0  ;;  %v5678_v44 = vrot.slane %v18502_v32, 1  ;;  %v5680_v41 = vrot.slane %v18506_v60, 1  ;;  %v18796_v13 = vld [vmem:[#allocation3 + $0x168] sm:$0xff]  ;;  %v6389_v17 = vsel %vm5834_vm7, %v18397_v1, 0 }
 0x2f6   : > { %23726 = vst [vmem:[#allocation133_spill] sm:$0xff] %v18789_v45  ;;  %v14377_v33 = vpop.f32.mrf.mxu1  ;;  %v6284_v42 = vrot.slane %v18785_v19, 2  ;;  %v6283_v32 = vsel %vm1356_vm4, %v6281_v34, %v6282_v59  ;;  %v18812_v60 = vpack.c.bf16 %v18798_v53, %v18796_v13  ;;  %v6286_v37 = vrot.slane %v18796_v13, 2 }
 0x2f7   : > { %14580 = vmatmul.mubr.msk.bf16.gmra.mxu1 %vm3068_vm5, %v4918_v30  ;;  %v18803_v40 = vadd.f32 %v14411_v36, %v14377_v33  ;;  %v14451_v63 = vpop.f32.mrf.mxu0  ;;  %v18807_v30 = vld [vmem:[#allocation3 + $0x178] sm:$0x3]  ;;  %v5674_v1 = vsel %vm791_vm2, %v5672_v14, %v5673_v58  ;;  %v5681_v22 = vsel %vm791_vm2, %v5678_v44, %v5680_v41 }
 0x2f8   : > { %14619 = vmatprep.mubr.msk.bf16.mxu1 %vm3068_vm5, %v17867_v16  ;;  %23727 = vst [vmem:[#allocation134_spill] sm:$0xff] %v18812_v60  ;;  %v3713_v45 = vpop.f32.mrf.mxu1  ;;  %v6285_v36 = vsel %vm1356_vm4, %v6282_v59, %v6284_v42  ;;  %v6287_v16 = vrot.slane %v18798_v53, 2  ;;  %v6289_v33 = vrot.slane %v18807_v30, 2  ;;  %v5676_v60 = vsel %vm791_vm2, %v5673_v58, %v5675_v7 }
 0x2f9   : > { %v18821_v23 = vadd.f32 %v3922_v47, %v3713_v45  ;;  %v4346_v34 = vpop.f32.mrf.mxu0  ;;  %v18829_v14 = vpack.c.bf16 %v6285_v36, %v6283_v32  ;;  %v5679_v42 = vsel %vm791_vm2, %v5677_v10, %v5678_v44  ;;  %v6048_v58 = vsel %vm5834_vm7, %v18395_v35, 0 }
 0x2fa   : > { %14654 = vmatmul.mubr.msk.bf16.vlgmr.msra.gmra.mxu0 %vm3158_vm8, %v18773_v24  ;;  %v5586_v24 = vld [vmem:[%s23013_s5 + $0x18] sm:$0xff]  ;;  %v14378_v59 = vpop.f32.mrf.mxu1  ;;  %v6288_v47 = vsel %vm1356_vm4, %v6286_v37, %v6287_v16  ;;  %v6290_v45 = vsel %vm1356_vm4, %v6287_v16, %v6289_v33  ;;  %v18844_v10 = vpack.c.bf16 %v5676_v60, %v5674_v1  ;;  %v5682_v44 = vrot.slane %v18516_v52, 1 }
 0x2fb   : > { %23728 = vst [vmem:[#allocation135_spill] sm:$0xff] %v18821_v23  ;;  %14657 = vmatprep.mubr.msk.bf16.mxu0 %vm3158_vm8, %v18775_v8  ;;  %14720 = vmatpush3.bf16.msra.mxu0 %v6389_v17  ;;  %23729 = vst [vmem:[#allocation136_spill] sm:$0xff] %v18829_v14  ;;  %v18835_v23 = vadd.f32 %v14412_v18, %v14378_v59  ;;  %v14452_v8 = vpop.f32.mrf.mxu0  ;;  %v18839_v7 = vpack.c.bf16 %v6290_v45, %v6288_v47  ;;  %v5587_v17 = vld [vmem:[%s23013_s5 + $0x20] sm:$0xff]  ;;  %v5683_v35 = vrot.slane %v18518_v0, 1 }
 0x2fc   : > { %v3716_v32 = vpop.f32.mrf.mxu1  ;;  %23731 = vst [vmem:[#allocation138_spill] sm:$0xff] %v18844_v10  ;;  %v18847_v41 = vpack.c.bf16 %v5586_v24, %v5586_v24  ;;  %v18849_v37 = vpack.c.bf16 %v5587_v17, %v5587_v17  ;;  %v18853_v16 = vpack.c.bf16 %v5681_v22, %v5679_v42  ;;  %v5685_v33 = vrot.slane %v18525_v9, 1 }
 0x2fd   : > { %23730 = vst [vmem:[#allocation137_spill] sm:$0xff] %v18839_v7  ;;  %v18851_v18 = vadd.f32 %v3925_v25, %v3716_v32  ;;  %v4349_v36 = vpop.f32.mrf.mxu0  ;;  %v5687_v60 = vrot.slane %v18550_v26, 1  ;;  %v5688_v52 = vrot.slane %v18552_v12, 1  ;;  %v5690_v24 = vrot.slane %v18554_v55, 1 }
 0x2fe   : > { %23732 = vst [vmem:[#allocation139_spill] sm:$0xff] %v18853_v16  ;;  %15582 = vmatprep.subr.msk.bf16.mxu0 %vm5834_vm7, %v18849_v37  ;;  %v5684_v26 = vsel %vm791_vm2, %v5682_v44, %v5683_v35  ;;  %v5692_v17 = vrot.slane %v18565_v49, 1  ;;  %v5693_v32 = vrot.slane %v18567_v62, 1  ;;  %v23739_v49 = vld [vmem:[#allocation84_spill] sm:$0xff]  ;;  %v23740_v62 = vld [vmem:[#allocation75_spill] sm:$0xff] }
 0x2ff   : > { %v14417_v59 = vpop.f32.mrf.mxu1  ;;  %14620 = vmatmul.mubr.msk.bf16.vlgmr.msra.gmra.mxu1 %vm3068_vm5, %v17869_v46  ;;  %v5689_v25 = vsel %vm791_vm2, %v5687_v60, %v5688_v52  ;;  %v5691_v1 = vsel %vm791_vm2, %v5688_v52, %v5690_v24  ;;  %v5697_v24 = vrot.slane %v18598_v38, 1 }
 0x300   : > { %v4277_v22 = vadd.f32 %v14417_v59, %v18386_v54  ;;  %14623 = vmatprep.mubr.msk.bf16.mxu1 %vm3068_vm5, %v17902_v4  ;;  %14686 = vmatpush3.bf16.msra.mxu1 %v6048_v58  ;;  %v5686_v54 = vsel %vm791_vm2, %v5683_v35, %v5685_v33  ;;  %v18888_v35 = vpack.c.bf16 %v5691_v1, %v5689_v25  ;;  %v23736_v33 = vld [vmem:[#allocation99_spill] sm:$0xff]  ;;  %v23742_v1 = vld [vmem:[#allocation109_spill] sm:$0xff] }
 0x301   : > { %v4148_v0 = vpop.f32.mrf.mxu1  ;;  %15581 = vmatprep.subr.msk.bf16.mxu1 %vm5834_vm7, %v18847_v41  ;;  %v18883_v58 = vpack.c.bf16 %v5686_v54, %v5684_v26  ;;  %v5695_v59 = vrot.slane %v23736_v33, 1  ;;  %v23741_v54 = vld [vmem:[#allocation92_spill] sm:$0xff]  ;;  %v5694_v38 = vsel %vm791_vm2, %v5692_v17, %v5693_v32 }
 0x302   : > { %v14455_v9 = vpop.f32.mrf.mxu0  ;;  %14658 = vmatmul.mubr.msk.bf16.gmra.mxu0 %vm3158_vm8, %v18844_v10  ;;  %v4275_v46 = vadd.f32 %v4148_v0, %v18399_v39  ;;  %v18876_v12 = vadd.f32 %v14451_v63, %v4277_v22  ;;  %v23734_v63 = vld [vmem:[#allocation74_spill] sm:$0xff]  ;;  %v23738_v22 = vld [vmem:[#allocation83_spill] sm:$0xff] }
 0x303   : > { %14661 = vmatprep.mubr.msk.bf16.mxu0 %vm3158_vm8, %v18853_v16  ;;  %v14418_v4 = vpop.f32.mrf.mxu1  ;;  %23733 = vst [vmem:[#allocation140_spill] sm:$0xff] %v18883_v58  ;;  %23735 = vst [vmem:[#allocation74_spill] sm:$0xff] %v18888_v35  ;;  %v5698_v0 = vrot.slane %v23738_v22, 1 }
 0x304   : > { %v4362_v55 = vpop.f32.mrf.mxu0  ;;  %v4278_v42 = vadd.f32 %v14418_v4, %v18419_v48  ;;  %v18881_v47 = vadd.f32 %v4346_v34, %v4275_v46  ;;  %v23737_v48 = vld [vmem:[#allocation93_spill] sm:$0xff]  ;;  %v5700_v46 = vrot.slane %v23739_v49, 1 }
 0x305   : > { %v4151_v39 = vpop.f32.mrf.mxu1 }
 0x306   : > { %v14456_v45 = vpop.f32.mrf.mxu0  ;;  %v4276_v44 = vadd.f32 %v4151_v39, %v23734_v63  ;;  %v18891_v60 = vadd.f32 %v14452_v8, %v4278_v42  ;;  %v5696_v39 = vsel %vm791_vm2, %v5693_v32, %v5695_v59 }
 0x307   : > { %v14421_v52 = vpop.f32.mrf.mxu1  ;;  %14624 = vmatmul.mubr.msk.bf16.gmra.mxu1 %vm3068_vm5, %v23737_v48  ;;  %v23743_v48 = vld [vmem:[#allocation76_spill] sm:$0xff] }
 0x308   : > { %v4365_v34 = vpop.f32.mrf.mxu0  ;;  %v4281_v26 = vadd.f32 %v14421_v52, %v23740_v62  ;;  %14627 = vmatprep.mubr.msk.bf16.mxu1 %vm3068_vm5, %v23741_v54  ;;  %v18901_v4 = vadd.f32 %v4349_v36, %v4276_v44  ;;  %v5699_v36 = vsel %vm791_vm2, %v5697_v24, %v5698_v0  ;;  %v5701_v44 = vsel %vm791_vm2, %v5698_v0, %v5700_v46  ;;  %v23750_v46 = vld [vmem:[#allocation94_spill] sm:$0xff] }
 0x309   : > { %v4164_v8 = vpop.f32.mrf.mxu1 }
 0x30a   : > { %v14459_v25 = vpop.f32.mrf.mxu0  ;;  %14662 = vmatmul.mubr.msk.bf16.gmra.mxu0 %vm3158_vm8, %v18883_v58  ;;  %v4279_v42 = vadd.f32 %v4164_v8, %v23742_v1  ;;  %v18910_v63 = vadd.f32 %v14455_v9, %v4281_v26  ;;  %v18917_v8 = vpack.c.bf16 %v5696_v39, %v5694_v38  ;;  %v23745_v1 = vld [vmem:[#allocation89_spill] sm:$0xff]  ;;  %v23747_v9 = vld [vmem:[#allocation116_spill] sm:$0xff]  ;;  %v18922_v26 = vpack.c.bf16 %v5701_v44, %v5699_v36  ;;  %v23749_v58 = vld [vmem:[#allocation90_spill] sm:$0xff] }
 0x30b   : > { %14665 = vmatprep.mubr.msk.bf16.mxu0 %vm3158_vm8, %v18888_v35  ;;  %v14422_v33 = vpop.f32.mrf.mxu1  ;;  %v5702_v17 = vrot.slane %v23745_v1, 1  ;;  %v23746_v35 = vld [vmem:[#allocation87_spill] sm:$0xff]  ;;  %v5705_v24 = vrot.slane %v23749_v58, 1  ;;  %v5708_v38 = vrot.slane %v18656_v5, 1  ;;  %v5710_v39 = vrot.slane %v18660_v50, 1  ;;  %v23753_v44 = vld [vmem:[#allocation118_spill] sm:$0xff] }
 0x30c   : > { %v4378_v52 = vpop.f32.mrf.mxu0  ;;  %v4282_v22 = vadd.f32 %v14422_v33, %v23743_v48  ;;  %v18915_v49 = vadd.f32 %v4362_v55, %v4279_v42  ;;  %23744 = vst [vmem:[#allocation99_spill] sm:$0xff] %v18917_v8  ;;  %v5703_v32 = vrot.slane %v23746_v35, 1  ;;  %23748 = vst [vmem:[#allocation93_spill] sm:$0xff] %v18922_v26  ;;  %v5707_v42 = vrot.slane %v18654_v51, 1  ;;  %v23751_v35 = vld [vmem:[#allocation115_spill] sm:$0xff]  ;;  %v23752_v48 = vld [vmem:[#allocation69_spill] sm:$0xff] }
 0x30d   : > { %v4167_v62 = vpop.f32.mrf.mxu1 }
 0x30e   : > { %v14460_v54 = vpop.f32.mrf.mxu0  ;;  %v4280_v59 = vadd.f32 %v4167_v62, %v23747_v9  ;;  %v18925_v16 = vadd.f32 %v14456_v45, %v4282_v22  ;;  %v5704_v51 = vsel %vm791_vm2, %v5702_v17, %v5703_v32  ;;  %v5706_v50 = vsel %vm791_vm2, %v5703_v32, %v5705_v24 }
 0x30f   : > { %v14425_v0 = vpop.f32.mrf.mxu1  ;;  %14628 = vmatmul.mubr.msk.bf16.gmra.mxu1 %vm3068_vm5, %v23750_v46  ;;  %v5711_v9 = vsel %vm791_vm2, %v5708_v38, %v5710_v39  ;;  %v5712_v17 = vrot.slane %v18675_v56, 1  ;;  %v5713_v32 = vrot.slane %v18677_v15, 1  ;;  %v23758_v39 = vld [vmem:[#allocation95_spill] sm:$0xff]  ;;  %v5720_v56 = vrot.slane %v18723_v27, 1  ;;  %v23759_v15 = vld [vmem:[#allocation121_spill] sm:$0xff] }
 0x310   : > { %v4381_v55 = vpop.f32.mrf.mxu0  ;;  %v4285_v33 = vadd.f32 %v14425_v0, %v23751_v35  ;;  %14631 = vmatprep.mubr.msk.bf16.mxu1 %vm3068_vm5, %v23752_v48  ;;  %v18935_v36 = vadd.f32 %v4365_v34, %v4280_v59  ;;  %v5709_v34 = vsel %vm791_vm2, %v5707_v42, %v5708_v38  ;;  %v23754_v59 = vld [vmem:[#allocation120_spill] sm:$0xff]  ;;  %v5715_v42 = vrot.slane %v18684_v29, 1 }
 0x311   : > { %v4180_v45 = vpop.f32.mrf.mxu1 }
 0x312   : > { %v14463_v58 = vpop.f32.mrf.mxu0  ;;  %14666 = vmatmul.mubr.msk.bf16.gmra.mxu0 %vm3158_vm8, %v18917_v8  ;;  %v4283_v22 = vadd.f32 %v4180_v45, %v23753_v44  ;;  %v18944_v5 = vadd.f32 %v14459_v25, %v4285_v33  ;;  %v18951_v45 = vpack.c.bf16 %v5706_v50, %v5704_v51  ;;  %v23756_v25 = vld [vmem:[#allocation119_spill] sm:$0xff]  ;;  %v18956_v33 = vpack.c.bf16 %v5711_v9, %v5709_v34  ;;  %v23761_v9 = vld [vmem:[#allocation100_spill] sm:$0xff] }
 0x313   : > { %14669 = vmatprep.mubr.msk.bf16.mxu0 %vm3158_vm8, %v18922_v26  ;;  %v14426_v62 = vpop.f32.mrf.mxu1  ;;  %v5718_v51 = vrot.slane %v18719_v11, 1  ;;  %v5716_v11 = vsel %vm791_vm2, %v5713_v32, %v5715_v42 }
 0x314   : > { %v4394_v1 = vpop.f32.mrf.mxu0  ;;  %v4286_v0 = vadd.f32 %v14426_v62, %v23754_v59  ;;  %v18949_v46 = vadd.f32 %v4378_v52, %v4283_v22  ;;  %23755 = vst [vmem:[#allocation83_spill] sm:$0xff] %v18951_v45  ;;  %23757 = vst [vmem:[#allocation84_spill] sm:$0xff] %v18956_v33  ;;  %v5717_v22 = vrot.slane %v18717_v2, 1  ;;  %v23760_v62 = vld [vmem:[#allocation70_spill] sm:$0xff]  ;;  %v5714_v2 = vsel %vm791_vm2, %v5712_v17, %v5713_v32 }
 0x315   : > { %v4183_v35 = vpop.f32.mrf.mxu1  ;;  %v5722_v17 = vrot.slane %v18734_v3, 1  ;;  %v5723_v32 = vrot.slane %v18736_v28, 1  ;;  %v5730_v3 = vrot.slane %v18785_v19, 1  ;;  %v23767_v28 = vld [vmem:[#allocation67_spill] sm:$0xff] }
 0x316   : > { %v14464_v48 = vpop.f32.mrf.mxu0  ;;  %v4284_v24 = vadd.f32 %v4183_v35, %v23756_v25  ;;  %v18959_v44 = vadd.f32 %v14460_v54, %v4286_v0  ;;  %v5721_v25 = vsel %vm791_vm2, %v5718_v51, %v5720_v56  ;;  %v23766_v56 = vld [vmem:[#allocation97_spill] sm:$0xff] }
 0x317   : > { %v14429_v38 = vpop.f32.mrf.mxu1  ;;  %14632 = vmatmul.mubr.msk.bf16.gmra.mxu1 %vm3068_vm5, %v23758_v39 }
 0x318   : > { %v4397_v52 = vpop.f32.mrf.mxu0  ;;  %v4289_v50 = vadd.f32 %v14429_v38, %v23759_v15  ;;  %14635 = vmatprep.mubr.msk.bf16.mxu1 %vm3068_vm5, %v23760_v62  ;;  %v18969_v34 = vadd.f32 %v4381_v55, %v4284_v24  ;;  %v5719_v55 = vsel %vm791_vm2, %v5717_v22, %v5718_v51  ;;  %v23762_v24 = vld [vmem:[#allocation56_spill] sm:$0xff]  ;;  %v5725_v22 = vrot.slane %v18743_v31, 1 }
 0x319   : > { %v4196_v29 = vpop.f32.mrf.mxu1 }
 0x31a   : > { %v14467_v54 = vpop.f32.mrf.mxu0  ;;  %14670 = vmatmul.mubr.msk.bf16.gmra.mxu0 %vm3158_vm8, %v18951_v45  ;;  %v4287_v59 = vadd.f32 %v4196_v29, %v23761_v9  ;;  %v18978_v27 = vadd.f32 %v14463_v58, %v4289_v50  ;;  %v18985_v29 = vpack.c.bf16 %v5716_v11, %v5714_v2  ;;  %v23764_v58 = vld [vmem:[#allocation82_spill] sm:$0xff]  ;;  %v18990_v50 = vpack.c.bf16 %v5721_v25, %v5719_v55  ;;  %v23769_v25 = vld [vmem:[#allocation59_spill] sm:$0xff]  ;;  %v23807_v45 = vld [vmem:[#allocation68_spill] sm:$0xff] }
 0x31b   : > { %14673 = vmatprep.mubr.msk.bf16.mxu0 %vm3158_vm8, %v18956_v33  ;;  %v14430_v0 = vpop.f32.mrf.mxu1  ;;  %v5728_v2 = vrot.slane %v18781_v43, 1  ;;  %v5726_v43 = vsel %vm791_vm2, %v5723_v32, %v5725_v22 }
 0x31c   : > { %v4410_v35 = vpop.f32.mrf.mxu0  ;;  %v4290_v38 = vadd.f32 %v14430_v0, %v23762_v24  ;;  %v18983_v39 = vadd.f32 %v4394_v1, %v4287_v59  ;;  %23763 = vst [vmem:[#allocation75_spill] sm:$0xff] %v18985_v29  ;;  %23765 = vst [vmem:[#allocation92_spill] sm:$0xff] %v18990_v50  ;;  %v5727_v59 = vrot.slane %v18779_v21, 1  ;;  %v23768_v0 = vld [vmem:[#allocation96_spill] sm:$0xff]  ;;  %v5724_v21 = vsel %vm791_vm2, %v5722_v17, %v5723_v32 }
 0x31d   : > { %v4199_v15 = vpop.f32.mrf.mxu1  ;;  %v5732_v17 = vrot.slane %v18796_v13, 1  ;;  %v5733_v32 = vrot.slane %v18798_v53, 1 }
 0x31e   : > { %v14468_v62 = vpop.f32.mrf.mxu0  ;;  %v4288_v42 = vadd.f32 %v4199_v15, %v23764_v58  ;;  %v18993_v9 = vadd.f32 %v14464_v48, %v4290_v38  ;;  %v5731_v58 = vsel %vm791_vm2, %v5728_v2, %v5730_v3  ;;  %v23774_v3 = vld [vmem:[#allocation71_spill] sm:$0xff] }
 0x31f   : > { %v14433_v51 = vpop.f32.mrf.mxu1  ;;  %14636 = vmatmul.mubr.msk.bf16.gmra.mxu1 %vm3068_vm5, %v23766_v56 }
 0x320   : > { %v4413_v1 = vpop.f32.mrf.mxu0  ;;  %v4293_v11 = vadd.f32 %v14433_v51, %v23767_v28  ;;  %14639 = vmatprep.mubr.msk.bf16.mxu1 %vm3068_vm5, %v23768_v0  ;;  %v19003_v55 = vadd.f32 %v4397_v52, %v4288_v42  ;;  %v5729_v52 = vsel %vm791_vm2, %v5727_v59, %v5728_v2  ;;  %v23770_v42 = vld [vmem:[#allocation80_spill] sm:$0xff]  ;;  %v5735_v59 = vrot.slane %v18807_v30, 1  ;;  %v23777_v30 = vld [vmem:[#allocation91_spill] sm:$0xff] }
 0x321   : > { %v4212_v31 = vpop.f32.mrf.mxu1 }
 0x322   : > { %v14471_v48 = vpop.f32.mrf.mxu0  ;;  %14674 = vmatmul.mubr.msk.bf16.gmra.mxu0 %vm3158_vm8, %v18985_v29  ;;  %v4291_v24 = vadd.f32 %v4212_v31, %v23769_v25  ;;  %v19012_v19 = vadd.f32 %v14467_v54, %v4293_v11  ;;  %v19019_v31 = vpack.c.bf16 %v5726_v43, %v5724_v21  ;;  %v23772_v54 = vld [vmem:[#allocation85_spill] sm:$0xff]  ;;  %v19024_v11 = vpack.c.bf16 %v5731_v58, %v5729_v52  ;;  %v23776_v43 = vld [vmem:[#allocation102_spill] sm:$0xff] }
 0x323   : > { %14677 = vmatprep.mubr.msk.bf16.mxu0 %vm3158_vm8, %v18990_v50  ;;  %v14434_v38 = vpop.f32.mrf.mxu1  ;;  %v5734_v52 = vsel %vm791_vm2, %v5732_v17, %v5733_v32  ;;  %v5736_v58 = vsel %vm791_vm2, %v5733_v32, %v5735_v59  ;;  %v23780_v17 = vld [vmem:[#allocation98_spill] sm:$0xff]  ;;  %v23781_v32 = vld [vmem:[#allocation127_spill] sm:$0xff] }
 0x324   : > { %v4426_v15 = vpop.f32.mrf.mxu0  ;;  %v4294_v51 = vadd.f32 %v14434_v38, %v23770_v42  ;;  %v19017_v56 = vadd.f32 %v4410_v35, %v4291_v24  ;;  %23771 = vst [vmem:[#allocation109_spill] sm:$0xff] %v19019_v31  ;;  %23773 = vst [vmem:[#allocation76_spill] sm:$0xff] %v19024_v11  ;;  %v23775_v24 = vld [vmem:[#allocation66_spill] sm:$0xff] }
 0x325   : > { %v4215_v28 = vpop.f32.mrf.mxu1  ;;  %v23803_v29 = vld [vmem:[#allocation78_spill] sm:$0xff] }
 0x326   : > { %v14472_v0 = vpop.f32.mrf.mxu0  ;;  %v4292_v22 = vadd.f32 %v4215_v28, %v23772_v54  ;;  %v19027_v25 = vadd.f32 %v14468_v62, %v4294_v51 }
 0x327   : > { %v14437_v2 = vpop.f32.mrf.mxu1  ;;  %14640 = vmatmul.mubr.msk.bf16.gmra.mxu1 %vm3068_vm5, %v23774_v3  ;;  %v19048_v3 = vpack.c.bf16 %v5736_v58, %v5734_v52  ;;  %v23783_v52 = vld [vmem:[#allocation108_spill] sm:$0xff]  ;;  %v23784_v58 = vld [vmem:[#allocation105_spill] sm:$0xff] }
 0x328   : > { %v4429_v35 = vpop.f32.mrf.mxu0  ;;  %v4297_v21 = vadd.f32 %v14437_v2, %v23775_v24  ;;  %14643 = vmatprep.mubr.msk.bf16.mxu1 %vm3068_vm5, %v23776_v43  ;;  %v19034_v13 = vadd.f32 %v4413_v1, %v4292_v22  ;;  %v23779_v24 = vld [vmem:[#allocation125_spill] sm:$0xff] }
 0x329   : > { %v4228_v53 = vpop.f32.mrf.mxu1  ;;  %23778 = vst [vmem:[#allocation89_spill] sm:$0xff] %v19048_v3 }
 0x32a   : > { %v14475_v38 = vpop.f32.mrf.mxu0  ;;  %14678 = vmatmul.mubr.msk.bf16.gmra.mxu0 %vm3158_vm8, %v19019_v31  ;;  %v4295_v62 = vadd.f32 %v4228_v53, %v23777_v30  ;;  %v19043_v42 = vadd.f32 %v14471_v48, %v4297_v21  ;;  %v23782_v21 = vld [vmem:[#allocation101_spill] sm:$0xff] }
 0x32b   : > { %14681 = vmatprep.mubr.msk.bf16.mxu0 %vm3158_vm8, %v19024_v11  ;;  %v14438_v51 = vpop.f32.mrf.mxu1 }
 0x32c   : > { %v4442_v28 = vpop.f32.mrf.mxu0  ;;  %v4298_v1 = vadd.f32 %v14438_v51, %v18708_v20  ;;  %v19046_v54 = vadd.f32 %v4426_v15, %v4295_v62  ;;  %v23785_v51 = vpack.c.bf16 %v23783_v52, %v23784_v58 }
 0x32d   : > { %v4231_v22 = vpop.f32.mrf.mxu1 }
 0x32e   : > { %v14476_v2 = vpop.f32.mrf.mxu0  ;;  %v4296_v43 = vadd.f32 %v4231_v22, %v23779_v24  ;;  %v19051_v53 = vadd.f32 %v14472_v0, %v4298_v1 }
 0x32f   : > { %v14441_v30 = vpop.f32.mrf.mxu1  ;;  %14644 = vmatmul.mubr.msk.bf16.gmra.mxu1 %vm3068_vm5, %v23780_v17 }
 0x330   : > { %v4445_v48 = vpop.f32.mrf.mxu0  ;;  %v4301_v59 = vadd.f32 %v14441_v30, %v23781_v32  ;;  %14647 = vmatprep.mubr.msk.bf16.mxu1 %vm3068_vm5, %v23782_v21  ;;  %v19058_v20 = vadd.f32 %v4429_v35, %v4296_v43 }
 0x331   : > { %v4244_v15 = vpop.f32.mrf.mxu1 }
 0x332   : > { %v14479_v62 = vpop.f32.mrf.mxu0  ;;  %14682 = vmatmul.mubr.msk.bf16.gmra.mxu0 %vm3158_vm8, %v19048_v3  ;;  %v4299_v0 = vadd.f32 %v4244_v15, %v18756_v6  ;;  %v19067_v1 = vadd.f32 %v14475_v38, %v4301_v59  ;;  %v23786_v15 = vld [vmem:[#allocation104_spill] sm:$0xff]  ;;  %v6801_v59 = vsel %vm5834_vm7, %v18849_v37, 0 }
 0x333   : > { %14721 = vmatprep.mubr.msk.bf16.mxu0 %vm3158_vm8, %v23785_v51  ;;  %v14442_v22 = vpop.f32.mrf.mxu1  ;;  %v23787_v3 = vld [vmem:[#allocation72_spill] sm:$0xff] }
 0x334   : > { %v4458_v24 = vpop.f32.mrf.mxu0  ;;  %v4302_v30 = vadd.f32 %v14442_v22, %v18767_v57  ;;  %v19070_v35 = vadd.f32 %v4442_v28, %v4299_v0  ;;  %v23788_v52 = vpack.c.bf16 %v23786_v15, %v23787_v3  ;;  %v23789_v28 = vld [vmem:[#allocation106_spill] sm:$0xff]  ;;  %v23790_v0 = vld [vmem:[#allocation73_spill] sm:$0xff]  ;;  %v23793_v3 = vld [vmem:[#allocation135_spill] sm:$0xff] }
 0x335   : > { %v4247_v43 = vpop.f32.mrf.mxu1  ;;  %v23791_v58 = vpack.c.bf16 %v23789_v28, %v23790_v0  ;;  %v23792_v22 = vld [vmem:[#allocation110_spill] sm:$0xff]  ;;  %v6590_v0 = vsel %vm5834_vm7, %v18847_v41, 0  ;;  %v23796_v41 = vld [vmem:[#allocation112_spill] sm:$0xff] }
 0x336   : > { %v14480_v17 = vpop.f32.mrf.mxu0  ;;  %v4300_v32 = vadd.f32 %v4247_v43, %v18783_v61  ;;  %v19073_v21 = vadd.f32 %v14476_v2, %v4302_v30  ;;  %v23794_v43 = vld [vmem:[#allocation114_spill] sm:$0xff] }
 0x337   : > { %v14445_v6 = vpop.f32.mrf.mxu1  ;;  %14648 = vmatmul.mubr.msk.bf16.gmra.mxu1 %vm3068_vm5, %v23788_v52 }
 0x338   : > { %v4461_v38 = vpop.f32.mrf.mxu0  ;;  %v4305_v57 = vadd.f32 %v14445_v6, %v18803_v40  ;;  %14687 = vmatprep.mubr.msk.bf16.mxu1 %vm3158_vm8, %v23791_v58  ;;  %v19086_v61 = vadd.f32 %v4445_v48, %v4300_v32  ;;  %v5588_v40 = vld [vmem:[%s23013_s5 + $0x28] sm:$0xff] }
 0x339   : > { %v4260_v2 = vpop.f32.mrf.mxu1  ;;  %v19103_v58 = vpack.c.bf16 %v5588_v40, %v5588_v40 }
 0x33a   : > { %v14519_v51 = vpop.f32.mrf.mxu0  ;;  %14722 = vmatmul.mubr.msk.bf16.vlgmr.msra.gmra.mxu0 %vm3158_vm8, %v23792_v22  ;;  %v4303_v30 = vadd.f32 %v4260_v2, %v23793_v3  ;;  %v19093_v37 = vadd.f32 %v14479_v62, %v4305_v57  ;;  %v5589_v57 = vld [vmem:[%s23013_s5 + $0x30] sm:$0xff]  ;;  %v23795_v3 = vld [vmem:[#allocation107_spill] sm:$0xff] }
 0x33b   : > { %14725 = vmatprep.mubr.msk.bf16.mxu0 %vm3158_vm8, %v23794_v43  ;;  %14788 = vmatpush3.bf16.msra.mxu0 %v6801_v59  ;;  %v14446_v6 = vpop.f32.mrf.mxu1 }
 0x33c   : > { %v4759_v48 = vpop.f32.mrf.mxu0  ;;  %v4306_v32 = vadd.f32 %v14446_v6, %v18835_v23  ;;  %v19099_v15 = vadd.f32 %v4458_v24, %v4303_v30  ;;  %v19113_v24 = vpack.c.bf16 %v5589_v57, %v5589_v57  ;;  %v23797_v6 = vld [vmem:[#allocation113_spill] sm:$0xff] }
 0x33d   : > { %v4263_v52 = vpop.f32.mrf.mxu1 }
 0x33e   : > { %v14520_v28 = vpop.f32.mrf.mxu0  ;;  %v4304_v62 = vadd.f32 %v4263_v52, %v18851_v18  ;;  %v19106_v59 = vadd.f32 %v14480_v17, %v4306_v32  ;;  %v23798_v52 = vld [vmem:[#allocation117_spill] sm:$0xff]  ;;  %15584 = vmatprep.subr.msk.bf16.mxu0 %vm5834_vm7, %v19113_v24 }
 0x33f   : > { %v14485_v2 = vpop.f32.mrf.mxu1  ;;  %14688 = vmatmul.mubr.msk.bf16.vlgmr.msra.gmra.mxu1 %vm3158_vm8, %v23795_v3 }
 0x340   : > { %v4762_v23 = vpop.f32.mrf.mxu0  ;;  %v4683_v30 = vadd.f32 %v14485_v2, %v18876_v12  ;;  %14754 = vmatpush3.bf16.msra.mxu1 %v6590_v0  ;;  %14691 = vmatprep.mubr.msk.bf16.mxu1 %vm3158_vm8, %v23796_v41  ;;  %v19118_v18 = vadd.f32 %v4461_v38, %v4304_v62 }
 0x341   : > { %v4554_v17 = vpop.f32.mrf.mxu1  ;;  %15583 = vmatprep.subr.msk.bf16.mxu1 %vm5834_vm7, %v19103_v58 }
 0x342   : > { %v14523_v40 = vpop.f32.mrf.mxu0  ;;  %14726 = vmatmul.mubr.msk.bf16.gmra.mxu0 %vm3158_vm8, %v23797_v6  ;;  %v4681_v32 = vadd.f32 %v4554_v17, %v18881_v47  ;;  %v19127_v12 = vadd.f32 %v14519_v51, %v4683_v30  ;;  %v23799_v17 = vld [vmem:[#allocation111_spill] sm:$0xff] }
 0x343   : > { %14729 = vmatprep.mubr.msk.bf16.mxu0 %vm3158_vm8, %v23798_v52  ;;  %v14486_v38 = vpop.f32.mrf.mxu1  ;;  %v23800_v52 = vld [vmem:[#allocation77_spill] sm:$0xff] }
 0x344   : > { %v4775_v0 = vpop.f32.mrf.mxu0  ;;  %v4684_v62 = vadd.f32 %v14486_v38, %v18891_v60  ;;  %v19132_v57 = vadd.f32 %v4759_v48, %v4681_v32  ;;  %v23801_v32 = vld [vmem:[#allocation79_spill] sm:$0xff] }
 0x345   : > { %v4557_v2 = vpop.f32.mrf.mxu1 }
 0x346   : > { %v14524_v6 = vpop.f32.mrf.mxu0  ;;  %v4682_v43 = vadd.f32 %v4557_v2, %v18901_v4  ;;  %v19135_v22 = vadd.f32 %v14520_v28, %v4684_v62  ;;  %v23802_v28 = vld [vmem:[#allocation103_spill] sm:$0xff] }
 0x347   : > { %v14489_v47 = vpop.f32.mrf.mxu1  ;;  %14692 = vmatmul.mubr.msk.bf16.gmra.mxu1 %vm3158_vm8, %v23799_v17 }
 0x348   : > { %v4778_v51 = vpop.f32.mrf.mxu0  ;;  %v4687_v30 = vadd.f32 %v14489_v47, %v18910_v63  ;;  %14695 = vmatprep.mubr.msk.bf16.mxu1 %vm3158_vm8, %v23800_v52  ;;  %v19142_v11 = vadd.f32 %v4762_v23, %v4682_v43 }
 0x349   : > { %v4570_v60 = vpop.f32.mrf.mxu1 }
 0x34a   : > { %v14527_v48 = vpop.f32.mrf.mxu0  ;;  %14730 = vmatmul.mubr.msk.bf16.gmra.mxu0 %vm3158_vm8, %v23801_v32  ;;  %v4685_v4 = vadd.f32 %v4570_v60, %v18915_v49  ;;  %v19149_v38 = vadd.f32 %v14523_v40, %v4687_v30  ;;  %v23804_v30 = vld [vmem:[#allocation122_spill] sm:$0xff] }
 0x34b   : > { %14733 = vmatprep.mubr.msk.bf16.mxu0 %vm3158_vm8, %v23802_v28  ;;  %v14490_v62 = vpop.f32.mrf.mxu1 }
 0x34c   : > { %v4791_v2 = vpop.f32.mrf.mxu0  ;;  %v4688_v63 = vadd.f32 %v14490_v62, %v18925_v16  ;;  %v19152_v47 = vadd.f32 %v4775_v0, %v4685_v4  ;;  %v23805_v4 = vld [vmem:[#allocation63_spill] sm:$0xff] }
 0x34d   : > { %v4573_v43 = vpop.f32.mrf.mxu1 }
 0x34e   : > { %v14528_v23 = vpop.f32.mrf.mxu0  ;;  %v4686_v31 = vadd.f32 %v4573_v43, %v18935_v36  ;;  %v19155_v50 = vadd.f32 %v14524_v6, %v4688_v63  ;;  %v23806_v6 = vld [vmem:[#allocation81_spill] sm:$0xff] }
 0x34f   : > { %v14493_v32 = vpop.f32.mrf.mxu1  ;;  %14696 = vmatmul.mubr.msk.bf16.gmra.mxu1 %vm3158_vm8, %v23803_v29 }
 0x350   : > { %v4794_v49 = vpop.f32.mrf.mxu0  ;;  %v4691_v40 = vadd.f32 %v14493_v32, %v18944_v5  ;;  %14699 = vmatprep.mubr.msk.bf16.mxu1 %vm3158_vm8, %v23804_v30  ;;  %v19162_v60 = vadd.f32 %v4778_v51, %v4686_v31 }
 0x351   : > { %v4586_v16 = vpop.f32.mrf.mxu1 }
 0x352   : > { %v14531_v0 = vpop.f32.mrf.mxu0  ;;  %14734 = vmatmul.mubr.msk.bf16.gmra.mxu0 %vm3158_vm8, %v23805_v4  ;;  %v4689_v36 = vadd.f32 %v4586_v16, %v18949_v46  ;;  %v19169_v62 = vadd.f32 %v14527_v48, %v4691_v40  ;;  %v23808_v40 = vld [vmem:[#allocation86_spill] sm:$0xff] }
 0x353   : > { %14737 = vmatprep.mubr.msk.bf16.mxu0 %vm3158_vm8, %v23806_v6  ;;  %v14494_v63 = vpop.f32.mrf.mxu1 }
 0x354   : > { %v4807_v43 = vpop.f32.mrf.mxu0  ;;  %v4692_v5 = vadd.f32 %v14494_v63, %v18959_v44  ;;  %v19172_v32 = vadd.f32 %v4791_v2, %v4689_v36  ;;  %v23810_v36 = vld [vmem:[#allocation64_spill] sm:$0xff] }
 0x355   : > { %v4589_v31 = vpop.f32.mrf.mxu1 }
 0x356   : > { %v14532_v51 = vpop.f32.mrf.mxu0  ;;  %v4690_v28 = vadd.f32 %v4589_v31, %v18969_v34  ;;  %v19175_v33 = vadd.f32 %v14528_v23, %v4692_v5  ;;  %v23811_v23 = vld [vmem:[#allocation123_spill] sm:$0xff] }
 0x357   : > { %v14497_v4 = vpop.f32.mrf.mxu1  ;;  %14700 = vmatmul.mubr.msk.bf16.gmra.mxu1 %vm3158_vm8, %v23807_v45 }
 0x358   : > { %v4810_v46 = vpop.f32.mrf.mxu0  ;;  %v4695_v48 = vadd.f32 %v14497_v4, %v18978_v27  ;;  %14703 = vmatprep.mubr.msk.bf16.mxu1 %vm3158_vm8, %v23808_v40  ;;  %v19182_v16 = vadd.f32 %v4794_v49, %v4690_v28 }
 0x359   : > { %v4602_v44 = vpop.f32.mrf.mxu1 }
 0x35a   : > { %23809 = vst [vmem:[#allocation87_spill] sm:$0xff] %v19182_v16  ;;  %v14535_v2 = vpop.f32.mrf.mxu0  ;;  %14738 = vmatmul.mubr.msk.bf16.gmra.mxu0 %vm3158_vm8, %v23810_v36  ;;  %v4693_v34 = vadd.f32 %v4602_v44, %v18983_v39  ;;  %v19189_v63 = vadd.f32 %v14531_v0, %v4695_v48  ;;  %v23812_v16 = vld [vmem:[#allocation58_spill] sm:$0xff]  ;;  %v23813_v48 = vld [vmem:[#allocation65_spill] sm:$0xff] }
 0x35b   : > { %14741 = vmatprep.mubr.msk.bf16.mxu0 %vm3158_vm8, %v23811_v23  ;;  %v14498_v5 = vpop.f32.mrf.mxu1 }
 0x35c   : > { %v4823_v31 = vpop.f32.mrf.mxu0  ;;  %v4696_v27 = vadd.f32 %v14498_v5, %v18993_v9  ;;  %v19192_v4 = vadd.f32 %v4807_v43, %v4693_v34  ;;  %v23815_v34 = vld [vmem:[#allocation124_spill] sm:$0xff] }
 0x35d   : > { %v4605_v28 = vpop.f32.mrf.mxu1 }
 0x35e   : > { %v14536_v49 = vpop.f32.mrf.mxu0  ;;  %v4694_v6 = vadd.f32 %v4605_v28, %v19003_v55  ;;  %v19195_v40 = vadd.f32 %v14532_v51, %v4696_v27  ;;  %v23816_v51 = vld [vmem:[#allocation129_spill] sm:$0xff] }
 0x35f   : > { %v14501_v36 = vpop.f32.mrf.mxu1  ;;  %14704 = vmatmul.mubr.msk.bf16.gmra.mxu1 %vm3158_vm8, %v23812_v16 }
 0x360   : > { %v4826_v39 = vpop.f32.mrf.mxu0  ;;  %v4699_v0 = vadd.f32 %v14501_v36, %v19012_v19  ;;  %14707 = vmatprep.mubr.msk.bf16.mxu1 %vm3158_vm8, %v23813_v48  ;;  %v19202_v44 = vadd.f32 %v4810_v46, %v4694_v6 }
 0x361   : > { %v4618_v9 = vpop.f32.mrf.mxu1 }
 0x362   : > { %23814 = vst [vmem:[#allocation116_spill] sm:$0xff] %v19202_v44  ;;  %v14539_v43 = vpop.f32.mrf.mxu0  ;;  %14742 = vmatmul.mubr.msk.bf16.gmra.mxu0 %vm3158_vm8, %v23815_v34  ;;  %v4697_v55 = vadd.f32 %v4618_v9, %v19017_v56  ;;  %v19209_v5 = vadd.f32 %v14535_v2, %v4699_v0  ;;  %v23817_v44 = vld [vmem:[#allocation88_spill] sm:$0xff]  ;;  %v23818_v0 = vld [vmem:[#allocation126_spill] sm:$0xff] }
 0x363   : > { %14745 = vmatprep.mubr.msk.bf16.mxu0 %vm3158_vm8, %v23816_v51  ;;  %v14502_v27 = vpop.f32.mrf.mxu1 }
 0x364   : > { %v4839_v28 = vpop.f32.mrf.mxu0  ;;  %v4700_v19 = vadd.f32 %v14502_v27, %v19027_v25  ;;  %v19212_v36 = vadd.f32 %v4823_v31, %v4697_v55  ;;  %v23819_v55 = vld [vmem:[#allocation130_spill] sm:$0xff] }
 0x365   : > { %v4621_v6 = vpop.f32.mrf.mxu1 }
 0x366   : > { %v14540_v46 = vpop.f32.mrf.mxu0  ;;  %v4698_v23 = vadd.f32 %v4621_v6, %v19034_v13  ;;  %v19215_v48 = vadd.f32 %v14536_v49, %v4700_v19 }
 0x367   : > { %v14505_v34 = vpop.f32.mrf.mxu1  ;;  %14708 = vmatmul.mubr.msk.bf16.gmra.mxu1 %vm3158_vm8, %v23817_v44 }
 0x368   : > { %v4842_v56 = vpop.f32.mrf.mxu0  ;;  %v4703_v2 = vadd.f32 %v14505_v34, %v19043_v42  ;;  %14711 = vmatprep.mubr.msk.bf16.mxu1 %vm3158_vm8, %v23818_v0  ;;  %v19222_v9 = vadd.f32 %v4826_v39, %v4698_v23  ;;  %v23820_v0 = vld [vmem:[#allocation128_spill] sm:$0xff] }
 0x369   : > { %v4634_v25 = vpop.f32.mrf.mxu1 }
 0x36a   : > { %v14543_v31 = vpop.f32.mrf.mxu0  ;;  %14746 = vmatmul.mubr.msk.bf16.gmra.mxu0 %vm3158_vm8, %v23819_v55  ;;  %v4701_v13 = vadd.f32 %v4634_v25, %v19046_v54  ;;  %v19229_v49 = vadd.f32 %v14539_v43, %v4703_v2  ;;  %v23821_v2 = vld [vmem:[#allocation133_spill] sm:$0xff] }
 0x36b   : > { %14749 = vmatprep.mubr.msk.bf16.mxu0 %vm3158_vm8, %v18829_v14  ;;  %v14506_v27 = vpop.f32.mrf.mxu1  ;;  %v23825_v14 = vld [vmem:[#allocation134_spill] sm:$0xff] }
 0x36c   : > { %v4855_v19 = vpop.f32.mrf.mxu0  ;;  %v4704_v42 = vadd.f32 %v14506_v27, %v19051_v53  ;;  %v19232_v34 = vadd.f32 %v4839_v28, %v4701_v13 }
 0x36d   : > { %v4637_v23 = vpop.f32.mrf.mxu1 }
 0x36e   : > { %v14544_v39 = vpop.f32.mrf.mxu0  ;;  %v4702_v6 = vadd.f32 %v4637_v23, %v19058_v20  ;;  %v19235_v51 = vadd.f32 %v14540_v46, %v4704_v42  ;;  %v23822_v46 = vld [vmem:[#allocation131_spill] sm:$0xff] }
 0x36f   : > { %v14509_v55 = vpop.f32.mrf.mxu1  ;;  %14712 = vmatmul.mubr.msk.bf16.gmra.mxu1 %vm3158_vm8, %v23820_v0 }
 0x370   : > { %v4858_v54 = vpop.f32.mrf.mxu0  ;;  %v4707_v43 = vadd.f32 %v14509_v55, %v19067_v1  ;;  %14715 = vmatprep.mubr.msk.bf16.mxu1 %vm3158_vm8, %v23821_v2  ;;  %v19242_v25 = vadd.f32 %v4842_v56, %v4702_v6  ;;  %v19251_v1 = vld [vmem:[#allocation3 + $0x180] sm:$0xff]  ;;  %v19253_v55 = vld [vmem:[#allocation3 + $0x188] sm:$0xff]  ;;  %v19265_v2 = vld [vmem:[#allocation3 + $0x190] sm:$0x3] }
 0x371   : > { %v4650_v53 = vpop.f32.mrf.mxu1  ;;  %v6996_v6 = vrot.slane %v19251_v1, 2 }
 0x372   : > { %v14547_v28 = vpop.f32.mrf.mxu0  ;;  %14750 = vmatmul.mubr.msk.bf16.gmra.mxu0 %vm3158_vm8, %v18839_v7  ;;  %v4705_v20 = vadd.f32 %v4650_v53, %v19070_v35  ;;  %v19249_v13 = vadd.f32 %v14543_v31, %v4707_v43  ;;  %v6997_v7 = vrot.slane %v19253_v55, 2 }
 0x373   : > { %14789 = vmatprep.mubr.msk.bf16.mxu0 %vm3158_vm8, %v23822_v46  ;;  %v14510_v27 = vpop.f32.mrf.mxu1 }
 0x374   : > { %23823 = vst [vmem:[#allocation90_spill] sm:$0xff] %v19249_v13  ;;  %v4871_v42 = vpop.f32.mrf.mxu0  ;;  %v4708_v56 = vadd.f32 %v14510_v27, %v19073_v21  ;;  %v19256_v23 = vadd.f32 %v4855_v19, %v4705_v20  ;;  %v7210_v21 = vsel %vm5834_vm7, %v19113_v24, 0 }
 0x375   : > { %v4653_v35 = vpop.f32.mrf.mxu1 }
 0x376   : > { %v14548_v53 = vpop.f32.mrf.mxu0  ;;  %v4706_v46 = vadd.f32 %v4653_v35, %v19086_v61  ;;  %v19261_v31 = vadd.f32 %v14544_v39, %v4708_v56  ;;  %v6998_v61 = vsel %vm1356_vm4, %v6996_v6, %v6997_v7  ;;  %v6999_v39 = vrot.slane %v19265_v2, 2  ;;  %v23826_v35 = vld [vmem:[#allocation132_spill] sm:$0xff] }
 0x377   : > { %v14513_v43 = vpop.f32.mrf.mxu1  ;;  %14716 = vmatmul.mubr.msk.bf16.gmra.mxu1 %vm3158_vm8, %v23825_v14 }
 0x378   : > { %23824 = vst [vmem:[#allocation94_spill] sm:$0xff] %v19261_v31  ;;  %v4874_v13 = vpop.f32.mrf.mxu0  ;;  %v4711_v19 = vadd.f32 %v14513_v43, %v19093_v37  ;;  %14755 = vmatprep.mubr.msk.bf16.mxu1 %vm3158_vm8, %v23795_v3  ;;  %v19272_v20 = vadd.f32 %v4858_v54, %v4706_v46  ;;  %v5590_v3 = vld [vmem:[%s23013_s5 + $0x38] sm:$0xff]  ;;  %v7000_v24 = vsel %vm1356_vm4, %v6997_v7, %v6999_v39 }
 0x379   : > { %v4666_v27 = vpop.f32.mrf.mxu1  ;;  %v19287_v46 = vpack.c.bf16 %v7000_v24, %v6998_v61 }
 0x37a   : > { %v14587_v56 = vpop.f32.mrf.mxu0  ;;  %14790 = vmatmul.mubr.msk.bf16.vlgmr.msra.gmra.mxu0 %vm3158_vm8, %v23826_v35  ;;  %v4709_v31 = vadd.f32 %v4666_v27, %v19099_v15  ;;  %v19281_v37 = vadd.f32 %v14547_v28, %v4711_v19  ;;  %v5591_v15 = vld [vmem:[%s23013_s5 + $0x40] sm:$0xff]  ;;  %v7009_v19 = vsel %vm5834_vm7, %v19103_v58, 0  ;;  %v19297_v27 = vpack.c.bf16 %v5590_v3, %v5590_v3 }
 0x37b   : > { %14793 = vmatprep.mubr.msk.bf16.mxu0 %vm3158_vm8, %v18844_v10  ;;  %14856 = vmatpush3.bf16.msra.mxu0 %v7210_v21  ;;  %v14514_v54 = vpop.f32.mrf.mxu1  ;;  %23827 = vst [vmem:[#allocation115_spill] sm:$0xff] %v19287_v46  ;;  %v19299_v7 = vpack.c.bf16 %v5591_v15, %v5591_v15 }
 0x37c   : > { %v5165_v6 = vpop.f32.mrf.mxu0  ;;  %v4712_v43 = vadd.f32 %v14514_v54, %v19106_v59  ;;  %v19290_v35 = vadd.f32 %v4871_v42, %v4709_v31  ;;  %v23829_v54 = vld [vmem:[#allocation140_spill] sm:$0xff] }
 0x37d   : > { %v4669_v28 = vpop.f32.mrf.mxu1  ;;  %15586 = vmatprep.subr.msk.bf16.mxu0 %vm5834_vm7, %v19299_v7 }
 0x37e   : > { %v14588_v21 = vpop.f32.mrf.mxu0  ;;  %v4710_v61 = vadd.f32 %v4669_v28, %v19118_v18  ;;  %v19302_v39 = vadd.f32 %v14548_v53, %v4712_v43  ;;  %v23828_v53 = vld [vmem:[#allocation139_spill] sm:$0xff] }
 0x37f   : > { %v14553_v59 = vpop.f32.mrf.mxu1  ;;  %14756 = vmatmul.mubr.msk.bf16.vlgmr.msra.gmra.mxu1 %vm3158_vm8, %v23796_v41 }
 0x380   : > { %v5168_v42 = vpop.f32.mrf.mxu0  ;;  %v5086_v31 = vadd.f32 %v14553_v59, %v19127_v12  ;;  %14822 = vmatpush3.bf16.msra.mxu1 %v7009_v19  ;;  %14759 = vmatprep.mubr.msk.bf16.mxu1 %vm3158_vm8, %v23799_v17  ;;  %v19311_v58 = vadd.f32 %v4874_v13, %v4710_v61 }
 0x381   : > { %v4957_v3 = vpop.f32.mrf.mxu1  ;;  %15585 = vmatprep.subr.msk.bf16.mxu1 %vm5834_vm7, %v19297_v27 }
 0x382   : > { %v14591_v18 = vpop.f32.mrf.mxu0  ;;  %14794 = vmatmul.mubr.msk.bf16.gmra.mxu0 %vm3158_vm8, %v23828_v53  ;;  %v5084_v24 = vadd.f32 %v4957_v3, %v19132_v57  ;;  %v19320_v12 = vadd.f32 %v14587_v56, %v5086_v31  ;;  %v23830_v3 = vld [vmem:[#allocation74_spill] sm:$0xff] }
 0x383   : > { %14797 = vmatprep.mubr.msk.bf16.mxu0 %vm3158_vm8, %v23829_v54  ;;  %v14554_v43 = vpop.f32.mrf.mxu1  ;;  %v23833_v54 = vld [vmem:[#allocation86_spill] sm:$0xff] }
 0x384   : > { %v5181_v15 = vpop.f32.mrf.mxu0  ;;  %v5087_v13 = vadd.f32 %v14554_v43, %v19135_v22  ;;  %v19323_v28 = vadd.f32 %v5165_v6, %v5084_v24 }
 0x385   : > { %v4960_v19 = vpop.f32.mrf.mxu1 }
 0x386   : > { %v14592_v61 = vpop.f32.mrf.mxu0  ;;  %v5085_v59 = vadd.f32 %v4960_v19, %v19142_v11  ;;  %v19326_v53 = vadd.f32 %v14588_v21, %v5087_v13 }
 0x387   : > { %v14557_v10 = vpop.f32.mrf.mxu1  ;;  %14760 = vmatmul.mubr.msk.bf16.gmra.mxu1 %vm3158_vm8, %v23800_v52 }
 0x388   : > { %v5184_v57 = vpop.f32.mrf.mxu0  ;;  %v5090_v56 = vadd.f32 %v14557_v10, %v19149_v38  ;;  %14763 = vmatprep.mubr.msk.bf16.mxu1 %vm3158_vm8, %v23803_v29  ;;  %v19333_v31 = vadd.f32 %v5168_v42, %v5085_v59 }
 0x389   : > { %v4973_v22 = vpop.f32.mrf.mxu1 }
 0x38a   : > { %v14595_v6 = vpop.f32.mrf.mxu0  ;;  %14798 = vmatmul.mubr.msk.bf16.gmra.mxu0 %vm3158_vm8, %v23830_v3  ;;  %v5088_v11 = vadd.f32 %v4973_v22, %v19152_v47  ;;  %v19340_v21 = vadd.f32 %v14591_v18, %v5090_v56 }
 0x38b   : > { %14801 = vmatprep.mubr.msk.bf16.mxu0 %vm3158_vm8, %v18917_v8  ;;  %v14558_v24 = vpop.f32.mrf.mxu1 }
 0x38c   : > { %v5197_v43 = vpop.f32.mrf.mxu0  ;;  %v5091_v10 = vadd.f32 %v14558_v24, %v19155_v50  ;;  %v19343_v38 = vadd.f32 %v5181_v15, %v5088_v11 }
 0x38d   : > { %v4976_v42 = vpop.f32.mrf.mxu1 }
 0x38e   : > { %v14596_v13 = vpop.f32.mrf.mxu0  ;;  %v5089_v19 = vadd.f32 %v4976_v42, %v19162_v60  ;;  %v19346_v59 = vadd.f32 %v14592_v61, %v5091_v10  ;;  %v23831_v61 = vld [vmem:[#allocation83_spill] sm:$0xff] }
 0x38f   : > { %v14561_v3 = vpop.f32.mrf.mxu1  ;;  %14764 = vmatmul.mubr.msk.bf16.gmra.mxu1 %vm3158_vm8, %v23804_v30  ;;  %v23832_v42 = vld [vmem:[#allocation87_spill] sm:$0xff] }
 0x390   : > { %v5200_v47 = vpop.f32.mrf.mxu0  ;;  %v5094_v18 = vadd.f32 %v14561_v3, %v19169_v62  ;;  %14767 = vmatprep.mubr.msk.bf16.mxu1 %vm3158_vm8, %v23807_v45  ;;  %v19353_v56 = vadd.f32 %v5184_v57, %v5089_v19 }
 0x391   : > { %v4989_v50 = vpop.f32.mrf.mxu1 }
 0x392   : > { %v14599_v15 = vpop.f32.mrf.mxu0  ;;  %14802 = vmatmul.mubr.msk.bf16.gmra.mxu0 %vm3158_vm8, %v18922_v26  ;;  %v5092_v60 = vadd.f32 %v4989_v50, %v19172_v32  ;;  %v19360_v22 = vadd.f32 %v14595_v6, %v5094_v18  ;;  %v23835_v50 = vld [vmem:[#allocation84_spill] sm:$0xff] }
 0x393   : > { %14805 = vmatprep.mubr.msk.bf16.mxu0 %vm3158_vm8, %v23831_v61  ;;  %v14562_v11 = vpop.f32.mrf.mxu1 }
 0x394   : > { %v5213_v24 = vpop.f32.mrf.mxu0  ;;  %v5095_v62 = vadd.f32 %v14562_v11, %v19175_v33  ;;  %v19363_v3 = vadd.f32 %v5197_v43, %v5092_v60  ;;  %v23836_v60 = vld [vmem:[#allocation75_spill] sm:$0xff] }
 0x395   : > { %v4992_v57 = vpop.f32.mrf.mxu1 }
 0x396   : > { %v14600_v10 = vpop.f32.mrf.mxu0  ;;  %v5093_v19 = vadd.f32 %v4992_v57, %v23832_v42  ;;  %v19366_v8 = vadd.f32 %v14596_v13, %v5095_v62 }
 0x397   : > { %v14565_v26 = vpop.f32.mrf.mxu1  ;;  %14768 = vmatmul.mubr.msk.bf16.gmra.mxu1 %vm3158_vm8, %v23833_v54 }
 0x398   : > { %v5216_v32 = vpop.f32.mrf.mxu0  ;;  %v5098_v6 = vadd.f32 %v14565_v26, %v19189_v63  ;;  %14771 = vmatprep.mubr.msk.bf16.mxu1 %vm3158_vm8, %v23812_v16  ;;  %v19373_v18 = vadd.f32 %v5200_v47, %v5093_v19  ;;  %v23837_v19 = vld [vmem:[#allocation116_spill] sm:$0xff] }
 0x399   : > { %v5005_v33 = vpop.f32.mrf.mxu1 }
 0x39a   : > { %23834 = vst [vmem:[#allocation69_spill] sm:$0xff] %v19373_v18  ;;  %v14603_v43 = vpop.f32.mrf.mxu0  ;;  %14806 = vmatmul.mubr.msk.bf16.gmra.mxu0 %vm3158_vm8, %v23835_v50  ;;  %v5096_v13 = vadd.f32 %v5005_v33, %v19192_v4  ;;  %v19380_v11 = vadd.f32 %v14599_v15, %v5098_v6  ;;  %v23838_v18 = vld [vmem:[#allocation65_spill] sm:$0xff]  ;;  %v23839_v33 = vld [vmem:[#allocation92_spill] sm:$0xff] }
 0x39b   : > { %14809 = vmatprep.mubr.msk.bf16.mxu0 %vm3158_vm8, %v23836_v60  ;;  %v14566_v62 = vpop.f32.mrf.mxu1 }
 0x39c   : > { %v5229_v57 = vpop.f32.mrf.mxu0  ;;  %v5099_v26 = vadd.f32 %v14566_v62, %v19195_v40  ;;  %v19383_v63 = vadd.f32 %v5213_v24, %v5096_v13  ;;  %v23840_v13 = vld [vmem:[#allocation109_spill] sm:$0xff] }
 0x39d   : > { %v5008_v47 = vpop.f32.mrf.mxu1 }
 0x39e   : > { %v14604_v42 = vpop.f32.mrf.mxu0  ;;  %v5097_v61 = vadd.f32 %v5008_v47, %v23837_v19  ;;  %v19386_v46 = vadd.f32 %v14600_v10, %v5099_v26  ;;  %v6788_v19 = vrot.slane %v19251_v1, 1 }
 0x39f   : > { %v14569_v50 = vpop.f32.mrf.mxu1  ;;  %14772 = vmatmul.mubr.msk.bf16.gmra.mxu1 %vm3158_vm8, %v23838_v18 }
 0x3a0   : > { %v5232_v4 = vpop.f32.mrf.mxu0  ;;  %v5102_v15 = vadd.f32 %v14569_v50, %v19209_v5  ;;  %14775 = vmatprep.mubr.msk.bf16.mxu1 %vm3158_vm8, %v23817_v44  ;;  %v19393_v6 = vadd.f32 %v5216_v32, %v5097_v61 }
 0x3a1   : > { %v5021_v40 = vpop.f32.mrf.mxu1 }
 0x3a2   : > { %v14607_v24 = vpop.f32.mrf.mxu0  ;;  %14810 = vmatmul.mubr.msk.bf16.gmra.mxu0 %vm3158_vm8, %v23839_v33  ;;  %v5100_v10 = vadd.f32 %v5021_v40, %v19212_v36  ;;  %v19400_v62 = vadd.f32 %v14603_v43, %v5102_v15  ;;  %v6789_v33 = vrot.slane %v19253_v55, 1  ;;  %v6791_v36 = vrot.slane %v19265_v2, 1  ;;  %v23841_v15 = vld [vmem:[#allocation126_spill] sm:$0xff] }
 0x3a3   : > { %14813 = vmatprep.mubr.msk.bf16.mxu0 %vm3158_vm8, %v23840_v13  ;;  %v14570_v26 = vpop.f32.mrf.mxu1 }
 0x3a4   : > { %v5245_v47 = vpop.f32.mrf.mxu0  ;;  %v5103_v5 = vadd.f32 %v14570_v26, %v19215_v48  ;;  %v19403_v50 = vadd.f32 %v5229_v57, %v5100_v10  ;;  %v23843_v26 = vld [vmem:[#allocation76_spill] sm:$0xff] }
 0x3a5   : > { %v5024_v61 = vpop.f32.mrf.mxu1 }
 0x3a6   : > { %v14608_v32 = vpop.f32.mrf.mxu0  ;;  %v5101_v60 = vadd.f32 %v5024_v61, %v19222_v9  ;;  %v19409_v40 = vadd.f32 %v14604_v42, %v5103_v5  ;;  %v23844_v42 = vld [vmem:[#allocation89_spill] sm:$0xff]  ;;  %v6790_v5 = vsel %vm791_vm2, %v6788_v19, %v6789_v33  ;;  %v6792_v61 = vsel %vm791_vm2, %v6789_v33, %v6791_v36 }
 0x3a7   : > { %v14573_v43 = vpop.f32.mrf.mxu1  ;;  %14776 = vmatmul.mubr.msk.bf16.gmra.mxu1 %vm3158_vm8, %v23841_v15 }
 0x3a8   : > { %v5248_v13 = vpop.f32.mrf.mxu0  ;;  %v5106_v48 = vadd.f32 %v14573_v43, %v19229_v49  ;;  %14779 = vmatprep.mubr.msk.bf16.mxu1 %vm3158_vm8, %v23820_v0  ;;  %v19416_v57 = vadd.f32 %v5232_v4, %v5101_v60  ;;  %v19430_v60 = vld [vmem:[%s23014_s6] sm:$0xff] }
 0x3a9   : > { %v5037_v10 = vpop.f32.mrf.mxu1  ;;  %23846 = vst [vmem:[#allocation119_spill] sm:$0xff] %v19430_v60  ;;  %v19439_v33 = vpack.c.bf16 %v19430_v60, %v19430_v60 }
 0x3aa   : > { %23842 = vst [vmem:[#allocation118_spill] sm:$0xff] %v19416_v57  ;;  %v14611_v9 = vpop.f32.mrf.mxu0  ;;  %14814 = vmatmul.mubr.msk.bf16.gmra.mxu0 %vm3158_vm8, %v23843_v26  ;;  %v5104_v2 = vadd.f32 %v5037_v10, %v19232_v34  ;;  %v19425_v49 = vadd.f32 %v14607_v24, %v5106_v48  ;;  %v23849_v48 = vld [vmem:[#allocation133_spill] sm:$0xff] }
 0x3ab   : > { %14817 = vmatprep.mubr.msk.bf16.mxu0 %vm3158_vm8, %v23844_v42  ;;  %v14574_v4 = vpop.f32.mrf.mxu1  ;;  %v19435_v42 = vpack.c.bf16 %v6792_v61, %v6790_v5 }
 0x3ac   : > { %23845 = vst [vmem:[#allocation120_spill] sm:$0xff] %v19425_v49  ;;  %v5261_v43 = vpop.f32.mrf.mxu0  ;;  %v5107_v26 = vadd.f32 %v14574_v4, %v19235_v51  ;;  %v19433_v57 = vadd.f32 %v5245_v47, %v5104_v2  ;;  %v23850_v51 = vld [vmem:[#allocation90_spill] sm:$0xff] }
 0x3ad   : > { %v5040_v34 = vpop.f32.mrf.mxu1  ;;  %23847 = vst [vmem:[#allocation95_spill] sm:$0xff] %v19435_v42 }
 0x3ae   : > { %v14612_v10 = vpop.f32.mrf.mxu0  ;;  %v5105_v24 = vadd.f32 %v5040_v34, %v19242_v25  ;;  %v19442_v19 = vadd.f32 %v14608_v32, %v5107_v26  ;;  %v7862_v25 = vshrl.u32 %v19439_v33, 16  ;;  %v7865_v32 = vshll.u32 %v19439_v33, 16 }
 0x3af   : > { %v14577_v36 = vpop.f32.mrf.mxu1  ;;  %14780 = vmatmul.mubr.msk.bf16.gmra.mxu1 %vm3158_vm8, %v23849_v48 }
 0x3b0   : > { %23848 = vst [vmem:[#allocation121_spill] sm:$0xff] %v19442_v19  ;;  %v5264_v49 = vpop.f32.mrf.mxu0  ;;  %v5110_v47 = vadd.f32 %v14577_v36, %v23850_v51  ;;  %14783 = vmatprep.mubr.msk.bf16.mxu1 %vm3158_vm8, %v23825_v14  ;;  %v19449_v2 = vadd.f32 %v5248_v13, %v5105_v24  ;;  %v19462_v13 = vpack.c.bf16 %v19253_v55, %v19251_v1  ;;  %v23853_v36 = vld [vmem:[#allocation94_spill] sm:$0xff]  ;;  %v19467_v19 = vld [vmem:[#allocation3 + $0x198] sm:$0xff] }
 0x3b1   : > { %v5053_v5 = vpop.f32.mrf.mxu1  ;;  %v7408_v1 = vrot.slane %v19467_v19, 1 }
 0x3b2   : > { %23851 = vst [vmem:[#allocation70_spill] sm:$0xff] %v19449_v2  ;;  %v14615_v61 = vpop.f32.mrf.mxu0  ;;  %14818 = vmatmul.mubr.msk.bf16.gmra.mxu0 %vm3158_vm8, %v19435_v42  ;;  %v5108_v26 = vadd.f32 %v5053_v5, %v19256_v23  ;;  %v19458_v4 = vadd.f32 %v14611_v9, %v5110_v47  ;;  %v19469_v23 = vld [vmem:[#allocation3 + $0x1a0] sm:$0xff]  ;;  %v7864_v5 = vrot.slane %v7862_v25, 1  ;;  %v23854_v25 = vld [vmem:[#allocation110_spill] sm:$0xff] }
 0x3b3   : > { %14857 = vmatprep.mubr.msk.bf16.mxu0 %vm3158_vm8, %v23796_v41  ;;  %v14578_v34 = vpop.f32.mrf.mxu1  ;;  %v7867_v41 = vrot.slane %v7865_v32, 2  ;;  %v7409_v55 = vrot.slane %v19469_v23, 1 }
 0x3b4   : > { %23852 = vst [vmem:[#allocation100_spill] sm:$0xff] %v19458_v4  ;;  %v5277_v24 = vpop.f32.mrf.mxu0  ;;  %v5111_v51 = vadd.f32 %v14578_v34, %v23853_v36  ;;  %v19465_v42 = vadd.f32 %v5261_v43, %v5108_v26  ;;  %v7629_v26 = vsel %vm5834_vm7, %v19299_v7, 0 }
 0x3b5   : > { %v5056_v60 = vpop.f32.mrf.mxu1  ;;  %v7868_v32 = vor.u32 %v7867_v41, %v7864_v5  ;;  %v19497_v7 = vsel %vm791_vm2, %v7408_v1, %v7409_v55  ;;  %v23856_v41 = vld [vmem:[#allocation5_spill] sm:$0xff] }
 0x3b6   : > { %v14616_v2 = vpop.f32.mrf.mxu0  ;;  %v5109_v9 = vadd.f32 %v5056_v60, %v19272_v20  ;;  %v19472_v47 = vadd.f32 %v14612_v10, %v5111_v51  ;;  %23855 = vst [vmem:[#allocation56_spill] sm:$0xff] %v19497_v7 }
 0x3b7   : > { %v14581_v4 = vpop.f32.mrf.mxu1  ;;  %14784 = vmatmul.mubr.msk.bf16.gmra.mxu1 %vm3158_vm8, %v19462_v13 }
 0x3b8   : > { %v5280_v43 = vpop.f32.mrf.mxu0  ;;  %v5114_v34 = vadd.f32 %v14581_v4, %v19281_v37  ;;  %14823 = vmatprep.mubr.msk.bf16.mxu1 %vm3158_vm8, %v23854_v25  ;;  %v19483_v20 = vadd.f32 %v5264_v49, %v5109_v9  ;;  %v19494_v37 = vld [vmem:[#allocation3 + $0x1a8] sm:$0x3] }
 0x3b9   : > { %v5069_v60 = vpop.f32.mrf.mxu1  ;;  %v7411_v9 = vrot.slane %v19494_v37, 1  ;;  %v23897_v7 = vld [vmem:[#allocation70_spill] sm:$0xff] }
 0x3ba   : > { %v19485_v10 = vpop.f32.mrf.mxu0  ;;  %14858 = vmatmul.mubr.msk.bf16.vlgmr.msra.gmra.mxu0 %vm3158_vm8, %v23799_v17  ;;  %v19489_v36 = vadd.f32 %v14615_v61, %v5114_v34  ;;  %v5112_v51 = vadd.f32 %v5069_v60, %v19290_v35  ;;  %v7421_v35 = vsel %vm5834_vm7, %v19297_v27, 0  ;;  %v23858_v60 = vld [vmem:[#allocation114_spill] sm:$0xff] }
 0x3bb   : > { %14861 = vmatprep.mubr.msk.bf16.mxu0 %vm3158_vm8, %v23800_v52  ;;  %14924 = vmatpush3.bf16.msra.mxu0 %v7629_v26  ;;  %v14582_v49 = vpop.f32.mrf.mxu1  ;;  %v19510_v26 = vand.u32 %v7868_v32, %v23856_v41  ;;  %v19513_v1 = vsel %vm791_vm2, %v7409_v55, %v7411_v9  ;;  %v19526_v32 = vand.u32 %v19439_v33, %v23856_v41 }
 0x3bc   : > { %v19499_v4 = vpop.f32.mrf.mxu0  ;;  %v19502_v17 = vadd.f32 %v5277_v24, %v5112_v51  ;;  %v5115_v61 = vadd.f32 %v14582_v49, %v19302_v39  ;;  %23857 = vst [vmem:[#allocation82_spill] sm:$0xff] %v19513_v1 }
 0x3bd   : > { %v5072_v5 = vpop.f32.mrf.mxu1  ;;  %14991 = vmatprep.subr.bf16.mxu0 %v19526_v32 }
 0x3be   : > { %v19507_v52 = vpop.f32.mrf.mxu0  ;;  %v19515_v34 = vadd.f32 %v14616_v2, %v5115_v61  ;;  %v5113_v25 = vadd.f32 %v5072_v5, %v19311_v58  ;;  %v23860_v58 = vld [vmem:[#allocation113_spill] sm:$0xff] }
 0x3bf   : > { %v14621_v39 = vpop.f32.mrf.mxu1  ;;  %14824 = vmatmul.mubr.msk.bf16.vlgmr.msra.gmra.mxu1 %vm3158_vm8, %v23858_v60 }
 0x3c0   : > { %v19522_v27 = vpop.f32.mrf.mxu0  ;;  %v19528_v51 = vadd.f32 %v5280_v43, %v5113_v25  ;;  %v19531_v2 = vadd.f32 %v14621_v39, %v19320_v12  ;;  %14890 = vmatpush3.bf16.msra.mxu1 %v7421_v35  ;;  %14827 = vmatprep.mubr.msk.bf16.mxu1 %vm3158_vm8, %v23860_v58  ;;  %v23866_v39 = vld [vmem:[#allocation79_spill] sm:$0xff] }
 0x3c1   : > { %v5370_v55 = vpop.f32.mrf.mxu1  ;;  %14957 = vmatprep.subr.bf16.mxu1 %v19510_v26 }
 0x3c2   : > { %23859 = vst [vmem:[#allocation97_spill] sm:$0xff] %v19531_v2  ;;  %v19535_v49 = vpop.f32.mrf.mxu0  ;;  %14862 = vmatmul.mubr.msk.bf16.gmra.mxu0 %vm3158_vm8, %v23803_v29  ;;  %v19541_v33 = vadd.f32 %v5370_v55, %v19323_v28  ;;  %v23864_v28 = vld [vmem:[#allocation117_spill] sm:$0xff]  ;;  %v7204_v2 = vpack.c.bf16 %v19469_v23, %v19467_v19 }
 0x3c3   : > { %14865 = vmatprep.mubr.msk.bf16.mxu0 %vm3158_vm8, %v23804_v30  ;;  %v14622_v12 = vpop.f32.mrf.mxu1 }
 0x3c4   : > { %23861 = vst [vmem:[#allocation67_spill] sm:$0xff] %v19541_v33  ;;  %v19546_v43 = vpop.f32.mrf.mxu0  ;;  %v19549_v9 = vadd.f32 %v14622_v12, %v19326_v53 }
 0x3c5   : > { %v5373_v61 = vpop.f32.mrf.mxu1 }
 0x3c6   : > { %23862 = vst [vmem:[#allocation96_spill] sm:$0xff] %v19549_v9  ;;  %v19551_v5 = vpop.f32.mrf.mxu0  ;;  %v19554_v29 = vadd.f32 %v5373_v61, %v19333_v31 }
 0x3c7   : > { %v14625_v35 = vpop.f32.mrf.mxu1  ;;  %14828 = vmatmul.mubr.msk.bf16.gmra.mxu1 %vm3158_vm8, %v23864_v28 }
 0x3c8   : > { %23863 = vst [vmem:[#allocation59_spill] sm:$0xff] %v19554_v29  ;;  %v19558_v25 = vpop.f32.mrf.mxu0  ;;  %v19561_v30 = vadd.f32 %v14625_v35, %v19340_v21  ;;  %14831 = vmatprep.mubr.msk.bf16.mxu1 %vm3158_vm8, %v23866_v39 }
 0x3c9   : > { %v5386_v53 = vpop.f32.mrf.mxu1 }
 0x3ca   : > { %23865 = vst [vmem:[#allocation80_spill] sm:$0xff] %v19561_v30  ;;  %v19565_v55 = vpop.f32.mrf.mxu0  ;;  %14866 = vmatmul.mubr.msk.bf16.gmra.mxu0 %vm3158_vm8, %v23807_v45  ;;  %v19570_v31 = vadd.f32 %v5386_v53, %v19343_v38  ;;  %v23870_v45 = vld [vmem:[#allocation103_spill] sm:$0xff] }
 0x3cb   : > { %14869 = vmatprep.mubr.msk.bf16.mxu0 %vm3158_vm8, %v23833_v54  ;;  %v14626_v12 = vpop.f32.mrf.mxu1  ;;  %v23872_v53 = vld [vmem:[#allocation63_spill] sm:$0xff] }
 0x3cc   : > { %23867 = vst [vmem:[#allocation85_spill] sm:$0xff] %v19570_v31  ;;  %v19574_v61 = vpop.f32.mrf.mxu0  ;;  %v19577_v21 = vadd.f32 %v14626_v12, %v19346_v59 }
 0x3cd   : > { %v5389_v35 = vpop.f32.mrf.mxu1 }
 0x3ce   : > { %23868 = vst [vmem:[#allocation71_spill] sm:$0xff] %v19577_v21  ;;  %v19579_v24 = vpop.f32.mrf.mxu0  ;;  %v19582_v30 = vadd.f32 %v5389_v35, %v19353_v56  ;;  %v23875_v21 = vld [vmem:[#allocation69_spill] sm:$0xff] }
 0x3cf   : > { %v14629_v29 = vpop.f32.mrf.mxu1  ;;  %14832 = vmatmul.mubr.msk.bf16.gmra.mxu1 %vm3158_vm8, %v23870_v45 }
 0x3d0   : > { %23869 = vst [vmem:[#allocation66_spill] sm:$0xff] %v19582_v30  ;;  %v19586_v38 = vpop.f32.mrf.mxu0  ;;  %v19589_v54 = vadd.f32 %v14629_v29, %v19360_v22  ;;  %14835 = vmatprep.mubr.msk.bf16.mxu1 %vm3158_vm8, %v23872_v53 }
 0x3d1   : > { %v5402_v59 = vpop.f32.mrf.mxu1 }
 0x3d2   : > { %23871 = vst [vmem:[#allocation102_spill] sm:$0xff] %v19589_v54  ;;  %v19593_v12 = vpop.f32.mrf.mxu0  ;;  %14870 = vmatmul.mubr.msk.bf16.gmra.mxu0 %vm3158_vm8, %v23812_v16  ;;  %v19598_v56 = vadd.f32 %v5402_v59, %v19363_v3  ;;  %v23877_v16 = vld [vmem:[#allocation81_spill] sm:$0xff]  ;;  %v23879_v59 = vld [vmem:[#allocation64_spill] sm:$0xff] }
 0x3d3   : > { %14873 = vmatprep.mubr.msk.bf16.mxu0 %vm3158_vm8, %v23838_v18  ;;  %v14630_v35 = vpop.f32.mrf.mxu1 }
 0x3d4   : > { %23873 = vst [vmem:[#allocation91_spill] sm:$0xff] %v19598_v56  ;;  %v19602_v30 = vpop.f32.mrf.mxu0  ;;  %v19605_v22 = vadd.f32 %v14630_v35, %v19366_v8 }
 0x3d5   : > { %v5405_v29 = vpop.f32.mrf.mxu1 }
 0x3d6   : > { %23874 = vst [vmem:[#allocation125_spill] sm:$0xff] %v19605_v22  ;;  %v19607_v54 = vpop.f32.mrf.mxu0  ;;  %v19610_v31 = vadd.f32 %v5405_v29, %v23875_v21 }
 0x3d7   : > { %v14633_v9 = vpop.f32.mrf.mxu1  ;;  %14836 = vmatmul.mubr.msk.bf16.gmra.mxu1 %vm3158_vm8, %v23877_v16 }
 0x3d8   : > { %23876 = vst [vmem:[#allocation98_spill] sm:$0xff] %v19610_v31  ;;  %v19614_v3 = vpop.f32.mrf.mxu0  ;;  %v19617_v18 = vadd.f32 %v14633_v9, %v19380_v11  ;;  %14839 = vmatprep.mubr.msk.bf16.mxu1 %vm3158_vm8, %v23879_v59 }
 0x3d9   : > { %v5418_v8 = vpop.f32.mrf.mxu1 }
 0x3da   : > { %23878 = vst [vmem:[#allocation127_spill] sm:$0xff] %v19617_v18  ;;  %v19621_v35 = vpop.f32.mrf.mxu0  ;;  %14874 = vmatmul.mubr.msk.bf16.gmra.mxu0 %vm3158_vm8, %v23817_v44  ;;  %v19626_v21 = vadd.f32 %v5418_v8, %v19383_v63  ;;  %v23883_v44 = vld [vmem:[#allocation123_spill] sm:$0xff]  ;;  %v23885_v8 = vld [vmem:[#allocation124_spill] sm:$0xff] }
 0x3db   : > { %14877 = vmatprep.mubr.msk.bf16.mxu0 %vm3158_vm8, %v23841_v15  ;;  %v14634_v29 = vpop.f32.mrf.mxu1 }
 0x3dc   : > { %23880 = vst [vmem:[#allocation101_spill] sm:$0xff] %v19626_v21  ;;  %v19630_v31 = vpop.f32.mrf.mxu0  ;;  %v19633_v11 = vadd.f32 %v14634_v29, %v19386_v46 }
 0x3dd   : > { %v5421_v9 = vpop.f32.mrf.mxu1 }
 0x3de   : > { %23881 = vst [vmem:[#allocation108_spill] sm:$0xff] %v19633_v11  ;;  %v19635_v18 = vpop.f32.mrf.mxu0  ;;  %v19638_v22 = vadd.f32 %v5421_v9, %v19393_v6  ;;  %v23888_v11 = vld [vmem:[#allocation118_spill] sm:$0xff] }
 0x3df   : > { %v14637_v56 = vpop.f32.mrf.mxu1  ;;  %14840 = vmatmul.mubr.msk.bf16.gmra.mxu1 %vm3158_vm8, %v23883_v44 }
 0x3e0   : > { %23882 = vst [vmem:[#allocation105_spill] sm:$0xff] %v19638_v22  ;;  %v19642_v63 = vpop.f32.mrf.mxu0  ;;  %v19645_v15 = vadd.f32 %v14637_v56, %v19400_v62  ;;  %14843 = vmatprep.mubr.msk.bf16.mxu1 %vm3158_vm8, %v23885_v8 }
 0x3e1   : > { %v5434_v46 = vpop.f32.mrf.mxu1 }
 0x3e2   : > { %23884 = vst [vmem:[#allocation104_spill] sm:$0xff] %v19645_v15  ;;  %v19649_v29 = vpop.f32.mrf.mxu0  ;;  %14878 = vmatmul.mubr.msk.bf16.gmra.mxu0 %vm3158_vm8, %v23820_v0  ;;  %v19654_v6 = vadd.f32 %v5434_v46, %v19403_v50  ;;  %v23890_v0 = vld [vmem:[#allocation129_spill] sm:$0xff]  ;;  %v23891_v46 = vld [vmem:[#allocation120_spill] sm:$0xff] }
 0x3e3   : > { %14881 = vmatprep.mubr.msk.bf16.mxu0 %vm3158_vm8, %v23849_v48  ;;  %v14638_v9 = vpop.f32.mrf.mxu1 }
 0x3e4   : > { %23886 = vst [vmem:[#allocation72_spill] sm:$0xff] %v19654_v6  ;;  %v19658_v22 = vpop.f32.mrf.mxu0  ;;  %v19661_v62 = vadd.f32 %v14638_v9, %v19409_v40  ;;  %v23893_v6 = vld [vmem:[#allocation130_spill] sm:$0xff] }
 0x3e5   : > { %v5437_v56 = vpop.f32.mrf.mxu1 }
 0x3e6   : > { %23887 = vst [vmem:[#allocation106_spill] sm:$0xff] %v19661_v62  ;;  %v19663_v15 = vpop.f32.mrf.mxu0  ;;  %v19666_v21 = vadd.f32 %v5437_v56, %v23888_v11 }
 0x3e7   : > { %v14641_v33 = vpop.f32.mrf.mxu1  ;;  %14844 = vmatmul.mubr.msk.bf16.gmra.mxu1 %vm3158_vm8, %v23890_v0 }
 0x3e8   : > { %23889 = vst [vmem:[#allocation73_spill] sm:$0xff] %v19666_v21  ;;  %v19670_v50 = vpop.f32.mrf.mxu0  ;;  %v19673_v48 = vadd.f32 %v14641_v33, %v23891_v46  ;;  %14847 = vmatprep.mubr.msk.bf16.mxu1 %vm3158_vm8, %v23893_v6  ;;  %v23895_v33 = vld [vmem:[#allocation121_spill] sm:$0xff] }
 0x3e9   : > { %v5450_v40 = vpop.f32.mrf.mxu1 }
 0x3ea   : > { %23892 = vst [vmem:[#allocation135_spill] sm:$0xff] %v19673_v48  ;;  %v19677_v9 = vpop.f32.mrf.mxu0  ;;  %14882 = vmatmul.mubr.msk.bf16.gmra.mxu0 %vm3158_vm8, %v23825_v14  ;;  %v19682_v11 = vadd.f32 %v5450_v40, %v19433_v57  ;;  %v23899_v40 = vld [vmem:[#allocation136_spill] sm:$0xff] }
 0x3eb   : > { %14885 = vmatprep.mubr.msk.bf16.mxu0 %vm3158_vm8, %v19462_v13  ;;  %v14642_v56 = vpop.f32.mrf.mxu1 }
 0x3ec   : > { %23894 = vst [vmem:[#allocation107_spill] sm:$0xff] %v19682_v11  ;;  %v19686_v21 = vpop.f32.mrf.mxu0  ;;  %v19689_v46 = vadd.f32 %v14642_v56, %v23895_v33  ;;  %v23900_v11 = vld [vmem:[#allocation100_spill] sm:$0xff]  ;;  %v23902_v56 = vld [vmem:[#allocation137_spill] sm:$0xff] }
 0x3ed   : > { %v5453_v48 = vpop.f32.mrf.mxu1 }
 0x3ee   : > { %23896 = vst [vmem:[#allocation112_spill] sm:$0xff] %v19689_v46  ;;  %v19691_v62 = vpop.f32.mrf.mxu0  ;;  %v19696_v14 = vadd.f32 %v5453_v48, %v23897_v7 }
 0x3ef   : > { %v14645_v57 = vpop.f32.mrf.mxu1  ;;  %14848 = vmatmul.mubr.msk.bf16.gmra.mxu1 %vm3158_vm8, %v23899_v40 }
 0x3f0   : > { %23898 = vst [vmem:[#allocation111_spill] sm:$0xff] %v19696_v14  ;;  %v19700_v13 = vpop.f32.mrf.mxu0  ;;  %v19703_v1 = vadd.f32 %v14645_v57, %v23900_v11  ;;  %14851 = vmatprep.mubr.msk.bf16.mxu1 %vm3158_vm8, %v23902_v56  ;;  %v19723_v57 = vld [vmem:[%s23014_s6 + $0x8] sm:$0xff] }
 0x3f1   : > { %v5466_v33 = vpop.f32.mrf.mxu1  ;;  %23907 = vst [vmem:[#allocation88_spill] sm:$0xff] %v19723_v57 }
 0x3f2   : > { %23901 = vst [vmem:[#allocation77_spill] sm:$0xff] %v19703_v1  ;;  %v19707_v46 = vpop.f32.mrf.mxu0  ;;  %14886 = vmatmul.mubr.msk.bf16.gmra.mxu0 %vm3158_vm8, %v7204_v2  ;;  %v19711_v7 = vadd.f32 %v5466_v33, %v19465_v42  ;;  %v23909_v2 = vld [vmem:[#allocation119_spill] sm:$0xff] }
 0x3f3   : > { %23903 = vst [vmem:[#allocation78_spill] sm:$0xff] %v19707_v46  ;;  %14925 = vmatprep.mubr.msk.bf16.mxu0 %vm3158_vm8, %v23858_v60  ;;  %v14646_v48 = vpop.f32.mrf.mxu1  ;;  %v8196_v42 = vpack.c.bf16 %v19723_v57, %v23909_v2 }
 0x3f4   : > { %23904 = vst [vmem:[#allocation122_spill] sm:$0xff] %v19711_v7  ;;  %v19715_v14 = vpop.f32.mrf.mxu0  ;;  %v19718_v11 = vadd.f32 %v14646_v48, %v19472_v47  ;;  %v23911_v7 = vld [vmem:[#allocation115_spill] sm:$0xff] }
 0x3f5   : > { %23905 = vst [vmem:[#allocation68_spill] sm:$0xff] %v19715_v14  ;;  %v5469_v1 = vpop.f32.mrf.mxu1  ;;  %v8198_v2 = vrot.slane %v8196_v42, 3 }
 0x3f6   : > { %23906 = vst [vmem:[#allocation58_spill] sm:$0xff] %v19718_v11  ;;  %v19725_v46 = vpop.f32.mrf.mxu0  ;;  %v19730_v33 = vadd.f32 %v5469_v1, %v19483_v20  ;;  %v23914_v11 = vld [vmem:[#allocation132_spill] sm:$0xff] }
 0x3f7   : > { %23908 = vst [vmem:[#allocation128_spill] sm:$0xff] %v19725_v46  ;;  %v14649_v60 = vpop.f32.mrf.mxu1  ;;  %14852 = vmatmul.mubr.msk.bf16.gmra.mxu1 %vm3158_vm8, %v23911_v7  ;;  %v19757_v42 = vand.u32 %v8198_v2, %v23856_v41 }
 0x3f8   : > { %23910 = vst [vmem:[#allocation131_spill] sm:$0xff] %v19730_v33  ;;  %v19734_v47 = vpop.f32.mrf.mxu0  ;;  %v19737_v48 = vadd.f32 %v14649_v60, %v19489_v36  ;;  %14891 = vmatprep.mubr.msk.bf16.mxu1 %vm3158_vm8, %v23914_v11  ;;  %v19754_v11 = vpack.c.bf16 %v19723_v57, %v19723_v57 }
 0x3f9   : > { %23912 = vst [vmem:[#allocation134_spill] sm:$0xff] %v19734_v47  ;;  %v5482_v14 = vpop.f32.mrf.mxu1 }
 0x3fa   : > { %23913 = vst [vmem:[#allocation87_spill] sm:$0xff] %v19737_v48  ;;  %v14723_v46 = vpop.f32.mrf.mxu0  ;;  %14926 = vmatmul.mubr.msk.bf16.vlgmr.msra.gmra.mxu0 %vm3158_vm8, %v23860_v58  ;;  %v19744_v20 = vadd.f32 %v5482_v14, %v19502_v17  ;;  %v23918_v14 = vld [vmem:[#allocation138_spill] sm:$0xff]  ;;  %v8399_v2 = vshll.u32 %v19754_v11, 16 }
 0x3fb   : > { %14929 = vmatprep.mubr.msk.bf16.mxu0 %vm3158_vm8, %v23864_v28  ;;  %14992 = vmatpush3.bf16.msra.mxu0 %v19526_v32  ;;  %v14650_v1 = vpop.f32.mrf.mxu1 }
 0x3fc   : > { %23915 = vst [vmem:[#allocation86_spill] sm:$0xff] %v19744_v20  ;;  %v6425_v36 = vpop.f32.mrf.mxu0  ;;  %v19750_v60 = vadd.f32 %v14650_v1, %v19515_v34  ;;  %v23919_v1 = vld [vmem:[#allocation139_spill] sm:$0xff] }
 0x3fd   : > { %v5485_v48 = vpop.f32.mrf.mxu1 }
 0x3fe   : > { %23916 = vst [vmem:[#allocation116_spill] sm:$0xff] %v19750_v60  ;;  %v14724_v58 = vpop.f32.mrf.mxu0  ;;  %v19760_v17 = vadd.f32 %v5485_v48, %v19528_v51  ;;  %v8397_v60 = vshrl.u32 %v19754_v11, 16 }
 0x3ff   : > { %v14689_v28 = vpop.f32.mrf.mxu1  ;;  %14892 = vmatmul.mubr.msk.bf16.vlgmr.msra.gmra.mxu1 %vm3158_vm8, %v23918_v14 }
 0x400   : > { %23917 = vst [vmem:[#allocation65_spill] sm:$0xff] %v19760_v17  ;;  %v6428_v32 = vpop.f32.mrf.mxu0  ;;  %v6093_v34 = vadd.f32 %v14689_v28, %v19485_v10  ;;  %14958 = vmatpush3.bf16.msra.mxu1 %v19510_v26  ;;  %14895 = vmatprep.mubr.msk.bf16.mxu1 %vm3158_vm8, %v23919_v1  ;;  %v8401_v26 = vrot.slane %v8399_v2, 1 }
 0x401   : > { %v6084_v20 = vpop.f32.mrf.mxu1  ;;  %15025 = vmatprep.subr.bf16.mxu1 %v19757_v42 }
 0x402   : > { %v14727_v33 = vpop.f32.mrf.mxu0  ;;  %14930 = vmatmul.mubr.msk.bf16.gmra.mxu0 %vm3158_vm8, %v23866_v39  ;;  %v19773_v51 = vadd.f32 %v14723_v46, %v6093_v34  ;;  %v6085_v10 = vadd.f32 %v6084_v20, %v19499_v4  ;;  %v8402_v17 = vor.u32 %v8401_v26, %v8397_v60  ;;  %v23920_v20 = vld [vmem:[#allocation140_spill] sm:$0xff] }
 0x403   : > { %14933 = vmatprep.mubr.msk.bf16.mxu0 %vm3158_vm8, %v23870_v45  ;;  %v14690_v48 = vpop.f32.mrf.mxu1 }
 0x404   : > { %v6441_v28 = vpop.f32.mrf.mxu0  ;;  %v19778_v14 = vadd.f32 %v6425_v36, %v6085_v10  ;;  %v6096_v1 = vadd.f32 %v14690_v48, %v19507_v52  ;;  %v19785_v34 = vand.u32 %v8402_v17, %v23856_v41  ;;  %v23921_v52 = vld [vmem:[#allocation74_spill] sm:$0xff] }
 0x405   : > { %v6087_v57 = vpop.f32.mrf.mxu1 }
 0x406   : > { %v14728_v47 = vpop.f32.mrf.mxu0  ;;  %v19781_v39 = vadd.f32 %v14724_v58, %v6096_v1  ;;  %v6088_v46 = vadd.f32 %v6087_v57, %v19522_v27  ;;  %15059 = vmatprep.subr.bf16.mxu0 %v19785_v34 }
 0x407   : > { %v14693_v4 = vpop.f32.mrf.mxu1  ;;  %14896 = vmatmul.mubr.msk.bf16.gmra.mxu1 %vm3158_vm8, %v23920_v20  ;;  %v23923_v20 = vld [vmem:[#allocation93_spill] sm:$0xff] }
 0x408   : > { %v6444_v45 = vpop.f32.mrf.mxu0  ;;  %v19789_v2 = vadd.f32 %v6428_v32, %v6088_v46  ;;  %v6109_v36 = vadd.f32 %v14693_v4, %v19535_v49  ;;  %14899 = vmatprep.mubr.msk.bf16.mxu1 %vm3158_vm8, %v23921_v52 }
 0x409   : > { %v6100_v60 = vpop.f32.mrf.mxu1 }
 0x40a   : > { %v14731_v58 = vpop.f32.mrf.mxu0  ;;  %14934 = vmatmul.mubr.msk.bf16.gmra.mxu0 %vm3158_vm8, %v23872_v53  ;;  %v19797_v27 = vadd.f32 %v14727_v33, %v6109_v36  ;;  %v6101_v57 = vadd.f32 %v6100_v60, %v19546_v43  ;;  %v23922_v33 = vld [vmem:[#allocation99_spill] sm:$0xff] }
 0x40b   : > { %14937 = vmatprep.mubr.msk.bf16.mxu0 %vm3158_vm8, %v23877_v16  ;;  %v14694_v17 = vpop.f32.mrf.mxu1 }
 0x40c   : > { %v6457_v32 = vpop.f32.mrf.mxu0  ;;  %v19802_v49 = vadd.f32 %v6441_v28, %v6101_v57  ;;  %v6112_v10 = vadd.f32 %v14694_v17, %v19551_v5 }
 0x40d   : > { %v6103_v26 = vpop.f32.mrf.mxu1 }
 0x40e   : > { %v14732_v48 = vpop.f32.mrf.mxu0  ;;  %v19805_v1 = vadd.f32 %v14728_v47, %v6112_v10  ;;  %v6104_v46 = vadd.f32 %v6103_v26, %v19558_v25 }
 0x40f   : > { %v14697_v53 = vpop.f32.mrf.mxu1  ;;  %14900 = vmatmul.mubr.msk.bf16.gmra.mxu1 %vm3158_vm8, %v23922_v33 }
 0x410   : > { %v6460_v43 = vpop.f32.mrf.mxu0  ;;  %v19810_v4 = vadd.f32 %v6444_v45, %v6104_v46  ;;  %v6125_v16 = vadd.f32 %v14697_v53, %v19565_v55  ;;  %14903 = vmatprep.mubr.msk.bf16.mxu1 %vm3158_vm8, %v23923_v20  ;;  %v23925_v46 = vld [vmem:[#allocation84_spill] sm:$0xff] }
 0x411   : > { %v6116_v28 = vpop.f32.mrf.mxu1 }
 0x412   : > { %v14735_v5 = vpop.f32.mrf.mxu0  ;;  %14938 = vmatmul.mubr.msk.bf16.gmra.mxu0 %vm3158_vm8, %v23879_v59  ;;  %v19817_v47 = vadd.f32 %v14731_v58, %v6125_v16  ;;  %v6117_v25 = vadd.f32 %v6116_v28, %v19574_v61  ;;  %v23924_v58 = vld [vmem:[#allocation83_spill] sm:$0xff] }
 0x413   : > { %14941 = vmatprep.mubr.msk.bf16.mxu0 %vm3158_vm8, %v23883_v44  ;;  %v14698_v36 = vpop.f32.mrf.mxu1 }
 0x414   : > { %v6473_v45 = vpop.f32.mrf.mxu0  ;;  %v19822_v52 = vadd.f32 %v6457_v32, %v6117_v25  ;;  %v6128_v55 = vadd.f32 %v14698_v36, %v19579_v24 }
 0x415   : > { %v6119_v60 = vpop.f32.mrf.mxu1 }
 0x416   : > { %v14736_v57 = vpop.f32.mrf.mxu0  ;;  %v19825_v17 = vadd.f32 %v14732_v48, %v6128_v55  ;;  %v6120_v10 = vadd.f32 %v6119_v60, %v19586_v38  ;;  %v23927_v55 = vld [vmem:[#allocation92_spill] sm:$0xff] }
 0x417   : > { %v14701_v59 = vpop.f32.mrf.mxu1  ;;  %14904 = vmatmul.mubr.msk.bf16.gmra.mxu1 %vm3158_vm8, %v23924_v58  ;;  %v7616_v58 = vrot.slane %v19467_v19, 2  ;;  %v23929_v19 = vld [vmem:[#allocation76_spill] sm:$0xff] }
 0x418   : > { %v6476_v61 = vpop.f32.mrf.mxu0  ;;  %v19830_v26 = vadd.f32 %v6460_v43, %v6120_v10  ;;  %v6141_v44 = vadd.f32 %v14701_v59, %v19593_v12  ;;  %14907 = vmatprep.mubr.msk.bf16.mxu1 %vm3158_vm8, %v23925_v46  ;;  %v7617_v46 = vrot.slane %v19469_v23, 2 }
 0x419   : > { %v6132_v32 = vpop.f32.mrf.mxu1 }
 0x41a   : > { %v14739_v24 = vpop.f32.mrf.mxu0  ;;  %14942 = vmatmul.mubr.msk.bf16.gmra.mxu0 %vm3158_vm8, %v23885_v8  ;;  %v19837_v48 = vadd.f32 %v14735_v5, %v6141_v44  ;;  %v6133_v38 = vadd.f32 %v6132_v32, %v19602_v30  ;;  %v23926_v5 = vld [vmem:[#allocation75_spill] sm:$0xff] }
 0x41b   : > { %14945 = vmatprep.mubr.msk.bf16.mxu0 %vm3158_vm8, %v23890_v0  ;;  %v14702_v53 = vpop.f32.mrf.mxu1 }
 0x41c   : > { %v6489_v33 = vpop.f32.mrf.mxu0  ;;  %v19842_v43 = vadd.f32 %v6473_v45, %v6133_v38  ;;  %v6144_v12 = vadd.f32 %v14702_v53, %v19607_v54 }
 0x41d   : > { %v6135_v16 = vpop.f32.mrf.mxu1 }
 0x41e   : > { %v14740_v20 = vpop.f32.mrf.mxu0  ;;  %v19845_v28 = vadd.f32 %v14736_v57, %v6144_v12  ;;  %v6136_v25 = vadd.f32 %v6135_v16, %v19614_v3  ;;  %v7618_v12 = vsel %vm1356_vm4, %v7616_v58, %v7617_v46  ;;  %v23932_v58 = vld [vmem:[#allocation24_spill] sm:$0xff] }
 0x41f   : > { %v14705_v8 = vpop.f32.mrf.mxu1  ;;  %14908 = vmatmul.mubr.msk.bf16.gmra.mxu1 %vm3158_vm8, %v23926_v5 }
 0x420   : > { %v6492_v30 = vpop.f32.mrf.mxu0  ;;  %v19850_v36 = vadd.f32 %v6476_v61, %v6136_v25  ;;  %v6157_v0 = vadd.f32 %v14705_v8, %v19621_v35  ;;  %14911 = vmatprep.mubr.msk.bf16.mxu1 %vm3158_vm8, %v23927_v55 }
 0x421   : > { %v6148_v45 = vpop.f32.mrf.mxu1 }
 0x422   : > { %v14743_v54 = vpop.f32.mrf.mxu0  ;;  %14946 = vmatmul.mubr.msk.bf16.gmra.mxu0 %vm3158_vm8, %v23893_v6  ;;  %v19857_v60 = vadd.f32 %v14739_v24, %v6157_v0  ;;  %v6149_v3 = vadd.f32 %v6148_v45, %v19630_v31  ;;  %v7619_v31 = vrot.slane %v19494_v37, 2  ;;  %v23930_v45 = vld [vmem:[#allocation89_spill] sm:$0xff] }
 0x423   : > { %14949 = vmatprep.mubr.msk.bf16.mxu0 %vm3158_vm8, %v23899_v40  ;;  %v14706_v57 = vpop.f32.mrf.mxu1  ;;  %v23928_v40 = vld [vmem:[#allocation109_spill] sm:$0xff] }
 0x424   : > { %v6505_v10 = vpop.f32.mrf.mxu0  ;;  %v19862_v59 = vadd.f32 %v6489_v33, %v6149_v3  ;;  %v6160_v35 = vadd.f32 %v14706_v57, %v19635_v18  ;;  %v7620_v16 = vsel %vm1356_vm4, %v7617_v46, %v7619_v31  ;;  %v23931_v57 = vld [vmem:[#allocation95_spill] sm:$0xff] }
 0x425   : > { %v6151_v61 = vpop.f32.mrf.mxu1 }
 0x426   : > { %v14744_v44 = vpop.f32.mrf.mxu0  ;;  %v19867_v6 = vadd.f32 %v14740_v20, %v6160_v35  ;;  %v6152_v32 = vadd.f32 %v6151_v61, %v19642_v63 }
 0x427   : > { %v14709_v24 = vpop.f32.mrf.mxu1  ;;  %14912 = vmatmul.mubr.msk.bf16.gmra.mxu1 %vm3158_vm8, %v23928_v40 }
 0x428   : > { %v6508_v38 = vpop.f32.mrf.mxu0  ;;  %v19873_v53 = vadd.f32 %v6492_v30, %v6152_v32  ;;  %v6173_v18 = vadd.f32 %v14709_v24, %v19649_v29  ;;  %14915 = vmatprep.mubr.msk.bf16.mxu1 %vm3158_vm8, %v23929_v19  ;;  %v23934_v19 = vld [vmem:[#allocation56_spill] sm:$0xff] }
 0x429   : > { %v6164_v33 = vpop.f32.mrf.mxu1 }
 0x42a   : > { %v14747_v23 = vpop.f32.mrf.mxu0  ;;  %14950 = vmatmul.mubr.msk.bf16.gmra.mxu0 %vm3158_vm8, %v23902_v56  ;;  %v19880_v63 = vadd.f32 %v14743_v54, %v6173_v18  ;;  %v6165_v37 = vadd.f32 %v6164_v33, %v19658_v22  ;;  %v7623_v56 = vpack.c.bf16 %v7620_v16, %v7618_v12  ;;  %v23933_v18 = vld [vmem:[#allocation82_spill] sm:$0xff] }
 0x42b   : > { %14953 = vmatprep.mubr.msk.bf16.mxu0 %vm3158_vm8, %v23911_v7  ;;  %v14710_v29 = vpop.f32.mrf.mxu1  ;;  %v23935_v33 = vpack.c.bf16 %v23933_v18, %v23934_v19  ;;  %v23937_v16 = vld [vmem:[#allocation6_spill] sm:$0xff]  ;;  %v23945_v19 = vld [vmem:[#allocation32_spill] sm:$0xff] }
 0x42c   : > { %v6521_v20 = vpop.f32.mrf.mxu0  ;;  %v19887_v25 = vadd.f32 %v6505_v10, %v6165_v37  ;;  %v6176_v8 = vadd.f32 %v14710_v29, %v19663_v15  ;;  %v23936_v37 = vld [vmem:[#allocation78_spill] sm:$0xff] }
 0x42d   : > { %v6167_v5 = vpop.f32.mrf.mxu1 }
 0x42e   : > { %v14748_v30 = vpop.f32.mrf.mxu0  ;;  %v19890_v0 = vadd.f32 %v14744_v44, %v6176_v8  ;;  %v6168_v22 = vadd.f32 %v6167_v5, %v19670_v50  ;;  %v23939_v5 = vld [vmem:[#allocation68_spill] sm:$0xff] }
 0x42f   : > { %v14713_v55 = vpop.f32.mrf.mxu1  ;;  %14916 = vmatmul.mubr.msk.bf16.gmra.mxu1 %vm3158_vm8, %v23930_v45 }
 0x430   : > { %v6524_v7 = vpop.f32.mrf.mxu0  ;;  %v19895_v54 = vadd.f32 %v6508_v38, %v6168_v22  ;;  %v6189_v3 = vadd.f32 %v14713_v55, %v19677_v9  ;;  %14919 = vmatprep.mubr.msk.bf16.mxu1 %vm3158_vm8, %v23931_v57 }
 0x431   : > { %v6180_v15 = vpop.f32.mrf.mxu1 }
 0x432   : > { %v14751_v10 = vpop.f32.mrf.mxu0  ;;  %14954 = vmatmul.mubr.msk.bf16.gmra.mxu0 %vm3158_vm8, %v7623_v56  ;;  %v19901_v35 = vadd.f32 %v14747_v23, %v6189_v3  ;;  %v6181_v50 = vadd.f32 %v6180_v15, %v19686_v21  ;;  %v23940_v56 = vld [vmem:[#allocation28_spill] sm:$0xff] }
 0x433   : > { %14993 = vmatprep.mubr.msk.bf16.mxu0 %vm928_vm3, %v23932_v58  ;;  %v14714_v61 = vpop.f32.mrf.mxu1 }
 0x434   : > { %v6537_v44 = vpop.f32.mrf.mxu0  ;;  %v19906_v46 = vadd.f32 %v6521_v20, %v6181_v50  ;;  %v6192_v9 = vadd.f32 %v14714_v61, %v19691_v62  ;;  %v23938_v20 = vld [vmem:[#allocation27_spill] sm:$0xff] }
 0x435   : > { %v6183_v32 = vpop.f32.mrf.mxu1 }
 0x436   : > { %v14752_v31 = vpop.f32.mrf.mxu0  ;;  %v19909_v24 = vadd.f32 %v14748_v30, %v6192_v9  ;;  %v6184_v40 = vadd.f32 %v6183_v32, %v19700_v13  ;;  %v8600_v13 = vrot.slane %v19754_v11, 2  ;;  %v23943_v9 = vld [vmem:[#allocation8_spill] sm:$0xff] }
 0x437   : > { %v14717_v38 = vpop.f32.mrf.mxu1  ;;  %14920 = vmatmul.mubr.msk.bf16.gmra.mxu1 %vm3158_vm8, %v23935_v33  ;;  %v23946_v33 = vld [vmem:[#allocation88_spill] sm:$0xff] }
 0x438   : > { %v6540_v21 = vpop.f32.mrf.mxu0  ;;  %v19916_v23 = vadd.f32 %v6524_v7, %v6184_v40  ;;  %v6205_v12 = vadd.f32 %v14717_v38, %v23936_v37  ;;  %14959 = vmatprep.mubr.msk.bf16.mxu1 %vm928_vm3, %v23937_v16  ;;  %v23941_v7 = vld [vmem:[#allocation128_spill] sm:$0xff]  ;;  %v19934_v50 = vand.u32 %v8600_v13, %v23856_v41  ;;  %v23944_v40 = vld [vmem:[#allocation10_spill] sm:$0xff] }
 0x439   : > { %v6196_v62 = vpop.f32.mrf.mxu1  ;;  %v23947_v37 = vld [vmem:[#allocation34_spill] sm:$0xff] }
 0x43a   : > { %v14791_v29 = vpop.f32.mrf.mxu0  ;;  %14994 = vmatmul.mubr.msk.bf16.vlgmr.msra.gmra.mxu0 %vm928_vm3, %v23938_v20  ;;  %v19924_v8 = vadd.f32 %v14751_v10, %v6205_v12  ;;  %v6197_v30 = vadd.f32 %v6196_v62, %v23939_v5  ;;  %v23942_v10 = vld [vmem:[#allocation134_spill] sm:$0xff] }
 0x43b   : > { %14997 = vmatprep.mubr.msk.bf16.mxu0 %vm928_vm3, %v23940_v56  ;;  %15060 = vmatpush3.bf16.msra.mxu0 %v19785_v34  ;;  %v14718_v22 = vpop.f32.mrf.mxu1 }
 0x43c   : > { %v6837_v55 = vpop.f32.mrf.mxu0  ;;  %v19930_v45 = vadd.f32 %v6537_v44, %v6197_v30  ;;  %v6208_v3 = vadd.f32 %v14718_v22, %v23941_v7 }
 0x43d   : > { %v6199_v57 = vpop.f32.mrf.mxu1 }
 0x43e   : > { %v14792_v15 = vpop.f32.mrf.mxu0  ;;  %v19936_v11 = vadd.f32 %v14752_v31, %v6208_v3  ;;  %v6200_v58 = vadd.f32 %v6199_v57, %v23942_v10  ;;  %v19950_v31 = vld [vmem:[%s23014_s6 + $0x10] sm:$0xff] }
 0x43f   : > { %v14757_v61 = vpop.f32.mrf.mxu1  ;;  %14960 = vmatmul.mubr.msk.bf16.vlgmr.msra.gmra.mxu1 %vm928_vm3, %v23943_v9  ;;  %v23962_v9 = vld [vmem:[#allocation7_spill] sm:$0xff] }
 0x440   : > { %v6840_v34 = vpop.f32.mrf.mxu0  ;;  %v19941_v32 = vadd.f32 %v6540_v21, %v6200_v58  ;;  %v6755_v44 = vadd.f32 %v14757_v61, %v19773_v51  ;;  %15026 = vmatpush3.bf16.msra.mxu1 %v19757_v42  ;;  %14963 = vmatprep.mubr.msk.bf16.mxu1 %vm928_vm3, %v23944_v40  ;;  %v8797_v51 = vpack.c.bf16 %v19950_v31, %v23946_v33  ;;  %v23948_v58 = vld [vmem:[#allocation13_spill] sm:$0xff]  ;;  %v23949_v33 = vld [vmem:[#allocation16_spill] sm:$0xff] }
 0x441   : > { %v6626_v38 = vpop.f32.mrf.mxu1  ;;  %15093 = vmatprep.subr.bf16.mxu1 %v19934_v50 }
 0x442   : > { %v14795_v18 = vpop.f32.mrf.mxu0  ;;  %14998 = vmatmul.mubr.msk.bf16.gmra.mxu0 %vm928_vm3, %v23945_v19  ;;  %v19957_v21 = vadd.f32 %v14791_v29, %v6755_v44  ;;  %v6753_v42 = vadd.f32 %v6626_v38, %v19778_v14  ;;  %v8799_v62 = vshrl.u32 %v8797_v51, 16  ;;  %v8802_v13 = vshll.u32 %v8797_v51, 16 }
 0x443   : > { %15001 = vmatprep.mubr.msk.bf16.mxu0 %vm928_vm3, %v23947_v37  ;;  %v14758_v12 = vpop.f32.mrf.mxu1 }
 0x444   : > { %v6853_v16 = vpop.f32.mrf.mxu0  ;;  %v19962_v5 = vadd.f32 %v6837_v55, %v6753_v42  ;;  %v6756_v30 = vadd.f32 %v14758_v12, %v19781_v39  ;;  %v8801_v3 = vrot.slane %v8799_v62, 3  ;;  %v8804_v57 = vrot.slane %v8802_v13, 4  ;;  %v23950_v42 = vld [vmem:[#allocation37_spill] sm:$0xff]  ;;  %v23951_v62 = vld [vmem:[#allocation40_spill] sm:$0xff] }
 0x445   : > { %v6629_v22 = vpop.f32.mrf.mxu1 }
 0x446   : > { %v14796_v7 = vpop.f32.mrf.mxu0  ;;  %v19965_v10 = vadd.f32 %v14792_v15, %v6756_v30  ;;  %v6754_v29 = vadd.f32 %v6629_v22, %v19789_v2  ;;  %v8805_v44 = vor.u32 %v8804_v57, %v8801_v3 }
 0x447   : > { %v14761_v14 = vpop.f32.mrf.mxu1  ;;  %14964 = vmatmul.mubr.msk.bf16.gmra.mxu1 %vm928_vm3, %v23948_v58  ;;  %v23957_v58 = vld [vmem:[#allocation26_spill] sm:$0xff] }
 0x448   : > { %v6856_v61 = vpop.f32.mrf.mxu0  ;;  %v19970_v38 = vadd.f32 %v6840_v34, %v6754_v29  ;;  %v6759_v55 = vadd.f32 %v14761_v14, %v19797_v27  ;;  %14967 = vmatprep.mubr.msk.bf16.mxu1 %vm928_vm3, %v23949_v33  ;;  %v19978_v2 = vand.u32 %v8805_v44, %v23856_v41  ;;  %v23952_v14 = vld [vmem:[#allocation21_spill] sm:$0xff] }
 0x449   : > { %v6642_v39 = vpop.f32.mrf.mxu1 }
 0x44a   : > { %v14799_v51 = vpop.f32.mrf.mxu0  ;;  %15002 = vmatmul.mubr.msk.bf16.gmra.mxu0 %vm928_vm3, %v23950_v42  ;;  %v19980_v15 = vadd.f32 %v14795_v18, %v6759_v55  ;;  %v6757_v12 = vadd.f32 %v6642_v39, %v19802_v49  ;;  %15127 = vmatprep.subr.bf16.mxu0 %v19978_v2  ;;  %v23953_v39 = vld [vmem:[#allocation23_spill] sm:$0xff] }
 0x44b   : > { %15005 = vmatprep.mubr.msk.bf16.mxu0 %vm928_vm3, %v23951_v62  ;;  %v14762_v34 = vpop.f32.mrf.mxu1 }
 0x44c   : > { %v6869_v27 = vpop.f32.mrf.mxu0  ;;  %v19986_v13 = vadd.f32 %v6853_v16, %v6757_v12  ;;  %v6760_v30 = vadd.f32 %v14762_v34, %v19805_v1  ;;  %v23954_v12 = vld [vmem:[#allocation49_spill] sm:$0xff]  ;;  %v23955_v34 = vld [vmem:[#allocation19_spill] sm:$0xff] }
 0x44d   : > { %v6645_v22 = vpop.f32.mrf.mxu1 }
 0x44e   : > { %v14800_v3 = vpop.f32.mrf.mxu0  ;;  %v19989_v57 = vadd.f32 %v14796_v7, %v6760_v30  ;;  %v6758_v18 = vadd.f32 %v6645_v22, %v19810_v4 }
 0x44f   : > { %v14765_v29 = vpop.f32.mrf.mxu1  ;;  %14968 = vmatmul.mubr.msk.bf16.gmra.mxu1 %vm928_vm3, %v23952_v14 }
 0x450   : > { %v6872_v49 = vpop.f32.mrf.mxu0  ;;  %v19994_v44 = vadd.f32 %v6856_v61, %v6758_v18  ;;  %v6763_v55 = vadd.f32 %v14765_v29, %v19817_v47  ;;  %14971 = vmatprep.mubr.msk.bf16.mxu1 %vm928_vm3, %v23953_v39 }
 0x451   : > { %v6658_v16 = vpop.f32.mrf.mxu1 }
 0x452   : > { %v14803_v1 = vpop.f32.mrf.mxu0  ;;  %15006 = vmatmul.mubr.msk.bf16.gmra.mxu0 %vm928_vm3, %v23954_v12  ;;  %v20001_v7 = vadd.f32 %v14799_v51, %v6763_v55  ;;  %v6761_v4 = vadd.f32 %v6658_v16, %v19822_v52  ;;  %v23956_v51 = vld [vmem:[#allocation25_spill] sm:$0xff] }
 0x453   : > { %15009 = vmatprep.mubr.msk.bf16.mxu0 %vm928_vm3, %v23955_v34  ;;  %v14766_v30 = vpop.f32.mrf.mxu1 }
 0x454   : > { %v6885_v61 = vpop.f32.mrf.mxu0  ;;  %v20006_v22 = vadd.f32 %v6869_v27, %v6761_v4  ;;  %v6764_v47 = vadd.f32 %v14766_v30, %v19825_v17  ;;  %v23958_v4 = vld [vmem:[#allocation18_spill] sm:$0xff] }
 0x455   : > { %v6661_v18 = vpop.f32.mrf.mxu1  ;;  %v23959_v30 = vld [vmem:[#allocation30_spill] sm:$0xff] }
 0x456   : > { %v14804_v29 = vpop.f32.mrf.mxu0  ;;  %v20009_v39 = vadd.f32 %v14800_v3, %v6764_v47  ;;  %v6762_v14 = vadd.f32 %v6661_v18, %v19830_v26 }
 0x457   : > { %v14769_v33 = vpop.f32.mrf.mxu1  ;;  %14972 = vmatmul.mubr.msk.bf16.gmra.mxu1 %vm928_vm3, %v23956_v51 }
 0x458   : > { %v6888_v52 = vpop.f32.mrf.mxu0  ;;  %v20014_v55 = vadd.f32 %v6872_v49, %v6762_v14  ;;  %v6767_v16 = vadd.f32 %v14769_v33, %v19837_v48  ;;  %14975 = vmatprep.mubr.msk.bf16.mxu1 %vm928_vm3, %v23957_v58 }
 0x459   : > { %v6674_v27 = vpop.f32.mrf.mxu1 }
 0x45a   : > { %v14807_v17 = vpop.f32.mrf.mxu0  ;;  %15010 = vmatmul.mubr.msk.bf16.gmra.mxu0 %vm928_vm3, %v23958_v4  ;;  %v20021_v3 = vadd.f32 %v14803_v1, %v6767_v16  ;;  %v6765_v26 = vadd.f32 %v6674_v27, %v19842_v43  ;;  %v23960_v1 = vld [vmem:[#allocation29_spill] sm:$0xff] }
 0x45b   : > { %15013 = vmatprep.mubr.msk.bf16.mxu0 %vm928_vm3, %v23959_v30  ;;  %v14770_v47 = vpop.f32.mrf.mxu1 }
 0x45c   : > { %v6901_v14 = vpop.f32.mrf.mxu0  ;;  %v20026_v49 = vadd.f32 %v6885_v61, %v6765_v26  ;;  %v6768_v48 = vadd.f32 %v14770_v47, %v19845_v28  ;;  %v23963_v26 = vld [vmem:[#allocation31_spill] sm:$0xff] }
 0x45d   : > { %v6677_v33 = vpop.f32.mrf.mxu1  ;;  %v23964_v47 = vld [vmem:[#allocation35_spill] sm:$0xff] }
 0x45e   : > { %v14808_v18 = vpop.f32.mrf.mxu0  ;;  %v20029_v58 = vadd.f32 %v14804_v29, %v6768_v48  ;;  %v6766_v51 = vadd.f32 %v6677_v33, %v19850_v36 }
 0x45f   : > { %v14773_v40 = vpop.f32.mrf.mxu1  ;;  %14976 = vmatmul.mubr.msk.bf16.gmra.mxu1 %vm928_vm3, %v23960_v1 }
 0x460   : > { %v6904_v43 = vpop.f32.mrf.mxu0  ;;  %v20034_v16 = vadd.f32 %v6888_v52, %v6766_v51  ;;  %v6771_v27 = vadd.f32 %v14773_v40, %v19857_v60  ;;  %14979 = vmatprep.mubr.msk.bf16.mxu1 %vm928_vm3, %v23962_v9 }
 0x461   : > { %v6690_v61 = vpop.f32.mrf.mxu1 }
 0x462   : > { %23961 = vst [vmem:[#allocation126_spill] sm:$0xff] %v20034_v16  ;;  %v14811_v28 = vpop.f32.mrf.mxu0  ;;  %15014 = vmatmul.mubr.msk.bf16.gmra.mxu0 %vm928_vm3, %v23963_v26  ;;  %v20041_v29 = vadd.f32 %v14807_v17, %v6771_v27  ;;  %v6769_v36 = vadd.f32 %v6690_v61, %v19862_v59  ;;  %v23965_v17 = vld [vmem:[#allocation9_spill] sm:$0xff] }
 0x463   : > { %15017 = vmatprep.mubr.msk.bf16.mxu0 %vm928_vm3, %v23964_v47  ;;  %v14774_v48 = vpop.f32.mrf.mxu1  ;;  %v23967_v47 = vld [vmem:[#allocation11_spill] sm:$0xff] }
 0x464   : > { %v6917_v51 = vpop.f32.mrf.mxu0  ;;  %v20046_v52 = vadd.f32 %v6901_v14, %v6769_v36  ;;  %v6772_v60 = vadd.f32 %v14774_v48, %v19867_v6  ;;  %v23968_v36 = vld [vmem:[#allocation36_spill] sm:$0xff]  ;;  %v23969_v48 = vld [vmem:[#allocation39_spill] sm:$0xff] }
 0x465   : > { %v6693_v40 = vpop.f32.mrf.mxu1 }
 0x466   : > { %v14812_v33 = vpop.f32.mrf.mxu0  ;;  %v20049_v9 = vadd.f32 %v14808_v18, %v6772_v60  ;;  %v6770_v1 = vadd.f32 %v6693_v40, %v19873_v53 }
 0x467   : > { %v14777_v16 = vpop.f32.mrf.mxu1  ;;  %14980 = vmatmul.mubr.msk.bf16.gmra.mxu1 %vm928_vm3, %v23965_v17 }
 0x468   : > { %v6920_v59 = vpop.f32.mrf.mxu0  ;;  %v20054_v27 = vadd.f32 %v6904_v43, %v6770_v1  ;;  %v6775_v61 = vadd.f32 %v14777_v16, %v19880_v63  ;;  %14983 = vmatprep.mubr.msk.bf16.mxu1 %vm928_vm3, %v23967_v47 }
 0x469   : > { %v6706_v14 = vpop.f32.mrf.mxu1 }
 0x46a   : > { %23966 = vst [vmem:[#allocation133_spill] sm:$0xff] %v20054_v27  ;;  %v14815_v6 = vpop.f32.mrf.mxu0  ;;  %15018 = vmatmul.mubr.msk.bf16.gmra.mxu0 %vm928_vm3, %v23968_v36  ;;  %v20061_v18 = vadd.f32 %v14811_v28, %v6775_v61  ;;  %v6773_v53 = vadd.f32 %v6706_v14, %v19887_v25  ;;  %v23970_v28 = vld [vmem:[#allocation15_spill] sm:$0xff] }
 0x46b   : > { %15021 = vmatprep.mubr.msk.bf16.mxu0 %vm928_vm3, %v23969_v48  ;;  %v14778_v60 = vpop.f32.mrf.mxu1  ;;  %v23971_v48 = vld [vmem:[#allocation17_spill] sm:$0xff] }
 0x46c   : > { %v6933_v1 = vpop.f32.mrf.mxu0  ;;  %v20066_v43 = vadd.f32 %v6917_v51, %v6773_v53  ;;  %v6776_v63 = vadd.f32 %v14778_v60, %v19890_v0  ;;  %v23972_v53 = vld [vmem:[#allocation43_spill] sm:$0xff] }
 0x46d   : > { %v6709_v16 = vpop.f32.mrf.mxu1 }
 0x46e   : > { %v14816_v40 = vpop.f32.mrf.mxu0  ;;  %v20069_v47 = vadd.f32 %v14812_v33, %v6776_v63  ;;  %v6774_v17 = vadd.f32 %v6709_v16, %v19895_v54 }
 0x46f   : > { %v14781_v27 = vpop.f32.mrf.mxu1  ;;  %14984 = vmatmul.mubr.msk.bf16.gmra.mxu1 %vm928_vm3, %v23970_v28 }
 0x470   : > { %v6936_v25 = vpop.f32.mrf.mxu0  ;;  %v20074_v61 = vadd.f32 %v6920_v59, %v6774_v17  ;;  %v6779_v14 = vadd.f32 %v14781_v27, %v19901_v35  ;;  %14987 = vmatprep.mubr.msk.bf16.mxu1 %vm928_vm3, %v23971_v48 }
 0x471   : > { %v6722_v51 = vpop.f32.mrf.mxu1 }
 0x472   : > { %v14819_v0 = vpop.f32.mrf.mxu0  ;;  %15022 = vmatmul.mubr.msk.bf16.gmra.mxu0 %vm928_vm3, %v23972_v53  ;;  %v20081_v33 = vadd.f32 %v14815_v6, %v6779_v14  ;;  %v6777_v54 = vadd.f32 %v6722_v51, %v19906_v46  ;;  %v23973_v6 = vld [vmem:[#allocation22_spill] sm:$0xff]  ;;  %v23974_v51 = vld [vmem:[#allocation33_spill] sm:$0xff] }
 0x473   : > { %15061 = vmatprep.mubr.msk.bf16.mxu0 %vm928_vm3, %v23938_v20  ;;  %v14782_v60 = vpop.f32.mrf.mxu1  ;;  %v9002_v20 = vpack.c.bf16 %v19950_v31, %v19950_v31 }
 0x474   : > { %v6949_v17 = vpop.f32.mrf.mxu0  ;;  %v20086_v59 = vadd.f32 %v6933_v1, %v6777_v54  ;;  %v6780_v35 = vadd.f32 %v14782_v60, %v19909_v24 }
 0x475   : > { %v6725_v27 = vpop.f32.mrf.mxu1 }
 0x476   : > { %v14820_v63 = vpop.f32.mrf.mxu0  ;;  %v20089_v16 = vadd.f32 %v14816_v40, %v6780_v35  ;;  %v6778_v48 = vadd.f32 %v6725_v27, %v19916_v23  ;;  %v9004_v23 = vrot.slane %v9002_v20, 1 }
 0x477   : > { %v14785_v28 = vpop.f32.mrf.mxu1  ;;  %14988 = vmatmul.mubr.msk.bf16.gmra.mxu1 %vm928_vm3, %v23973_v6 }
 0x478   : > { %v6952_v46 = vpop.f32.mrf.mxu0  ;;  %v20096_v14 = vadd.f32 %v6936_v25, %v6778_v48  ;;  %v6783_v1 = vadd.f32 %v14785_v28, %v19924_v8  ;;  %15027 = vmatprep.mubr.msk.bf16.mxu1 %vm928_vm3, %v23974_v51  ;;  %v20113_v27 = vand.u32 %v9004_v23, %v23856_v41  ;;  %v23975_v51 = vld [vmem:[#allocation38_spill] sm:$0xff] }
 0x479   : > { %v6738_v24 = vpop.f32.mrf.mxu1 }
 0x47a   : > { %v14859_v40 = vpop.f32.mrf.mxu0  ;;  %15062 = vmatmul.mubr.msk.bf16.vlgmr.msra.gmra.mxu0 %vm928_vm3, %v23940_v56  ;;  %v20103_v54 = vadd.f32 %v14819_v0, %v6783_v1  ;;  %v6781_v60 = vadd.f32 %v6738_v24, %v19930_v45 }
 0x47b   : > { %15065 = vmatprep.mubr.msk.bf16.mxu0 %vm928_vm3, %v23945_v19  ;;  %15128 = vmatpush3.bf16.msra.mxu0 %v19978_v2  ;;  %v14786_v31 = vpop.f32.mrf.mxu1 }
 0x47c   : > { %v7246_v8 = vpop.f32.mrf.mxu0  ;;  %v20109_v48 = vadd.f32 %v6949_v17, %v6781_v60  ;;  %v6784_v28 = vadd.f32 %v14786_v31, %v19936_v11  ;;  %v23976_v11 = vld [vmem:[#allocation41_spill] sm:$0xff] }
 0x47d   : > { %v6741_v25 = vpop.f32.mrf.mxu1 }
 0x47e   : > { %v14860_v35 = vpop.f32.mrf.mxu0  ;;  %v20115_v0 = vadd.f32 %v14820_v63, %v6784_v28  ;;  %v6782_v45 = vadd.f32 %v6741_v25, %v19941_v32 }
 0x47f   : > { %v14825_v1 = vpop.f32.mrf.mxu1  ;;  %15028 = vmatmul.mubr.msk.bf16.vlgmr.msra.gmra.mxu1 %vm928_vm3, %v23975_v51 }
 0x480   : > { %v7249_v2 = vpop.f32.mrf.mxu0  ;;  %v20120_v24 = vadd.f32 %v6952_v46, %v6782_v45  ;;  %v7174_v17 = vadd.f32 %v14825_v1, %v19957_v21  ;;  %15094 = vmatpush3.bf16.msra.mxu1 %v19934_v50  ;;  %15031 = vmatprep.mubr.msk.bf16.mxu1 %vm928_vm3, %v23976_v11  ;;  %v9202_v21 = vshrl.u32 %v9002_v20, 16  ;;  %v9205_v46 = vshll.u32 %v9002_v20, 16 }
 0x481   : > { %v7045_v23 = vpop.f32.mrf.mxu1  ;;  %15161 = vmatprep.subr.bf16.mxu1 %v20113_v27 }
 0x482   : > { %v14863_v60 = vpop.f32.mrf.mxu0  ;;  %15066 = vmatmul.mubr.msk.bf16.gmra.mxu0 %vm928_vm3, %v23947_v37  ;;  %v20129_v32 = vadd.f32 %v14859_v40, %v7174_v17  ;;  %v7172_v63 = vadd.f32 %v7045_v23, %v19962_v5  ;;  %v9204_v45 = vrot.slane %v9202_v21, 2  ;;  %v9207_v1 = vrot.slane %v9205_v46, 3  ;;  %v23977_v23 = vld [vmem:[#allocation42_spill] sm:$0xff] }
 0x483   : > { %15069 = vmatprep.mubr.msk.bf16.mxu0 %vm928_vm3, %v23950_v42  ;;  %v14826_v50 = vpop.f32.mrf.mxu1 }
 0x484   : > { %v7262_v31 = vpop.f32.mrf.mxu0  ;;  %v20134_v28 = vadd.f32 %v7246_v8, %v7172_v63  ;;  %v7175_v25 = vadd.f32 %v14826_v50, %v19965_v10  ;;  %v9208_v5 = vor.u32 %v9207_v1, %v9204_v45  ;;  %v23978_v63 = vld [vmem:[#allocation14_spill] sm:$0xff] }
 0x485   : > { %v7048_v37 = vpop.f32.mrf.mxu1 }
 0x486   : > { %v14864_v19 = vpop.f32.mrf.mxu0  ;;  %v20137_v56 = vadd.f32 %v14860_v35, %v7175_v25  ;;  %v7173_v40 = vadd.f32 %v7048_v37, %v19970_v38  ;;  %v20148_v10 = vand.u32 %v9208_v5, %v23856_v41  ;;  %v23979_v5 = vld [vmem:[#allocation50_spill] sm:$0xff] }
 0x487   : > { %v14829_v17 = vpop.f32.mrf.mxu1  ;;  %15032 = vmatmul.mubr.msk.bf16.gmra.mxu1 %vm928_vm3, %v23977_v23 }
 0x488   : > { %v7265_v20 = vpop.f32.mrf.mxu0  ;;  %v20142_v42 = vadd.f32 %v7249_v2, %v7173_v40  ;;  %v7178_v8 = vadd.f32 %v14829_v17, %v19980_v15  ;;  %15035 = vmatprep.mubr.msk.bf16.mxu1 %vm928_vm3, %v23978_v63  ;;  %15195 = vmatprep.subr.bf16.mxu0 %v20148_v10 }
 0x489   : > { %v7061_v35 = vpop.f32.mrf.mxu1 }
 0x48a   : > { %v14867_v21 = vpop.f32.mrf.mxu0  ;;  %15070 = vmatmul.mubr.msk.bf16.gmra.mxu0 %vm928_vm3, %v23951_v62  ;;  %v20152_v37 = vadd.f32 %v14863_v60, %v7178_v8  ;;  %v7176_v38 = vadd.f32 %v7061_v35, %v19986_v13  ;;  %v23980_v35 = vld [vmem:[#allocation51_spill] sm:$0xff]  ;;  %v23987_v62 = vld [vmem:[#allocation133_spill] sm:$0xff] }
 0x48b   : > { %15073 = vmatprep.mubr.msk.bf16.mxu0 %vm928_vm3, %v23954_v12  ;;  %v14830_v15 = vpop.f32.mrf.mxu1 }
 0x48c   : > { %v7278_v2 = vpop.f32.mrf.mxu0  ;;  %v20158_v46 = vadd.f32 %v7262_v31, %v7176_v38  ;;  %v7179_v50 = vadd.f32 %v14830_v15, %v19989_v57 }
 0x48d   : > { %v7064_v25 = vpop.f32.mrf.mxu1 }
 0x48e   : > { %v14868_v45 = vpop.f32.mrf.mxu0  ;;  %v20161_v1 = vadd.f32 %v14864_v19, %v7179_v50  ;;  %v7177_v60 = vadd.f32 %v7064_v25, %v19994_v44 }
 0x48f   : > { %v14833_v40 = vpop.f32.mrf.mxu1  ;;  %15036 = vmatmul.mubr.msk.bf16.gmra.mxu1 %vm928_vm3, %v23979_v5 }
 0x490   : > { %v7281_v13 = vpop.f32.mrf.mxu0  ;;  %v20166_v17 = vadd.f32 %v7265_v20, %v7177_v60  ;;  %v7182_v8 = vadd.f32 %v14833_v40, %v20001_v7  ;;  %15039 = vmatprep.mubr.msk.bf16.mxu1 %vm928_vm3, %v23980_v35 }
 0x491   : > { %v7077_v31 = vpop.f32.mrf.mxu1 }
 0x492   : > { %v14871_v57 = vpop.f32.mrf.mxu0  ;;  %15074 = vmatmul.mubr.msk.bf16.gmra.mxu0 %vm928_vm3, %v23955_v34  ;;  %v20173_v19 = vadd.f32 %v14867_v21, %v7182_v8  ;;  %v7180_v44 = vadd.f32 %v7077_v31, %v20006_v22  ;;  %v23981_v21 = vld [vmem:[#allocation20_spill] sm:$0xff] }
 0x493   : > { %15077 = vmatprep.mubr.msk.bf16.mxu0 %vm928_vm3, %v23958_v4  ;;  %v14834_v38 = vpop.f32.mrf.mxu1  ;;  %v23982_v4 = vld [vmem:[#allocation52_spill] sm:$0xff] }
 0x494   : > { %v7294_v20 = vpop.f32.mrf.mxu0  ;;  %v20178_v15 = vadd.f32 %v7278_v2, %v7180_v44  ;;  %v7183_v7 = vadd.f32 %v14834_v38, %v20009_v39 }
 0x495   : > { %v7080_v50 = vpop.f32.mrf.mxu1 }
 0x496   : > { %v14872_v25 = vpop.f32.mrf.mxu0  ;;  %v20181_v60 = vadd.f32 %v14868_v45, %v7183_v7  ;;  %v7181_v40 = vadd.f32 %v7080_v50, %v20014_v55 }
 0x497   : > { %v14837_v34 = vpop.f32.mrf.mxu1  ;;  %15040 = vmatmul.mubr.msk.bf16.gmra.mxu1 %vm928_vm3, %v23981_v21 }
 0x498   : > { %v7297_v22 = vpop.f32.mrf.mxu0  ;;  %v20186_v8 = vadd.f32 %v7281_v13, %v7181_v40  ;;  %v7186_v31 = vadd.f32 %v14837_v34, %v20021_v3  ;;  %15043 = vmatprep.mubr.msk.bf16.mxu1 %vm928_vm3, %v23982_v4  ;;  %v23983_v40 = vld [vmem:[#allocation126_spill] sm:$0xff] }
 0x499   : > { %v7093_v2 = vpop.f32.mrf.mxu1 }
 0x49a   : > { %v14875_v39 = vpop.f32.mrf.mxu0  ;;  %15078 = vmatmul.mubr.msk.bf16.gmra.mxu0 %vm928_vm3, %v23959_v30  ;;  %v20193_v45 = vadd.f32 %v14871_v57, %v7186_v31  ;;  %v7184_v55 = vadd.f32 %v7093_v2, %v20026_v49  ;;  %v23984_v57 = vld [vmem:[#allocation53_spill] sm:$0xff] }
 0x49b   : > { %15081 = vmatprep.mubr.msk.bf16.mxu0 %vm928_vm3, %v23963_v26  ;;  %v14838_v44 = vpop.f32.mrf.mxu1  ;;  %v23985_v26 = vld [vmem:[#allocation44_spill] sm:$0xff] }
 0x49c   : > { %v7310_v13 = vpop.f32.mrf.mxu0  ;;  %v20198_v38 = vadd.f32 %v7294_v20, %v7184_v55  ;;  %v7187_v34 = vadd.f32 %v14838_v44, %v20029_v58  ;;  %v23986_v55 = vld [vmem:[#allocation35_spill] sm:$0xff] }
 0x49d   : > { %v7096_v3 = vpop.f32.mrf.mxu1 }
 0x49e   : > { %v14876_v7 = vpop.f32.mrf.mxu0  ;;  %v20201_v50 = vadd.f32 %v14872_v25, %v7187_v34  ;;  %v7185_v12 = vadd.f32 %v7096_v3, %v23983_v40 }
 0x49f   : > { %v14841_v30 = vpop.f32.mrf.mxu1  ;;  %15044 = vmatmul.mubr.msk.bf16.gmra.mxu1 %vm928_vm3, %v23984_v57 }
 0x4a0   : > { %v7313_v49 = vpop.f32.mrf.mxu0  ;;  %v20206_v31 = vadd.f32 %v7297_v22, %v7185_v12  ;;  %v7190_v2 = vadd.f32 %v14841_v30, %v20041_v29  ;;  %15047 = vmatprep.mubr.msk.bf16.mxu1 %vm928_vm3, %v23985_v26 }
 0x4a1   : > { %v7109_v20 = vpop.f32.mrf.mxu1 }
 0x4a2   : > { %v14879_v58 = vpop.f32.mrf.mxu0  ;;  %15082 = vmatmul.mubr.msk.bf16.gmra.mxu0 %vm928_vm3, %v23986_v55  ;;  %v20213_v25 = vadd.f32 %v14875_v39, %v7190_v2  ;;  %v7188_v44 = vadd.f32 %v7109_v20, %v20046_v52  ;;  %v23988_v39 = vld [vmem:[#allocation45_spill] sm:$0xff] }
 0x4a3   : > { %15085 = vmatprep.mubr.msk.bf16.mxu0 %vm928_vm3, %v23968_v36  ;;  %v14842_v34 = vpop.f32.mrf.mxu1  ;;  %v23990_v36 = vld [vmem:[#allocation46_spill] sm:$0xff] }
 0x4a4   : > { %v7326_v12 = vpop.f32.mrf.mxu0  ;;  %v20218_v22 = vadd.f32 %v7310_v13, %v7188_v44  ;;  %v7191_v30 = vadd.f32 %v14842_v34, %v20049_v9  ;;  %v23991_v44 = vld [vmem:[#allocation39_spill] sm:$0xff] }
 0x4a5   : > { %v7112_v29 = vpop.f32.mrf.mxu1 }
 0x4a6   : > { %v14880_v3 = vpop.f32.mrf.mxu0  ;;  %v20221_v40 = vadd.f32 %v14876_v7, %v7191_v30  ;;  %v7189_v6 = vadd.f32 %v7112_v29, %v23987_v62 }
 0x4a7   : > { %v14845_v55 = vpop.f32.mrf.mxu1  ;;  %15048 = vmatmul.mubr.msk.bf16.gmra.mxu1 %vm928_vm3, %v23988_v39 }
 0x4a8   : > { %v7329_v52 = vpop.f32.mrf.mxu0  ;;  %v20226_v2 = vadd.f32 %v7313_v49, %v7189_v6  ;;  %v7194_v20 = vadd.f32 %v14845_v55, %v20061_v18  ;;  %15051 = vmatprep.mubr.msk.bf16.mxu1 %vm928_vm3, %v23990_v36 }
 0x4a9   : > { %v7125_v13 = vpop.f32.mrf.mxu1 }
 0x4aa   : > { %23989 = vst [vmem:[#allocation90_spill] sm:$0xff] %v20226_v2  ;;  %v14883_v9 = vpop.f32.mrf.mxu0  ;;  %15086 = vmatmul.mubr.msk.bf16.gmra.mxu0 %vm928_vm3, %v23991_v44  ;;  %v20233_v7 = vadd.f32 %v14879_v58, %v7194_v20  ;;  %v7192_v62 = vadd.f32 %v7125_v13, %v20066_v43  ;;  %v23992_v58 = vld [vmem:[#allocation47_spill] sm:$0xff] }
 0x4ab   : > { %15089 = vmatprep.mubr.msk.bf16.mxu0 %vm928_vm3, %v23972_v53  ;;  %v14846_v34 = vpop.f32.mrf.mxu1  ;;  %v23994_v53 = vld [vmem:[#allocation12_spill] sm:$0xff] }
 0x4ac   : > { %v7342_v6 = vpop.f32.mrf.mxu0  ;;  %v20238_v49 = vadd.f32 %v7326_v12, %v7192_v62  ;;  %v7195_v18 = vadd.f32 %v14846_v34, %v20069_v47  ;;  %v23995_v62 = vld [vmem:[#allocation54_spill] sm:$0xff] }
 0x4ad   : > { %v7128_v55 = vpop.f32.mrf.mxu1 }
 0x4ae   : > { %v14884_v30 = vpop.f32.mrf.mxu0  ;;  %v20241_v29 = vadd.f32 %v14880_v3, %v7195_v18  ;;  %v7193_v2 = vadd.f32 %v7128_v55, %v20074_v61 }
 0x4af   : > { %v14849_v44 = vpop.f32.mrf.mxu1  ;;  %15052 = vmatmul.mubr.msk.bf16.gmra.mxu1 %vm928_vm3, %v23992_v58 }
 0x4b0   : > { %v7345_v43 = vpop.f32.mrf.mxu0  ;;  %v20246_v20 = vadd.f32 %v7329_v52, %v7193_v2  ;;  %v7198_v13 = vadd.f32 %v14849_v44, %v20081_v33  ;;  %15055 = vmatprep.mubr.msk.bf16.mxu1 %vm928_vm3, %v23994_v53 }
 0x4b1   : > { %v7141_v12 = vpop.f32.mrf.mxu1 }
 0x4b2   : > { %23993 = vst [vmem:[#allocation94_spill] sm:$0xff] %v20246_v20  ;;  %v14887_v47 = vpop.f32.mrf.mxu0  ;;  %15090 = vmatmul.mubr.msk.bf16.gmra.mxu0 %vm928_vm3, %v23995_v62  ;;  %v20253_v3 = vadd.f32 %v14883_v9, %v7198_v13  ;;  %v7196_v61 = vadd.f32 %v7141_v12, %v20086_v59  ;;  %v7859_v9 = vld [vmem:[%s23014_s6 + $0x18] sm:$0x7]  ;;  %v23996_v13 = vld [vmem:[#allocation48_spill] sm:$0xff] }
 0x4b3   : > { %15129 = vmatprep.mubr.msk.bf16.mxu0 %vm928_vm3, %v23975_v51  ;;  %v14850_v34 = vpop.f32.mrf.mxu1 }
 0x4b4   : > { %v7358_v52 = vpop.f32.mrf.mxu0  ;;  %v20258_v2 = vadd.f32 %v7342_v6, %v7196_v61  ;;  %v7199_v33 = vadd.f32 %v14850_v34, %v20089_v16  ;;  %v23997_v16 = vld [vmem:[#allocation8_spill] sm:$0xff] }
 0x4b5   : > { %v7144_v44 = vpop.f32.mrf.mxu1 }
 0x4b6   : > { %v14888_v18 = vpop.f32.mrf.mxu0  ;;  %v20261_v55 = vadd.f32 %v14884_v30, %v7199_v33  ;;  %v7197_v20 = vadd.f32 %v7144_v44, %v20096_v14  ;;  %v9405_v14 = vpack.c.bf16 %v7859_v9, %v7859_v9 }
 0x4b7   : > { %v14853_v59 = vpop.f32.mrf.mxu1  ;;  %15056 = vmatmul.mubr.msk.bf16.gmra.mxu1 %vm928_vm3, %v23996_v13 }
 0x4b8   : > { %v7361_v51 = vpop.f32.mrf.mxu0  ;;  %v20269_v12 = vadd.f32 %v7345_v43, %v7197_v20  ;;  %v7202_v6 = vadd.f32 %v14853_v59, %v20103_v54  ;;  %15095 = vmatprep.mubr.msk.bf16.mxu1 %vm928_vm3, %v23997_v16 }
 0x4b9   : > { %v7157_v30 = vpop.f32.mrf.mxu1 }
 0x4ba   : > { %v14927_v61 = vpop.f32.mrf.mxu0  ;;  %15130 = vmatmul.mubr.msk.bf16.vlgmr.msra.gmra.mxu0 %vm928_vm3, %v23976_v11  ;;  %v20276_v34 = vadd.f32 %v14887_v47, %v7202_v6  ;;  %v7200_v33 = vadd.f32 %v7157_v30, %v20109_v48  ;;  %v20286_v11 = vand.u32 %v9405_v14, %v23856_v41  ;;  %v23998_v6 = vld [vmem:[#allocation10_spill] sm:$0xff]  ;;  %v24002_v41 = vld [vmem:[#allocation67_spill] sm:$0xff] }
 0x4bb   : > { %15133 = vmatprep.mubr.msk.bf16.mxu0 %vm928_vm3, %v23977_v23  ;;  %15196 = vmatpush3.bf16.msra.mxu0 %v20148_v10  ;;  %v14854_v43 = vpop.f32.mrf.mxu1 }
 0x4bc   : > { %v7665_v54 = vpop.f32.mrf.mxu0  ;;  %v20282_v20 = vadd.f32 %v7358_v52, %v7200_v33  ;;  %v7203_v44 = vadd.f32 %v14854_v43, %v20115_v0  ;;  %v23999_v0 = vld [vmem:[#allocation13_spill] sm:$0xff] }
 0x4bd   : > { %v7160_v59 = vpop.f32.mrf.mxu1  ;;  %v24000_v43 = vld [vmem:[#allocation97_spill] sm:$0xff] }
 0x4be   : > { %v14928_v16 = vpop.f32.mrf.mxu0  ;;  %v20288_v47 = vadd.f32 %v14888_v18, %v7203_v44  ;;  %v7201_v48 = vadd.f32 %v7160_v59, %v20120_v24 }
 0x4bf   : > { %v14893_v9 = vpop.f32.mrf.mxu1  ;;  %15096 = vmatmul.mubr.msk.bf16.vlgmr.msra.gmra.mxu1 %vm928_vm3, %v23998_v6 }
 0x4c0   : > { %v7668_v10 = vpop.f32.mrf.mxu0  ;;  %v20293_v30 = vadd.f32 %v7361_v51, %v7201_v48  ;;  %v7586_v52 = vadd.f32 %v14893_v9, %v20129_v32  ;;  %15162 = vmatpush3.bf16.msra.mxu1 %v20113_v27  ;;  %15099 = vmatprep.mubr.msk.bf16.mxu1 %vm928_vm3, %v23999_v0 }
 0x4c1   : > { %v7457_v14 = vpop.f32.mrf.mxu1  ;;  %15229 = vmatprep.subr.bf16.mxu1 %v20286_v11 }
 0x4c2   : > { %v14931_v33 = vpop.f32.mrf.mxu0  ;;  %15134 = vmatmul.mubr.msk.bf16.gmra.mxu0 %vm928_vm3, %v23978_v63  ;;  %v7794_v24 = vadd.f32 %v14927_v61, %v7586_v52  ;;  %v7584_v18 = vadd.f32 %v7457_v14, %v20134_v28  ;;  %v24004_v52 = vld [vmem:[#allocation16_spill] sm:$0xff] }
 0x4c3   : > { %15137 = vmatprep.mubr.msk.bf16.mxu0 %vm928_vm3, %v23979_v5  ;;  %v14894_v51 = vpop.f32.mrf.mxu1  ;;  %v24005_v5 = vld [vmem:[#allocation96_spill] sm:$0xff] }
 0x4c4   : > { %v7681_v32 = vpop.f32.mrf.mxu0  ;;  %v20306_v27 = vadd.f32 %v7794_v24, %v24000_v43  ;;  %v7792_v44 = vadd.f32 %v7665_v54, %v7584_v18  ;;  %v7587_v59 = vadd.f32 %v14894_v51, %v20137_v56  ;;  %v24007_v56 = vld [vmem:[#allocation21_spill] sm:$0xff] }
 0x4c5   : > { %v7460_v48 = vpop.f32.mrf.mxu1 }
 0x4c6   : > { %24001 = vst [vmem:[#allocation110_spill] sm:$0xff] %v20306_v27  ;;  %v14932_v9 = vpop.f32.mrf.mxu0  ;;  %v20310_v63 = vadd.f32 %v7792_v44, %v24002_v41  ;;  %v7795_v23 = vadd.f32 %v14928_v16, %v7587_v59  ;;  %v7585_v61 = vadd.f32 %v7460_v48, %v20142_v42  ;;  %v24008_v42 = vld [vmem:[#allocation59_spill] sm:$0xff] }
 0x4c7   : > { %v14897_v28 = vpop.f32.mrf.mxu1  ;;  %15100 = vmatmul.mubr.msk.bf16.gmra.mxu1 %vm928_vm3, %v24004_v52 }
 0x4c8   : > { %24003 = vst [vmem:[#allocation114_spill] sm:$0xff] %v20310_v63  ;;  %v7684_v14 = vpop.f32.mrf.mxu0  ;;  %v20316_v62 = vadd.f32 %v7795_v23, %v24005_v5  ;;  %v7793_v24 = vadd.f32 %v7668_v10, %v7585_v61  ;;  %v7590_v54 = vadd.f32 %v14897_v28, %v20152_v37  ;;  %15103 = vmatprep.mubr.msk.bf16.mxu1 %vm928_vm3, %v24007_v56  ;;  %v24010_v37 = vld [vmem:[#allocation80_spill] sm:$0xff]  ;;  %v24012_v28 = vld [vmem:[#allocation85_spill] sm:$0xff] }
 0x4c9   : > { %v7473_v18 = vpop.f32.mrf.mxu1 }
 0x4ca   : > { %24006 = vst [vmem:[#allocation113_spill] sm:$0xff] %v20316_v62  ;;  %v14935_v41 = vpop.f32.mrf.mxu0  ;;  %15138 = vmatmul.mubr.msk.bf16.gmra.mxu0 %vm928_vm3, %v23980_v35  ;;  %v20324_v16 = vadd.f32 %v7793_v24, %v24008_v42  ;;  %v7798_v51 = vadd.f32 %v14931_v33, %v7590_v54  ;;  %v7588_v43 = vadd.f32 %v7473_v18, %v20158_v46  ;;  %v24014_v54 = vld [vmem:[#allocation23_spill] sm:$0xff] }
 0x4cb   : > { %15141 = vmatprep.mubr.msk.bf16.mxu0 %vm928_vm3, %v23981_v21  ;;  %v14898_v23 = vpop.f32.mrf.mxu1  ;;  %v24015_v42 = vld [vmem:[#allocation71_spill] sm:$0xff] }
 0x4cc   : > { %24009 = vst [vmem:[#allocation117_spill] sm:$0xff] %v20324_v16  ;;  %v7697_v5 = vpop.f32.mrf.mxu0  ;;  %v20330_v10 = vadd.f32 %v7798_v51, %v24010_v37  ;;  %v7796_v44 = vadd.f32 %v7681_v32, %v7588_v43  ;;  %v7591_v59 = vadd.f32 %v14898_v23, %v20161_v1  ;;  %v24017_v1 = vld [vmem:[#allocation25_spill] sm:$0xff] }
 0x4cd   : > { %v7476_v48 = vpop.f32.mrf.mxu1 }
 0x4ce   : > { %24011 = vst [vmem:[#allocation79_spill] sm:$0xff] %v20330_v10  ;;  %v14936_v61 = vpop.f32.mrf.mxu0  ;;  %v20334_v62 = vadd.f32 %v7796_v44, %v24012_v28  ;;  %v7799_v24 = vadd.f32 %v14932_v9, %v7591_v59  ;;  %v7589_v33 = vadd.f32 %v7476_v48, %v20166_v17  ;;  %v24018_v17 = vld [vmem:[#allocation66_spill] sm:$0xff] }
 0x4cf   : > { %v14901_v46 = vpop.f32.mrf.mxu1  ;;  %15104 = vmatmul.mubr.msk.bf16.gmra.mxu1 %vm928_vm3, %v24014_v54 }
 0x4d0   : > { %24013 = vst [vmem:[#allocation103_spill] sm:$0xff] %v20334_v62  ;;  %v7700_v18 = vpop.f32.mrf.mxu0  ;;  %v20340_v16 = vadd.f32 %v7799_v24, %v24015_v42  ;;  %v7797_v51 = vadd.f32 %v7684_v14, %v7589_v33  ;;  %v7594_v32 = vadd.f32 %v14901_v46, %v20173_v19  ;;  %15107 = vmatprep.mubr.msk.bf16.mxu1 %vm928_vm3, %v24017_v1  ;;  %v24020_v19 = vld [vmem:[#allocation102_spill] sm:$0xff]  ;;  %v24022_v42 = vld [vmem:[#allocation91_spill] sm:$0xff] }
 0x4d1   : > { %v7489_v43 = vpop.f32.mrf.mxu1 }
 0x4d2   : > { %24016 = vst [vmem:[#allocation63_spill] sm:$0xff] %v20340_v16  ;;  %v14939_v23 = vpop.f32.mrf.mxu0  ;;  %15142 = vmatmul.mubr.msk.bf16.gmra.mxu0 %vm928_vm3, %v23982_v4  ;;  %v20348_v9 = vadd.f32 %v7797_v51, %v24018_v17  ;;  %v7802_v37 = vadd.f32 %v14935_v41, %v7594_v32  ;;  %v7592_v44 = vadd.f32 %v7489_v43, %v20178_v15  ;;  %v24024_v32 = vld [vmem:[#allocation26_spill] sm:$0xff]  ;;  %v24025_v17 = vld [vmem:[#allocation125_spill] sm:$0xff] }
 0x4d3   : > { %15145 = vmatprep.mubr.msk.bf16.mxu0 %vm928_vm3, %v23984_v57  ;;  %v14902_v14 = vpop.f32.mrf.mxu1 }
 0x4d4   : > { %24019 = vst [vmem:[#allocation69_spill] sm:$0xff] %v20348_v9  ;;  %v7713_v59 = vpop.f32.mrf.mxu0  ;;  %v20354_v48 = vadd.f32 %v7802_v37, %v24020_v19  ;;  %v7800_v28 = vadd.f32 %v7697_v5, %v7592_v44  ;;  %v7595_v24 = vadd.f32 %v14902_v14, %v20181_v60  ;;  %v24027_v60 = vld [vmem:[#allocation29_spill] sm:$0xff] }
 0x4d5   : > { %v7492_v33 = vpop.f32.mrf.mxu1 }
 0x4d6   : > { %24021 = vst [vmem:[#allocation81_spill] sm:$0xff] %v20354_v48  ;;  %v14940_v46 = vpop.f32.mrf.mxu0  ;;  %v20358_v16 = vadd.f32 %v7800_v28, %v24022_v42  ;;  %v7803_v51 = vadd.f32 %v14936_v61, %v7595_v24  ;;  %v7593_v41 = vadd.f32 %v7492_v33, %v20186_v8  ;;  %v24028_v8 = vld [vmem:[#allocation98_spill] sm:$0xff] }
 0x4d7   : > { %v14905_v15 = vpop.f32.mrf.mxu1  ;;  %15108 = vmatmul.mubr.msk.bf16.gmra.mxu1 %vm928_vm3, %v24024_v32 }
 0x4d8   : > { %24023 = vst [vmem:[#allocation64_spill] sm:$0xff] %v20358_v16  ;;  %v7716_v43 = vpop.f32.mrf.mxu0  ;;  %v20364_v9 = vadd.f32 %v7803_v51, %v24025_v17  ;;  %v7801_v37 = vadd.f32 %v7700_v18, %v7593_v41  ;;  %v7598_v5 = vadd.f32 %v14905_v15, %v20193_v45  ;;  %15111 = vmatprep.mubr.msk.bf16.mxu1 %vm928_vm3, %v24027_v60  ;;  %v24030_v45 = vld [vmem:[#allocation127_spill] sm:$0xff]  ;;  %v24032_v17 = vld [vmem:[#allocation101_spill] sm:$0xff] }
 0x4d9   : > { %v7505_v44 = vpop.f32.mrf.mxu1 }
 0x4da   : > { %24026 = vst [vmem:[#allocation123_spill] sm:$0xff] %v20364_v9  ;;  %v14943_v14 = vpop.f32.mrf.mxu0  ;;  %15146 = vmatmul.mubr.msk.bf16.gmra.mxu0 %vm928_vm3, %v23985_v26  ;;  %v20372_v61 = vadd.f32 %v7801_v37, %v24028_v8  ;;  %v7806_v19 = vadd.f32 %v14939_v23, %v7598_v5  ;;  %v7596_v28 = vadd.f32 %v7505_v44, %v20198_v38  ;;  %v24034_v5 = vld [vmem:[#allocation7_spill] sm:$0xff]  ;;  %v24035_v8 = vld [vmem:[#allocation108_spill] sm:$0xff] }
 0x4db   : > { %15149 = vmatprep.mubr.msk.bf16.mxu0 %vm928_vm3, %v23988_v39  ;;  %v14906_v18 = vpop.f32.mrf.mxu1 }
 0x4dc   : > { %24029 = vst [vmem:[#allocation124_spill] sm:$0xff] %v20372_v61  ;;  %v7729_v24 = vpop.f32.mrf.mxu0  ;;  %v20378_v33 = vadd.f32 %v7806_v19, %v24030_v45  ;;  %v7804_v42 = vadd.f32 %v7713_v59, %v7596_v28  ;;  %v7599_v51 = vadd.f32 %v14906_v18, %v20201_v50  ;;  %v24037_v50 = vld [vmem:[#allocation9_spill] sm:$0xff] }
 0x4dd   : > { %v7508_v41 = vpop.f32.mrf.mxu1 }
 0x4de   : > { %24031 = vst [vmem:[#allocation118_spill] sm:$0xff] %v20378_v33  ;;  %v14944_v15 = vpop.f32.mrf.mxu0  ;;  %v20382_v9 = vadd.f32 %v7804_v42, %v24032_v17  ;;  %v7807_v37 = vadd.f32 %v14940_v46, %v7599_v51  ;;  %v7597_v23 = vadd.f32 %v7508_v41, %v20206_v31  ;;  %v24038_v31 = vld [vmem:[#allocation105_spill] sm:$0xff] }
 0x4df   : > { %v14909_v38 = vpop.f32.mrf.mxu1  ;;  %15112 = vmatmul.mubr.msk.bf16.gmra.mxu1 %vm928_vm3, %v24034_v5 }
 0x4e0   : > { %24033 = vst [vmem:[#allocation129_spill] sm:$0xff] %v20382_v9  ;;  %v7732_v44 = vpop.f32.mrf.mxu0  ;;  %v20388_v61 = vadd.f32 %v7807_v37, %v24035_v8  ;;  %v7805_v19 = vadd.f32 %v7716_v43, %v7597_v23  ;;  %v7602_v59 = vadd.f32 %v14909_v38, %v20213_v25  ;;  %15115 = vmatprep.mubr.msk.bf16.mxu1 %vm928_vm3, %v24037_v50  ;;  %v24040_v25 = vld [vmem:[#allocation104_spill] sm:$0xff] }
 0x4e1   : > { %v7521_v28 = vpop.f32.mrf.mxu1  ;;  %v24042_v8 = vld [vmem:[#allocation72_spill] sm:$0xff] }
 0x4e2   : > { %24036 = vst [vmem:[#allocation120_spill] sm:$0xff] %v20388_v61  ;;  %v14947_v18 = vpop.f32.mrf.mxu0  ;;  %15150 = vmatmul.mubr.msk.bf16.gmra.mxu0 %vm928_vm3, %v23990_v36  ;;  %v20396_v46 = vadd.f32 %v7805_v19, %v24038_v31  ;;  %v7810_v45 = vadd.f32 %v14943_v14, %v7602_v59  ;;  %v7600_v42 = vadd.f32 %v7521_v28, %v20218_v22  ;;  %v24044_v14 = vld [vmem:[#allocation90_spill] sm:$0xff]  ;;  %v24045_v28 = vld [vmem:[#allocation11_spill] sm:$0xff] }
 0x4e3   : > { %15153 = vmatprep.mubr.msk.bf16.mxu0 %vm928_vm3, %v23992_v58  ;;  %v14910_v43 = vpop.f32.mrf.mxu1 }
 0x4e4   : > { %24039 = vst [vmem:[#allocation130_spill] sm:$0xff] %v20396_v46  ;;  %v7745_v51 = vpop.f32.mrf.mxu0  ;;  %v20402_v41 = vadd.f32 %v7810_v45, %v24040_v25  ;;  %v7808_v17 = vadd.f32 %v7729_v24, %v7600_v42  ;;  %v7603_v37 = vadd.f32 %v14910_v43, %v20221_v40  ;;  %v24046_v46 = vld [vmem:[#allocation106_spill] sm:$0xff]  ;;  %v24048_v40 = vld [vmem:[#allocation15_spill] sm:$0xff] }
 0x4e5   : > { %v7524_v23 = vpop.f32.mrf.mxu1 }
 0x4e6   : > { %24041 = vst [vmem:[#allocation121_spill] sm:$0xff] %v20402_v41  ;;  %v14948_v38 = vpop.f32.mrf.mxu0  ;;  %v20406_v61 = vadd.f32 %v7808_v17, %v24042_v8  ;;  %v7811_v19 = vadd.f32 %v14944_v15, %v7603_v37  ;;  %v7601_v59 = vadd.f32 %v7524_v23, %v24044_v14  ;;  %v24049_v15 = vld [vmem:[#allocation73_spill] sm:$0xff] }
 0x4e7   : > { %v14913_v22 = vpop.f32.mrf.mxu1  ;;  %15116 = vmatmul.mubr.msk.bf16.gmra.mxu1 %vm928_vm3, %v24045_v28 }
 0x4e8   : > { %24043 = vst [vmem:[#allocation70_spill] sm:$0xff] %v20406_v61  ;;  %v7748_v31 = vpop.f32.mrf.mxu0  ;;  %v20412_v9 = vadd.f32 %v7811_v19, %v24046_v46  ;;  %v7809_v45 = vadd.f32 %v7732_v44, %v7601_v59  ;;  %v7606_v24 = vadd.f32 %v14913_v22, %v20233_v7  ;;  %15119 = vmatprep.mubr.msk.bf16.mxu1 %vm928_vm3, %v24048_v40  ;;  %v24051_v7 = vld [vmem:[#allocation135_spill] sm:$0xff] }
 0x4e9   : > { %v7537_v42 = vpop.f32.mrf.mxu1  ;;  %v24053_v22 = vld [vmem:[#allocation107_spill] sm:$0xff] }
 0x4ea   : > { %24047 = vst [vmem:[#allocation136_spill] sm:$0xff] %v20412_v9  ;;  %v14951_v43 = vpop.f32.mrf.mxu0  ;;  %15154 = vmatmul.mubr.msk.bf16.gmra.mxu0 %vm928_vm3, %v23994_v53  ;;  %v20420_v25 = vadd.f32 %v7809_v45, %v24049_v15  ;;  %v7814_v17 = vadd.f32 %v14947_v18, %v7606_v24  ;;  %v7604_v37 = vadd.f32 %v7537_v42, %v20238_v49  ;;  %v24055_v18 = vld [vmem:[#allocation94_spill] sm:$0xff]  ;;  %v24056_v42 = vld [vmem:[#allocation17_spill] sm:$0xff] }
 0x4eb   : > { %15157 = vmatprep.mubr.msk.bf16.mxu0 %vm928_vm3, %v23996_v13  ;;  %v14914_v44 = vpop.f32.mrf.mxu1 }
 0x4ec   : > { %24050 = vst [vmem:[#allocation100_spill] sm:$0xff] %v20420_v25  ;;  %v7761_v46 = vpop.f32.mrf.mxu0  ;;  %v20426_v23 = vadd.f32 %v7814_v17, %v24051_v7  ;;  %v7812_v8 = vadd.f32 %v7745_v51, %v7604_v37  ;;  %v7607_v19 = vadd.f32 %v14914_v44, %v20241_v29  ;;  %v24057_v25 = vld [vmem:[#allocation112_spill] sm:$0xff]  ;;  %v24059_v29 = vld [vmem:[#allocation22_spill] sm:$0xff]  ;;  %v24060_v7 = vld [vmem:[#allocation57_spill] sm:$0xff] }
 0x4ed   : > { %v7540_v14 = vpop.f32.mrf.mxu1 }
 0x4ee   : > { %24052 = vst [vmem:[#allocation137_spill] sm:$0xff] %v20426_v23  ;;  %v14952_v59 = vpop.f32.mrf.mxu0  ;;  %v20430_v9 = vadd.f32 %v7812_v8, %v24053_v22  ;;  %v7815_v45 = vadd.f32 %v14948_v38, %v7607_v19  ;;  %v7605_v24 = vadd.f32 %v7540_v14, %v24055_v18  ;;  %v24061_v38 = vld [vmem:[#allocation111_spill] sm:$0xff] }
 0x4ef   : > { %v14917_v49 = vpop.f32.mrf.mxu1  ;;  %15120 = vmatmul.mubr.msk.bf16.gmra.mxu1 %vm928_vm3, %v24056_v42 }
 0x4f0   : > { %24054 = vst [vmem:[#allocation119_spill] sm:$0xff] %v20430_v9  ;;  %v7764_v15 = vpop.f32.mrf.mxu0  ;;  %v20436_v61 = vadd.f32 %v7815_v45, %v24057_v25  ;;  %v7813_v17 = vadd.f32 %v7748_v31, %v7605_v24  ;;  %v7610_v51 = vadd.f32 %v14917_v49, %v20253_v3  ;;  %15123 = vmatprep.mubr.msk.bf16.mxu1 %vm928_vm3, %v24059_v29  ;;  %v24063_v3 = vld [vmem:[#allocation77_spill] sm:$0xff] }
 0x4f1   : > { %v7553_v37 = vpop.f32.mrf.mxu1 }
 0x4f2   : > { %24058 = vst [vmem:[#allocation115_spill] sm:$0xff] %v20436_v61  ;;  %v14955_v44 = vpop.f32.mrf.mxu0  ;;  %15158 = vmatmul.mubr.msk.bf16.gmra.mxu0 %vm928_vm3, %v24060_v7  ;;  %v20444_v8 = vadd.f32 %v7813_v17, %v24061_v38  ;;  %v7818_v19 = vadd.f32 %v14951_v43, %v7610_v51  ;;  %v7608_v14 = vadd.f32 %v7553_v37, %v20258_v2  ;;  %v24065_v61 = vld [vmem:[#allocation122_spill] sm:$0xff]  ;;  %v24067_v51 = vld [vmem:[#allocation55_spill] sm:$0xff] }
 0x4f3   : > { %15197 = vmatprep.mubr.msk.bf16.mxu0 %vm928_vm3, %v23998_v6  ;;  %v14918_v31 = vpop.f32.mrf.mxu1  ;;  %v24068_v37 = vld [vmem:[#allocation58_spill] sm:$0xff] }
 0x4f4   : > { %24062 = vst [vmem:[#allocation132_spill] sm:$0xff] %v20444_v8  ;;  %v7777_v25 = vpop.f32.mrf.mxu0  ;;  %v20450_v22 = vadd.f32 %v7818_v19, %v24063_v3  ;;  %v7816_v45 = vadd.f32 %v7761_v46, %v7608_v14  ;;  %v7611_v18 = vadd.f32 %v14918_v31, %v20261_v55  ;;  %v24070_v55 = vld [vmem:[#allocation28_spill] sm:$0xff]  ;;  %v24097_v8 = vld [vmem:[#allocation41_spill] sm:$0xff] }
 0x4f5   : > { %v7556_v24 = vpop.f32.mrf.mxu1 }
 0x4f6   : > { %24064 = vst [vmem:[#allocation138_spill] sm:$0xff] %v20450_v22  ;;  %v14956_v49 = vpop.f32.mrf.mxu0  ;;  %v20454_v9 = vadd.f32 %v7816_v45, %v24065_v61  ;;  %v7819_v17 = vadd.f32 %v14952_v59, %v7611_v18  ;;  %v7609_v43 = vadd.f32 %v7556_v24, %v20269_v12  ;;  %v24071_v12 = vld [vmem:[#allocation131_spill] sm:$0xff] }
 0x4f7   : > { %v14921_v2 = vpop.f32.mrf.mxu1  ;;  %15124 = vmatmul.mubr.msk.bf16.gmra.mxu1 %vm928_vm3, %v24067_v51 }
 0x4f8   : > { %24066 = vst [vmem:[#allocation139_spill] sm:$0xff] %v20454_v9  ;;  %v7780_v6 = vpop.f32.mrf.mxu0  ;;  %v20460_v38 = vadd.f32 %v7819_v17, %v24068_v37  ;;  %v7817_v19 = vadd.f32 %v7764_v15, %v7609_v43  ;;  %v7614_v46 = vadd.f32 %v14921_v2, %v20276_v34  ;;  %15163 = vmatprep.mubr.msk.bf16.mxu1 %vm928_vm3, %v24070_v55  ;;  %v24073_v34 = vld [vmem:[#allocation87_spill] sm:$0xff]  ;;  %v24078_v55 = vld [vmem:[#allocation116_spill] sm:$0xff] }
 0x4f9   : > { %v7569_v14 = vpop.f32.mrf.mxu1 }
 0x4fa   : > { %24069 = vst [vmem:[#allocation140_spill] sm:$0xff] %v20460_v38  ;;  %v14995_v61 = vpop.f32.mrf.mxu0  ;;  %15198 = vmatmul.mubr.msk.bf16.vlgmr.msra.gmra.mxu0 %vm928_vm3, %v23999_v0  ;;  %v20468_v59 = vadd.f32 %v7817_v19, %v24071_v12  ;;  %v7822_v31 = vadd.f32 %v14955_v44, %v7614_v46  ;;  %v7612_v3 = vadd.f32 %v7569_v14, %v20282_v20  ;;  %v24075_v0 = vld [vmem:[#allocation86_spill] sm:$0xff]  ;;  %v24077_v46 = vld [vmem:[#allocation32_spill] sm:$0xff] }
 0x4fb   : > { %15201 = vmatprep.mubr.msk.bf16.mxu0 %vm928_vm3, %v24004_v52  ;;  %v14922_v15 = vpop.f32.mrf.mxu1 }
 0x4fc   : > { %24072 = vst [vmem:[#allocation74_spill] sm:$0xff] %v20468_v59  ;;  %v8069_v45 = vpop.f32.mrf.mxu0  ;;  %v20474_v18 = vadd.f32 %v7822_v31, %v24073_v34  ;;  %v7820_v24 = vadd.f32 %v7777_v25, %v7612_v3  ;;  %v7615_v17 = vadd.f32 %v14922_v15, %v20288_v47  ;;  %v24080_v47 = vld [vmem:[#allocation34_spill] sm:$0xff] }
 0x4fd   : > { %v7572_v43 = vpop.f32.mrf.mxu1 }
 0x4fe   : > { %24074 = vst [vmem:[#allocation99_spill] sm:$0xff] %v20474_v18  ;;  %v14996_v2 = vpop.f32.mrf.mxu0  ;;  %v20478_v37 = vadd.f32 %v7820_v24, %v24075_v0  ;;  %v7823_v19 = vadd.f32 %v14956_v49, %v7615_v17  ;;  %v7613_v44 = vadd.f32 %v7572_v43, %v20293_v30  ;;  %v24081_v30 = vld [vmem:[#allocation65_spill] sm:$0xff] }
 0x4ff   : > { %v14961_v20 = vpop.f32.mrf.mxu1  ;;  %15164 = vmatmul.mubr.msk.bf16.vlgmr.msra.gmra.mxu1 %vm928_vm3, %v24077_v46  ;;  %v24083_v0 = vld [vmem:[#allocation37_spill] sm:$0xff] }
 0x500   : > { %24076 = vst [vmem:[#allocation93_spill] sm:$0xff] %v20478_v37  ;;  %v8072_v52 = vpop.f32.mrf.mxu0  ;;  %v20484_v14 = vadd.f32 %v7823_v19, %v24078_v55  ;;  %v7821_v12 = vadd.f32 %v7780_v6, %v7613_v44  ;;  %v20486_v25 = vadd.f32 %v14995_v61, %v14961_v20  ;;  %15230 = vmatpush3.bf16.msra.mxu1 %v20286_v11  ;;  %v24093_v37 = vld [vmem:[#allocation43_spill] sm:$0xff] }
 0x501   : > { %15167 = vmatprep.mubr.msk.bf16.mxu1 %vm928_vm3, %v24080_v47  ;;  %v7906_v31 = vpop.f32.mrf.mxu1 }
 0x502   : > { %24079 = vst [vmem:[#allocation83_spill] sm:$0xff] %v20484_v14  ;;  %v14999_v49 = vpop.f32.mrf.mxu0  ;;  %15202 = vmatmul.mubr.msk.bf16.gmra.mxu0 %vm928_vm3, %v24007_v56  ;;  %v20494_v3 = vadd.f32 %v7821_v12, %v24081_v30  ;;  %v20496_v15 = vadd.f32 %v8069_v45, %v7906_v31  ;;  %v24084_v45 = vld [vmem:[#allocation40_spill] sm:$0xff] }
 0x503   : > { %15205 = vmatprep.mubr.msk.bf16.mxu0 %vm928_vm3, %v24014_v54  ;;  %v14962_v6 = vpop.f32.mrf.mxu1 }
 0x504   : > { %24082 = vst [vmem:[#allocation84_spill] sm:$0xff] %v20494_v3  ;;  %v8085_v61 = vpop.f32.mrf.mxu0  ;;  %v20500_v34 = vadd.f32 %v14996_v2, %v14962_v6 }
 0x505   : > { %v7909_v11 = vpop.f32.mrf.mxu1 }
 0x506   : > { %v15000_v24 = vpop.f32.mrf.mxu0  ;;  %v20502_v17 = vadd.f32 %v8072_v52, %v7909_v11 }
 0x507   : > { %v14965_v43 = vpop.f32.mrf.mxu1  ;;  %15168 = vmatmul.mubr.msk.bf16.gmra.mxu1 %vm928_vm3, %v24083_v0 }
 0x508   : > { %v8088_v56 = vpop.f32.mrf.mxu0  ;;  %v20506_v19 = vadd.f32 %v14999_v49, %v14965_v43  ;;  %15171 = vmatprep.mubr.msk.bf16.mxu1 %vm928_vm3, %v24084_v45  ;;  %v24085_v49 = vld [vmem:[#allocation49_spill] sm:$0xff] }
 0x509   : > { %v7922_v44 = vpop.f32.mrf.mxu1 }
 0x50a   : > { %v15003_v54 = vpop.f32.mrf.mxu0  ;;  %15206 = vmatmul.mubr.msk.bf16.gmra.mxu0 %vm928_vm3, %v24017_v1  ;;  %v20512_v2 = vadd.f32 %v8085_v61, %v7922_v44  ;;  %v24086_v1 = vld [vmem:[#allocation19_spill] sm:$0xff] }
 0x50b   : > { %15209 = vmatprep.mubr.msk.bf16.mxu0 %vm928_vm3, %v24024_v32  ;;  %v14966_v20 = vpop.f32.mrf.mxu1 }
 0x50c   : > { %v8101_v46 = vpop.f32.mrf.mxu0  ;;  %v20516_v52 = vadd.f32 %v15000_v24, %v14966_v20  ;;  %v24087_v20 = vld [vmem:[#allocation18_spill] sm:$0xff] }
 0x50d   : > { %v7925_v55 = vpop.f32.mrf.mxu1 }
 0x50e   : > { %v15004_v12 = vpop.f32.mrf.mxu0  ;;  %v20518_v47 = vadd.f32 %v8088_v56, %v7925_v55 }
 0x50f   : > { %v14969_v31 = vpop.f32.mrf.mxu1  ;;  %15172 = vmatmul.mubr.msk.bf16.gmra.mxu1 %vm928_vm3, %v24085_v49 }
 0x510   : > { %v8104_v30 = vpop.f32.mrf.mxu0  ;;  %v20522_v6 = vadd.f32 %v15003_v54, %v14969_v31  ;;  %15175 = vmatprep.mubr.msk.bf16.mxu1 %vm928_vm3, %v24086_v1 }
 0x511   : > { %v7938_v61 = vpop.f32.mrf.mxu1 }
 0x512   : > { %v15007_v32 = vpop.f32.mrf.mxu0  ;;  %15210 = vmatmul.mubr.msk.bf16.gmra.mxu0 %vm928_vm3, %v24027_v60  ;;  %v20528_v11 = vadd.f32 %v8101_v46, %v7938_v61  ;;  %v24088_v60 = vld [vmem:[#allocation30_spill] sm:$0xff] }
 0x513   : > { %15213 = vmatprep.mubr.msk.bf16.mxu0 %vm928_vm3, %v24034_v5  ;;  %v14970_v24 = vpop.f32.mrf.mxu1 }
 0x514   : > { %v8117_v43 = vpop.f32.mrf.mxu0  ;;  %v20532_v0 = vadd.f32 %v15004_v12, %v14970_v24 }
 0x515   : > { %v7941_v56 = vpop.f32.mrf.mxu1 }
 0x516   : > { %v15008_v45 = vpop.f32.mrf.mxu0  ;;  %v20534_v44 = vadd.f32 %v8104_v30, %v7941_v56 }
 0x517   : > { %v14973_v54 = vpop.f32.mrf.mxu1  ;;  %15176 = vmatmul.mubr.msk.bf16.gmra.mxu1 %vm928_vm3, %v24087_v20 }
 0x518   : > { %v8120_v55 = vpop.f32.mrf.mxu0  ;;  %v20538_v31 = vadd.f32 %v15007_v32, %v14973_v54  ;;  %15179 = vmatprep.mubr.msk.bf16.mxu1 %vm928_vm3, %v24088_v60  ;;  %v24089_v54 = vld [vmem:[#allocation31_spill] sm:$0xff] }
 0x519   : > { %v7954_v46 = vpop.f32.mrf.mxu1 }
 0x51a   : > { %v15011_v5 = vpop.f32.mrf.mxu0  ;;  %15214 = vmatmul.mubr.msk.bf16.gmra.mxu0 %vm928_vm3, %v24037_v50  ;;  %v20544_v12 = vadd.f32 %v8117_v43, %v7954_v46  ;;  %v24090_v43 = vld [vmem:[#allocation35_spill] sm:$0xff] }
 0x51b   : > { %15217 = vmatprep.mubr.msk.bf16.mxu0 %vm928_vm3, %v24045_v28  ;;  %v14974_v49 = vpop.f32.mrf.mxu1 }
 0x51c   : > { %v8133_v30 = vpop.f32.mrf.mxu0  ;;  %v20548_v1 = vadd.f32 %v15008_v45, %v14974_v49 }
 0x51d   : > { %v7957_v61 = vpop.f32.mrf.mxu1 }
 0x51e   : > { %v15012_v32 = vpop.f32.mrf.mxu0  ;;  %v20550_v24 = vadd.f32 %v8120_v55, %v7957_v61 }
 0x51f   : > { %v14977_v56 = vpop.f32.mrf.mxu1  ;;  %15180 = vmatmul.mubr.msk.bf16.gmra.mxu1 %vm928_vm3, %v24089_v54  ;;  %v24091_v54 = vld [vmem:[#allocation36_spill] sm:$0xff] }
 0x520   : > { %v20554_v20 = vpop.f32.mrf.mxu0  ;;  %v20556_v50 = vadd.f32 %v15011_v5, %v14977_v56  ;;  %15183 = vmatprep.mubr.msk.bf16.mxu1 %vm928_vm3, %v24090_v43 }
 0x521   : > { %v7970_v28 = vpop.f32.mrf.mxu1 }
 0x522   : > { %v15015_v60 = vpop.f32.mrf.mxu0  ;;  %15218 = vmatmul.mubr.msk.bf16.gmra.mxu0 %vm928_vm3, %v24048_v40  ;;  %v20562_v45 = vadd.f32 %v8133_v30, %v7970_v28  ;;  %v24092_v40 = vld [vmem:[#allocation39_spill] sm:$0xff] }
 0x523   : > { %15221 = vmatprep.mubr.msk.bf16.mxu0 %vm928_vm3, %v24056_v42  ;;  %v14978_v55 = vpop.f32.mrf.mxu1 }
 0x524   : > { %v8149_v46 = vpop.f32.mrf.mxu0  ;;  %v20566_v49 = vadd.f32 %v15012_v32, %v14978_v55 }
 0x525   : > { %v20568_v61 = vpop.f32.mrf.mxu1 }
 0x526   : > { %v15016_v5 = vpop.f32.mrf.mxu0 }
 0x527   : > { %v14981_v56 = vpop.f32.mrf.mxu1  ;;  %15184 = vmatmul.mubr.msk.bf16.gmra.mxu1 %vm928_vm3, %v24091_v54 }
 0x528   : > { %v20572_v43 = vpop.f32.mrf.mxu0  ;;  %v20574_v3 = vadd.f32 %v15015_v60, %v14981_v56  ;;  %15187 = vmatprep.mubr.msk.bf16.mxu1 %vm928_vm3, %v24092_v40 }
 0x529   : > { %v7986_v30 = vpop.f32.mrf.mxu1 }
 0x52a   : > { %v15019_v42 = vpop.f32.mrf.mxu0  ;;  %15222 = vmatmul.mubr.msk.bf16.gmra.mxu0 %vm928_vm3, %v24059_v29  ;;  %v20580_v32 = vadd.f32 %v8149_v46, %v7986_v30  ;;  %v24094_v29 = vld [vmem:[#allocation54_spill] sm:$0xff]  ;;  %v24095_v30 = vld [vmem:[#allocation61_spill] sm:$0xff] }
 0x52b   : > { %15225 = vmatprep.mubr.msk.bf16.mxu0 %vm928_vm3, %v24067_v51  ;;  %v14982_v28 = vpop.f32.mrf.mxu1 }
 0x52c   : > { %v8165_v55 = vpop.f32.mrf.mxu0  ;;  %v20584_v54 = vadd.f32 %v15016_v5, %v14982_v28 }
 0x52d   : > { %v20586_v14 = vpop.f32.mrf.mxu1 }
 0x52e   : > { %v15020_v60 = vpop.f32.mrf.mxu0 }
 0x52f   : > { %v14985_v56 = vpop.f32.mrf.mxu1  ;;  %15188 = vmatmul.mubr.msk.bf16.gmra.mxu1 %vm928_vm3, %v24093_v37 }
 0x530   : > { %v20590_v40 = vpop.f32.mrf.mxu0  ;;  %v20592_v18 = vadd.f32 %v15019_v42, %v14985_v56  ;;  %15191 = vmatprep.mubr.msk.bf16.mxu1 %vm928_vm3, %v24094_v29  ;;  %v24096_v42 = vld [vmem:[#allocation60_spill] sm:$0xff] }
 0x531   : > { %v8002_v46 = vpop.f32.mrf.mxu1 }
 0x532   : > { %v15023_v51 = vpop.f32.mrf.mxu0  ;;  %15226 = vmatmul.mubr.msk.bf16.gmra.mxu0 %vm928_vm3, %v24095_v30  ;;  %v20598_v5 = vadd.f32 %v8165_v55, %v8002_v46 }
 0x533   : > { %v14986_v28 = vpop.f32.mrf.mxu1 }
 0x534   : > { %v8181_v59 = vpop.f32.mrf.mxu0  ;;  %v20600_v38 = vadd.f32 %v15020_v60, %v14986_v28 }
 0x535   : > { %v20602_v9 = vpop.f32.mrf.mxu1 }
 0x536   : > { %v15024_v37 = vpop.f32.mrf.mxu0 }
 0x537   : > { %v14989_v22 = vpop.f32.mrf.mxu1  ;;  %15192 = vmatmul.mubr.msk.bf16.gmra.mxu1 %vm928_vm3, %v24096_v42  ;;  %v24098_v42 = vld [vmem:[#allocation42_spill] sm:$0xff] }
 0x538   : > { %v20606_v56 = vpop.f32.mrf.mxu0  ;;  %v20608_v29 = vadd.f32 %v15023_v51, %v14989_v22  ;;  %15231 = vmatprep.mubr.msk.bf16.mxu1 %vm928_vm3, %v24097_v8  ;;  %v24100_v8 = vld [vmem:[#allocation14_spill] sm:$0xff] }
 0x539   : > { %v8018_v55 = vpop.f32.mrf.mxu1 }
 0x53a   : > { %v15063_v46 = vpop.f32.mrf.mxu0  ;;  %v20612_v30 = vadd.f32 %v8181_v59, %v8018_v55 }
 0x53b   : > { %v14990_v60 = vpop.f32.mrf.mxu1 }
 0x53c   : > { %v8440_v28 = vpop.f32.mrf.mxu0  ;;  %v20614_v23 = vadd.f32 %v15024_v37, %v14990_v60 }
 0x53d   : > { %v20616_v41 = vpop.f32.mrf.mxu1 }
 0x53e   : > { %v15064_v33 = vpop.f32.mrf.mxu0 }
 0x53f   : > { %v15029_v16 = vpop.f32.mrf.mxu1  ;;  %15232 = vmatmul.mubr.msk.bf16.vlgmr.msra.gmra.mxu1 %vm928_vm3, %v24098_v42 }
 0x540   : > { %v20620_v22 = vpop.f32.mrf.mxu0  ;;  %v8365_v51 = vadd.f32 %v15029_v16, %v20486_v25  ;;  %15235 = vmatprep.mubr.msk.bf16.mxu1 %vm928_vm3, %v24100_v8  ;;  %v24101_v8 = vld [vmem:[#allocation50_spill] sm:$0xff] }
 0x541   : > { %24099 = vst [vmem:[#allocation75_spill] sm:$0xff] %v20620_v22  ;;  %v8236_v59 = vpop.f32.mrf.mxu1 }
 0x542   : > { %v15067_v55 = vpop.f32.mrf.mxu0  ;;  %v8363_v48 = vadd.f32 %v8236_v59, %v20496_v15  ;;  %v20626_v37 = vadd.f32 %v15063_v46, %v8365_v51 }
 0x543   : > { %v15030_v60 = vpop.f32.mrf.mxu1 }
 0x544   : > { %v8456_v62 = vpop.f32.mrf.mxu0  ;;  %v8366_v10 = vadd.f32 %v15030_v60, %v20500_v34  ;;  %v20629_v63 = vadd.f32 %v8440_v28, %v8363_v48 }
 0x545   : > { %v8239_v42 = vpop.f32.mrf.mxu1 }
 0x546   : > { %v15068_v27 = vpop.f32.mrf.mxu0  ;;  %v20632_v22 = vadd.f32 %v8239_v42, %v20502_v17  ;;  %v20634_v16 = vadd.f32 %v15064_v33, %v8366_v10 }
 0x547   : > { %v15033_v25 = vpop.f32.mrf.mxu1  ;;  %15236 = vmatmul.mubr.msk.bf16.gmra.mxu1 %vm928_vm3, %v24101_v8 }
 0x548   : > { %v20638_v15 = vpop.f32.mrf.mxu0  ;;  %v8369_v46 = vadd.f32 %v15033_v25, %v20506_v19  ;;  %15239 = vmatprep.mubr.msk.bf16.mxu1 %vm928_vm3, %v23980_v35 }
 0x549   : > { %v8252_v48 = vpop.f32.mrf.mxu1 }
 0x54a   : > { %v15071_v34 = vpop.f32.mrf.mxu0  ;;  %v8367_v28 = vadd.f32 %v8252_v48, %v20512_v2  ;;  %v20644_v51 = vadd.f32 %v15067_v55, %v8369_v46 }
 0x54b   : > { %v15034_v17 = vpop.f32.mrf.mxu1 }
 0x54c   : > { %v8472_v10 = vpop.f32.mrf.mxu0  ;;  %v8370_v33 = vadd.f32 %v15034_v17, %v20516_v52  ;;  %v20647_v59 = vadd.f32 %v8456_v62, %v8367_v28 }
 0x54d   : > { %v8255_v60 = vpop.f32.mrf.mxu1 }
 0x54e   : > { %v15072_v42 = vpop.f32.mrf.mxu0  ;;  %v20650_v8 = vadd.f32 %v8255_v60, %v20518_v47  ;;  %v20652_v19 = vadd.f32 %v15068_v27, %v8370_v33 }
 0x54f   : > { %v15037_v35 = vpop.f32.mrf.mxu1  ;;  %15240 = vmatmul.mubr.msk.bf16.gmra.mxu1 %vm928_vm3, %v23981_v21 }
 0x550   : > { %v20656_v2 = vpop.f32.mrf.mxu0  ;;  %v8373_v55 = vadd.f32 %v15037_v35, %v20522_v6  ;;  %15243 = vmatprep.mubr.msk.bf16.mxu1 %vm928_vm3, %v23982_v4 }
 0x551   : > { %v8268_v62 = vpop.f32.mrf.mxu1 }
 0x552   : > { %v15075_v52 = vpop.f32.mrf.mxu0  ;;  %v8371_v25 = vadd.f32 %v8268_v62, %v20528_v11  ;;  %v20662_v46 = vadd.f32 %v15071_v34, %v8373_v55 }
 0x553   : > { %v15038_v47 = vpop.f32.mrf.mxu1 }
 0x554   : > { %v8488_v27 = vpop.f32.mrf.mxu0  ;;  %v8374_v48 = vadd.f32 %v15038_v47, %v20532_v0  ;;  %v20665_v28 = vadd.f32 %v8472_v10, %v8371_v25 }
 0x555   : > { %v8271_v21 = vpop.f32.mrf.mxu1 }
 0x556   : > { %v15076_v17 = vpop.f32.mrf.mxu0  ;;  %v20668_v33 = vadd.f32 %v8271_v21, %v20534_v44  ;;  %v20670_v6 = vadd.f32 %v15072_v42, %v8374_v48  ;;  %v20685_v44 = vld [vmem:[%s23022_s14] sm:$0xff] }
 0x557   : > { %v15041_v4 = vpop.f32.mrf.mxu1  ;;  %15244 = vmatmul.mubr.msk.bf16.gmra.mxu1 %vm928_vm3, %v23984_v57  ;;  %v20689_v55 = vpack.c.bf16 %v20685_v44, %v20685_v44 }
 0x558   : > { %v20674_v11 = vpop.f32.mrf.mxu0  ;;  %v8377_v34 = vadd.f32 %v15041_v4, %v20538_v31  ;;  %15247 = vmatprep.mubr.msk.bf16.mxu1 %vm928_vm3, %v23985_v26 }
 0x559   : > { %24102 = vst [vmem:[#allocation92_spill] sm:$0xff] %v20674_v11  ;;  %v8284_v0 = vpop.f32.mrf.mxu1  ;;  %v24104_v11 = vld [vmem:[#allocation5_spill] sm:$0xff] }
 0x55a   : > { %v15079_v10 = vpop.f32.mrf.mxu0  ;;  %v8375_v60 = vadd.f32 %v8284_v0, %v20544_v12  ;;  %v20680_v35 = vadd.f32 %v15075_v52, %v8377_v34  ;;  %v10109_v12 = vshrl.u32 %v20689_v55, 16  ;;  %v10112_v52 = vshll.u32 %v20689_v55, 16 }
 0x55b   : > { %v15042_v42 = vpop.f32.mrf.mxu1 }
 0x55c   : > { %v8504_v57 = vpop.f32.mrf.mxu0  ;;  %v8378_v31 = vadd.f32 %v15042_v42, %v20548_v1  ;;  %v20692_v26 = vadd.f32 %v8488_v27, %v8375_v60  ;;  %v10111_v1 = vrot.slane %v10109_v12, 1  ;;  %v10114_v27 = vrot.slane %v10112_v52, 2 }
 0x55d   : > { %v8287_v62 = vpop.f32.mrf.mxu1 }
 0x55e   : > { %v15080_v25 = vpop.f32.mrf.mxu0  ;;  %v20697_v47 = vadd.f32 %v8287_v62, %v20550_v24  ;;  %v20699_v48 = vadd.f32 %v15076_v17, %v8378_v31  ;;  %v10115_v42 = vor.u32 %v10114_v27, %v10111_v1 }
 0x55f   : > { %v15045_v21 = vpop.f32.mrf.mxu1  ;;  %15248 = vmatmul.mubr.msk.bf16.gmra.mxu1 %vm928_vm3, %v23988_v39 }
 0x560   : > { %v20703_v4 = vpop.f32.mrf.mxu0  ;;  %v8381_v34 = vadd.f32 %v15045_v21, %v20556_v50  ;;  %15251 = vmatprep.mubr.msk.bf16.mxu1 %vm928_vm3, %v23990_v36  ;;  %v10165_v39 = vand.u32 %v10115_v42, %v24104_v11 }
 0x561   : > { %24103 = vst [vmem:[#allocation109_spill] sm:$0xff] %v20703_v4  ;;  %v8300_v0 = vpop.f32.mrf.mxu1 }
 0x562   : > { %v15083_v60 = vpop.f32.mrf.mxu0  ;;  %v8379_v24 = vadd.f32 %v8300_v0, %v20562_v45  ;;  %v20709_v17 = vadd.f32 %v15079_v10, %v8381_v34  ;;  %15263 = vmatprep.subr.bf16.mxu0 %v10165_v39 }
 0x563   : > { %v15046_v31 = vpop.f32.mrf.mxu1  ;;  %15264 = vmatpush3.bf16.msra.mxu0 %v10165_v39 }
 0x564   : > { %v8520_v62 = vpop.f32.mrf.mxu0  ;;  %v8382_v4 = vadd.f32 %v15046_v31, %v20566_v49  ;;  %v20713_v12 = vadd.f32 %v8504_v57, %v8379_v24 }
 0x565   : > { %v20715_v52 = vpop.f32.mrf.mxu1 }
 0x566   : > { %v15084_v50 = vpop.f32.mrf.mxu0  ;;  %v20717_v36 = vadd.f32 %v15080_v25, %v8382_v4 }
 0x567   : > { %v15049_v21 = vpop.f32.mrf.mxu1  ;;  %15252 = vmatmul.mubr.msk.bf16.gmra.mxu1 %vm928_vm3, %v23992_v58 }
 0x568   : > { %v20721_v45 = vpop.f32.mrf.mxu0  ;;  %v8385_v10 = vadd.f32 %v15049_v21, %v20574_v3  ;;  %15255 = vmatprep.mubr.msk.bf16.mxu1 %vm928_vm3, %v23994_v53 }
 0x569   : > { %v8316_v49 = vpop.f32.mrf.mxu1 }
 0x56a   : > { %v15087_v57 = vpop.f32.mrf.mxu0  ;;  %v8383_v1 = vadd.f32 %v8316_v49, %v20580_v32  ;;  %v20727_v27 = vadd.f32 %v15083_v60, %v8385_v10 }
 0x56b   : > { %v15050_v25 = vpop.f32.mrf.mxu1 }
 0x56c   : > { %v8536_v4 = vpop.f32.mrf.mxu0  ;;  %v8386_v34 = vadd.f32 %v15050_v25, %v20584_v54  ;;  %v20730_v0 = vadd.f32 %v8520_v62, %v8383_v1  ;;  %v24105_v25 = vld [vmem:[#allocation62_spill] sm:$0xff] }
 0x56d   : > { %v20732_v58 = vpop.f32.mrf.mxu1 }
 0x56e   : > { %v15088_v42 = vpop.f32.mrf.mxu0  ;;  %v20734_v24 = vadd.f32 %v15084_v50, %v8386_v34 }
 0x56f   : > { %v15053_v3 = vpop.f32.mrf.mxu1  ;;  %15256 = vmatmul.mubr.msk.bf16.gmra.mxu1 %vm928_vm3, %v23996_v13 }
 0x570   : > { %v20738_v53 = vpop.f32.mrf.mxu0  ;;  %v8389_v32 = vadd.f32 %v15053_v3, %v20592_v18  ;;  %15259 = vmatprep.mubr.msk.bf16.mxu1 %vm928_vm3, %v24060_v7 }
 0x571   : > { %v8332_v60 = vpop.f32.mrf.mxu1 }
 0x572   : > { %v15091_v54 = vpop.f32.mrf.mxu0  ;;  %v8387_v31 = vadd.f32 %v8332_v60, %v20598_v5  ;;  %v20744_v62 = vadd.f32 %v15087_v57, %v8389_v32 }
 0x573   : > { %v15054_v39 = vpop.f32.mrf.mxu1 }
 0x574   : > { %v8552_v50 = vpop.f32.mrf.mxu0  ;;  %v8390_v21 = vadd.f32 %v15054_v39, %v20600_v38  ;;  %v20747_v10 = vadd.f32 %v8536_v4, %v8387_v31 }
 0x575   : > { %v20749_v13 = vpop.f32.mrf.mxu1 }
 0x576   : > { %v15092_v49 = vpop.f32.mrf.mxu0  ;;  %v20751_v1 = vadd.f32 %v15088_v42, %v8390_v21 }
 0x577   : > { %v15057_v18 = vpop.f32.mrf.mxu1  ;;  %15260 = vmatmul.mubr.msk.bf16.gmra.mxu1 %vm928_vm3, %v24105_v25 }
 0x578   : > { %v20755_v7 = vpop.f32.mrf.mxu0  ;;  %v8393_v5 = vadd.f32 %v15057_v18, %v20608_v29 }
 0x579   : > { %v8348_v57 = vpop.f32.mrf.mxu1 }
 0x57a   : > { %v20758_v34 = vpop.f32.mrf.mxu0  ;;  %v8391_v38 = vadd.f32 %v8348_v57, %v20612_v30  ;;  %v20761_v4 = vadd.f32 %v15091_v54, %v8393_v5 }
 0x57b   : > { %v15058_v3 = vpop.f32.mrf.mxu1 }
 0x57c   : > { %v20763_v32 = vpop.f32.mrf.mxu0  ;;  %v8394_v42 = vadd.f32 %v15058_v3, %v20614_v23  ;;  %v20766_v60 = vadd.f32 %v8552_v50, %v8391_v38 }
 0x57d   : > { %v20768_v31 = vpop.f32.mrf.mxu1 }
 0x57e   : > { %v20770_v39 = vpop.f32.mrf.mxu0  ;;  %v20772_v21 = vadd.f32 %v15092_v49, %v8394_v42 }
 0x57f   : > { %v15097_v29 = vpop.f32.mrf.mxu1 }
 0x580   : > { %v20774_v18 = vpop.f32.mrf.mxu0  ;;  %v20777_v30 = vadd.f32 %v15097_v29, %v20626_v37 }
 0x581   : > { %v8638_v54 = vpop.f32.mrf.mxu1 }
 0x582   : > { %v20779_v25 = vpop.f32.mrf.mxu0  ;;  %v20782_v5 = vadd.f32 %v8638_v54, %v20629_v63 }
 0x583   : > { %24106 = vst [vmem:[#allocation76_spill] sm:$0xff] %v20779_v25  ;;  %v15098_v23 = vpop.f32.mrf.mxu1 }
 0x584   : > { %v20784_v50 = vpop.f32.mrf.mxu0  ;;  %v20787_v57 = vadd.f32 %v15098_v23, %v20634_v16  ;;  %v24114_v23 = vmov 0.0  }
 0x585   : > { %24107 = vst [vmem:[#allocation89_spill] sm:$0xff] %v20784_v50  ;;  %v20789_v49 = vpop.f32.mrf.mxu1  ;;  %9778 = vst.msk [vmem:[#allocation4 + $0x40] sm:$0x3] %vm9771_vm10, %v24114_v23 }
 0x586   : > { %v20791_v38 = vpop.f32.mrf.mxu0  ;;  %9772 = vst.msk [vmem:[#allocation4 + $0x10] sm:$0x3] %vm9771_vm10, %v24114_v23  ;;  %9775 = vst.msk [vmem:[#allocation4 + $0x28] sm:$0x3] %vm9771_vm10, %v24114_v23 }
 0x587   : > { %24108 = vst [vmem:[#allocation95_spill] sm:$0xff] %v20791_v38  ;;  %v15101_v3 = vpop.f32.mrf.mxu1  ;;  %9781 = vst.msk [vmem:[#allocation4 + $0x58] sm:$0x3] %vm9771_vm10, %v24114_v23 }
 0x588   : > { %v20793_v42 = vpop.f32.mrf.mxu0  ;;  %v20796_v37 = vadd.f32 %v15101_v3, %v20644_v51  ;;  %9784 = vst.msk [vmem:[#allocation4 + $0x70] sm:$0x3] %vm9771_vm10, %v24114_v23  ;;  %9787 = vst.msk [vmem:[#allocation4 + $0x88] sm:$0x3] %vm9771_vm10, %v24114_v23 }
 0x589   : > { %24109 = vst [vmem:[#allocation24_spill] sm:$0xff] %v20793_v42  ;;  %v8654_v29 = vpop.f32.mrf.mxu1  ;;  %9790 = vst.msk [vmem:[#allocation4 + $0xa0] sm:$0x3] %vm9771_vm10, %v24114_v23 }
 0x58a   : > { %v20798_v25 = vpop.f32.mrf.mxu0  ;;  %v20801_v63 = vadd.f32 %v8654_v29, %v20647_v59  ;;  %9793 = vst.msk [vmem:[#allocation4 + $0xb8] sm:$0x3] %vm9771_vm10, %v24114_v23  ;;  %9796 = vst.msk [vmem:[#allocation4 + $0xd0] sm:$0x3] %vm9771_vm10, %v24114_v23 }
 0x58b   : > { %24110 = vst [vmem:[#allocation82_spill] sm:$0xff] %v20798_v25  ;;  %v15102_v54 = vpop.f32.mrf.mxu1  ;;  %9799 = vst.msk [vmem:[#allocation4 + $0xe8] sm:$0x3] %vm9771_vm10, %v24114_v23 }
 0x58c   : > { %24111 = vst [vmem:[#allocation56_spill] sm:$0xff] %v20801_v63  ;;  %v20803_v50 = vpop.f32.mrf.mxu0  ;;  %v20806_v16 = vadd.f32 %v15102_v54, %v20652_v19  ;;  %9802 = vst.msk [vmem:[#allocation4 + $0x100] sm:$0x3] %vm9771_vm10, %v24114_v23 }
 0x58d   : > { %24112 = vst [vmem:[#allocation78_spill] sm:$0xff] %v20803_v50  ;;  %9805 = vst.msk [vmem:[#allocation4 + $0x118] sm:$0x3] %vm9771_vm10, %v24114_v23  ;;  %v20844_v51 = vpop.f32.mrf.mxu1 }
 0x58e   : > { %24113 = vst [vmem:[#allocation6_spill] sm:$0xff] %v20806_v16  ;;  %9808 = vst.msk [vmem:[#allocation4 + $0x130] sm:$0x3] %vm9771_vm10, %v24114_v23  ;;  %v20846_v59 = vpop.f32.mrf.mxu0 }
 0x58f   : > { %9811 = vst.msk [vmem:[#allocation4 + $0x148] sm:$0x3] %vm9771_vm10, %v24114_v23  ;;  %9814 = vst.msk [vmem:[#allocation4 + $0x160] sm:$0x3] %vm9771_vm10, %v24114_v23  ;;  %v15105_v19 = vpop.f32.mrf.mxu1 }
 0x590   : > { %9817 = vst.msk [vmem:[#allocation4 + $0x178] sm:$0x3] %vm9771_vm10, %v24114_v23  ;;  %9820 = vst.msk [vmem:[#allocation4 + $0x190] sm:$0x3] %vm9771_vm10, %v24114_v23  ;;  %v20848_v3 = vpop.f32.mrf.mxu0  ;;  %v20851_v29 = vadd.f32 %v15105_v19, %v20662_v46 }
 0x591   : > { %9823 = vst.msk [vmem:[#allocation4 + $0x1a8] sm:$0x3] %vm9771_vm10, %v24114_v23  ;;  %24115 = vst [vmem:[#allocation27_spill] sm:$0xff] %v20846_v59  ;;  %v8670_v54 = vpop.f32.mrf.mxu1 }
 0x592   : > { %24116 = vst [vmem:[#allocation68_spill] sm:$0xff] %v20848_v3  ;;  %24117 = vst [vmem:[#allocation128_spill] sm:$0xff] %v20851_v29  ;;  %v20853_v50 = vpop.f32.mrf.mxu0  ;;  %v20856_v25 = vadd.f32 %v8670_v54, %v20665_v28  ;;  %v10376_v28 = vand.u32 %v20689_v55, %v24104_v11 }
 0x593   : > { %24118 = vst [vmem:[#allocation134_spill] sm:$0xff] %v20853_v50  ;;  %v15106_v42 = vpop.f32.mrf.mxu1 }
 0x594   : > { %24119 = vst [vmem:[#allocation88_spill] sm:$0xff] %v20856_v25  ;;  %v20858_v38 = vpop.f32.mrf.mxu0  ;;  %v20861_v23 = vadd.f32 %v15106_v42, %v20670_v6  ;;  %15297 = vmatprep.subr.bf16.mxu1 %v10376_v28 }
 0x595   : > { %24120 = vst [vmem:[#allocation33_spill] sm:$0xff] %v20858_v38  ;;  %v20863_v16 = vpop.f32.mrf.mxu1  ;;  %15298 = vmatpush3.bf16.msra.mxu1 %v10376_v28 }
 0x596   : > { %24121 = vst [vmem:[#allocation38_spill] sm:$0xff] %v20861_v23  ;;  %v20865_v59 = vpop.f32.mrf.mxu0 }
 0x597   : > { %24122 = vst [vmem:[#allocation51_spill] sm:$0xff] %v20865_v59  ;;  %v15109_v3 = vpop.f32.mrf.mxu1 }
 0x598   : > { %v20867_v63 = vpop.f32.mrf.mxu0  ;;  %v20870_v46 = vadd.f32 %v15109_v3, %v20680_v35  ;;  %v20888_v3 = vld [vmem:[#allocation4] sm:$0xff] }
 0x599   : > { %24123 = vst [vmem:[#allocation20_spill] sm:$0xff] %v20867_v63  ;;  %v8686_v19 = vpop.f32.mrf.mxu1 }
 0x59a   : > { %24124 = vst [vmem:[#allocation52_spill] sm:$0xff] %v20870_v46  ;;  %v20872_v50 = vpop.f32.mrf.mxu0  ;;  %v20877_v54 = vadd.f32 %v8686_v19, %v20692_v26  ;;  %v9980_v26 = vrot.slane %v20888_v3, 1 }
 0x59b   : > { %24125 = vst [vmem:[#allocation126_spill] sm:$0xff] %v20872_v50  ;;  %v15110_v6 = vpop.f32.mrf.mxu1  ;;  %v20890_v50 = vld [vmem:[#allocation4 + $0x8] sm:$0xff] }
 0x59c   : > { %24126 = vst [vmem:[#allocation53_spill] sm:$0xff] %v20877_v54  ;;  %v20879_v42 = vpop.f32.mrf.mxu0  ;;  %v20882_v59 = vadd.f32 %v15110_v6, %v20699_v48  ;;  %v9915_v55 = vpack.c.bf16 %v20890_v50, %v20888_v3  ;;  %v9981_v48 = vrot.slane %v20890_v50, 1  ;;  %v20898_v6 = vld [vmem:[#allocation4 + $0x10] sm:$0x3] }
 0x59d   : > { %24127 = vst [vmem:[#allocation44_spill] sm:$0xff] %v20879_v42  ;;  %v20884_v63 = vpop.f32.mrf.mxu1 }
 0x59e   : > { %24128 = vst [vmem:[#allocation133_spill] sm:$0xff] %v20882_v59  ;;  %v20886_v35 = vpop.f32.mrf.mxu0  ;;  %15299 = vmatprep.mubr.msk.bf16.mxu1 %vm928_vm3, %v9915_v55  ;;  %v9982_v54 = vsel %vm791_vm2, %v9980_v26, %v9981_v48 }
 0x59f   : > { %24129 = vst [vmem:[#allocation45_spill] sm:$0xff] %v20886_v35  ;;  %v15113_v19 = vpop.f32.mrf.mxu1  ;;  %v9983_v35 = vrot.slane %v20898_v6, 1 }
 0x5a0   : > { %v20895_v42 = vpop.f32.mrf.mxu0  ;;  %v20901_v28 = vadd.f32 %v15113_v19, %v20709_v17 }
 0x5a1   : > { %24130 = vst [vmem:[#allocation46_spill] sm:$0xff] %v20895_v42  ;;  %v8702_v59 = vpop.f32.mrf.mxu1  ;;  %v20911_v42 = vld [vmem:[%s23022_s14 + $0x8] sm:$0xff]  ;;  %v9984_v17 = vsel %vm791_vm2, %v9981_v48, %v9983_v35 }
 0x5a2   : > { %24131 = vst [vmem:[#allocation47_spill] sm:$0xff] %v20901_v28  ;;  %v20905_v38 = vpop.f32.mrf.mxu0  ;;  %v20914_v46 = vadd.f32 %v8702_v59, %v20713_v12  ;;  %v10667_v55 = vpack.c.bf16 %v20911_v42, %v20685_v44  ;;  %v10092_v23 = vpack.c.bf16 %v9984_v17, %v9982_v54 }
 0x5a3   : > { %24132 = vst [vmem:[#allocation12_spill] sm:$0xff] %v20905_v38  ;;  %v15114_v19 = vpop.f32.mrf.mxu1 }
 0x5a4   : > { %v20919_v28 = vpop.f32.mrf.mxu0  ;;  %v20922_v38 = vadd.f32 %v15114_v19, %v20717_v36  ;;  %v10669_v26 = vrot.slane %v10667_v55, 3  ;;  %15265 = vmatprep.mubr.msk.bf16.mxu0 %vm928_vm3, %v10092_v23 }
 0x5a5   : > { %v20924_v25 = vpop.f32.mrf.mxu1 }
 0x5a6   : > { %v20926_v29 = vpop.f32.mrf.mxu0  ;;  %v20930_v12 = vand.u32 %v10669_v26, %v24104_v11 }
 0x5a7   : > { %24133 = vst [vmem:[#allocation48_spill] sm:$0xff] %v20926_v29  ;;  %v15117_v59 = vpop.f32.mrf.mxu1 }
 0x5a8   : > { %24134 = vst [vmem:[#allocation8_spill] sm:$0xff] %v20930_v12  ;;  %v20932_v35 = vpop.f32.mrf.mxu0  ;;  %v20935_v44 = vadd.f32 %v15117_v59, %v20727_v27  ;;  %15331 = vmatprep.subr.bf16.mxu0 %v20930_v12 }
 0x5a9   : > { %24135 = vst [vmem:[#allocation10_spill] sm:$0xff] %v20932_v35  ;;  %v8718_v36 = vpop.f32.mrf.mxu1 }
 0x5aa   : > { %v20938_v54 = vpop.f32.mrf.mxu0  ;;  %v20941_v48 = vadd.f32 %v8718_v36, %v20730_v0 }
 0x5ab   : > { %24136 = vst [vmem:[#allocation13_spill] sm:$0xff] %v20938_v54  ;;  %v15118_v17 = vpop.f32.mrf.mxu1 }
 0x5ac   : > { %v20943_v55 = vpop.f32.mrf.mxu0  ;;  %v20946_v23 = vadd.f32 %v15118_v17, %v20734_v24 }
 0x5ad   : > { %24137 = vst [vmem:[#allocation97_spill] sm:$0xff] %v20943_v55  ;;  %v20948_v19 = vpop.f32.mrf.mxu1 }
 0x5ae   : > { %v20950_v26 = vpop.f32.mrf.mxu0 }
 0x5af   : > { %24138 = vst [vmem:[#allocation67_spill] sm:$0xff] %v20950_v26  ;;  %v15121_v27 = vpop.f32.mrf.mxu1 }
 0x5b0   : > { %v20952_v59 = vpop.f32.mrf.mxu0  ;;  %v20955_v12 = vadd.f32 %v15121_v27, %v20744_v62 }
 0x5b1   : > { %24139 = vst [vmem:[#allocation16_spill] sm:$0xff] %v20952_v59  ;;  %v8734_v54 = vpop.f32.mrf.mxu1 }
 0x5b2   : > { %v20957_v35 = vpop.f32.mrf.mxu0  ;;  %v20960_v0 = vadd.f32 %v8734_v54, %v20747_v10 }
 0x5b3   : > { %24140 = vst [vmem:[#allocation96_spill] sm:$0xff] %v20957_v35  ;;  %v15122_v36 = vpop.f32.mrf.mxu1 }
 0x5b4   : > { %v20962_v55 = vpop.f32.mrf.mxu0  ;;  %v20965_v24 = vadd.f32 %v15122_v36, %v20751_v1 }
 0x5b5   : > { %24141 = vst [vmem:[#allocation21_spill] sm:$0xff] %v20962_v55  ;;  %v20967_v17 = vpop.f32.mrf.mxu1 }
 0x5b6   : > { %v20969_v26 = vpop.f32.mrf.mxu0 }
 0x5b7   : > { %24142 = vst [vmem:[#allocation59_spill] sm:$0xff] %v20969_v26  ;;  %v15125_v59 = vpop.f32.mrf.mxu1 }
 0x5b8   : > { %v20971_v29 = vpop.f32.mrf.mxu0  ;;  %v20974_v62 = vadd.f32 %v15125_v59, %v20761_v4 }
 0x5b9   : > { %24143 = vst [vmem:[#allocation80_spill] sm:$0xff] %v20971_v29  ;;  %v8750_v27 = vpop.f32.mrf.mxu1 }
 0x5ba   : > { %v20976_v35 = vpop.f32.mrf.mxu0  ;;  %v20979_v10 = vadd.f32 %v8750_v27, %v20766_v60 }
 0x5bb   : > { %24144 = vst [vmem:[#allocation85_spill] sm:$0xff] %v20976_v35  ;;  %v15126_v54 = vpop.f32.mrf.mxu1 }
 0x5bc   : > { %24145 = vst [vmem:[#allocation23_spill] sm:$0xff] %v20979_v10  ;;  %v20981_v55 = vpop.f32.mrf.mxu0  ;;  %v20984_v1 = vadd.f32 %v15126_v54, %v20772_v21 }
 0x5bd   : > { %24146 = vst [vmem:[#allocation71_spill] sm:$0xff] %v20981_v55  ;;  %v20986_v36 = vpop.f32.mrf.mxu1 }
 0x5be   : > { %24147 = vst [vmem:[#allocation25_spill] sm:$0xff] %v20984_v1  ;;  %v20988_v26 = vpop.f32.mrf.mxu0 }
 0x5bf   : > { %24148 = vst [vmem:[#allocation66_spill] sm:$0xff] %v20988_v26  ;;  %v20990_v29 = vpop.f32.mrf.mxu1 }
 0x5c0   : > { %24149 = vst [vmem:[#allocation102_spill] sm:$0xff] %v20990_v29  ;;  %v20992_v4 = vpop.f32.mrf.mxu0 }
 0x5c1   : > { %24150 = vst [vmem:[#allocation91_spill] sm:$0xff] %v20992_v4  ;;  %v20994_v59 = vpop.f32.mrf.mxu1 }
 0x5c2   : > { %24151 = vst [vmem:[#allocation26_spill] sm:$0xff] %v20994_v59  ;;  %v20996_v35 = vpop.f32.mrf.mxu0 }
 0x5c3   : > { %24152 = vst [vmem:[#allocation125_spill] sm:$0xff] %v20996_v35  ;;  %v20998_v60 = vpop.f32.mrf.mxu1 }
 0x5c4   : > { %24153 = vst [vmem:[#allocation29_spill] sm:$0xff] %v20998_v60  ;;  %v21000_v27 = vpop.f32.mrf.mxu0 }
 0x5c5   : > { %24154 = vst [vmem:[#allocation98_spill] sm:$0xff] %v21000_v27  ;;  %v21002_v55 = vpop.f32.mrf.mxu1 }
 0x5c6   : > { %24155 = vst [vmem:[#allocation127_spill] sm:$0xff] %v21002_v55  ;;  %v21004_v21 = vpop.f32.mrf.mxu0 }
 0x5c7   : > { %24156 = vst [vmem:[#allocation101_spill] sm:$0xff] %v21004_v21  ;;  %v21006_v54 = vpop.f32.mrf.mxu1 }
 0x5c8   : > { %24157 = vst [vmem:[#allocation7_spill] sm:$0xff] %v21006_v54  ;;  %v21008_v1 = vpop.f32.mrf.mxu0 }
 0x5c9   : > { %24158 = vst [vmem:[#allocation108_spill] sm:$0xff] %v21008_v1  ;;  %v21010_v26 = vpop.f32.mrf.mxu1 }
 0x5ca   : > { %24159 = vst [vmem:[#allocation9_spill] sm:$0xff] %v21010_v26  ;;  %v21012_v10 = vpop.f32.mrf.mxu0 }
 0x5cb   : > { %24160 = vst [vmem:[#allocation105_spill] sm:$0xff] %v21012_v10  ;;  %v21014_v4 = vpop.f32.mrf.mxu1  ;;  %v21036_v10 = vpack.c.bf16 %v20911_v42, %v20911_v42  ;;  %v10542_v42 = vrot.slane %v20898_v6, 2 }
 0x5cc   : > { %24161 = vst [vmem:[#allocation104_spill] sm:$0xff] %v21014_v4  ;;  %v21016_v59 = vpop.f32.mrf.mxu0 }
 0x5cd   : > { %24162 = vst [vmem:[#allocation72_spill] sm:$0xff] %v21016_v59  ;;  %v21018_v35 = vpop.f32.mrf.mxu1  ;;  %24171 = vst [vmem:[#allocation17_spill] sm:$0xff] %v21036_v10  ;;  %v10539_v59 = vrot.slane %v20888_v3, 2 }
 0x5ce   : > { %24163 = vst [vmem:[#allocation90_spill] sm:$0xff] %v21018_v35  ;;  %v21020_v60 = vpop.f32.mrf.mxu0 }
 0x5cf   : > { %24164 = vst [vmem:[#allocation11_spill] sm:$0xff] %v21020_v60  ;;  %v21022_v27 = vpop.f32.mrf.mxu1  ;;  %v10540_v60 = vrot.slane %v20890_v50, 2 }
 0x5d0   : > { %24165 = vst [vmem:[#allocation106_spill] sm:$0xff] %v21022_v27  ;;  %v21024_v55 = vpop.f32.mrf.mxu0 }
 0x5d1   : > { %24166 = vst [vmem:[#allocation15_spill] sm:$0xff] %v21024_v55  ;;  %v21026_v21 = vpop.f32.mrf.mxu1 }
 0x5d2   : > { %24167 = vst [vmem:[#allocation73_spill] sm:$0xff] %v21026_v21  ;;  %v21028_v54 = vpop.f32.mrf.mxu0 }
 0x5d3   : > { %24168 = vst [vmem:[#allocation135_spill] sm:$0xff] %v21028_v54  ;;  %v21030_v1 = vpop.f32.mrf.mxu1  ;;  %v10917_v54 = vshrl.u32 %v21036_v10, 16 }
 0x5d4   : > { %24169 = vst [vmem:[#allocation107_spill] sm:$0xff] %v21030_v1  ;;  %v21032_v26 = vpop.f32.mrf.mxu0  ;;  %v21051_v1 = vsel %vm1356_vm4, %v10539_v59, %v10540_v60 }
 0x5d5   : > { %24170 = vst [vmem:[#allocation94_spill] sm:$0xff] %v21032_v26  ;;  %v21040_v35 = vpop.f32.mrf.mxu1  ;;  %v10919_v26 = vshll.u32 %v21036_v10, 16  ;;  %24176 = vst [vmem:[#allocation77_spill] sm:$0xff] %v21051_v1 }
 0x5d6   : > { %24172 = vst [vmem:[#allocation112_spill] sm:$0xff] %v21040_v35  ;;  %v21042_v27 = vpop.f32.mrf.mxu0 }
 0x5d7   : > { %24173 = vst [vmem:[#allocation22_spill] sm:$0xff] %v21042_v27  ;;  %v21044_v55 = vpop.f32.mrf.mxu1  ;;  %v10921_v35 = vrot.slane %v10919_v26, 1  ;;  %v21059_v27 = vsel %vm1356_vm4, %v10540_v60, %v10542_v42 }
 0x5d8   : > { %24174 = vst [vmem:[#allocation57_spill] sm:$0xff] %v21044_v55  ;;  %v21046_v21 = vpop.f32.mrf.mxu0  ;;  %24178 = vst [vmem:[#allocation55_spill] sm:$0xff] %v21059_v27  ;;  %v8153_v27 = vadd.f32 %v20572_v43, %v20586_v14 }
 0x5d9   : > { %24175 = vst [vmem:[#allocation111_spill] sm:$0xff] %v21046_v21  ;;  %v21054_v3 = vpop.f32.mrf.mxu1  ;;  %v10922_v4 = vor.u32 %v10921_v35, %v10917_v54 }
 0x5da   : > { %v21056_v50 = vpop.f32.mrf.mxu0 }
 0x5db   : > { %24177 = vst [vmem:[#allocation122_spill] sm:$0xff] %v21056_v50  ;;  %v21061_v55 = vpop.f32.mrf.mxu1  ;;  %v21072_v6 = vand.u32 %v10922_v4, %v24104_v11  ;;  %v8137_v4 = vadd.f32 %v20554_v20, %v20568_v61  ;;  %v8384_v20 = vadd.f32 %v20732_v58, %v8153_v27  ;;  %v24187_v58 = vld [vmem:[#allocation109_spill] sm:$0xff] }
 0x5dc   : > { %v21063_v21 = vpop.f32.mrf.mxu0 }
 0x5dd   : > { %24179 = vst [vmem:[#allocation58_spill] sm:$0xff] %v21063_v21  ;;  %v21067_v59 = vpop.f32.mrf.mxu1  ;;  %24181 = vst [vmem:[#allocation131_spill] sm:$0xff] %v21072_v6  ;;  %15365 = vmatprep.subr.bf16.mxu1 %v21072_v6  ;;  %v8169_v6 = vadd.f32 %v20590_v40, %v20602_v9  ;;  %v8572_v9 = vadd.f32 %v20638_v15, %v20650_v8  ;;  %v8588_v27 = vadd.f32 %v20721_v45, %v8384_v20 }
 0x5de   : > { %v21069_v29 = vpop.f32.mrf.mxu0 }
 0x5df   : > { %24180 = vst [vmem:[#allocation28_spill] sm:$0xff] %v21069_v29  ;;  %v21074_v50 = vpop.f32.mrf.mxu1  ;;  %v8380_v29 = vadd.f32 %v20715_v52, %v8137_v4  ;;  %v8388_v61 = vadd.f32 %v20749_v13, %v8169_v6  ;;  %v8770_v13 = vadd.f32 %v20844_v51, %v8572_v9 }
 0x5e0   : > { %v21076_v26 = vpop.f32.mrf.mxu0 }
 0x5e1   : > { %24182 = vst [vmem:[#allocation87_spill] sm:$0xff] %v21076_v26  ;;  %v21079_v60 = vpop.f32.mrf.mxu1  ;;  %v8592_v15 = vadd.f32 %v20738_v53, %v8388_v61  ;;  %v24188_v53 = vld [vmem:[#allocation76_spill] sm:$0xff] }
 0x5e2   : > { %v21081_v42 = vpop.f32.mrf.mxu0  ;;  %v24196_v61 = vld [vmem:[#allocation88_spill] sm:$0xff] }
 0x5e3   : > { %24183 = vst [vmem:[#allocation86_spill] sm:$0xff] %v21081_v42  ;;  %v21083_v35 = vpop.f32.mrf.mxu1  ;;  %v8185_v42 = vadd.f32 %v20606_v56, %v20616_v41  ;;  %v8576_v41 = vadd.f32 %v20656_v2, %v20668_v33 }
 0x5e4   : > { %v21087_v10 = vpop.f32.mrf.mxu0 }
 0x5e5   : > { %v21085_v54 = vpop.f32.mrf.mxu1  ;;  %24184 = vst [vmem:[#allocation32_spill] sm:$0xff] %v21087_v10  ;;  %v24185_v10 = vld [vmem:[#allocation75_spill] sm:$0xff]  ;;  %v8392_v14 = vadd.f32 %v20768_v31, %v8185_v42  ;;  %v8774_v2 = vadd.f32 %v20863_v16, %v8576_v41  ;;  %v24190_v16 = vld [vmem:[#allocation89_spill] sm:$0xff] }
 0x5e6   : > { %v21102_v21 = vpop.f32.mrf.mxu0  ;;  %v8568_v11 = vadd.f32 %v24185_v10, %v20632_v22  ;;  %v24186_v22 = vld [vmem:[#allocation92_spill] sm:$0xff]  ;;  %v8584_v10 = vadd.f32 %v24187_v58, %v8380_v29  ;;  %v24200_v41 = vld [vmem:[#allocation27_spill] sm:$0xff]  ;;  %v24203_v58 = vld [vmem:[#allocation134_spill] sm:$0xff] }
 0x5e7   : > { %v21089_v1 = vpop.f32.mrf.mxu1  ;;  %v8580_v52 = vadd.f32 %v24186_v22, %v20697_v47  ;;  %v8596_v8 = vadd.f32 %v20755_v7, %v8392_v14  ;;  %v8970_v47 = vadd.f32 %v20763_v32, %v20782_v5  ;;  %v8976_v7 = vadd.f32 %v24188_v53, %v20796_v37  ;;  %v24189_v29 = vld [vmem:[#allocation56_spill] sm:$0xff]  ;;  %v24199_v37 = vld [vmem:[#allocation38_spill] sm:$0xff] }
 0x5e8   : > { %v8766_v40 = vadd.f32 %v20789_v49, %v8568_v11  ;;  %v21122_v31 = vpop.f32.mrf.mxu0  ;;  %v8972_v11 = vadd.f32 %v20758_v34, %v20777_v30  ;;  %v8973_v49 = vadd.f32 %v20770_v39, %v20787_v57  ;;  %v8974_v6 = vadd.f32 %v24190_v16, %v24189_v29  ;;  %v24191_v34 = vld [vmem:[#allocation6_spill] sm:$0xff]  ;;  %v24192_v30 = vld [vmem:[#allocation95_spill] sm:$0xff]  ;;  %v24193_v5 = vld [vmem:[#allocation24_spill] sm:$0xff] }
 0x5e9   : > { %v21099_v26 = vpop.f32.mrf.mxu1  ;;  %v8778_v51 = vadd.f32 %v20884_v63, %v8580_v52  ;;  %v8782_v42 = vadd.f32 %v20924_v25, %v8584_v10  ;;  %v8977_v32 = vadd.f32 %v24192_v30, %v24191_v34  ;;  %v8975_v20 = vadd.f32 %v24193_v5, %v8770_v13  ;;  %v24194_v39 = vld [vmem:[#allocation128_spill] sm:$0xff]  ;;  %v24195_v57 = vld [vmem:[#allocation82_spill] sm:$0xff]  ;;  %v24204_v13 = vld [vmem:[#allocation53_spill] sm:$0xff] }
 0x5ea   : > { %v8971_v45 = vadd.f32 %v20774_v18, %v8766_v40  ;;  %v8980_v63 = vadd.f32 %v24195_v57, %v24194_v39  ;;  %v24197_v18 = vld [vmem:[#allocation78_spill] sm:$0xff]  ;;  %v21152_v9 = vpop.f32.mrf.mxu0  ;;  %v8981_v40 = vadd.f32 %v24200_v41, %v24199_v37  ;;  %v24201_v22 = vld [vmem:[#allocation68_spill] sm:$0xff]  ;;  %v8786_v53 = vadd.f32 %v20948_v19, %v8588_v27  ;;  %v24205_v16 = vld [vmem:[#allocation33_spill] sm:$0xff] }
 0x5eb   : > { %v21109_v43 = vpop.f32.mrf.mxu1  ;;  %v8978_v14 = vadd.f32 %v24197_v18, %v24196_v61  ;;  %24198 = vst [vmem:[#allocation116_spill] sm:$0xff] %v21152_v9  ;;  %v8979_v25 = vadd.f32 %v24201_v22, %v8774_v2  ;;  %v24202_v52 = vld [vmem:[#allocation52_spill] sm:$0xff]  ;;  %v8982_v34 = vadd.f32 %v24205_v16, %v24204_v13  ;;  %v24206_v30 = vld [vmem:[#allocation133_spill] sm:$0xff]  ;;  %v24207_v5 = vld [vmem:[#allocation51_spill] sm:$0xff]  ;;  %v8790_v18 = vadd.f32 %v20967_v17, %v8592_v15 }
 0x5ec   : > { %v8984_v10 = vadd.f32 %v24203_v58, %v24202_v52  ;;  %v8985_v39 = vadd.f32 %v24207_v5, %v24206_v30  ;;  %v24208_v57 = vld [vmem:[#allocation20_spill] sm:$0xff]  ;;  %v24209_v37 = vld [vmem:[#allocation47_spill] sm:$0xff]  ;;  %v24210_v41 = vld [vmem:[#allocation126_spill] sm:$0xff]  ;;  %v21185_v17 = vadd.f32 %v20919_v28, %v20941_v48 }
 0x5ed   : > { %v21116_v56 = vpop.f32.mrf.mxu1  ;;  %v8983_v61 = vadd.f32 %v24208_v57, %v8778_v51  ;;  %v8988_v2 = vadd.f32 %v24210_v41, %v24209_v37  ;;  %v24211_v22 = vld [vmem:[#allocation44_spill] sm:$0xff]  ;;  %v24212_v19 = vld [vmem:[#allocation45_spill] sm:$0xff]  ;;  %v24213_v58 = vld [vmem:[#allocation46_spill] sm:$0xff] }
 0x5ee   : > { %v8986_v52 = vadd.f32 %v24211_v22, %v20914_v46  ;;  %v8989_v27 = vadd.f32 %v24212_v19, %v20922_v38  ;;  %v21175_v9 = vadd.f32 %v24213_v58, %v8782_v42  ;;  %v24215_v16 = vld [vmem:[#allocation12_spill] sm:$0xff]  ;;  %v8794_v46 = vadd.f32 %v20986_v36, %v8596_v8  ;;  %v21192_v38 = vpop.f32.mrf.mxu0  ;;  %v24218_v42 = vld [vmem:[#allocation10_spill] sm:$0xff]  ;;  %v24219_v57 = vld [vmem:[#allocation13_spill] sm:$0xff] }
 0x5ef   : > { %v21128_v33 = vpop.f32.mrf.mxu1  ;;  %v21181_v30 = vadd.f32 %v24215_v16, %v20935_v44  ;;  %v24216_v15 = vld [vmem:[#allocation48_spill] sm:$0xff]  ;;  %24217 = vst [vmem:[#allocation65_spill] sm:$0xff] %v21192_v38  ;;  %v21195_v5 = vadd.f32 %v24218_v42, %v8786_v53  ;;  %v21199_v37 = vadd.f32 %v24219_v57, %v20955_v12  ;;  %v24220_v44 = vld [vmem:[#allocation97_spill] sm:$0xff]  ;;  %v24221_v28 = vld [vmem:[#allocation67_spill] sm:$0xff] }
 0x5f0   : > { %v21189_v51 = vadd.f32 %v24216_v15, %v20946_v23  ;;  %v21203_v41 = vadd.f32 %v24220_v44, %v20960_v0  ;;  %v21207_v48 = vadd.f32 %v24221_v28, %v20965_v24  ;;  %v24223_v36 = vld [vmem:[#allocation16_spill] sm:$0xff]  ;;  %v24226_v19 = vld [vmem:[#allocation102_spill] sm:$0xff]  ;;  %v24228_v15 = vld [vmem:[#allocation23_spill] sm:$0xff] }
 0x5f1   : > { %v21143_v4 = vpop.f32.mrf.mxu1  ;;  %v21212_v8 = vadd.f32 %v24223_v36, %v8790_v18  ;;  %v24224_v53 = vld [vmem:[#allocation96_spill] sm:$0xff]  ;;  %v9171_v12 = vadd.f32 %v24226_v19, %v8972_v11  ;;  %v24227_v58 = vld [vmem:[#allocation26_spill] sm:$0xff]  ;;  %v24229_v0 = vld [vmem:[#allocation21_spill] sm:$0xff] }
 0x5f2   : > { %v21216_v22 = vadd.f32 %v24224_v53, %v20974_v62  ;;  %v9169_v16 = vadd.f32 %v24227_v58, %v8970_v47  ;;  %v21222_v42 = vadd.f32 %v24229_v0, %v24228_v15  ;;  %v24231_v57 = vld [vmem:[#allocation29_spill] sm:$0xff]  ;;  %v24232_v44 = vld [vmem:[#allocation127_spill] sm:$0xff]  ;;  %v24238_v53 = vld [vmem:[#allocation80_spill] sm:$0xff]  ;;  %v21238_v0 = vpop.f32.mrf.mxu0 }
 0x5f3   : > { %v21160_v29 = vpop.f32.mrf.mxu1  ;;  %v9172_v24 = vadd.f32 %v24231_v57, %v8973_v49  ;;  %v9170_v28 = vadd.f32 %v24232_v44, %v8971_v45  ;;  %v24233_v38 = vld [vmem:[#allocation7_spill] sm:$0xff]  ;;  %v24235_v36 = vld [vmem:[#allocation25_spill] sm:$0xff]  ;;  %v21234_v11 = vadd.f32 %v24238_v53, %v8794_v46  ;;  %v24241_v58 = vld [vmem:[#allocation104_spill] sm:$0xff]  ;;  %24242 = vst [vmem:[#allocation31_spill] sm:$0xff] %v21238_v0 }
 0x5f4   : > { %24225 = vst [vmem:[#allocation40_spill] sm:$0xff] %v21216_v22  ;;  %24230 = vst [vmem:[#allocation49_spill] sm:$0xff] %v21222_v42  ;;  %v24240_v47 = vld [vmem:[#allocation9_spill] sm:$0xff]  ;;  %v9176_v15 = vadd.f32 %v24241_v58, %v8977_v32  ;;  %v24243_v49 = vld [vmem:[#allocation90_spill] sm:$0xff] }
 0x5f5   : > { %v21177_v13 = vpop.f32.mrf.mxu1  ;;  %24239 = vst [vmem:[#allocation30_spill] sm:$0xff] %v21234_v11  ;;  %v9173_v19 = vadd.f32 %v24240_v47, %v8974_v6  ;;  %v9174_v57 = vadd.f32 %v24243_v49, %v8975_v20  ;;  %v24244_v45 = vld [vmem:[#allocation106_spill] sm:$0xff]  ;;  %v24248_v46 = vld [vmem:[#allocation71_spill] sm:$0xff]  ;;  %v24249_v11 = vld [vmem:[#allocation112_spill] sm:$0xff] }
 0x5f6   : > { %24214 = vst [vmem:[#allocation34_spill] sm:$0xff] %v21177_v13  ;;  %v24236_v13 = vld [vmem:[#allocation59_spill] sm:$0xff]  ;;  %v9179_v44 = vadd.f32 %v24244_v45, %v8980_v63  ;;  %v9373_v53 = vadd.f32 %v24248_v46, %v9169_v16  ;;  %v9178_v6 = vadd.f32 %v24249_v11, %v8979_v25  ;;  %v24250_v47 = vld [vmem:[#allocation57_spill] sm:$0xff]  ;;  %v24251_v58 = vld [vmem:[#allocation66_spill] sm:$0xff]  ;;  %v9184_v25 = vadd.f32 %v21061_v55, %v8985_v39  ;;  %v21264_v16 = vpop.f32.mrf.mxu0 }
 0x5f7   : > { %v21209_v23 = vpop.f32.mrf.mxu1  ;;  %v21231_v62 = vadd.f32 %v24236_v13, %v24235_v36  ;;  %v24247_v13 = vld [vmem:[#allocation85_spill] sm:$0xff]  ;;  %v9183_v32 = vadd.f32 %v24250_v47, %v8984_v10  ;;  %v9376_v0 = vadd.f32 %v24251_v58, %v9172_v24  ;;  %v9182_v10 = vadd.f32 %v21067_v59, %v8983_v61  ;;  %v24256_v24 = vld [vmem:[#allocation108_spill] sm:$0xff]  ;;  %v24259_v11 = vld [vmem:[#allocation11_spill] sm:$0xff] }
 0x5f8   : > { %24222 = vst [vmem:[#allocation37_spill] sm:$0xff] %v21209_v23  ;;  %v9175_v23 = vadd.f32 %v24233_v38, %v8976_v7  ;;  %v24245_v7 = vld [vmem:[#allocation73_spill] sm:$0xff]  ;;  %v9375_v36 = vadd.f32 %v24247_v13, %v9171_v12  ;;  %v24260_v13 = vld [vmem:[#allocation15_spill] sm:$0xff]  ;;  %v24263_v47 = vld [vmem:[#allocation94_spill] sm:$0xff] }
 0x5f9   : > { %v21227_v18 = vpop.f32.mrf.mxu1  ;;  %24237 = vst [vmem:[#allocation18_spill] sm:$0xff] %v21231_v62  ;;  %v9177_v38 = vadd.f32 %v24245_v7, %v8978_v14  ;;  %v24252_v62 = vld [vmem:[#allocation91_spill] sm:$0xff]  ;;  %v24253_v49 = vld [vmem:[#allocation125_spill] sm:$0xff]  ;;  %v9181_v14 = vadd.f32 %v21054_v3, %v8982_v34  ;;  %v24258_v34 = vld [vmem:[#allocation72_spill] sm:$0xff]  ;;  %v21279_v55 = vadd.f32 %v24260_v13, %v9178_v6 }
 0x5fa   : > { %24234 = vst [vmem:[#allocation19_spill] sm:$0xff] %v21227_v18  ;;  %v24246_v18 = vld [vmem:[#allocation107_spill] sm:$0xff]  ;;  %v9374_v20 = vadd.f32 %v24252_v62, %v9170_v28  ;;  %v9379_v63 = vadd.f32 %v24253_v49, %v9175_v23  ;;  %v24255_v12 = vld [vmem:[#allocation101_spill] sm:$0xff]  ;;  %v21267_v28 = vadd.f32 %v24256_v24, %v9174_v57  ;;  %v24264_v49 = vld [vmem:[#allocation22_spill] sm:$0xff] }
 0x5fb   : > { %v9180_v42 = vadd.f32 %v24246_v18, %v8981_v40  ;;  %v21244_v22 = vpop.f32.mrf.mxu1  ;;  %v24254_v40 = vld [vmem:[#allocation98_spill] sm:$0xff]  ;;  %v21260_v7 = vadd.f32 %v24255_v12, %v9176_v15  ;;  %v24257_v23 = vld [vmem:[#allocation105_spill] sm:$0xff]  ;;  %v21273_v62 = vadd.f32 %v24258_v34, %v9177_v38  ;;  %v24261_v39 = vld [vmem:[#allocation135_spill] sm:$0xff]  ;;  %v21286_v58 = vadd.f32 %v24263_v47, %v9181_v14  ;;  %v21303_v14 = vpop.f32.mrf.mxu0 }
 0x5fc   : > { %v21257_v18 = vadd.f32 %v24254_v40, %v9173_v19  ;;  %v21270_v3 = vadd.f32 %v24257_v23, %v9179_v44  ;;  %v21282_v59 = vadd.f32 %v24261_v39, %v9183_v32  ;;  %v24262_v46 = vld [vmem:[#allocation17_spill] sm:$0xff]  ;;  %v9187_v44 = vadd.f32 %v21074_v50, %v8988_v2  ;;  %v21295_v6 = vld [vmem:[%s23015_s7] ss:$0 sm:$0xff]  ;;  %v24266_v50 = vld [vmem:[#allocation110_spill] sm:$0xff] }
 0x5fd   : > { %v21254_v45 = vpop.f32.mrf.mxu1  ;;  %v21276_v19 = vadd.f32 %v24259_v11, %v9180_v42  ;;  %v11134_v57 = vrot.slane %v24262_v46, 2  ;;  %v9185_v38 = vadd.f32 %v21079_v60, %v8986_v52  ;;  %v9188_v42 = vadd.f32 %v21083_v35, %v8989_v27  ;;  %v24265_v40 = vld [vmem:[#allocation111_spill] sm:$0xff]  ;;  %v24272_v23 = vld [vmem:[#allocation28_spill] sm:$0xff]  ;;  %v9358_v13 = vpop.f32.mrf.mxu0 }
 0x5fe   : > { %v21301_v12 = vadd.f32 %v24265_v40, %v9182_v10  ;;  %v9186_v35 = vadd.f32 %v21085_v54, %v21175_v9  ;;  %v9191_v52 = vadd.f32 %v21089_v1, %v21181_v30  ;;  %v9189_v27 = vadd.f32 %v21099_v26, %v21185_v17  ;;  %v24267_v1 = vld [vmem:[#allocation114_spill] sm:$0xff]  ;;  %v24268_v26 = vld [vmem:[#allocation5_spill] sm:$0xff]  ;;  %v24274_v47 = vld [vmem:[#allocation87_spill] sm:$0xff] }
 0x5ff   : > { %v15233_v15 = vpop.f32.mrf.mxu1  ;;  %v21327_v17 = vand.u32 %v11134_v57, %v24268_v26  ;;  %v21336_v34 = vadd.f32 %v24272_v23, %v9188_v42  ;;  %v9190_v11 = vadd.f32 %v21116_v56, %v21195_v5 }
 0x600   : > { %v9572_v61 = vadd.f32 %v15233_v15, %v9375_v36  ;;  %v21298_v36 = vadd.f32 %v24264_v49, %v9184_v25  ;;  %v9192_v25 = vadd.f32 %v21109_v43, %v21189_v51  ;;  %v24270_v43 = vld [vmem:[#allocation122_spill] sm:$0xff] }
 0x601   : > { %v9443_v32 = vpop.f32.mrf.mxu1  ;;  %24269 = vst [vmem:[#allocation35_spill] sm:$0xff] %v21327_v17  ;;  %v21330_v51 = vadd.f32 %v24270_v43, %v9187_v44  ;;  %v21345_v44 = vadd.f32 %v24274_v47, %v9186_v35  ;;  %v9195_v35 = vadd.f32 %v21128_v33, %v21199_v37 }
 0x602   : > { %v9604_v2 = vadd.f32 %v9572_v61, %v24266_v50  ;;  %v9570_v60 = vadd.f32 %v9443_v32, %v9373_v53  ;;  %v24271_v53 = vld [vmem:[#allocation58_spill] sm:$0xff]  ;;  %v24273_v61 = vld [vmem:[#allocation113_spill] sm:$0xff]  ;;  %v24276_v32 = vld [vmem:[#allocation32_spill] sm:$0xff]  ;;  %v21354_v5 = vadd.f32 %v21102_v21, %v9192_v25  ;;  %v9193_v21 = vadd.f32 %v21143_v4, %v21203_v41 }
 0x603   : > { %v15234_v24 = vpop.f32.mrf.mxu1  ;;  %v21333_v10 = vadd.f32 %v24271_v53, %v9185_v38  ;;  %v24275_v38 = vld [vmem:[#allocation86_spill] sm:$0xff]  ;;  %v21351_v56 = vadd.f32 %v24276_v32, %v9189_v27  ;;  %v24277_v50 = vld [vmem:[#allocation117_spill] sm:$0xff]  ;;  %v9196_v27 = vadd.f32 %v21160_v29, %v21207_v48 }
 0x604   : > { %v9643_v54 = vadd.f32 %v21295_v6, %v9604_v2  ;;  %v9602_v9 = vadd.f32 %v9570_v60, %v24267_v1  ;;  %v9573_v30 = vadd.f32 %v15234_v24, %v9376_v0  ;;  %v21348_v42 = vadd.f32 %v24275_v38, %v9191_v52  ;;  %v15228_v24 = vpop.f32.mrf.mxu0  ;;  %v24279_v4 = vld [vmem:[#allocation34_spill] sm:$0xff]  ;;  %v24280_v1 = vld [vmem:[#allocation40_spill] sm:$0xff]  ;;  %v24282_v48 = vld [vmem:[#allocation49_spill] sm:$0xff] }
 0x605   : > { %v9446_v15 = vpop.f32.mrf.mxu1  ;;  %v21365_v52 = vadd.f32 %v21122_v31, %v9190_v11  ;;  %v24278_v31 = vld [vmem:[#allocation79_spill] sm:$0xff]  ;;  %v9194_v41 = vadd.f32 %v24279_v4, %v21212_v8  ;;  %v24284_v53 = vld [vmem:[#allocation18_spill] sm:$0xff] }
 0x606   : > { %v9675_v0 = vsel %vm928_vm3, %v9643_v54, 0.0  ;;  %9827 = vst.msk [vmem:[#allocation4 + $0x31] sm:$0xff] %vm928_vm3, %v9643_v54  ;;  %v9641_v39 = vadd.f32 %v21295_v6, %v9602_v9  ;;  %v9605_v46 = vadd.f32 %v9573_v30, %v24273_v61  ;;  %v9571_v57 = vadd.f32 %v9446_v15, %v9374_v20  ;;  %v24281_v9 = vld [vmem:[#allocation37_spill] sm:$0xff]  ;;  %v24283_v30 = vld [vmem:[#allocation19_spill] sm:$0xff]  ;;  %v24286_v61 = vld [vmem:[#allocation116_spill] sm:$0xff] }
 0x607   : > { %9707 = vst [vmem:[%s21317_s24 + $0x10] sm:$0xff] %v9675_v0  ;;  %9739 = vst [vmem:[%s21322_s3 + $0x10] sm:$0xff] %v9675_v0  ;;  %v15237_v49 = vpop.f32.mrf.mxu1  ;;  %v9199_v29 = vadd.f32 %v24281_v9, %v24280_v1  ;;  %v9197_v43 = vadd.f32 %v24283_v30, %v24282_v48  ;;  %v9200_v23 = vadd.f32 %v21244_v22, %v24284_v53  ;;  %v24288_v22 = vld [vmem:[#allocation31_spill] sm:$0xff]  ;;  %v24289_v32 = vld [vmem:[#allocation30_spill] sm:$0xff] }
 0x608   : > { %v9673_v40 = vsel %vm928_vm3, %v9641_v39, 0.0  ;;  %9825 = vst.msk [vmem:[#allocation4 + $0x19] sm:$0xff] %vm928_vm3, %v9641_v39  ;;  %v9644_v20 = vadd.f32 %v21295_v6, %v9605_v46  ;;  %v9603_v2 = vadd.f32 %v9571_v57, %v24277_v50  ;;  %v9576_v60 = vadd.f32 %v15237_v49, %v9379_v63  ;;  %v24287_v57 = vld [vmem:[#allocation65_spill] sm:$0xff] }
 0x609   : > { %9705 = vst [vmem:[%s21317_s24] sm:$0xff] %v9673_v40  ;;  %9737 = vst [vmem:[%s21322_s3] sm:$0xff] %v9673_v40  ;;  %v9459_v25 = vpop.f32.mrf.mxu1  ;;  %v21394_v46 = vadd.f32 %v24286_v61, %v9195_v35  ;;  %v21397_v47 = vadd.f32 %v24287_v57, %v9193_v21  ;;  %v21400_v38 = vadd.f32 %v24288_v22, %v9196_v27  ;;  %v24292_v30 = vld [vmem:[#allocation81_spill] sm:$0xff]  ;;  %v24293_v57 = vld [vmem:[#allocation64_spill] sm:$0xff] }
 0x60a   : > { %v9676_v63 = vsel %vm928_vm3, %v9644_v20, 0.0  ;;  %9828 = vst.msk [vmem:[#allocation4 + $0x39] sm:$0xff] %vm928_vm3, %v9644_v20  ;;  %v9642_v33 = vadd.f32 %v21295_v6, %v9603_v2  ;;  %v9608_v37 = vadd.f32 %v9576_v60, %v24278_v31  ;;  %v9574_v54 = vadd.f32 %v9459_v25, %v21257_v18  ;;  %v24285_v18 = vld [vmem:[#allocation103_spill] sm:$0xff]  ;;  %v9361_v20 = vpop.f32.mrf.mxu0 }
 0x60b   : > { %9708 = vst [vmem:[%s21317_s24 + $0x18] sm:$0xff] %v9676_v63  ;;  %9740 = vst [vmem:[%s21322_s3 + $0x18] sm:$0xff] %v9676_v63  ;;  %v15238_v11 = vpop.f32.mrf.mxu1  ;;  %v9198_v49 = vadd.f32 %v21254_v45, %v24289_v32  ;;  %v24290_v2 = vld [vmem:[#allocation63_spill] sm:$0xff]  ;;  %v21414_v45 = vadd.f32 %v21264_v16, %v9194_v41  ;;  %v21417_v27 = vadd.f32 %v21303_v14, %v9199_v29  ;;  %v24291_v16 = vld [vmem:[#allocation69_spill] sm:$0xff] }
 0x60c   : > { %v9674_v15 = vsel %vm928_vm3, %v9642_v33, 0.0  ;;  %9826 = vst.msk [vmem:[#allocation4 + $0x21] sm:$0xff] %vm928_vm3, %v9642_v33  ;;  %v9647_v8 = vadd.f32 %v21295_v6, %v9608_v37  ;;  %v9606_v0 = vadd.f32 %v9574_v54, %v24285_v18  ;;  %v9577_v39 = vadd.f32 %v15238_v11, %v21260_v7 }
 0x60d   : > { %9706 = vst [vmem:[%s21317_s24 + $0x8] sm:$0xff] %v9674_v15  ;;  %9738 = vst [vmem:[%s21322_s3 + $0x8] sm:$0xff] %v9674_v15  ;;  %v9462_v40 = vpop.f32.mrf.mxu1  ;;  %v21411_v21 = vld [vmem:[#allocation4 + $0x30] sm:$0xff]  ;;  %v21419_v25 = vadd.f32 %v9358_v13, %v9197_v43  ;;  %v21421_v63 = vadd.f32 %v15228_v24, %v9200_v23  ;;  %v21432_v13 = vadd.f32 %v9361_v20, %v9198_v49  ;;  %v24319_v15 = vld [vmem:[#allocation132_spill] sm:$0xff] }
 0x60e   : > { %v9679_v7 = vsel %vm928_vm3, %v9647_v8, 0.0  ;;  %9831 = vst.msk [vmem:[#allocation4 + $0x61] sm:$0xff] %vm928_vm3, %v9647_v8  ;;  %v9645_v50 = vadd.f32 %v21295_v6, %v9606_v0  ;;  %v9609_v60 = vadd.f32 %v9577_v39, %v24290_v2  ;;  %v9575_v35 = vadd.f32 %v9462_v40, %v21267_v28 }
 0x60f   : > { %9711 = vst [vmem:[%s21317_s24 + $0x30] sm:$0xff] %v9679_v7  ;;  %9743 = vst [vmem:[%s21322_s3 + $0x30] sm:$0xff] %v9679_v7  ;;  %v15241_v33 = vpop.f32.mrf.mxu1  ;;  %v21425_v31 = vld [vmem:[#allocation4 + $0x18] sm:$0xff]  ;;  %v9990_v1 = vrot.slane %v21411_v21, 1 }
 0x610   : > { %v9677_v28 = vsel %vm928_vm3, %v9645_v50, 0.0  ;;  %9829 = vst.msk [vmem:[#allocation4 + $0x49] sm:$0xff] %vm928_vm3, %v9645_v50  ;;  %v9648_v37 = vadd.f32 %v21295_v6, %v9609_v60  ;;  %v9607_v54 = vadd.f32 %v9575_v35, %v24291_v16  ;;  %v9580_v14 = vadd.f32 %v15241_v33, %v21270_v3 }
 0x611   : > { %9709 = vst [vmem:[%s21317_s24 + $0x20] sm:$0xff] %v9677_v28  ;;  %9741 = vst [vmem:[%s21322_s3 + $0x20] sm:$0xff] %v9677_v28  ;;  %v9475_v24 = vpop.f32.mrf.mxu1  ;;  %v9985_v4 = vrot.slane %v21425_v31, 1  ;;  %v21437_v41 = vld [vmem:[#allocation4 + $0x38] sm:$0xff]  ;;  %v21441_v29 = vld [vmem:[#allocation4 + $0x40] sm:$0x3] }
 0x612   : > { %v9680_v48 = vsel %vm928_vm3, %v9648_v37, 0.0  ;;  %9832 = vst.msk [vmem:[#allocation4 + $0x69] sm:$0xff] %vm928_vm3, %v9648_v37  ;;  %v9646_v3 = vadd.f32 %v21295_v6, %v9607_v54  ;;  %v9612_v43 = vadd.f32 %v9580_v14, %v24292_v30  ;;  %v9578_v53 = vadd.f32 %v9475_v24, %v21273_v62 }
 0x613   : > { %9712 = vst [vmem:[%s21317_s24 + $0x38] sm:$0xff] %v9680_v48  ;;  %9744 = vst [vmem:[%s21322_s3 + $0x38] sm:$0xff] %v9680_v48  ;;  %v15242_v23 = vpop.f32.mrf.mxu1  ;;  %v21450_v11 = vld [vmem:[#allocation4 + $0x20] sm:$0xff]  ;;  %v21455_v8 = vpack.c.bf16 %v21437_v41, %v21411_v21  ;;  %v9991_v18 = vrot.slane %v21437_v41, 1  ;;  %v21458_v0 = vld [vmem:[#allocation4 + $0x28] sm:$0x3] }
 0x614   : > { %v9993_v39 = vrot.slane %v21441_v29, 1  ;;  %v9678_v62 = vsel %vm928_vm3, %v9646_v3, 0.0  ;;  %9830 = vst.msk [vmem:[#allocation4 + $0x51] sm:$0xff] %vm928_vm3, %v9646_v3  ;;  %v9651_v61 = vadd.f32 %v21295_v6, %v9612_v43  ;;  %v9610_v22 = vadd.f32 %v9578_v53, %v24293_v57  ;;  %v24295_v3 = vld [vmem:[#allocation124_spill] sm:$0xff] }
 0x615   : > { %v9581_v32 = vadd.f32 %v15242_v23, %v21276_v19  ;;  %9710 = vst [vmem:[%s21317_s24 + $0x28] sm:$0xff] %v9678_v62  ;;  %9742 = vst [vmem:[%s21322_s3 + $0x28] sm:$0xff] %v9678_v62  ;;  %v9478_v49 = vpop.f32.mrf.mxu1  ;;  %v21470_v40 = vpack.c.bf16 %v21450_v11, %v21425_v31  ;;  %v9986_v20 = vrot.slane %v21450_v11, 1  ;;  %v9988_v50 = vrot.slane %v21458_v0, 1  ;;  %v24294_v19 = vld [vmem:[#allocation123_spill] sm:$0xff] }
 0x616   : > { %v9683_v2 = vsel %vm928_vm3, %v9651_v61, 0.0  ;;  %9835 = vst.msk [vmem:[#allocation4 + $0x91] sm:$0xff] %vm928_vm3, %v9651_v61  ;;  %v9649_v60 = vadd.f32 %v21295_v6, %v9610_v22  ;;  %v9579_v33 = vadd.f32 %v9478_v49, %v21279_v55  ;;  %v9992_v54 = vsel %vm791_vm2, %v9990_v1, %v9991_v18  ;;  %v24296_v1 = vld [vmem:[#allocation131_spill] sm:$0xff]  ;;  %v24299_v22 = vld [vmem:[#allocation118_spill] sm:$0xff] }
 0x617   : > { %v9613_v35 = vadd.f32 %v9581_v32, %v24294_v19  ;;  %9715 = vst [vmem:[%s21317_s24 + $0x50] sm:$0xff] %v9683_v2  ;;  %9747 = vst [vmem:[%s21322_s3 + $0x50] sm:$0xff] %v9683_v2  ;;  %15300 = vmatmul.mubr.msk.bf16.vlgmr.msra.gmra.mxu1 %vm928_vm3, %v21470_v40  ;;  %v15245_v28 = vpop.f32.mrf.mxu1  ;;  %v9987_v37 = vsel %vm791_vm2, %v9985_v4, %v9986_v20  ;;  %v9989_v16 = vsel %vm791_vm2, %v9986_v20, %v9988_v50  ;;  %v21488_v24 = vld [vmem:[#allocation4 + $0x48] sm:$0xff]  ;;  %v21497_v4 = vld [vmem:[#allocation4 + $0x60] sm:$0xff] }
 0x618   : > { %v9994_v14 = vsel %vm791_vm2, %v9991_v18, %v9993_v39  ;;  %v9681_v55 = vsel %vm928_vm3, %v9649_v60, 0.0  ;;  %9833 = vst.msk [vmem:[#allocation4 + $0x79] sm:$0xff] %vm928_vm3, %v9649_v60  ;;  %v9611_v30 = vadd.f32 %v9579_v33, %v24295_v3  ;;  %v9584_v43 = vadd.f32 %v15245_v28, %v21282_v59  ;;  %15303 = vmatprep.mubr.msk.bf16.mxu1 %vm928_vm3, %v21455_v8  ;;  %v24300_v28 = vld [vmem:[#allocation129_spill] sm:$0xff] }
 0x619   : > { %v9652_v48 = vadd.f32 %v21295_v6, %v9613_v35  ;;  %15366 = vmatpush3.bf16.msra.mxu1 %v24296_v1  ;;  %9713 = vst [vmem:[%s21317_s24 + $0x40] sm:$0xff] %v9681_v55  ;;  %9745 = vst [vmem:[%s21322_s3 + $0x40] sm:$0xff] %v9681_v55  ;;  %v9491_v23 = vpop.f32.mrf.mxu1  ;;  %v21503_v18 = vpack.c.bf16 %v9989_v16, %v9987_v37  ;;  %v21505_v39 = vpack.c.bf16 %v9994_v14, %v9992_v54  ;;  %v21508_v62 = vld [vmem:[#allocation4 + $0x68] sm:$0xff]  ;;  %v21538_v55 = vld [vmem:[#allocation4 + $0x70] sm:$0x3] }
 0x61a   : > { %v9995_v59 = vrot.slane %v21488_v24, 1  ;;  %v9650_v57 = vadd.f32 %v21295_v6, %v9611_v30  ;;  %v9616_v32 = vadd.f32 %v9584_v43, %v24299_v22  ;;  %v9582_v49 = vadd.f32 %v9491_v23, %v21286_v58  ;;  %v24301_v16 = vld [vmem:[#allocation8_spill] sm:$0xff] }
 0x61b   : > { %24297 = vst [vmem:[#allocation36_spill] sm:$0xff] %v21503_v18  ;;  %24298 = vst [vmem:[#allocation39_spill] sm:$0xff] %v21505_v39  ;;  %v9684_v61 = vsel %vm928_vm3, %v9652_v48, 0.0  ;;  %15266 = vmatmul.mubr.msk.bf16.vlgmr.msra.gmra.mxu0 %vm928_vm3, %v21503_v18  ;;  %v15246_v20 = vpop.f32.mrf.mxu1  ;;  %v21519_v50 = vld [vmem:[#allocation4 + $0x50] sm:$0xff]  ;;  %v21524_v60 = vpack.c.bf16 %v21508_v62, %v21497_v4  ;;  %v10000_v19 = vrot.slane %v21497_v4, 1  ;;  %v10001_v58 = vrot.slane %v21508_v62, 1 }
 0x61c   : > { %9836 = vst.msk [vmem:[#allocation4 + $0x99] sm:$0xff] %vm928_vm3, %v9652_v48  ;;  %9716 = vst [vmem:[%s21317_s24 + $0x58] sm:$0xff] %v9684_v61  ;;  %v9682_v35 = vsel %vm928_vm3, %v9650_v57, 0.0  ;;  %v9655_v33 = vadd.f32 %v21295_v6, %v9616_v32  ;;  %v9614_v37 = vadd.f32 %v9582_v49, %v24300_v28  ;;  %15269 = vmatprep.mubr.msk.bf16.mxu0 %vm928_vm3, %v21505_v39  ;;  %15332 = vmatpush3.bf16.msra.mxu0 %v24301_v16  ;;  %v21536_v14 = vld [vmem:[#allocation4 + $0x58] sm:$0x3] }
 0x61d   : > { %9748 = vst [vmem:[%s21322_s3 + $0x58] sm:$0xff] %v9684_v61  ;;  %9834 = vst.msk [vmem:[#allocation4 + $0x81] sm:$0xff] %vm928_vm3, %v9650_v57  ;;  %v9585_v54 = vadd.f32 %v15246_v20, %v21298_v36  ;;  %v9494_v48 = vpop.f32.mrf.mxu1  ;;  %v21544_v3 = vpack.c.bf16 %v21519_v50, %v21488_v24  ;;  %v9996_v30 = vrot.slane %v21519_v50, 1  ;;  %15399 = vmatprep.subr.bf16.mxu0 %v21327_v17  ;;  %v24302_v61 = vld [vmem:[#allocation120_spill] sm:$0xff]  ;;  %v9998_v20 = vrot.slane %v21536_v14, 1  ;;  %v24303_v16 = vld [vmem:[#allocation130_spill] sm:$0xff] }
 0x61e   : > { %9714 = vst [vmem:[%s21317_s24 + $0x48] sm:$0xff] %v9682_v35  ;;  %9746 = vst [vmem:[%s21322_s3 + $0x48] sm:$0xff] %v9682_v35  ;;  %v9687_v36 = vsel %vm928_vm3, %v9655_v33, 0.0  ;;  %v9653_v23 = vadd.f32 %v21295_v6, %v9614_v37  ;;  %v9583_v22 = vadd.f32 %v9494_v48, %v21301_v12  ;;  %v10002_v35 = vsel %vm791_vm2, %v10000_v19, %v10001_v58  ;;  %v21585_v1 = vld [vmem:[#allocation4 + $0x90] sm:$0xff] }
 0x61f   : > { %9839 = vst.msk [vmem:[#allocation4 + $0xc1] sm:$0xff] %vm928_vm3, %v9655_v33  ;;  %v9617_v57 = vadd.f32 %v9585_v54, %v24302_v61  ;;  %9719 = vst [vmem:[%s21317_s24 + $0x70] sm:$0xff] %v9687_v36  ;;  %15304 = vmatmul.mubr.msk.bf16.gmra.mxu1 %vm928_vm3, %v21544_v3  ;;  %v15249_v32 = vpop.f32.mrf.mxu1  ;;  %v9997_v49 = vsel %vm791_vm2, %v9995_v59, %v9996_v30  ;;  %v10003_v33 = vrot.slane %v21538_v55, 1  ;;  %v21563_v28 = vld [vmem:[#allocation4 + $0x78] sm:$0xff] }
 0x620   : > { %9751 = vst [vmem:[%s21322_s3 + $0x70] sm:$0xff] %v9687_v36  ;;  %v9685_v12 = vsel %vm928_vm3, %v9653_v23, 0.0  ;;  %9837 = vst.msk [vmem:[#allocation4 + $0xa9] sm:$0xff] %vm928_vm3, %v9653_v23  ;;  %v9615_v54 = vadd.f32 %v9583_v22, %v24303_v16  ;;  %v9588_v48 = vadd.f32 %v15249_v32, %v21330_v51  ;;  %15307 = vmatprep.mubr.msk.bf16.mxu1 %vm928_vm3, %v21524_v60  ;;  %v10005_v61 = vrot.slane %v21563_v28, 1  ;;  %v24304_v32 = vld [vmem:[#allocation121_spill] sm:$0xff] }
 0x621   : > { %v9656_v37 = vadd.f32 %v21295_v6, %v9617_v57  ;;  %9717 = vst [vmem:[%s21317_s24 + $0x60] sm:$0xff] %v9685_v12  ;;  %9749 = vst [vmem:[%s21322_s3 + $0x60] sm:$0xff] %v9685_v12  ;;  %v9507_v19 = vpop.f32.mrf.mxu1  ;;  %v9999_v36 = vsel %vm791_vm2, %v9996_v30, %v9998_v20  ;;  %v10004_v23 = vsel %vm791_vm2, %v10001_v58, %v10003_v33 }
 0x622   : > { %v9654_v22 = vadd.f32 %v21295_v6, %v9615_v54  ;;  %v9620_v16 = vadd.f32 %v9588_v48, %v24304_v32  ;;  %v9586_v12 = vadd.f32 %v9507_v19, %v21333_v10  ;;  %v21589_v58 = vpack.c.bf16 %v9999_v36, %v9997_v49  ;;  %v24308_v19 = vld [vmem:[#allocation70_spill] sm:$0xff] }
 0x623   : > { %v21578_v57 = vld [vmem:[#allocation4 + $0x98] sm:$0xff]  ;;  %v9688_v51 = vsel %vm928_vm3, %v9656_v37, 0.0  ;;  %9840 = vst.msk [vmem:[#allocation4 + $0xc9] sm:$0xff] %vm928_vm3, %v9656_v37  ;;  %v21591_v30 = vpack.c.bf16 %v10004_v23, %v10002_v35  ;;  %v15250_v20 = vpop.f32.mrf.mxu1  ;;  %v10010_v32 = vrot.slane %v21585_v1, 1  ;;  %v21625_v37 = vld [vmem:[#allocation4 + $0xa0] sm:$0x3] }
 0x624   : > { %9720 = vst [vmem:[%s21317_s24 + $0x78] sm:$0xff] %v9688_v51  ;;  %9752 = vst [vmem:[%s21322_s3 + $0x78] sm:$0xff] %v9688_v51  ;;  %v21593_v33 = vld [vmem:[#allocation4 + $0x80] sm:$0xff]  ;;  %v21598_v54 = vpack.c.bf16 %v21578_v57, %v21585_v1  ;;  %v9686_v10 = vsel %vm928_vm3, %v9654_v22, 0.0  ;;  %v9659_v48 = vadd.f32 %v21295_v6, %v9620_v16  ;;  %v9618_v49 = vadd.f32 %v9586_v12, %v24308_v19  ;;  %v21605_v36 = vld [vmem:[#allocation4 + $0x88] sm:$0x3] }
 0x625   : > { %24305 = vst [vmem:[#allocation43_spill] sm:$0xff] %v21589_v58  ;;  %24306 = vst [vmem:[#allocation54_spill] sm:$0xff] %v21591_v30  ;;  %v9589_v35 = vadd.f32 %v15250_v20, %v21336_v34  ;;  %15270 = vmatmul.mubr.msk.bf16.gmra.mxu0 %vm928_vm3, %v21589_v58  ;;  %v9510_v23 = vpop.f32.mrf.mxu1  ;;  %v21613_v51 = vpack.c.bf16 %v21593_v33, %v21563_v28  ;;  %v10011_v34 = vrot.slane %v21578_v57, 1  ;;  %v24310_v20 = vld [vmem:[#allocation136_spill] sm:$0xff] }
 0x626   : > { %24307 = vst [vmem:[#allocation61_spill] sm:$0xff] %v21598_v54  ;;  %9838 = vst.msk [vmem:[#allocation4 + $0xb1] sm:$0xff] %vm928_vm3, %v9654_v22  ;;  %v10006_v22 = vrot.slane %v21593_v33, 1  ;;  %v9691_v16 = vsel %vm928_vm3, %v9659_v48, 0.0  ;;  %v9657_v12 = vadd.f32 %v21295_v6, %v9618_v49  ;;  %15273 = vmatprep.mubr.msk.bf16.mxu0 %vm928_vm3, %v21591_v30  ;;  %v9587_v19 = vadd.f32 %v9510_v23, %v21345_v44 }
 0x627   : > { %9718 = vst [vmem:[%s21317_s24 + $0x68] sm:$0xff] %v9686_v10  ;;  %9750 = vst [vmem:[%s21322_s3 + $0x68] sm:$0xff] %v9686_v10  ;;  %v9621_v10 = vadd.f32 %v9589_v35, %v24310_v20  ;;  %15308 = vmatmul.mubr.msk.bf16.gmra.mxu1 %vm928_vm3, %v21613_v51  ;;  %v15253_v59 = vpop.f32.mrf.mxu1  ;;  %v10008_v35 = vrot.slane %v21605_v36, 1  ;;  %v24311_v20 = vld [vmem:[#allocation100_spill] sm:$0xff] }
 0x628   : > { %24309 = vst [vmem:[#allocation60_spill] sm:$0xff] %v21613_v51  ;;  %9843 = vst.msk [vmem:[#allocation4 + $0xf1] sm:$0xff] %vm928_vm3, %v9659_v48  ;;  %v10007_v2 = vsel %vm791_vm2, %v10005_v61, %v10006_v22  ;;  %v9689_v44 = vsel %vm928_vm3, %v9657_v12, 0.0  ;;  %v9592_v43 = vadd.f32 %v15253_v59, %v21348_v42  ;;  %15311 = vmatprep.mubr.msk.bf16.mxu1 %vm928_vm3, %v21598_v54  ;;  %v21642_v49 = vld [vmem:[#allocation4 + $0xa8] sm:$0xff]  ;;  %v10547_v51 = vrot.slane %v21458_v0, 2 }
 0x629   : > { %9723 = vst [vmem:[%s21317_s24 + $0x90] sm:$0xff] %v9691_v16  ;;  %9755 = vst [vmem:[%s21322_s3 + $0x90] sm:$0xff] %v9691_v16  ;;  %v9660_v23 = vadd.f32 %v21295_v6, %v9621_v10  ;;  %v9619_v16 = vadd.f32 %v9587_v19, %v24311_v20  ;;  %v9523_v48 = vpop.f32.mrf.mxu1  ;;  %v10012_v10 = vsel %vm791_vm2, %v10010_v32, %v10011_v34  ;;  %v10013_v19 = vrot.slane %v21625_v37, 1  ;;  %v24312_v20 = vld [vmem:[#allocation137_spill] sm:$0xff] }
 0x62a   : > { %9841 = vst.msk [vmem:[#allocation4 + $0xd9] sm:$0xff] %vm928_vm3, %v9657_v12  ;;  %9721 = vst [vmem:[%s21317_s24 + $0x80] sm:$0xff] %v9689_v44  ;;  %v10009_v12 = vsel %vm791_vm2, %v10006_v22, %v10008_v35  ;;  %v9624_v9 = vadd.f32 %v9592_v43, %v24312_v20  ;;  %v9590_v7 = vadd.f32 %v9523_v48, %v21351_v56  ;;  %v24314_v48 = vld [vmem:[#allocation119_spill] sm:$0xff] }
 0x62b   : > { %9753 = vst [vmem:[%s21322_s3 + $0x80] sm:$0xff] %v9689_v44  ;;  %v9692_v42 = vsel %vm928_vm3, %v9660_v23, 0.0  ;;  %9844 = vst.msk [vmem:[#allocation4 + $0xf9] sm:$0xff] %vm928_vm3, %v9660_v23  ;;  %v9658_v59 = vadd.f32 %v21295_v6, %v9619_v16  ;;  %v21655_v44 = vld [vmem:[#allocation4 + $0xc8] sm:$0xff]  ;;  %v21659_v22 = vpack.c.bf16 %v10009_v12, %v10007_v2  ;;  %v10014_v32 = vsel %vm791_vm2, %v10011_v34, %v10013_v19  ;;  %v15254_v35 = vpop.f32.mrf.mxu1  ;;  %v21672_v2 = vld [vmem:[#allocation4 + $0xc0] sm:$0xff] }
 0x62c   : > { %9724 = vst [vmem:[%s21317_s24 + $0x98] sm:$0xff] %v9692_v42  ;;  %9756 = vst [vmem:[%s21322_s3 + $0x98] sm:$0xff] %v9692_v42  ;;  %v10015_v23 = vrot.slane %v21642_v49, 1  ;;  %v9663_v56 = vadd.f32 %v21295_v6, %v9624_v9  ;;  %v9622_v20 = vadd.f32 %v9590_v7, %v24314_v48  ;;  %v21670_v42 = vpack.c.bf16 %v10014_v32, %v10012_v10  ;;  %v24318_v48 = vld [vmem:[#allocation115_spill] sm:$0xff] }
 0x62d   : > { %24313 = vst [vmem:[#allocation41_spill] sm:$0xff] %v21659_v22  ;;  %v21662_v61 = vld [vmem:[#allocation4 + $0xb0] sm:$0xff]  ;;  %v9690_v43 = vsel %vm928_vm3, %v9658_v59, 0.0  ;;  %9842 = vst.msk [vmem:[#allocation4 + $0xe1] sm:$0xff] %vm928_vm3, %v9658_v59  ;;  %15274 = vmatmul.mubr.msk.bf16.gmra.mxu0 %vm928_vm3, %v21659_v22  ;;  %v9593_v34 = vadd.f32 %v15254_v35, %v21354_v5  ;;  %v9526_v12 = vpop.f32.mrf.mxu1  ;;  %v21686_v7 = vpack.c.bf16 %v21655_v44, %v21672_v2  ;;  %v21695_v35 = vld [vmem:[#allocation4 + $0xb8] sm:$0x3] }
 0x62e   : > { %24315 = vst [vmem:[#allocation42_spill] sm:$0xff] %v21670_v42  ;;  %9722 = vst [vmem:[%s21317_s24 + $0x88] sm:$0xff] %v9690_v43  ;;  %v21681_v19 = vpack.c.bf16 %v21662_v61, %v21642_v49  ;;  %v10016_v9 = vrot.slane %v21662_v61, 1  ;;  %v9695_v10 = vsel %vm928_vm3, %v9663_v56, 0.0  ;;  %v9661_v59 = vadd.f32 %v21295_v6, %v9622_v20  ;;  %15277 = vmatprep.mubr.msk.bf16.mxu0 %vm928_vm3, %v21670_v42 }
 0x62f   : > { %9754 = vst [vmem:[%s21322_s3 + $0x88] sm:$0xff] %v9690_v43  ;;  %24317 = vst [vmem:[#allocation50_spill] sm:$0xff] %v21686_v7  ;;  %v9591_v5 = vadd.f32 %v9526_v12, %v21365_v52  ;;  %v21697_v43 = vld [vmem:[#allocation4 + $0xd0] sm:$0x3]  ;;  %v9625_v16 = vadd.f32 %v9593_v34, %v24318_v48  ;;  %v10020_v20 = vrot.slane %v21672_v2, 1  ;;  %v10021_v52 = vrot.slane %v21655_v44, 1 }
 0x630   : > { %24316 = vst [vmem:[#allocation14_spill] sm:$0xff] %v21681_v19  ;;  %9847 = vst.msk [vmem:[#allocation4 + $0x121] sm:$0xff] %vm928_vm3, %v9663_v56  ;;  %15312 = vmatmul.mubr.msk.bf16.gmra.mxu1 %vm928_vm3, %v21681_v19  ;;  %v15257_v56 = vpop.f32.mrf.mxu1  ;;  %v9693_v32 = vsel %vm928_vm3, %v9661_v59, 0.0 }
 0x631   : > { %9727 = vst [vmem:[%s21317_s24 + $0xb0] sm:$0xff] %v9695_v10  ;;  %9759 = vst [vmem:[%s21322_s3 + $0xb0] sm:$0xff] %v9695_v10  ;;  %v9623_v53 = vadd.f32 %v9591_v5, %v24319_v15  ;;  %v9596_v10 = vadd.f32 %v15257_v56, %v21394_v46  ;;  %15315 = vmatprep.mubr.msk.bf16.mxu1 %vm928_vm3, %v21686_v7  ;;  %v21714_v48 = vld [vmem:[#allocation4 + $0xd8] sm:$0xff]  ;;  %v9664_v42 = vadd.f32 %v21295_v6, %v9625_v16 }
 0x632   : > { %9845 = vst.msk [vmem:[#allocation4 + $0x109] sm:$0xff] %vm928_vm3, %v9661_v59  ;;  %9725 = vst [vmem:[%s21317_s24 + $0xa0] sm:$0xff] %v9693_v32  ;;  %v9539_v12 = vpop.f32.mrf.mxu1  ;;  %v10017_v59 = vsel %vm791_vm2, %v10015_v23, %v10016_v9  ;;  %v10018_v15 = vrot.slane %v21695_v35, 1  ;;  %v10023_v46 = vrot.slane %v21697_v43, 1  ;;  %v24320_v56 = vld [vmem:[#allocation138_spill] sm:$0xff]  ;;  %v10022_v30 = vsel %vm791_vm2, %v10020_v20, %v10021_v52 }
 0x633   : > { %9757 = vst [vmem:[%s21322_s3 + $0xa0] sm:$0xff] %v9693_v32  ;;  %v9662_v5 = vadd.f32 %v21295_v6, %v9623_v53  ;;  %v9628_v22 = vadd.f32 %v9596_v10, %v24320_v56  ;;  %v9594_v34 = vadd.f32 %v9539_v12, %v21397_v47  ;;  %v9696_v16 = vsel %vm928_vm3, %v9664_v42, 0.0  ;;  %9848 = vst.msk [vmem:[#allocation4 + $0x129] sm:$0xff] %vm928_vm3, %v9664_v42  ;;  %v24321_v12 = vld [vmem:[#allocation139_spill] sm:$0xff] }
 0x634   : > { %v10019_v23 = vsel %vm791_vm2, %v10016_v9, %v10018_v15  ;;  %v10024_v32 = vsel %vm791_vm2, %v10021_v52, %v10023_v46  ;;  %v15258_v58 = vpop.f32.mrf.mxu1  ;;  %v21730_v39 = vld [vmem:[#allocation4 + $0xe0] sm:$0xff]  ;;  %v10025_v53 = vrot.slane %v21714_v48, 1  ;;  %9728 = vst [vmem:[%s21317_s24 + $0xb8] sm:$0xff] %v9696_v16  ;;  %9760 = vst [vmem:[%s21322_s3 + $0xb8] sm:$0xff] %v9696_v16  ;;  %v21741_v9 = vld [vmem:[#allocation4 + $0xf8] sm:$0xff] }
 0x635   : > { %v9694_v47 = vsel %vm928_vm3, %v9662_v5, 0.0  ;;  %9846 = vst.msk [vmem:[#allocation4 + $0x111] sm:$0xff] %vm928_vm3, %v9662_v5  ;;  %v9667_v20 = vadd.f32 %v21295_v6, %v9628_v22  ;;  %v9626_v10 = vadd.f32 %v9594_v34, %v24321_v12  ;;  %v21739_v42 = vpack.c.bf16 %v10019_v23, %v10017_v59  ;;  %v21753_v34 = vld [vmem:[#allocation4 + $0xf0] sm:$0xff]  ;;  %v24325_v16 = vld [vmem:[#allocation140_spill] sm:$0xff] }
 0x636   : > { %9726 = vst [vmem:[%s21317_s24 + $0xa8] sm:$0xff] %v9694_v47  ;;  %9758 = vst [vmem:[%s21322_s3 + $0xa8] sm:$0xff] %v9694_v47  ;;  %v21745_v52 = vpack.c.bf16 %v10024_v32, %v10022_v30  ;;  %v9597_v15 = vadd.f32 %v15258_v58, %v21400_v38  ;;  %v9542_v46 = vpop.f32.mrf.mxu1  ;;  %v21750_v5 = vpack.c.bf16 %v21730_v39, %v21714_v48  ;;  %v10026_v22 = vrot.slane %v21730_v39, 1  ;;  %v21762_v30 = vld [vmem:[#allocation4 + $0xe8] sm:$0x3] }
 0x637   : > { %24322 = vst [vmem:[#allocation62_spill] sm:$0xff] %v21739_v42  ;;  %v9699_v59 = vsel %vm928_vm3, %v9667_v20, 0.0  ;;  %9851 = vst.msk [vmem:[#allocation4 + $0x151] sm:$0xff] %vm928_vm3, %v9667_v20  ;;  %v9665_v56 = vadd.f32 %v21295_v6, %v9626_v10  ;;  %15278 = vmatmul.mubr.msk.bf16.gmra.mxu0 %vm928_vm3, %v21739_v42  ;;  %v9595_v38 = vadd.f32 %v9542_v46, %v21414_v45  ;;  %v10031_v20 = vrot.slane %v21741_v9, 1  ;;  %v24327_v10 = vld [vmem:[#allocation74_spill] sm:$0xff] }
 0x638   : > { %24323 = vst [vmem:[#allocation75_spill] sm:$0xff] %v21745_v52  ;;  %24324 = vst [vmem:[#allocation92_spill] sm:$0xff] %v21750_v5  ;;  %15281 = vmatprep.mubr.msk.bf16.mxu0 %vm928_vm3, %v21745_v52  ;;  %v9629_v23 = vadd.f32 %v9597_v15, %v24325_v16  ;;  %15316 = vmatmul.mubr.msk.bf16.gmra.mxu1 %vm928_vm3, %v21750_v5  ;;  %v15261_v47 = vpop.f32.mrf.mxu1  ;;  %v21774_v45 = vpack.c.bf16 %v21741_v9, %v21753_v34  ;;  %v21782_v16 = vld [vmem:[#allocation4 + $0x100] sm:$0x3] }
 0x639   : > { %9731 = vst [vmem:[%s21317_s24 + $0xd0] sm:$0xff] %v9699_v59  ;;  %9763 = vst [vmem:[%s21322_s3 + $0xd0] sm:$0xff] %v9699_v59  ;;  %v9697_v12 = vsel %vm928_vm3, %v9665_v56, 0.0  ;;  %v9627_v46 = vadd.f32 %v9595_v38, %v24327_v10  ;;  %v9600_v15 = vadd.f32 %v15261_v47, %v21417_v27  ;;  %v10030_v59 = vrot.slane %v21753_v34, 1  ;;  %v24328_v10 = vld [vmem:[#allocation99_spill] sm:$0xff] }
 0x63a   : > { %24326 = vst [vmem:[#allocation109_spill] sm:$0xff] %v21774_v45  ;;  %9849 = vst.msk [vmem:[#allocation4 + $0x139] sm:$0xff] %vm928_vm3, %v9665_v56  ;;  %v9668_v58 = vadd.f32 %v21295_v6, %v9629_v23  ;;  %15319 = vmatprep.mubr.msk.bf16.mxu1 %vm928_vm3, %v21774_v45  ;;  %v9555_v56 = vpop.f32.mrf.mxu1  ;;  %v10027_v38 = vsel %vm791_vm2, %v10025_v53, %v10026_v22  ;;  %v10028_v27 = vrot.slane %v21762_v30, 1  ;;  %v10033_v18 = vrot.slane %v21782_v16, 1 }
 0x63b   : > { %9729 = vst [vmem:[%s21317_s24 + $0xc0] sm:$0xff] %v9697_v12  ;;  %9761 = vst [vmem:[%s21322_s3 + $0xc0] sm:$0xff] %v9697_v12  ;;  %v9666_v47 = vadd.f32 %v21295_v6, %v9627_v46  ;;  %v9632_v52 = vadd.f32 %v9600_v15, %v24328_v10  ;;  %v9598_v23 = vadd.f32 %v9555_v56, %v21419_v25  ;;  %v24329_v56 = vld [vmem:[#allocation93_spill] sm:$0xff] }
 0x63c   : > { %v9700_v42 = vsel %vm928_vm3, %v9668_v58, 0.0  ;;  %9852 = vst.msk [vmem:[#allocation4 + $0x159] sm:$0xff] %vm928_vm3, %v9668_v58  ;;  %v10029_v32 = vsel %vm791_vm2, %v10026_v22, %v10028_v27  ;;  %v10032_v53 = vsel %vm791_vm2, %v10030_v59, %v10031_v20  ;;  %v15262_v45 = vpop.f32.mrf.mxu1  ;;  %v21801_v46 = vld [vmem:[#allocation4 + $0x110] sm:$0xff]  ;;  %v21811_v22 = vld [vmem:[#allocation4 + $0x108] sm:$0xff] }
 0x63d   : > { %9732 = vst [vmem:[%s21317_s24 + $0xd8] sm:$0xff] %v9700_v42  ;;  %9764 = vst [vmem:[%s21322_s3 + $0xd8] sm:$0xff] %v9700_v42  ;;  %v9698_v15 = vsel %vm928_vm3, %v9666_v47, 0.0  ;;  %v9671_v25 = vadd.f32 %v21295_v6, %v9632_v52  ;;  %v9630_v58 = vadd.f32 %v9598_v23, %v24329_v56  ;;  %v21809_v10 = vpack.c.bf16 %v10029_v32, %v10027_v38  ;;  %v21813_v59 = vld [vmem:[#allocation4 + $0x128] sm:$0xff]  ;;  %v21824_v38 = vld [vmem:[#allocation4 + $0x120] sm:$0xff] }
 0x63e   : > { %9850 = vst.msk [vmem:[#allocation4 + $0x141] sm:$0xff] %vm928_vm3, %v9666_v47  ;;  %9730 = vst [vmem:[%s21317_s24 + $0xc8] sm:$0xff] %v9698_v15  ;;  %v10034_v42 = vsel %vm791_vm2, %v10031_v20, %v10033_v18  ;;  %v9601_v27 = vadd.f32 %v15262_v45, %v21421_v63  ;;  %v9558_v12 = vpop.f32.mrf.mxu1  ;;  %v21821_v52 = vpack.c.bf16 %v21801_v46, %v21811_v22  ;;  %v10036_v32 = vrot.slane %v21801_v46, 1  ;;  %v24333_v45 = vld [vmem:[#allocation83_spill] sm:$0xff] }
 0x63f   : > { %24330 = vst [vmem:[#allocation76_spill] sm:$0xff] %v21809_v10  ;;  %9762 = vst [vmem:[%s21322_s3 + $0xc8] sm:$0xff] %v9698_v15  ;;  %v9703_v47 = vsel %vm928_vm3, %v9671_v25, 0.0  ;;  %v9669_v23 = vadd.f32 %v21295_v6, %v9630_v58  ;;  %15282 = vmatmul.mubr.msk.bf16.gmra.mxu0 %vm928_vm3, %v21809_v10  ;;  %v21831_v18 = vpack.c.bf16 %v10034_v42, %v10032_v53  ;;  %v10035_v15 = vrot.slane %v21811_v22, 1  ;;  %v21845_v53 = vld [vmem:[#allocation4 + $0x118] sm:$0x3] }
 0x640   : > { %24331 = vst [vmem:[#allocation56_spill] sm:$0xff] %v21821_v52  ;;  %9855 = vst.msk [vmem:[#allocation4 + $0x181] sm:$0xff] %vm928_vm3, %v9671_v25  ;;  %v9599_v63 = vadd.f32 %v9558_v12, %v21432_v13  ;;  %v9633_v20 = vadd.f32 %v9601_v27, %v24333_v45  ;;  %15320 = vmatmul.mubr.msk.bf16.gmra.mxu1 %vm928_vm3, %v21821_v52  ;;  %v21843_v56 = vpack.c.bf16 %v21813_v59, %v21824_v38  ;;  %v21847_v13 = vld [vmem:[#allocation4 + $0x130] sm:$0x3]  ;;  %v24335_v58 = vld [vmem:[#allocation84_spill] sm:$0xff] }
 0x641   : > { %24332 = vst [vmem:[#allocation89_spill] sm:$0xff] %v21831_v18  ;;  %9735 = vst [vmem:[%s21317_s24 + $0xf0] sm:$0xff] %v9703_v47  ;;  %v9701_v12 = vsel %vm928_vm3, %v9669_v23, 0.0  ;;  %15285 = vmatprep.mubr.msk.bf16.mxu0 %vm928_vm3, %v21831_v18  ;;  %v10040_v27 = vrot.slane %v21824_v38, 1  ;;  %v21856_v45 = vld [vmem:[#allocation4 + $0x138] sm:$0xff]  ;;  %v10038_v18 = vrot.slane %v21845_v53, 1 }
 0x642   : > { %9767 = vst [vmem:[%s21322_s3 + $0xf0] sm:$0xff] %v9703_v47  ;;  %24334 = vst [vmem:[#allocation6_spill] sm:$0xff] %v21843_v56  ;;  %v9631_v42 = vadd.f32 %v9599_v63, %v24335_v58  ;;  %v10041_v47 = vrot.slane %v21813_v59, 1  ;;  %v9672_v25 = vadd.f32 %v21295_v6, %v9633_v20  ;;  %15323 = vmatprep.mubr.msk.bf16.mxu1 %vm928_vm3, %v21843_v56 }
 0x643   : > { %9853 = vst.msk [vmem:[#allocation4 + $0x169] sm:$0xff] %vm928_vm3, %v9669_v23  ;;  %9733 = vst [vmem:[%s21317_s24 + $0xe0] sm:$0xff] %v9701_v12  ;;  %v10037_v63 = vsel %vm791_vm2, %v10035_v15, %v10036_v32  ;;  %v21870_v20 = vld [vmem:[#allocation4 + $0x158] sm:$0xff]  ;;  %v10039_v5 = vsel %vm791_vm2, %v10036_v32, %v10038_v18  ;;  %v21893_v19 = vld [vmem:[#allocation4 + $0x160] sm:$0x3]  ;;  %v24341_v18 = vrot.slane %v21425_v31, 2 }
 0x644   : > { %9765 = vst [vmem:[%s21322_s3 + $0xe0] sm:$0xff] %v9701_v12  ;;  %v9670_v58 = vadd.f32 %v21295_v6, %v9631_v42  ;;  %v10042_v52 = vsel %vm791_vm2, %v10040_v27, %v10041_v47  ;;  %v10043_v12 = vrot.slane %v21847_v13, 1  ;;  %v9704_v10 = vsel %vm928_vm3, %v9672_v25, 0.0  ;;  %9856 = vst.msk [vmem:[#allocation4 + $0x189] sm:$0xff] %vm928_vm3, %v9672_v25  ;;  %v21879_v42 = vld [vmem:[#allocation4 + $0x150] sm:$0xff] }
 0x645   : > { %v21875_v56 = vld [vmem:[#allocation4 + $0x140] sm:$0xff]  ;;  %v10045_v6 = vrot.slane %v21856_v45, 1  ;;  %9736 = vst [vmem:[%s21317_s24 + $0xf8] sm:$0xff] %v9704_v10  ;;  %9768 = vst [vmem:[%s21322_s3 + $0xf8] sm:$0xff] %v9704_v10  ;;  %v21891_v7 = vld [vmem:[#allocation4 + $0x148] sm:$0x3]  ;;  %v21897_v15 = vpack.c.bf16 %v10039_v5, %v10037_v63  ;;  %v21904_v32 = vpack.c.bf16 %v21870_v20, %v21879_v42 }
 0x646   : > { %v9702_v27 = vsel %vm928_vm3, %v9670_v58, 0.0  ;;  %9854 = vst.msk [vmem:[#allocation4 + $0x171] sm:$0xff] %vm928_vm3, %v9670_v58  ;;  %v10044_v25 = vsel %vm791_vm2, %v10041_v47, %v10043_v12  ;;  %v21889_v23 = vpack.c.bf16 %v21875_v56, %v21856_v45  ;;  %v10046_v58 = vrot.slane %v21875_v56, 1 }
 0x647   : > { %9734 = vst [vmem:[%s21317_s24 + $0xe8] sm:$0xff] %v9702_v27  ;;  %9766 = vst [vmem:[%s21322_s3 + $0xe8] sm:$0xff] %v9702_v27  ;;  %v21899_v10 = vpack.c.bf16 %v10044_v25, %v10042_v52  ;;  %v10050_v47 = vrot.slane %v21879_v42, 1  ;;  %v10051_v12 = vrot.slane %v21870_v20, 1  ;;  %15286 = vmatmul.mubr.msk.bf16.gmra.mxu0 %vm928_vm3, %v21897_v15  ;;  %v10048_v52 = vrot.slane %v21891_v7, 1 }
 0x648   : > { %24336 = vst [vmem:[#allocation95_spill] sm:$0xff] %v21889_v23  ;;  %24337 = vst [vmem:[#allocation24_spill] sm:$0xff] %v21897_v15  ;;  %15324 = vmatmul.mubr.msk.bf16.gmra.mxu1 %vm928_vm3, %v21889_v23  ;;  %v10047_v5 = vsel %vm791_vm2, %v10045_v6, %v10046_v58  ;;  %v10053_v63 = vrot.slane %v21893_v19, 1  ;;  %v24340_v25 = vrot.slane %v21450_v11, 2 }
 0x649   : > { %24338 = vst [vmem:[#allocation128_spill] sm:$0xff] %v21899_v10  ;;  %24339 = vst [vmem:[#allocation82_spill] sm:$0xff] %v21904_v32  ;;  %15289 = vmatprep.mubr.msk.bf16.mxu0 %vm928_vm3, %v21899_v10  ;;  %15327 = vmatprep.mubr.msk.bf16.mxu1 %vm928_vm3, %v21904_v32  ;;  %v10052_v15 = vsel %vm791_vm2, %v10050_v47, %v10051_v12  ;;  %v10049_v17 = vsel %vm791_vm2, %v10046_v58, %v10048_v52  ;;  %v10552_v32 = vrot.slane %v21441_v29, 2 }
 0x64a   : > { %v21917_v27 = vld [vmem:[#allocation4 + $0x168] sm:$0xff]  ;;  %v10546_v54 = vsel %vm1356_vm4, %v24341_v18, %v24340_v25  ;;  %v10054_v31 = vsel %vm791_vm2, %v10051_v12, %v10053_v63  ;;  %v24342_v18 = vrot.slane %v21437_v41, 2  ;;  %v24343_v25 = vrot.slane %v21411_v21, 2 }
 0x64b   : > { %v10055_v23 = vrot.slane %v21917_v27, 1  ;;  %v21940_v26 = vpack.c.bf16 %v10049_v17, %v10047_v5  ;;  %v21942_v6 = vpack.c.bf16 %v10054_v31, %v10052_v15  ;;  %v24344_v47 = vrot.slane %v21450_v11, 2 }
 0x64c   : > { %v10551_v10 = vsel %vm1356_vm4, %v24343_v25, %v24342_v18  ;;  %v24345_v58 = vrot.slane %v21519_v50, 2  ;;  %v24346_v12 = vrot.slane %v21488_v24, 2  ;;  %v24347_v17 = vrot.slane %v21437_v41, 2 }
 0x64d   : > { %v10548_v0 = vsel %vm1356_vm4, %v24344_v47, %v10547_v51  ;;  %v21952_v63 = vld [vmem:[#allocation4 + $0x170] sm:$0xff]  ;;  %v21954_v21 = vld [vmem:[#allocation4 + $0x178] sm:$0x3]  ;;  %v10557_v11 = vrot.slane %v21536_v14, 2  ;;  %v24348_v51 = vrot.slane %v21508_v62, 2  ;;  %v24349_v15 = vrot.slane %v21497_v4, 2 }
 0x64e   : > { %v10556_v52 = vsel %vm1356_vm4, %v24346_v12, %v24345_v58  ;;  %v21956_v18 = vpack.c.bf16 %v10548_v0, %v10546_v54  ;;  %v10553_v29 = vsel %vm1356_vm4, %v24347_v17, %v10552_v32  ;;  %v21969_v5 = vpack.c.bf16 %v21952_v63, %v21917_v27 }
 0x64f   : > { %v10561_v24 = vsel %vm1356_vm4, %v24349_v15, %v24348_v51  ;;  %v10056_v31 = vrot.slane %v21952_v63, 1  ;;  %v10615_v54 = vrot.slane %v21952_v63, 2  ;;  %v10058_v41 = vrot.slane %v21954_v21, 1  ;;  %15290 = vmatmul.mubr.msk.bf16.gmra.mxu0 %vm928_vm3, %v21940_v26 }
 0x650   : > { %v21974_v25 = vpack.c.bf16 %v10553_v29, %v10551_v10  ;;  %v24350_v14 = vmov %v24345_v58  ;;  %v10562_v4 = vrot.slane %v21538_v55, 2  ;;  %v24351_v47 = vrot.slane %v21593_v33, 2  ;;  %15328 = vmatmul.mubr.msk.bf16.gmra.mxu1 %vm928_vm3, %v21969_v5  ;;  %15293 = vmatprep.mubr.msk.bf16.mxu0 %vm928_vm3, %v21942_v6 }
 0x651   : > { %v10558_v32 = vsel %vm1356_vm4, %v24350_v14, %v10557_v11  ;;  %v24352_v0 = vrot.slane %v21563_v28, 2  ;;  %v10057_v12 = vsel %vm791_vm2, %v10055_v23, %v10056_v31  ;;  %v10059_v17 = vsel %vm791_vm2, %v10056_v31, %v10058_v41  ;;  %15367 = vmatprep.mubr.msk.bf16.mxu1 %vm928_vm3, %v21470_v40 }
 0x652   : > { %v21987_v51 = vpack.c.bf16 %v10558_v32, %v10556_v52  ;;  %v10567_v10 = vrot.slane %v21605_v36, 2  ;;  %v21994_v50 = vpack.c.bf16 %v10059_v17, %v10057_v12  ;;  %v24353_v55 = vrot.slane %v21508_v62, 2 }
 0x653   : > { %v10566_v58 = vsel %vm1356_vm4, %v24352_v0, %v24351_v47  ;;  %v24354_v23 = vrot.slane %v21578_v57, 2  ;;  %v24355_v29 = vrot.slane %v21585_v1, 2  ;;  %v10572_v36 = vrot.slane %v21625_v37, 2 }
 0x654   : > { %v10563_v28 = vsel %vm1356_vm4, %v24353_v55, %v10562_v4  ;;  %v24356_v62 = vmov %v24351_v47  ;;  %v24357_v31 = vrot.slane %v21662_v61, 2  ;;  %v24358_v1 = vrot.slane %v21642_v49, 2 }
 0x655   : > { %v10571_v52 = vsel %vm1356_vm4, %v24355_v29, %v24354_v23  ;;  %v22009_v11 = vpack.c.bf16 %v10563_v28, %v10561_v24  ;;  %v10568_v15 = vsel %vm1356_vm4, %v24356_v62, %v10567_v10  ;;  %v10577_v37 = vrot.slane %v21695_v35, 2 }
 0x656   : > { %v10576_v41 = vsel %vm1356_vm4, %v24358_v1, %v24357_v31  ;;  %v22020_v14 = vpack.c.bf16 %v10568_v15, %v10566_v58  ;;  %v24359_v32 = vmov %v24354_v23  ;;  %v24360_v24 = vrot.slane %v21655_v44, 2 }
 0x657   : > { %v10573_v40 = vsel %vm1356_vm4, %v24359_v32, %v10572_v36  ;;  %v24361_v33 = vrot.slane %v21672_v2, 2  ;;  %v10582_v47 = vrot.slane %v21697_v43, 2  ;;  %v24362_v49 = vmov %v24357_v31  ;;  %15294 = vmatmul.mubr.msk.bf16.gmra.mxu0 %vm928_vm3, %v21994_v50 }
 0x658   : > { %v22031_v0 = vpack.c.bf16 %v10573_v40, %v10571_v52  ;;  %v10578_v35 = vsel %vm1356_vm4, %v24362_v49, %v10577_v37  ;;  %v24363_v58 = vrot.slane %v21730_v39, 2  ;;  %v24364_v57 = vrot.slane %v21714_v48, 2  ;;  %15368 = vmatmul.mubr.msk.bf16.vlgmr.msra.gmra.mxu1 %vm928_vm3, %v21455_v8 }
 0x659   : > { %v10581_v4 = vsel %vm1356_vm4, %v24361_v33, %v24360_v24  ;;  %v10587_v17 = vrot.slane %v21762_v30, 2  ;;  %v22042_v10 = vpack.c.bf16 %v10578_v35, %v10576_v41  ;;  %v24365_v2 = vmov %v24360_v24  ;;  %v22086_v33 = vld [vmem:[#allocation4 + $0x180] sm:$0xff]  ;;  %15371 = vmatprep.mubr.msk.bf16.mxu1 %vm928_vm3, %v21544_v3 }
 0x65a   : > { %v10586_v12 = vsel %vm1356_vm4, %v24364_v57, %v24363_v58  ;;  %v10583_v43 = vsel %vm1356_vm4, %v24365_v2, %v10582_v47  ;;  %v24366_v55 = vrot.slane %v21741_v9, 2  ;;  %v24367_v61 = vrot.slane %v21753_v34, 2  ;;  %v24381_v57 = vld [vmem:[#allocation77_spill] sm:$0xff] }
 0x65b   : > { %v10592_v23 = vrot.slane %v21782_v16, 2  ;;  %v22053_v29 = vpack.c.bf16 %v10583_v43, %v10581_v4  ;;  %v24368_v48 = vmov %v24363_v58  ;;  %v24369_v52 = vrot.slane %v21801_v46, 2  ;;  %v24380_v58 = vld [vmem:[#allocation55_spill] sm:$0xff] }
 0x65c   : > { %v10591_v28 = vsel %vm1356_vm4, %v24367_v61, %v24366_v55  ;;  %v10588_v30 = vsel %vm1356_vm4, %v24368_v48, %v10587_v17  ;;  %v24370_v44 = vrot.slane %v21811_v22, 2  ;;  %v10597_v62 = vrot.slane %v21845_v53, 2 }
 0x65d   : > { %v22064_v15 = vpack.c.bf16 %v10588_v30, %v10586_v12  ;;  %v24371_v34 = vmov %v24366_v55  ;;  %v24372_v31 = vrot.slane %v21813_v59, 2  ;;  %v24373_v39 = vrot.slane %v21824_v38, 2  ;;  %v22088_v38 = vld [vmem:[#allocation4 + $0x188] sm:$0xff] }
 0x65e   : > { %v10596_v36 = vsel %vm1356_vm4, %v24370_v44, %v24369_v52  ;;  %v10593_v16 = vsel %vm1356_vm4, %v24371_v34, %v10592_v23  ;;  %v10602_v41 = vrot.slane %v21847_v13, 2  ;;  %v24374_v22 = vmov %v24369_v52 }
 0x65f   : > { %v10601_v1 = vsel %vm1356_vm4, %v24373_v39, %v24372_v31  ;;  %v22075_v37 = vpack.c.bf16 %v10593_v16, %v10591_v28  ;;  %v10598_v53 = vsel %vm1356_vm4, %v24374_v22, %v10597_v62  ;;  %v24375_v32 = vrot.slane %v21875_v56, 2  ;;  %v22127_v28 = vld [vmem:[#allocation4 + $0x190] sm:$0x3] }
 0x660   : > { %v24376_v9 = vrot.slane %v21856_v45, 2  ;;  %v10607_v24 = vrot.slane %v21891_v7, 2  ;;  %v22094_v46 = vpack.c.bf16 %v10598_v53, %v10596_v36  ;;  %v24377_v13 = vmov %v24372_v31  ;;  %15372 = vmatmul.mubr.msk.bf16.gmra.mxu1 %vm928_vm3, %v21524_v60 }
 0x661   : > { %v10603_v45 = vsel %vm1356_vm4, %v24377_v13, %v10602_v41  ;;  %v24378_v4 = vrot.slane %v21870_v20, 2  ;;  %v24379_v7 = vrot.slane %v21879_v42, 2  ;;  %v10612_v49 = vrot.slane %v21893_v19, 2  ;;  %v9913_v19 = vld [vmem:[%s23022_s14 + $0x10] sm:$0xff]  ;;  %v15599_v20 = vld [vmem:[%s23022_s14 + $0x8] sm:$0xff] }
 0x662   : > { %v10606_v40 = vsel %vm1356_vm4, %v24376_v9, %v24375_v32  ;;  %v10614_v35 = vrot.slane %v21917_v27, 2  ;;  %v24382_v12 = vpack.c.bf16 %v24380_v58, %v24381_v57  ;;  %v22112_v59 = vpack.c.bf16 %v10603_v45, %v10601_v1  ;;  %v24387_v13 = vld [vmem:[#allocation60_spill] sm:$0xff]  ;;  %v24390_v58 = vld [vmem:[#allocation50_spill] sm:$0xff] }
 0x663   : > { %v10611_v47 = vsel %vm1356_vm4, %v24379_v7, %v24378_v4  ;;  %v24383_v17 = vmov %v24375_v32  ;;  %v24384_v27 = vmov %v24378_v4  ;;  %v11125_v55 = vrot.slane %v22086_v33, 1  ;;  %v24386_v32 = vld [vmem:[#allocation35_spill] sm:$0xff]  ;;  %15375 = vmatprep.mubr.msk.bf16.mxu1 %vm928_vm3, %v24387_v13  ;;  %v24391_v57 = vld [vmem:[#allocation92_spill] sm:$0xff] }
 0x664   : > { %15333 = vmatprep.mubr.msk.bf16.mxu0 %vm928_vm3, %v24382_v12  ;;  %v10608_v42 = vsel %vm1356_vm4, %v24383_v17, %v10607_v24  ;;  %v10613_v43 = vsel %vm1356_vm4, %v24384_v27, %v10612_v49  ;;  %v11126_v61 = vrot.slane %v22088_v38, 1  ;;  %v10616_v56 = vsel %vm1356_vm4, %v10614_v35, %v10615_v54  ;;  %v24388_v49 = vld [vmem:[#allocation61_spill] sm:$0xff]  ;;  %v24389_v35 = vld [vmem:[#allocation14_spill] sm:$0xff]  ;;  %v24393_v17 = vld [vmem:[#allocation56_spill] sm:$0xff] }
 0x665   : > { %v22120_v2 = vpack.c.bf16 %v10608_v42, %v10606_v40  ;;  %v22129_v23 = vpack.c.bf16 %v10613_v43, %v10611_v47  ;;  %v10617_v48 = vrot.slane %v21954_v21, 2  ;;  %v11342_v30 = vpack.c.bf16 %v9913_v19, %v15599_v20  ;;  %15334 = vmatmul.mubr.msk.bf16.vlgmr.msra.gmra.mxu0 %vm928_vm3, %v21956_v18  ;;  %v24392_v12 = vld [vmem:[#allocation109_spill] sm:$0xff]  ;;  %v24394_v42 = vld [vmem:[#allocation6_spill] sm:$0xff]  ;;  %v24399_v20 = vld [vmem:[#allocation39_spill] sm:$0xff] }
 0x666   : > { %v11551_v52 = vpack.c.bf16 %v9913_v19, %v9913_v19  ;;  %v11127_v44 = vsel %vm791_vm2, %v11125_v55, %v11126_v61  ;;  %v11128_v62 = vrot.slane %v22127_v28, 1  ;;  %15337 = vmatprep.mubr.msk.bf16.mxu0 %vm928_vm3, %v21974_v25  ;;  %15400 = vmatpush3.bf16.msra.mxu0 %v24386_v32  ;;  %v24395_v19 = vld [vmem:[#allocation95_spill] sm:$0xff]  ;;  %v24396_v27 = vld [vmem:[#allocation82_spill] sm:$0xff]  ;;  %v22202_v43 = vpack.c.bf16 %v22088_v38, %v22086_v33 }
 0x667   : > { %v10618_v36 = vsel %vm1356_vm4, %v10615_v54, %v10617_v48  ;;  %v11344_v16 = vshrl.u32 %v11342_v30, 16  ;;  %v11347_v31 = vshll.u32 %v11342_v30, 16  ;;  %v24385_v54 = vld [vmem:[#allocation5_spill] sm:$0xff]  ;;  %v9914_v55 = vld [vmem:[%s23022_s14 + $0x18] sm:$0x7]  ;;  %v24398_v48 = vmov 0.0  }
 0x668   : > { %v22143_v34 = vpack.c.bf16 %v10618_v36, %v10616_v56  ;;  %v11553_v39 = vrot.slane %v11551_v52, 1  ;;  %v11129_v21 = vsel %vm791_vm2, %v11126_v61, %v11128_v62  ;;  %v11765_v1 = vshrl.u32 %v11551_v52, 16  ;;  %15376 = vmatmul.mubr.msk.bf16.gmra.mxu1 %vm928_vm3, %v24388_v49  ;;  %v24397_v61 = vld [vmem:[#allocation36_spill] sm:$0xff]  ;;  %v24400_v30 = vld [vmem:[#allocation43_spill] sm:$0xff]  ;;  %v24403_v36 = vld [vmem:[#allocation42_spill] sm:$0xff] }
 0x669   : > { %v11768_v41 = vshll.u32 %v11551_v52, 16  ;;  %v11346_v63 = vrot.slane %v11344_v16, 3  ;;  %v11349_v22 = vrot.slane %v11347_v31, 4  ;;  %v22154_v9 = vpack.c.bf16 %v11129_v21, %v11127_v44  ;;  %15379 = vmatprep.mubr.msk.bf16.mxu1 %vm928_vm3, %v24389_v35  ;;  %v24401_v52 = vld [vmem:[#allocation54_spill] sm:$0xff]  ;;  %v24402_v44 = vld [vmem:[#allocation41_spill] sm:$0xff]  ;;  %v24405_v16 = vld [vmem:[#allocation75_spill] sm:$0xff] }
 0x66a   : > { %v11558_v53 = vand.u32 %v11553_v39, %v24385_v54  ;;  %v11767_v40 = vrot.slane %v11765_v1, 2  ;;  %v11979_v56 = vpack.c.bf16 %v9914_v55, %v9914_v55  ;;  %v24404_v62 = vld [vmem:[#allocation62_spill] sm:$0xff]  ;;  %v24406_v31 = vld [vmem:[#allocation76_spill] sm:$0xff]  ;;  %v24407_v39 = vld [vmem:[#allocation89_spill] sm:$0xff]  ;;  %v11335_v1 = vrot.slane %v22088_v38, 2 }
 0x66b   : > { %v11770_v24 = vrot.slane %v11768_v41, 3  ;;  %v11350_v45 = vor.u32 %v11349_v22, %v11346_v63  ;;  %v24408_v21 = vld [vmem:[#allocation24_spill] sm:$0xff]  ;;  %v11337_v41 = vrot.slane %v22127_v28, 2  ;;  %v11334_v22 = vrot.slane %v22086_v33, 2  ;;  %v22291_v33 = vld [vmem:[#allocation4 + $0x198] sm:$0xff]  ;;  %v22293_v28 = vld [vmem:[#allocation4 + $0x1a0] sm:$0xff] }
 0x66c   : > { %15467 = vmatprep.subr.bf16.mxu0 %v11558_v53  ;;  %v24409_v63 = vld [vmem:[#allocation128_spill] sm:$0xff]  ;;  %v11971_v32 = vrot.slane %v22291_v33, 2 }
 0x66d   : > { %v11771_v4 = vor.u32 %v11770_v24, %v11767_v40  ;;  %v11355_v7 = vand.u32 %v11350_v45, %v24385_v54  ;;  %15338 = vmatmul.mubr.msk.bf16.gmra.mxu0 %vm928_vm3, %v21987_v51  ;;  %v11338_v38 = vsel %vm1356_vm4, %v11335_v1, %v11337_v41  ;;  %v11972_v40 = vrot.slane %v22293_v28, 2  ;;  %v22301_v45 = vld [vmem:[#allocation4 + $0x1a8] sm:$0x3] }
 0x66e   : > { %15341 = vmatprep.mubr.msk.bf16.mxu0 %vm928_vm3, %v22009_v11 }
 0x66f   : > { %15433 = vmatprep.subr.bf16.mxu1 %v11355_v7  ;;  %v11776_v47 = vand.u32 %v11771_v4, %v24385_v54  ;;  %v22308_v4 = vsel %vm1356_vm4, %v11971_v32, %v11972_v40 }
 0x670   : > { %15434 = vmatpush3.bf16.msra.mxu1 %v11355_v7  ;;  %v11974_v7 = vrot.slane %v22301_v45, 2 }
 0x671   : > { %15501 = vmatprep.subr.bf16.mxu1 %v11776_v47  ;;  %15380 = vmatmul.mubr.msk.bf16.gmra.mxu1 %vm928_vm3, %v24390_v58 }
 0x672   : > { %15383 = vmatprep.mubr.msk.bf16.mxu1 %vm928_vm3, %v24391_v57  ;;  %v22312_v55 = vsel %vm1356_vm4, %v11972_v40, %v11974_v7 }
 0x675   : > { %15342 = vmatmul.mubr.msk.bf16.gmra.mxu0 %vm928_vm3, %v22020_v14 }
 0x676   : > { %15345 = vmatprep.mubr.msk.bf16.mxu0 %vm928_vm3, %v22031_v0 }
 0x679   : > { %15384 = vmatmul.mubr.msk.bf16.gmra.mxu1 %vm928_vm3, %v24392_v12 }
 0x67a   : > { %15387 = vmatprep.mubr.msk.bf16.mxu1 %vm928_vm3, %v24393_v17 }
 0x67d   : > { %15346 = vmatmul.mubr.msk.bf16.gmra.mxu0 %vm928_vm3, %v22042_v10 }
 0x67e   : > { %15349 = vmatprep.mubr.msk.bf16.mxu0 %vm928_vm3, %v22053_v29 }
 0x681   : > { %15388 = vmatmul.mubr.msk.bf16.gmra.mxu1 %vm928_vm3, %v24394_v42 }
 0x682   : > { %15391 = vmatprep.mubr.msk.bf16.mxu1 %vm928_vm3, %v24395_v19 }
 0x685   : > { %15350 = vmatmul.mubr.msk.bf16.gmra.mxu0 %vm928_vm3, %v22064_v15 }
 0x686   : > { %15353 = vmatprep.mubr.msk.bf16.mxu0 %vm928_vm3, %v22075_v37 }
 0x689   : > { %15392 = vmatmul.mubr.msk.bf16.gmra.mxu1 %vm928_vm3, %v24396_v27 }
 0x68a   : > { %15395 = vmatprep.mubr.msk.bf16.mxu1 %vm928_vm3, %v21969_v5 }
 0x68d   : > { %15354 = vmatmul.mubr.msk.bf16.gmra.mxu0 %vm928_vm3, %v22094_v46 }
 0x68e   : > { %15357 = vmatprep.mubr.msk.bf16.mxu0 %vm928_vm3, %v22112_v59 }
 0x691   : > { %15396 = vmatmul.mubr.msk.bf16.gmra.mxu1 %vm928_vm3, %v22202_v43 }
 0x692   : > { %15435 = vmatprep.mubr.msk.bf16.mxu1 %vm928_vm3, %v21956_v18  ;;  %v22225_v18 = vand.u32 %v11979_v56, %v24385_v54  ;;  %v11336_v54 = vsel %vm1356_vm4, %v11334_v22, %v11335_v1 }
 0x695   : > { %15358 = vmatmul.mubr.msk.bf16.gmra.mxu0 %vm928_vm3, %v22120_v2 }
 0x696   : > { %15361 = vmatprep.mubr.msk.bf16.mxu0 %vm928_vm3, %v22129_v23 }
 0x699   : > { %15436 = vmatmul.mubr.msk.bf16.vlgmr.msra.gmra.mxu1 %vm928_vm3, %v21974_v25 }
 0x69a   : > { %15439 = vmatprep.mubr.msk.bf16.mxu1 %vm928_vm3, %v21987_v51  ;;  %15502 = vmatpush3.bf16.msra.mxu1 %v11776_v47 }
 0x69b   : > { %15569 = vmatprep.subr.mxu1 %v24398_v48 }
 0x69d   : > { %15362 = vmatmul.mubr.msk.bf16.gmra.mxu0 %vm928_vm3, %v22143_v34 }
 0x69e   : > { %15401 = vmatprep.mubr.msk.bf16.mxu0 %vm928_vm3, %v24397_v61 }
 0x6a1   : > { %15440 = vmatmul.mubr.msk.bf16.gmra.mxu1 %vm928_vm3, %v22009_v11 }
 0x6a2   : > { %15443 = vmatprep.mubr.msk.bf16.mxu1 %vm928_vm3, %v22020_v14 }
 0x6a5   : > { %15402 = vmatmul.mubr.msk.bf16.vlgmr.msra.gmra.mxu0 %vm928_vm3, %v24399_v20 }
 0x6a6   : > { %15405 = vmatprep.mubr.msk.bf16.mxu0 %vm928_vm3, %v24400_v30  ;;  %15468 = vmatpush3.bf16.msra.mxu0 %v11558_v53  ;;  %v22281_v53 = vpack.c.bf16 %v11338_v38, %v11336_v54 }
 0x6a7   : > { %15535 = vmatprep.subr.bf16.mxu0 %v22225_v18 }
 0x6a9   : > { %15444 = vmatmul.mubr.msk.bf16.gmra.mxu1 %vm928_vm3, %v22031_v0 }
 0x6aa   : > { %15447 = vmatprep.mubr.msk.bf16.mxu1 %vm928_vm3, %v22042_v10 }
 0x6ad   : > { %15406 = vmatmul.mubr.msk.bf16.gmra.mxu0 %vm928_vm3, %v24401_v52 }
 0x6ae   : > { %15409 = vmatprep.mubr.msk.bf16.mxu0 %vm928_vm3, %v24402_v44 }
 0x6b1   : > { %15448 = vmatmul.mubr.msk.bf16.gmra.mxu1 %vm928_vm3, %v22053_v29 }
 0x6b2   : > { %15451 = vmatprep.mubr.msk.bf16.mxu1 %vm928_vm3, %v22064_v15 }
 0x6b5   : > { %15410 = vmatmul.mubr.msk.bf16.gmra.mxu0 %vm928_vm3, %v24403_v36 }
 0x6b6   : > { %15413 = vmatprep.mubr.msk.bf16.mxu0 %vm928_vm3, %v24404_v62 }
 0x6b9   : > { %15452 = vmatmul.mubr.msk.bf16.gmra.mxu1 %vm928_vm3, %v22075_v37 }
 0x6ba   : > { %15455 = vmatprep.mubr.msk.bf16.mxu1 %vm928_vm3, %v22094_v46 }
 0x6bd   : > { %15414 = vmatmul.mubr.msk.bf16.gmra.mxu0 %vm928_vm3, %v24405_v16 }
 0x6be   : > { %15417 = vmatprep.mubr.msk.bf16.mxu0 %vm928_vm3, %v24406_v31 }
 0x6c1   : > { %15456 = vmatmul.mubr.msk.bf16.gmra.mxu1 %vm928_vm3, %v22112_v59 }
 0x6c2   : > { %15459 = vmatprep.mubr.msk.bf16.mxu1 %vm928_vm3, %v22120_v2 }
 0x6c5   : > { %15418 = vmatmul.mubr.msk.bf16.gmra.mxu0 %vm928_vm3, %v24407_v39 }
 0x6c6   : > { %15421 = vmatprep.mubr.msk.bf16.mxu0 %vm928_vm3, %v24408_v21 }
 0x6c9   : > { %15460 = vmatmul.mubr.msk.bf16.gmra.mxu1 %vm928_vm3, %v22129_v23 }
 0x6ca   : > { %15463 = vmatprep.mubr.msk.bf16.mxu1 %vm928_vm3, %v22143_v34 }
 0x6cd   : > { %15422 = vmatmul.mubr.msk.bf16.gmra.mxu0 %vm928_vm3, %v24409_v63 }
 0x6ce   : > { %15425 = vmatprep.mubr.msk.bf16.mxu0 %vm928_vm3, %v21940_v26 }
 0x6d1   : > { %15464 = vmatmul.mubr.msk.bf16.gmra.mxu1 %vm928_vm3, %v22281_v53 }
 0x6d2   : > { %15503 = vmatprep.mubr.msk.bf16.mxu1 %vm928_vm3, %v24399_v20 }
 0x6d5   : > { %15426 = vmatmul.mubr.msk.bf16.gmra.mxu0 %vm928_vm3, %v21942_v6 }
 0x6d6   : > { %15429 = vmatprep.mubr.msk.bf16.mxu0 %vm928_vm3, %v21994_v50 }
 0x6d7   : > { %v15301_v24 = vpop.f32.mrf.mxu1 }
 0x6d9   : > { %15504 = vmatmul.mubr.msk.bf16.vlgmr.msra.gmra.mxu1 %vm928_vm3, %v24400_v30  ;;  %v10412_v47 = vpop.f32.mrf.mxu1 }
 0x6da   : > { %15507 = vmatprep.mubr.msk.bf16.mxu1 %vm928_vm3, %v24401_v52 }
 0x6db   : > { %v15267_v61 = vpop.f32.mrf.mxu0  ;;  %v15302_v56 = vpop.f32.mrf.mxu1 }
 0x6dc   : > { %v22316_v30 = vadd.f32 %v15301_v24, %v15267_v61 }
 0x6dd   : > { %15430 = vmatmul.mubr.msk.bf16.gmra.mxu0 %vm928_vm3, %v22154_v9  ;;  %v10415_v1 = vpop.f32.mrf.mxu1 }
 0x6de   : > { %15469 = vmatprep.mubr.msk.bf16.mxu0 %vm928_vm3, %v21455_v8  ;;  %v10201_v8 = vpop.f32.mrf.mxu0 }
 0x6df   : > { %v22318_v41 = vadd.f32 %v10412_v47, %v10201_v8  ;;  %v15305_v22 = vpop.f32.mrf.mxu1 }
 0x6e0   : > { %v15268_v52 = vpop.f32.mrf.mxu0 }
 0x6e1   : > { %15508 = vmatmul.mubr.msk.bf16.gmra.mxu1 %vm928_vm3, %v24402_v44  ;;  %v22327_v54 = vadd.f32 %v15302_v56, %v15268_v52  ;;  %v10428_v32 = vpop.f32.mrf.mxu1 }
 0x6e2   : > { %v10204_v38 = vpop.f32.mrf.mxu0  ;;  %15511 = vmatprep.mubr.msk.bf16.mxu1 %vm928_vm3, %v24403_v36 }
 0x6e3   : > { %v22331_v40 = vadd.f32 %v10415_v1, %v10204_v38 }
 0x6e5   : > { %15470 = vmatmul.mubr.msk.bf16.vlgmr.msra.gmra.mxu0 %vm928_vm3, %v21544_v3  ;;  %v15306_v3 = vpop.f32.mrf.mxu1  ;;  %v15271_v24 = vpop.f32.mrf.mxu0 }
 0x6e6   : > { %15473 = vmatprep.mubr.msk.bf16.mxu0 %vm928_vm3, %v21524_v60  ;;  %15536 = vmatpush3.bf16.msra.mxu0 %v22225_v18  ;;  %v22333_v47 = vadd.f32 %v15305_v22, %v15271_v24 }
 0x6e7   : > { %v10431_v7 = vpop.f32.mrf.mxu1  ;;  %v10217_v60 = vpop.f32.mrf.mxu0 }
 0x6e8   : > { %v22341_v18 = vadd.f32 %v10428_v32, %v10217_v60 }
 0x6e9   : > { %v15309_v44 = vpop.f32.mrf.mxu1  ;;  %15512 = vmatmul.mubr.msk.bf16.gmra.mxu1 %vm928_vm3, %v24404_v62  ;;  %v15272_v36 = vpop.f32.mrf.mxu0 }
 0x6ea   : > { %15515 = vmatprep.mubr.msk.bf16.mxu1 %vm928_vm3, %v24405_v16  ;;  %v22345_v56 = vadd.f32 %v15306_v3, %v15272_v36 }
 0x6eb   : > { %v10444_v61 = vpop.f32.mrf.mxu1  ;;  %v10220_v8 = vpop.f32.mrf.mxu0 }
 0x6ed   : > { %15474 = vmatmul.mubr.msk.bf16.gmra.mxu0 %vm928_vm3, %v24387_v13  ;;  %v15310_v1 = vpop.f32.mrf.mxu1  ;;  %v22347_v13 = vadd.f32 %v10431_v7, %v10220_v8  ;;  %v15275_v52 = vpop.f32.mrf.mxu0 }
 0x6ee   : > { %15477 = vmatprep.mubr.msk.bf16.mxu0 %vm928_vm3, %v24388_v49  ;;  %v22349_v38 = vadd.f32 %v15309_v44, %v15275_v52 }
 0x6ef   : > { %v10447_v22 = vpop.f32.mrf.mxu1  ;;  %v10233_v49 = vpop.f32.mrf.mxu0 }
 0x6f0   : > { %v22357_v16 = vadd.f32 %v10444_v61, %v10233_v49 }
 0x6f1   : > { %v15313_v62 = vpop.f32.mrf.mxu1  ;;  %15516 = vmatmul.mubr.msk.bf16.gmra.mxu1 %vm928_vm3, %v24406_v31  ;;  %v15276_v32 = vpop.f32.mrf.mxu0 }
 0x6f2   : > { %15519 = vmatprep.mubr.msk.bf16.mxu1 %vm928_vm3, %v24407_v39  ;;  %v22361_v24 = vadd.f32 %v15310_v1, %v15276_v32 }
 0x6f3   : > { %v10460_v3 = vpop.f32.mrf.mxu1  ;;  %v10236_v7 = vpop.f32.mrf.mxu0 }
 0x6f5   : > { %15478 = vmatmul.mubr.msk.bf16.gmra.mxu0 %vm928_vm3, %v24389_v35  ;;  %v15314_v60 = vpop.f32.mrf.mxu1  ;;  %v22363_v35 = vadd.f32 %v10447_v22, %v10236_v7 }
 0x6f6   : > { %15481 = vmatprep.mubr.msk.bf16.mxu0 %vm928_vm3, %v24390_v58 }
 0x6f7   : > { %v10463_v44 = vpop.f32.mrf.mxu1  ;;  %v15279_v36 = vpop.f32.mrf.mxu0 }
 0x6f8   : > { %v22365_v8 = vadd.f32 %v15313_v62, %v15279_v36 }
 0x6f9   : > { %v15317_v58 = vpop.f32.mrf.mxu1  ;;  %15520 = vmatmul.mubr.msk.bf16.gmra.mxu1 %vm928_vm3, %v24408_v21  ;;  %v10249_v31 = vpop.f32.mrf.mxu0 }
 0x6fa   : > { %15523 = vmatprep.mubr.msk.bf16.mxu1 %vm928_vm3, %v24409_v63  ;;  %v22375_v39 = vadd.f32 %v10460_v3, %v10249_v31 }
 0x6fb   : > { %v22377_v61 = vpop.f32.mrf.mxu1  ;;  %v15280_v1 = vpop.f32.mrf.mxu0 }
 0x6fc   : > { %v22379_v52 = vadd.f32 %v15314_v60, %v15280_v1 }
 0x6fd   : > { %15482 = vmatmul.mubr.msk.bf16.gmra.mxu0 %vm928_vm3, %v24391_v57  ;;  %v15318_v22 = vpop.f32.mrf.mxu1  ;;  %v10252_v57 = vpop.f32.mrf.mxu0 }
 0x6fe   : > { %15485 = vmatprep.mubr.msk.bf16.mxu0 %vm928_vm3, %v24392_v12  ;;  %v22381_v49 = vadd.f32 %v10463_v44, %v10252_v57 }
 0x6ff   : > { %v10479_v62 = vpop.f32.mrf.mxu1  ;;  %v15283_v21 = vpop.f32.mrf.mxu0 }
 0x700   : > { %v22383_v32 = vadd.f32 %v15317_v58, %v15283_v21  ;;  %v11757_v58 = vrot.slane %v22293_v28, 1 }
 0x701   : > { %v15321_v12 = vpop.f32.mrf.mxu1  ;;  %15524 = vmatmul.mubr.msk.bf16.gmra.mxu1 %vm928_vm3, %v21940_v26  ;;  %v22391_v63 = vpop.f32.mrf.mxu0  ;;  %v11759_v26 = vrot.slane %v22301_v45, 1 }
 0x702   : > { %15527 = vmatprep.mubr.msk.bf16.mxu1 %vm928_vm3, %v21942_v6 }
 0x703   : > { %v10492_v3 = vpop.f32.mrf.mxu1  ;;  %v15284_v7 = vpop.f32.mrf.mxu0  ;;  %v11760_v57 = vsel %vm791_vm2, %v11757_v58, %v11759_v26 }
 0x704   : > { %v22395_v60 = vadd.f32 %v15318_v22, %v15284_v7 }
 0x705   : > { %15486 = vmatmul.mubr.msk.bf16.gmra.mxu0 %vm928_vm3, %v24393_v17  ;;  %v15322_v44 = vpop.f32.mrf.mxu1  ;;  %v10268_v36 = vpop.f32.mrf.mxu0  ;;  %v11756_v17 = vrot.slane %v22291_v33, 1 }
 0x706   : > { %15489 = vmatprep.mubr.msk.bf16.mxu0 %vm928_vm3, %v24394_v42  ;;  %v22400_v31 = vadd.f32 %v10479_v62, %v10268_v36 }
 0x707   : > { %v10495_v42 = vpop.f32.mrf.mxu1  ;;  %v15287_v1 = vpop.f32.mrf.mxu0  ;;  %v11758_v45 = vsel %vm791_vm2, %v11756_v17, %v11757_v58 }
 0x708   : > { %v22406_v22 = vadd.f32 %v15321_v12, %v15287_v1  ;;  %v11763_v20 = vpack.c.bf16 %v11760_v57, %v11758_v45 }
 0x709   : > { %v15325_v6 = vpop.f32.mrf.mxu1  ;;  %15528 = vmatmul.mubr.msk.bf16.gmra.mxu1 %vm928_vm3, %v21994_v50  ;;  %v10281_v62 = vpop.f32.mrf.mxu0 }
 0x70a   : > { %15531 = vmatprep.mubr.msk.bf16.mxu1 %vm928_vm3, %v22154_v9  ;;  %v22414_v7 = vadd.f32 %v10492_v3, %v10281_v62 }
 0x70b   : > { %v10508_v21 = vpop.f32.mrf.mxu1 }
 0x70d   : > { %15490 = vmatmul.mubr.msk.bf16.gmra.mxu0 %vm928_vm3, %v24395_v19  ;;  %v15288_v19 = vpop.f32.mrf.mxu0  ;;  %v15326_v36 = vpop.f32.mrf.mxu1 }
 0x70e   : > { %15493 = vmatprep.mubr.msk.bf16.mxu0 %vm928_vm3, %v24396_v27  ;;  %v22416_v50 = vadd.f32 %v15322_v44, %v15288_v19 }
 0x70f   : > { %v10284_v12 = vpop.f32.mrf.mxu0  ;;  %v10511_v1 = vpop.f32.mrf.mxu1 }
 0x710   : > { %v22418_v48 = vadd.f32 %v10495_v42, %v10284_v12  ;;  %v11550_v42 = vpack.c.bf16 %v22293_v28, %v22291_v33 }
 0x711   : > { %v15291_v27 = vpop.f32.mrf.mxu0  ;;  %v15329_v9 = vpop.f32.mrf.mxu1  ;;  %15532 = vmatmul.mubr.msk.bf16.gmra.mxu1 %vm928_vm3, %v11763_v20 }
 0x712   : > { %v22423_v17 = vadd.f32 %v15325_v6, %v15291_v27 }
 0x713   : > { %v10297_v3 = vpop.f32.mrf.mxu0  ;;  %v10524_v58 = vpop.f32.mrf.mxu1 }
 0x714   : > { %v22427_v44 = vadd.f32 %v10508_v21, %v10297_v3 }
 0x715   : > { %15494 = vmatmul.mubr.msk.bf16.gmra.mxu0 %vm928_vm3, %v21969_v5  ;;  %v15292_v26 = vpop.f32.mrf.mxu0  ;;  %v15330_v45 = vpop.f32.mrf.mxu1 }
 0x716   : > { %15497 = vmatprep.mubr.msk.bf16.mxu0 %vm928_vm3, %v22202_v43  ;;  %v22431_v57 = vadd.f32 %v15326_v36, %v15292_v26 }
 0x717   : > { %v10300_v5 = vpop.f32.mrf.mxu0  ;;  %v10527_v62 = vpop.f32.mrf.mxu1 }
 0x718   : > { %v22433_v19 = vadd.f32 %v10511_v1, %v10300_v5 }
 0x719   : > { %v15295_v20 = vpop.f32.mrf.mxu0  ;;  %v15369_v6 = vpop.f32.mrf.mxu1 }
 0x71a   : > { %v22436_v43 = vadd.f32 %v15329_v9, %v15295_v20 }
 0x71b   : > { %v10313_v21 = vpop.f32.mrf.mxu0  ;;  %v10963_v12 = vpop.f32.mrf.mxu1 }
 0x71c   : > { %v22440_v27 = vadd.f32 %v10524_v58, %v10313_v21 }
 0x71d   : > { %15498 = vmatmul.mubr.msk.bf16.gmra.mxu0 %vm928_vm3, %v11550_v42  ;;  %v15296_v33 = vpop.f32.mrf.mxu0  ;;  %v15370_v28 = vpop.f32.mrf.mxu1 }
 0x71e   : > { %15537 = vmatprep.mubr.msk.bf16.mxu0 %vm928_vm3, %v21974_v25  ;;  %v22442_v36 = vadd.f32 %v15330_v45, %v15296_v33 }
 0x71f   : > { %v10316_v3 = vpop.f32.mrf.mxu0  ;;  %v10966_v1 = vpop.f32.mrf.mxu1 }
 0x720   : > { %24410 = vst [vmem:[#allocation88_spill] sm:$0xff] %v22442_v36  ;;  %v22444_v26 = vadd.f32 %v10527_v62, %v10316_v3 }
 0x721   : > { %v15373_v9 = vpop.f32.mrf.mxu1 }
 0x722   : > { %24411 = vst [vmem:[#allocation78_spill] sm:$0xff] %v22444_v26 }
 0x723   : > { %v10979_v58 = vpop.f32.mrf.mxu1 }
 0x725   : > { %v15335_v5 = vpop.f32.mrf.mxu0  ;;  %15538 = vmatmul.mubr.msk.bf16.vlgmr.msra.gmra.mxu0 %vm928_vm3, %v21987_v51  ;;  %v15374_v33 = vpop.f32.mrf.mxu1 }
 0x726   : > { %v10884_v42 = vadd.f32 %v15335_v5, %v22316_v30  ;;  %15541 = vmatprep.mubr.msk.bf16.mxu0 %vm928_vm3, %v22009_v11 }
 0x727   : > { %v10755_v25 = vpop.f32.mrf.mxu0  ;;  %v10982_v51 = vpop.f32.mrf.mxu1 }
 0x728   : > { %v10882_v20 = vadd.f32 %v10755_v25, %v22318_v41  ;;  %v22452_v45 = vadd.f32 %v15369_v6, %v10884_v42 }
 0x729   : > { %v15336_v21 = vpop.f32.mrf.mxu0  ;;  %v15377_v11 = vpop.f32.mrf.mxu1 }
 0x72a   : > { %v10885_v62 = vadd.f32 %v15336_v21, %v22327_v54  ;;  %v22455_v3 = vadd.f32 %v10963_v12, %v10882_v20 }
 0x72b   : > { %v10758_v26 = vpop.f32.mrf.mxu0  ;;  %v10995_v12 = vpop.f32.mrf.mxu1 }
 0x72c   : > { %v10883_v36 = vadd.f32 %v10758_v26, %v22331_v40  ;;  %v22458_v30 = vadd.f32 %v15370_v28, %v10885_v62 }
 0x72d   : > { %v15339_v5 = vpop.f32.mrf.mxu0  ;;  %15542 = vmatmul.mubr.msk.bf16.gmra.mxu0 %vm928_vm3, %v22020_v14  ;;  %v15378_v28 = vpop.f32.mrf.mxu1 }
 0x72e   : > { %v10888_v41 = vadd.f32 %v15339_v5, %v22333_v47  ;;  %15545 = vmatprep.mubr.msk.bf16.mxu0 %vm928_vm3, %v22031_v0  ;;  %v22465_v6 = vadd.f32 %v10966_v1, %v10883_v36 }
 0x72f   : > { %v10771_v54 = vpop.f32.mrf.mxu0  ;;  %v10998_v21 = vpop.f32.mrf.mxu1 }
 0x730   : > { %v10886_v42 = vadd.f32 %v10771_v54, %v22341_v18  ;;  %v22468_v25 = vadd.f32 %v15373_v9, %v10888_v41 }
 0x731   : > { %v15340_v40 = vpop.f32.mrf.mxu0  ;;  %v15381_v36 = vpop.f32.mrf.mxu1 }
 0x732   : > { %v10889_v26 = vadd.f32 %v15340_v40, %v22345_v56  ;;  %v22471_v20 = vadd.f32 %v10979_v58, %v10886_v42 }
 0x733   : > { %v10774_v14 = vpop.f32.mrf.mxu0  ;;  %v11011_v9 = vpop.f32.mrf.mxu1 }
 0x734   : > { %v10887_v47 = vadd.f32 %v10774_v14, %v22347_v13  ;;  %v22474_v62 = vadd.f32 %v15374_v33, %v10889_v26 }
 0x735   : > { %v15343_v0 = vpop.f32.mrf.mxu0  ;;  %15546 = vmatmul.mubr.msk.bf16.gmra.mxu0 %vm928_vm3, %v22042_v10  ;;  %v15382_v33 = vpop.f32.mrf.mxu1 }
 0x736   : > { %v10892_v18 = vadd.f32 %v15343_v0, %v22349_v38  ;;  %15549 = vmatprep.mubr.msk.bf16.mxu0 %vm928_vm3, %v22053_v29  ;;  %v22481_v1 = vadd.f32 %v10982_v51, %v10887_v47 }
 0x737   : > { %v10787_v56 = vpop.f32.mrf.mxu0  ;;  %v11014_v42 = vpop.f32.mrf.mxu1 }
 0x738   : > { %v10890_v58 = vadd.f32 %v10787_v56, %v22357_v16  ;;  %v22484_v5 = vadd.f32 %v15377_v11, %v10892_v18 }
 0x739   : > { %v15344_v13 = vpop.f32.mrf.mxu0  ;;  %v15385_v51 = vpop.f32.mrf.mxu1 }
 0x73a   : > { %v10893_v41 = vadd.f32 %v15344_v13, %v22361_v24  ;;  %v22487_v54 = vadd.f32 %v10995_v12, %v10890_v58 }
 0x73b   : > { %v10790_v10 = vpop.f32.mrf.mxu0  ;;  %v11027_v12 = vpop.f32.mrf.mxu1 }
 0x73c   : > { %v10891_v38 = vadd.f32 %v10790_v10, %v22363_v35  ;;  %v22490_v40 = vadd.f32 %v15378_v28, %v10893_v41 }
 0x73d   : > { %v15347_v29 = vpop.f32.mrf.mxu0  ;;  %15550 = vmatmul.mubr.msk.bf16.gmra.mxu0 %vm928_vm3, %v22064_v15  ;;  %v15386_v28 = vpop.f32.mrf.mxu1 }
 0x73e   : > { %v10896_v16 = vadd.f32 %v15347_v29, %v22365_v8  ;;  %15553 = vmatprep.mubr.msk.bf16.mxu0 %vm928_vm3, %v22075_v37  ;;  %v22497_v11 = vadd.f32 %v10998_v21, %v10891_v38 }
 0x73f   : > { %v10803_v24 = vpop.f32.mrf.mxu0  ;;  %v11030_v18 = vpop.f32.mrf.mxu1 }
 0x740   : > { %v10894_v26 = vadd.f32 %v10803_v24, %v22375_v39  ;;  %v22500_v14 = vadd.f32 %v15381_v36, %v10896_v16  ;;  %v10477_v39 = vadd.f32 %v22377_v61, %v22391_v63 }
 0x741   : > { %v15348_v35 = vpop.f32.mrf.mxu0  ;;  %v15389_v21 = vpop.f32.mrf.mxu1 }
 0x742   : > { %v10897_v47 = vadd.f32 %v15348_v35, %v22379_v52  ;;  %v22503_v0 = vadd.f32 %v11011_v9, %v10894_v26 }
 0x743   : > { %v10806_v15 = vpop.f32.mrf.mxu0  ;;  %v11043_v58 = vpop.f32.mrf.mxu1 }
 0x744   : > { %v10895_v8 = vadd.f32 %v10806_v15, %v22381_v49  ;;  %v22506_v56 = vadd.f32 %v15382_v33, %v10897_v47 }
 0x745   : > { %v15351_v37 = vpop.f32.mrf.mxu0  ;;  %15554 = vmatmul.mubr.msk.bf16.gmra.mxu0 %vm928_vm3, %v22094_v46  ;;  %v15390_v41 = vpop.f32.mrf.mxu1 }
 0x746   : > { %v10900_v36 = vadd.f32 %v15351_v37, %v22383_v32  ;;  %15557 = vmatprep.mubr.msk.bf16.mxu0 %vm928_vm3, %v22112_v59  ;;  %v22515_v52 = vadd.f32 %v11014_v42, %v10895_v8 }
 0x747   : > { %v10819_v9 = vpop.f32.mrf.mxu0  ;;  %v11046_v61 = vpop.f32.mrf.mxu1 }
 0x748   : > { %v10898_v49 = vadd.f32 %v10819_v9, %v10477_v39  ;;  %v22517_v13 = vadd.f32 %v15385_v51, %v10900_v36 }
 0x749   : > { %v15352_v33 = vpop.f32.mrf.mxu0  ;;  %v15393_v42 = vpop.f32.mrf.mxu1 }
 0x74a   : > { %v10901_v46 = vadd.f32 %v15352_v33, %v22395_v60  ;;  %v22520_v10 = vadd.f32 %v11027_v12, %v10898_v49 }
 0x74b   : > { %v10822_v38 = vpop.f32.mrf.mxu0  ;;  %v11059_v16 = vpop.f32.mrf.mxu1 }
 0x74c   : > { %v10899_v32 = vadd.f32 %v10822_v38, %v22400_v31  ;;  %v22523_v63 = vadd.f32 %v15386_v28, %v10901_v46 }
 0x74d   : > { %v15355_v59 = vpop.f32.mrf.mxu0  ;;  %15558 = vmatmul.mubr.msk.bf16.gmra.mxu0 %vm928_vm3, %v22120_v2  ;;  %v15394_v26 = vpop.f32.mrf.mxu1 }
 0x74e   : > { %v10904_v29 = vadd.f32 %v15355_v59, %v22406_v22  ;;  %15561 = vmatprep.mubr.msk.bf16.mxu0 %vm928_vm3, %v22129_v23  ;;  %v22530_v51 = vadd.f32 %v11030_v18, %v10899_v32 }
 0x74f   : > { %v10835_v60 = vpop.f32.mrf.mxu0  ;;  %v11062_v47 = vpop.f32.mrf.mxu1 }
 0x750   : > { %v10902_v24 = vadd.f32 %v10835_v60, %v22414_v7  ;;  %v22533_v12 = vadd.f32 %v15389_v21, %v10904_v29  ;;  %v24413_v29 = vld [vmem:[#allocation88_spill] sm:$0xff] }
 0x751   : > { %v15356_v31 = vpop.f32.mrf.mxu0  ;;  %v15397_v18 = vpop.f32.mrf.mxu1 }
 0x752   : > { %v10905_v35 = vadd.f32 %v15356_v31, %v22416_v50  ;;  %v22536_v28 = vadd.f32 %v11043_v58, %v10902_v24  ;;  %v24414_v24 = vld [vmem:[#allocation78_spill] sm:$0xff] }
 0x753   : > { %v10838_v2 = vpop.f32.mrf.mxu0  ;;  %v11075_v37 = vpop.f32.mrf.mxu1 }
 0x754   : > { %v10903_v22 = vadd.f32 %v10838_v2, %v22418_v48  ;;  %v22539_v15 = vadd.f32 %v15390_v41, %v10905_v35  ;;  %v24412_v41 = vpack.c.bf16 %v22312_v55, %v22308_v4 }
 0x755   : > { %v15359_v23 = vpop.f32.mrf.mxu0  ;;  %15562 = vmatmul.mubr.msk.bf16.gmra.mxu0 %vm928_vm3, %v22143_v34  ;;  %v15398_v36 = vpop.f32.mrf.mxu1 }
 0x756   : > { %v10908_v7 = vadd.f32 %v15359_v23, %v22423_v17  ;;  %15565 = vmatprep.mubr.msk.bf16.mxu0 %vm928_vm3, %v22281_v53  ;;  %v22546_v8 = vadd.f32 %v11046_v61, %v10903_v22 }
 0x757   : > { %v10851_v50 = vpop.f32.mrf.mxu0  ;;  %v11078_v49 = vpop.f32.mrf.mxu1 }
 0x758   : > { %v10906_v21 = vadd.f32 %v10851_v50, %v22427_v44  ;;  %v22549_v39 = vadd.f32 %v15393_v42, %v10908_v7 }
 0x759   : > { %v15360_v48 = vpop.f32.mrf.mxu0  ;;  %v15437_v44 = vpop.f32.mrf.mxu1 }
 0x75a   : > { %v10909_v9 = vadd.f32 %v15360_v48, %v22431_v57  ;;  %v22552_v58 = vadd.f32 %v11059_v16, %v10906_v21 }
 0x75b   : > { %v10854_v34 = vpop.f32.mrf.mxu0  ;;  %v11391_v61 = vpop.f32.mrf.mxu1 }
 0x75c   : > { %v10907_v17 = vadd.f32 %v10854_v34, %v22433_v19  ;;  %v22555_v33 = vadd.f32 %v15394_v26, %v10909_v9 }
 0x75d   : > { %v15363_v53 = vpop.f32.mrf.mxu0  ;;  %15566 = vmatmul.mubr.msk.bf16.gmra.mxu0 %vm928_vm3, %v24412_v41  ;;  %v15438_v42 = vpop.f32.mrf.mxu1 }
 0x75e   : > { %v10912_v46 = vadd.f32 %v15363_v53, %v22436_v43  ;;  %v22562_v38 = vadd.f32 %v11062_v47, %v10907_v17 }
 0x75f   : > { %v10867_v57 = vpop.f32.mrf.mxu0  ;;  %v22570_v55 = vpop.f32.mrf.mxu1 }
 0x760   : > { %v10910_v32 = vadd.f32 %v10867_v57, %v22440_v27  ;;  %v22565_v59 = vadd.f32 %v15397_v18, %v10912_v46 }
 0x761   : > { %v15364_v19 = vpop.f32.mrf.mxu0  ;;  %v15441_v35 = vpop.f32.mrf.mxu1 }
 0x762   : > { %v10913_v60 = vadd.f32 %v15364_v19, %v24413_v29  ;;  %v22568_v16 = vadd.f32 %v11075_v37, %v10910_v32 }
 0x763   : > { %v10870_v4 = vpop.f32.mrf.mxu0  ;;  %v22578_v22 = vpop.f32.mrf.mxu1 }
 0x764   : > { %v10911_v31 = vadd.f32 %v10870_v4, %v24414_v24  ;;  %v22573_v43 = vadd.f32 %v15398_v36, %v10913_v60 }
 0x765   : > { %v15403_v26 = vpop.f32.mrf.mxu0  ;;  %v15442_v50 = vpop.f32.mrf.mxu1 }
 0x766   : > { %v11304_v2 = vadd.f32 %v15403_v26, %v22452_v45  ;;  %v22576_v27 = vadd.f32 %v11078_v49, %v10911_v31 }
 0x767   : > { %v11175_v47 = vpop.f32.mrf.mxu0  ;;  %v22586_v36 = vpop.f32.mrf.mxu1 }
 0x768   : > { %v11302_v23 = vadd.f32 %v11175_v47, %v22455_v3  ;;  %v22581_v18 = vadd.f32 %v15437_v44, %v11304_v2 }
 0x769   : > { %v15404_v7 = vpop.f32.mrf.mxu0  ;;  %v15445_v49 = vpop.f32.mrf.mxu1 }
 0x76a   : > { %v11305_v37 = vadd.f32 %v15404_v7, %v22458_v30  ;;  %v22584_v21 = vadd.f32 %v11391_v61, %v11302_v23 }
 0x76b   : > { %v11178_v48 = vpop.f32.mrf.mxu0  ;;  %v22594_v53 = vpop.f32.mrf.mxu1 }
 0x76c   : > { %v22589_v45 = vadd.f32 %v11178_v48, %v22465_v6  ;;  %v22591_v9 = vadd.f32 %v15438_v42, %v11305_v37 }
 0x76d   : > { %v15407_v34 = vpop.f32.mrf.mxu0  ;;  %v15446_v46 = vpop.f32.mrf.mxu1 }
 0x76e   : > { %v11308_v3 = vadd.f32 %v15407_v34, %v22468_v25 }
 0x76f   : > { %v11191_v17 = vpop.f32.mrf.mxu0  ;;  %v22602_v61 = vpop.f32.mrf.mxu1 }
 0x770   : > { %v22597_v41 = vadd.f32 %v11191_v17, %v22471_v20  ;;  %v22599_v30 = vadd.f32 %v15441_v35, %v11308_v3 }
 0x771   : > { %v15408_v44 = vpop.f32.mrf.mxu0  ;;  %v15449_v42 = vpop.f32.mrf.mxu1 }
 0x772   : > { %v11309_v57 = vadd.f32 %v15408_v44, %v22474_v62 }
 0x773   : > { %v11194_v6 = vpop.f32.mrf.mxu0  ;;  %v22610_v60 = vpop.f32.mrf.mxu1 }
 0x774   : > { %v22605_v32 = vadd.f32 %v11194_v6, %v22481_v1  ;;  %v22607_v19 = vadd.f32 %v15442_v50, %v11309_v57 }
 0x775   : > { %v15411_v25 = vpop.f32.mrf.mxu0  ;;  %v15450_v31 = vpop.f32.mrf.mxu1 }
 0x776   : > { %v11312_v29 = vadd.f32 %v15411_v25, %v22484_v5 }
 0x777   : > { %v11207_v20 = vpop.f32.mrf.mxu0  ;;  %v22618_v35 = vpop.f32.mrf.mxu1 }
 0x778   : > { %v22613_v4 = vadd.f32 %v11207_v20, %v22487_v54  ;;  %v22615_v24 = vadd.f32 %v15445_v49, %v11312_v29 }
 0x779   : > { %v15412_v62 = vpop.f32.mrf.mxu0  ;;  %v15453_v23 = vpop.f32.mrf.mxu1 }
 0x77a   : > { %v11313_v26 = vadd.f32 %v15412_v62, %v22490_v40 }
 0x77b   : > { %v11210_v1 = vpop.f32.mrf.mxu0  ;;  %v22626_v50 = vpop.f32.mrf.mxu1 }
 0x77c   : > { %v22621_v2 = vadd.f32 %v11210_v1, %v22497_v11  ;;  %v22623_v47 = vadd.f32 %v15446_v46, %v11313_v26 }
 0x77d   : > { %v15415_v5 = vpop.f32.mrf.mxu0  ;;  %v15454_v34 = vpop.f32.mrf.mxu1 }
 0x77e   : > { %v11316_v7 = vadd.f32 %v15415_v5, %v22500_v14 }
 0x77f   : > { %v11223_v54 = vpop.f32.mrf.mxu0  ;;  %v22634_v3 = vpop.f32.mrf.mxu1 }
 0x780   : > { %v22629_v37 = vadd.f32 %v11223_v54, %v22503_v0  ;;  %v22631_v48 = vadd.f32 %v15449_v42, %v11316_v7 }
 0x781   : > { %v15416_v40 = vpop.f32.mrf.mxu0  ;;  %v15457_v46 = vpop.f32.mrf.mxu1 }
 0x782   : > { %v11317_v49 = vadd.f32 %v15416_v40, %v22506_v56 }
 0x783   : > { %v11226_v11 = vpop.f32.mrf.mxu0  ;;  %v22642_v6 = vpop.f32.mrf.mxu1 }
 0x784   : > { %v22637_v17 = vadd.f32 %v11226_v11, %v22515_v52  ;;  %v22639_v44 = vadd.f32 %v15450_v31, %v11317_v49  ;;  %24415 = vst [vmem:[#allocation38_spill] sm:$0xff] %v22642_v6  ;;  %v12322_v52 = vld [vmem:[%s23024_s16 + $0x8] sm:$0xff] }
 0x785   : > { %v15419_v14 = vpop.f32.mrf.mxu0  ;;  %v15458_v29 = vpop.f32.mrf.mxu1  ;;  %15570 = vmatpush3.msra.mxu1 %v12322_v52 }
 0x786   : > { %v11320_v57 = vadd.f32 %v15419_v14, %v22517_v13  ;;  %v24417_v13 = vmov 0.0  }
 0x787   : > { %v11239_v0 = vpop.f32.mrf.mxu0  ;;  %v22653_v31 = vpop.f32.mrf.mxu1  ;;  %15571 = vmatprep.subr.mxu1 %v24417_v13  ;;  %15573 = vmatprep.mubr.msk.f32.mxu1 %vm15610_vm11, %v24417_v13 }
 0x788   : > { %v22645_v25 = vadd.f32 %v11239_v0, %v22520_v10  ;;  %v22647_v42 = vadd.f32 %v15453_v23, %v11320_v57  ;;  %24416 = vst [vmem:[#allocation27_spill] sm:$0xff] %v22653_v31 }
 0x789   : > { %v15420_v56 = vpop.f32.mrf.mxu0  ;;  %v15461_v5 = vpop.f32.mrf.mxu1 }
 0x78a   : > { %v11321_v20 = vadd.f32 %v15420_v56, %v22523_v63 }
 0x78b   : > { %v11242_v62 = vpop.f32.mrf.mxu0  ;;  %v22662_v54 = vpop.f32.mrf.mxu1 }
 0x78c   : > { %v22657_v26 = vadd.f32 %v11242_v62, %v22530_v51  ;;  %v22659_v10 = vadd.f32 %v15454_v34, %v11321_v20  ;;  %24418 = vst [vmem:[#allocation68_spill] sm:$0xff] %v22662_v54 }
 0x78d   : > { %v15423_v1 = vpop.f32.mrf.mxu0  ;;  %v15462_v11 = vpop.f32.mrf.mxu1 }
 0x78e   : > { %v11324_v23 = vadd.f32 %v15423_v1, %v22533_v12 }
 0x78f   : > { %v11255_v7 = vpop.f32.mrf.mxu0  ;;  %v22670_v57 = vpop.f32.mrf.mxu1 }
 0x790   : > { %v22665_v63 = vadd.f32 %v11255_v7, %v22536_v28  ;;  %v22667_v40 = vadd.f32 %v15457_v46, %v11324_v23  ;;  %24420 = vst [vmem:[#allocation134_spill] sm:$0xff] %v22670_v57 }
 0x791   : > { %v15424_v49 = vpop.f32.mrf.mxu0  ;;  %v15465_v56 = vpop.f32.mrf.mxu1 }
 0x792   : > { %24419 = vst [vmem:[#allocation52_spill] sm:$0xff] %v22665_v63  ;;  %v11325_v14 = vadd.f32 %v15424_v49, %v22539_v15 }
 0x793   : > { %v11258_v51 = vpop.f32.mrf.mxu0  ;;  %v22681_v20 = vpop.f32.mrf.mxu1 }
 0x794   : > { %v22673_v34 = vadd.f32 %v11258_v51, %v22546_v8  ;;  %v22675_v0 = vadd.f32 %v15458_v29, %v11325_v14  ;;  %24423 = vst [vmem:[#allocation133_spill] sm:$0xff] %v22681_v20 }
 0x795   : > { %v15427_v12 = vpop.f32.mrf.mxu0  ;;  %v15466_v29 = vpop.f32.mrf.mxu1 }
 0x796   : > { %24421 = vst [vmem:[#allocation53_spill] sm:$0xff] %v22673_v34  ;;  %v11328_v52 = vadd.f32 %v15427_v12, %v22549_v39 }
 0x797   : > { %v11271_v28 = vpop.f32.mrf.mxu0  ;;  %v22695_v51 = vpop.f32.mrf.mxu1 }
 0x798   : > { %v22679_v46 = vadd.f32 %v11271_v28, %v22552_v58  ;;  %v22683_v62 = vadd.f32 %v15461_v5, %v11328_v52  ;;  %24426 = vst [vmem:[#allocation47_spill] sm:$0xff] %v22695_v51 }
 0x799   : > { %v15428_v15 = vpop.f32.mrf.mxu0 }
 0x79a   : > { %24422 = vst [vmem:[#allocation33_spill] sm:$0xff] %v22679_v46  ;;  %v11329_v1 = vadd.f32 %v15428_v15, %v22555_v33 }
 0x79b   : > { %v11274_v23 = vpop.f32.mrf.mxu0 }
 0x79c   : > { %v22687_v8 = vadd.f32 %v11274_v23, %v22562_v38  ;;  %v22689_v7 = vadd.f32 %v15462_v11, %v11329_v1  ;;  %v22700_v38 = vpop.f32.mrf.mxu1 }
 0x79d   : > { %v15431_v49 = vpop.f32.mrf.mxu0 }
 0x79e   : > { %24424 = vst [vmem:[#allocation51_spill] sm:$0xff] %v22687_v8  ;;  %v11332_v39 = vadd.f32 %v15431_v49, %v22565_v59  ;;  %v22710_v1 = vpop.f32.mrf.mxu1 }
 0x79f   : > { %v11287_v14 = vpop.f32.mrf.mxu0 }
 0x7a0   : > { %v22693_v58 = vadd.f32 %v11287_v14, %v22568_v16  ;;  %v22697_v5 = vadd.f32 %v15465_v56, %v11332_v39  ;;  %v22721_v49 = vpop.f32.mrf.mxu1 }
 0x7a1   : > { %v15432_v12 = vpop.f32.mrf.mxu0 }
 0x7a2   : > { %24425 = vst [vmem:[#allocation20_spill] sm:$0xff] %v22693_v58  ;;  %v11333_v33 = vadd.f32 %v15432_v12, %v22573_v43  ;;  %v12321_v43 = vld [vmem:[%s23024_s16] sm:$0xff] }
 0x7a3   : > { %v11290_v52 = vpop.f32.mrf.mxu0  ;;  %15572 = vmatpush3.msra.mxu1 %v12321_v43 }
 0x7a4   : > { %v22703_v11 = vadd.f32 %v11290_v52, %v22576_v27  ;;  %v22705_v28 = vadd.f32 %v15466_v29, %v11333_v33 }
 0x7a5   : > { %v15471_v59 = vpop.f32.mrf.mxu0 }
 0x7a6   : > { %24427 = vst [vmem:[#allocation126_spill] sm:$0xff] %v22703_v11  ;;  %v22708_v15 = vadd.f32 %v15471_v59, %v22581_v18 }
 0x7a7   : > { %v11594_v16 = vpop.f32.mrf.mxu0 }
 0x7a8   : > { %v22713_v56 = vadd.f32 %v11594_v16, %v22584_v21  ;;  %v22728_v21 = vpop.f32.mrf.mxu1 }
 0x7a9   : > { %v15472_v23 = vpop.f32.mrf.mxu0 }
 0x7aa   : > { %v22719_v27 = vadd.f32 %v15472_v23, %v22591_v9  ;;  %v22735_v9 = vpop.f32.mrf.mxu1 }
 0x7ab   : > { %v11597_v29 = vpop.f32.mrf.mxu0 }
 0x7ad   : > { %v15475_v18 = vpop.f32.mrf.mxu0 }
 0x7ae   : > { %v22724_v39 = vadd.f32 %v15475_v18, %v22599_v30  ;;  %v22742_v30 = vpop.f32.mrf.mxu1 }
 0x7af   : > { %v22726_v14 = vpop.f32.mrf.mxu0 }
 0x7b1   : > { %v15476_v12 = vpop.f32.mrf.mxu0 }
 0x7b2   : > { %v22731_v33 = vadd.f32 %v15476_v12, %v22607_v19  ;;  %v22749_v19 = vpop.f32.mrf.mxu1 }
 0x7b3   : > { %v22733_v52 = vpop.f32.mrf.mxu0 }
 0x7b5   : > { %v15479_v59 = vpop.f32.mrf.mxu0 }
 0x7b6   : > { %v22738_v16 = vadd.f32 %v15479_v59, %v22615_v24  ;;  %v22757_v59 = vpop.f32.mrf.mxu1 }
 0x7b7   : > { %v22740_v23 = vpop.f32.mrf.mxu0 }
 0x7b9   : > { %v15480_v43 = vpop.f32.mrf.mxu0 }
 0x7ba   : > { %v22745_v18 = vadd.f32 %v15480_v43, %v22623_v47  ;;  %v22764_v43 = vpop.f32.mrf.mxu1 }
 0x7bb   : > { %v22747_v51 = vpop.f32.mrf.mxu0 }
 0x7bd   : > { %v15483_v12 = vpop.f32.mrf.mxu0 }
 0x7be   : > { %v22752_v11 = vadd.f32 %v15483_v12, %v22631_v48  ;;  %v22771_v12 = vpop.f32.mrf.mxu1 }
 0x7bf   : > { %v22755_v24 = vpop.f32.mrf.mxu0 }
 0x7c1   : > { %v15484_v20 = vpop.f32.mrf.mxu0 }
 0x7c2   : > { %v22760_v58 = vadd.f32 %v15484_v20, %v22639_v44  ;;  %v22778_v44 = vpop.f32.mrf.mxu1 }
 0x7c3   : > { %v22762_v47 = vpop.f32.mrf.mxu0 }
 0x7c5   : > { %v15487_v57 = vpop.f32.mrf.mxu0 }
 0x7c6   : > { %v22767_v8 = vadd.f32 %v15487_v57, %v22647_v42  ;;  %v22785_v42 = vpop.f32.mrf.mxu1 }
 0x7c7   : > { %v22769_v48 = vpop.f32.mrf.mxu0 }
 0x7c8   : > { %24428 = vst [vmem:[#allocation44_spill] sm:$0xff] %v22767_v8 }
 0x7c9   : > { %v15488_v13 = vpop.f32.mrf.mxu0 }
 0x7ca   : > { %v22774_v54 = vadd.f32 %v15488_v13, %v22659_v10  ;;  %v22792_v10 = vpop.f32.mrf.mxu1 }
 0x7cb   : > { %v22776_v46 = vpop.f32.mrf.mxu0 }
 0x7cc   : > { %24429 = vst [vmem:[#allocation45_spill] sm:$0xff] %v22774_v54 }
 0x7cd   : > { %v15491_v20 = vpop.f32.mrf.mxu0 }
 0x7ce   : > { %v22781_v31 = vadd.f32 %v15491_v20, %v22667_v40  ;;  %v22799_v40 = vpop.f32.mrf.mxu1 }
 0x7cf   : > { %v22783_v34 = vpop.f32.mrf.mxu0 }
 0x7d0   : > { %24430 = vst [vmem:[#allocation46_spill] sm:$0xff] %v22781_v31  ;;  %24431 = vst [vmem:[#allocation12_spill] sm:$0xff] %v22783_v34 }
 0x7d1   : > { %v15492_v57 = vpop.f32.mrf.mxu0 }
 0x7d2   : > { %v22788_v6 = vadd.f32 %v15492_v57, %v22675_v0  ;;  %v22806_v0 = vpop.f32.mrf.mxu1 }
 0x7d3   : > { %v22790_v63 = vpop.f32.mrf.mxu0 }
 0x7d4   : > { %24432 = vst [vmem:[#allocation48_spill] sm:$0xff] %v22788_v6  ;;  %24433 = vst [vmem:[#allocation10_spill] sm:$0xff] %v22790_v63 }
 0x7d5   : > { %v15495_v13 = vpop.f32.mrf.mxu0 }
 0x7d6   : > { %v22795_v54 = vadd.f32 %v15495_v13, %v22683_v62  ;;  %v22813_v62 = vpop.f32.mrf.mxu1 }
 0x7d7   : > { %v22797_v8 = vpop.f32.mrf.mxu0 }
 0x7d8   : > { %24434 = vst [vmem:[#allocation13_spill] sm:$0xff] %v22795_v54  ;;  %24435 = vst [vmem:[#allocation97_spill] sm:$0xff] %v22797_v8 }
 0x7d9   : > { %v15496_v20 = vpop.f32.mrf.mxu0 }
 0x7da   : > { %v22802_v31 = vadd.f32 %v15496_v20, %v22689_v7  ;;  %v11519_v7 = vadd.f32 %v22570_v55, %v22589_v45  ;;  %v22822_v20 = vpop.f32.mrf.mxu1  ;;  %v11942_v55 = vadd.f32 %v22721_v49, %v22719_v27  ;;  %v22837_v45 = vld [vmem:[%s23023_s15] ss:$0 sm:$0xff] }
 0x7db   : > { %v22804_v34 = vpop.f32.mrf.mxu0 }
 0x7dc   : > { %24436 = vst [vmem:[#allocation67_spill] sm:$0xff] %v22802_v31  ;;  %24437 = vst [vmem:[#allocation16_spill] sm:$0xff] %v22804_v34  ;;  %v11722_v34 = vadd.f32 %v11597_v29, %v11519_v7 }
 0x7dd   : > { %v15499_v57 = vpop.f32.mrf.mxu0 }
 0x7de   : > { %v22809_v6 = vadd.f32 %v15499_v57, %v22697_v5  ;;  %v11941_v5 = vadd.f32 %v22700_v38, %v22708_v15  ;;  %v11939_v57 = vadd.f32 %v22710_v1, %v22713_v56 }
 0x7df   : > { %v22811_v63 = vpop.f32.mrf.mxu0 }
 0x7e0   : > { %24438 = vst [vmem:[#allocation96_spill] sm:$0xff] %v22809_v6 }
 0x7e1   : > { %v15500_v13 = vpop.f32.mrf.mxu0 }
 0x7e2   : > { %v22816_v54 = vadd.f32 %v15500_v13, %v22705_v28  ;;  %v11522_v28 = vadd.f32 %v22578_v22, %v22597_v41  ;;  %v22830_v13 = vpop.f32.mrf.mxu1  ;;  %v11940_v22 = vadd.f32 %v22728_v21, %v11722_v34  ;;  %v11523_v41 = vadd.f32 %v22586_v36, %v22605_v32 }
 0x7e3   : > { %v22818_v8 = vpop.f32.mrf.mxu0  ;;  %v11945_v34 = vadd.f32 %v22735_v9, %v22724_v39  ;;  %v11526_v36 = vadd.f32 %v22594_v53, %v22613_v4 }
 0x7e4   : > { %24439 = vst [vmem:[#allocation102_spill] sm:$0xff] %v22816_v54  ;;  %24440 = vst [vmem:[#allocation26_spill] sm:$0xff] %v22818_v8  ;;  %v11725_v15 = vadd.f32 %v22726_v14, %v11522_v28  ;;  %v11726_v49 = vadd.f32 %v22733_v52, %v11523_v41 }
 0x7e5   : > { %v15539_v31 = vpop.f32.mrf.mxu0 }
 0x7e6   : > { %v12149_v54 = vadd.f32 %v15539_v31, %v11941_v5  ;;  %v22844_v31 = vpop.f32.mrf.mxu1  ;;  %v11943_v21 = vadd.f32 %v22742_v30, %v11725_v15  ;;  %v11944_v9 = vadd.f32 %v22757_v59, %v11726_v49 }
 0x7e7   : > { %v12020_v6 = vpop.f32.mrf.mxu0 }
 0x7e8   : > { %v12147_v8 = vadd.f32 %v12020_v6, %v11939_v57  ;;  %v12188_v27 = vadd.f32 %v22837_v45, %v12149_v54  ;;  %v11946_v54 = vadd.f32 %v22749_v19, %v22731_v33  ;;  %v22857_v57 = vpop.f32.mrf.mxu1  ;;  %v11527_v33 = vadd.f32 %v22602_v61, %v22621_v2 }
 0x7e9   : > { %v15540_v38 = vpop.f32.mrf.mxu0 }
 0x7ea   : > { %v12186_v1 = vadd.f32 %v22837_v45, %v12147_v8  ;;  %v12150_v56 = vadd.f32 %v15540_v38, %v11942_v55  ;;  %v12220_v52 = vmax.f32 %v12188_v27, 0.0  ;;  %v22866_v41 = vpop.f32.mrf.mxu1  ;;  %v11730_v59 = vadd.f32 %v22747_v51, %v11527_v33 }
 0x7eb   : > { %v12023_v6 = vpop.f32.mrf.mxu0  ;;  %v11950_v51 = vadd.f32 %v22778_v44, %v22745_v18  ;;  %v11531_v18 = vadd.f32 %v22618_v35, %v22637_v17 }
 0x7ec   : > { %v12148_v29 = vadd.f32 %v12023_v6, %v11940_v22  ;;  %v12218_v7 = vmax.f32 %v12186_v1, 0.0  ;;  %v12189_v14 = vadd.f32 %v22837_v45, %v12150_v56  ;;  %v11729_v1 = vadd.f32 %v22740_v23, %v11526_v36 }
 0x7ed   : > { %v15543_v5 = vpop.f32.mrf.mxu0  ;;  %v12253_v23 = vsel %vm3068_vm5, %v12220_v52, 0.0 }
 0x7ee   : > { %v12187_v8 = vadd.f32 %v22837_v45, %v12148_v29  ;;  %v12153_v55 = vadd.f32 %v15543_v5, %v11945_v34  ;;  %v12250_v56 = vsel %vm3068_vm5, %v12218_v7, 0.0  ;;  %v12221_v30 = vmax.f32 %v12189_v14, 0.0 }
 0x7ef   : > { %v12036_v32 = vpop.f32.mrf.mxu0  ;;  %v11949_v7 = vadd.f32 %v22764_v43, %v22738_v16  ;;  %v11530_v34 = vadd.f32 %v22610_v60, %v22629_v37 }
 0x7f0   : > { %v12219_v28 = vmax.f32 %v12187_v8, 0.0  ;;  %v12151_v38 = vadd.f32 %v12036_v32, %v11943_v21  ;;  %v12192_v6 = vadd.f32 %v22837_v45, %v12153_v55  ;;  %v12255_v14 = vsel %vm3068_vm5, %v12221_v30, 0.0 }
 0x7f1   : > { %v15544_v39 = vpop.f32.mrf.mxu0  ;;  %v11947_v8 = vadd.f32 %v22771_v12, %v11729_v1  ;;  %v11733_v55 = vadd.f32 %v22755_v24, %v11530_v34  ;;  %v11948_v1 = vadd.f32 %v22785_v42, %v11730_v59  ;;  %v11734_v42 = vadd.f32 %v22762_v47, %v11531_v18 }
 0x7f2   : > { %v12251_v53 = vsel %vm3068_vm5, %v12219_v28, 0.0  ;;  %v12190_v4 = vadd.f32 %v22837_v45, %v12151_v38  ;;  %v12154_v15 = vadd.f32 %v15544_v39, %v11946_v54  ;;  %v22881_v54 = vpop.f32.mrf.mxu1  ;;  %v12224_v16 = vmax.f32 %v12192_v6, 0.0 }
 0x7f3   : > { %v12252_v19 = vadd.f32 %v12251_v53, %v12250_v56  ;;  %v12039_v22 = vpop.f32.mrf.mxu0  ;;  %v11951_v6 = vadd.f32 %v22799_v40, %v11733_v55  ;;  %v11954_v47 = vadd.f32 %v22806_v0, %v22760_v58  ;;  %v11535_v58 = vadd.f32 %v22634_v3, %v22657_v26 }
 0x7f4   : > { %v12222_v27 = vmax.f32 %v12190_v4, 0.0  ;;  %v12152_v29 = vadd.f32 %v12039_v22, %v11944_v9  ;;  %v12193_v61 = vadd.f32 %v22837_v45, %v12154_v15  ;;  %v22891_v53 = vpop.f32.mrf.mxu1  ;;  %v12261_v24 = vsel %vm3068_vm5, %v12224_v16, 0.0 }
 0x7f5   : > { %v12254_v49 = vadd.f32 %v12253_v23, %v12252_v19  ;;  %v15547_v5 = vpop.f32.mrf.mxu0  ;;  %v11953_v19 = vadd.f32 %v22792_v10, %v22752_v11 }
 0x7f6   : > { %v12191_v2 = vadd.f32 %v22837_v45, %v12152_v29  ;;  %v12157_v36 = vadd.f32 %v15547_v5, %v11949_v7  ;;  %v12257_v43 = vsel %vm3068_vm5, %v12222_v27, 0.0  ;;  %v12225_v60 = vmax.f32 %v12193_v61, 0.0  ;;  %v22905_v7 = vpop.f32.mrf.mxu1 }
 0x7f7   : > { %v12256_v21 = vadd.f32 %v12255_v14, %v12254_v49  ;;  %v12052_v32 = vpop.f32.mrf.mxu0  ;;  %v11534_v27 = vadd.f32 %v22626_v50, %v22645_v25 }
 0x7f8   : > { %v12223_v52 = vmax.f32 %v12191_v2, 0.0  ;;  %v12155_v28 = vadd.f32 %v12052_v32, %v11947_v8  ;;  %v12196_v9 = vadd.f32 %v22837_v45, %v12157_v36  ;;  %v12263_v23 = vsel %vm3068_vm5, %v12225_v60, 0.0  ;;  %v22914_v32 = vpop.f32.mrf.mxu1  ;;  %v24442_v60 = vld [vmem:[#allocation52_spill] sm:$0xff] }
 0x7f9   : > { %v12258_v38 = vadd.f32 %v12257_v43, %v12256_v21  ;;  %v15548_v12 = vpop.f32.mrf.mxu0  ;;  %v11737_v61 = vadd.f32 %v22769_v48, %v11534_v27  ;;  %v11952_v8 = vadd.f32 %v22813_v62, %v11734_v42  ;;  %v11738_v62 = vadd.f32 %v22776_v46, %v11535_v58  ;;  %v24444_v46 = vld [vmem:[#allocation45_spill] sm:$0xff]  ;;  %v24445_v42 = vld [vmem:[#allocation12_spill] sm:$0xff]  ;;  %v24447_v27 = vld [vmem:[#allocation27_spill] sm:$0xff] }
 0x7fa   : > { %v12259_v37 = vsel %vm3068_vm5, %v12223_v52, 0.0  ;;  %v12194_v56 = vadd.f32 %v22837_v45, %v12155_v28  ;;  %v12158_v39 = vadd.f32 %v15548_v12, %v11950_v51  ;;  %v12228_v29 = vmax.f32 %v12196_v9, 0.0  ;;  %v24441_v28 = vld [vmem:[#allocation44_spill] sm:$0xff] }
 0x7fb   : > { %v12260_v44 = vadd.f32 %v12259_v37, %v12258_v38  ;;  %v12055_v30 = vpop.f32.mrf.mxu0  ;;  %v11957_v55 = vadd.f32 %v22822_v20, %v24441_v28  ;;  %v24443_v37 = vld [vmem:[#allocation38_spill] sm:$0xff]  ;;  %v11958_v9 = vadd.f32 %v22844_v31, %v24444_v46  ;;  %v24446_v31 = vld [vmem:[#allocation53_spill] sm:$0xff] }
 0x7fc   : > { %v12226_v4 = vmax.f32 %v12194_v56, 0.0  ;;  %v12156_v15 = vadd.f32 %v12055_v30, %v11948_v1  ;;  %v12197_v35 = vadd.f32 %v22837_v45, %v12158_v39  ;;  %v12269_v51 = vsel %vm3068_vm5, %v12228_v29, 0.0  ;;  %v22929_v30 = vpop.f32.mrf.mxu1  ;;  %v24455_v46 = vld [vmem:[#allocation134_spill] sm:$0xff] }
 0x7fd   : > { %v12262_v33 = vadd.f32 %v12261_v24, %v12260_v44  ;;  %v15551_v22 = vpop.f32.mrf.mxu0  ;;  %v11955_v1 = vadd.f32 %v22830_v13, %v11737_v61  ;;  %v11538_v56 = vadd.f32 %v24443_v37, %v24442_v60  ;;  %v11539_v29 = vadd.f32 %v24447_v27, %v24446_v31  ;;  %v24448_v61 = vld [vmem:[#allocation10_spill] sm:$0xff] }
 0x7fe   : > { %v12195_v17 = vadd.f32 %v22837_v45, %v12156_v15  ;;  %v12265_v11 = vsel %vm3068_vm5, %v12226_v4, 0.0  ;;  %v12161_v5 = vadd.f32 %v15551_v22, %v11953_v19  ;;  %v12229_v50 = vmax.f32 %v12197_v35, 0.0 }
 0x7ff   : > { %v12264_v59 = vadd.f32 %v12263_v23, %v12262_v33  ;;  %v12068_v49 = vpop.f32.mrf.mxu0  ;;  %v11741_v33 = vadd.f32 %v24445_v42, %v11538_v56  ;;  %v11956_v22 = vadd.f32 %v22857_v57, %v11738_v62  ;;  %v11742_v57 = vadd.f32 %v24448_v61, %v11539_v29  ;;  %v24452_v62 = vld [vmem:[#allocation48_spill] sm:$0xff]  ;;  %v24460_v61 = vld [vmem:[#allocation67_spill] sm:$0xff] }
 0x800   : > { %v12227_v10 = vmax.f32 %v12195_v17, 0.0  ;;  %v12159_v14 = vadd.f32 %v12068_v49, %v11951_v6  ;;  %v12200_v48 = vadd.f32 %v22837_v45, %v12161_v5  ;;  %v12271_v12 = vsel %vm3068_vm5, %v12229_v50, 0.0 }
 0x801   : > { %v12266_v2 = vadd.f32 %v12265_v11, %v12264_v59  ;;  %v15552_v40 = vpop.f32.mrf.mxu0  ;;  %v15530_v11 = vpop.f32.mrf.mxu1  ;;  %v11959_v58 = vadd.f32 %v22881_v54, %v11741_v33  ;;  %v11960_v54 = vadd.f32 %v22905_v7, %v11742_v57 }
 0x802   : > { %v12267_v25 = vsel %vm3068_vm5, %v12227_v10, 0.0  ;;  %v12198_v34 = vadd.f32 %v22837_v45, %v12159_v14  ;;  %v12162_v21 = vadd.f32 %v15552_v40, %v11954_v47  ;;  %v12232_v20 = vmax.f32 %v12200_v48, 0.0  ;;  %v24449_v40 = vld [vmem:[#allocation46_spill] sm:$0xff] }
 0x803   : > { %v12268_v0 = vadd.f32 %v12267_v25, %v12266_v2  ;;  %v12071_v36 = vpop.f32.mrf.mxu0  ;;  %v11911_v28 = vpop.f32.mrf.mxu1  ;;  %v11966_v57 = vadd.f32 %v15530_v11, %v24460_v61 }
 0x804   : > { %v12230_v16 = vmax.f32 %v12198_v34, 0.0  ;;  %v12160_v43 = vadd.f32 %v12071_v36, %v11952_v8  ;;  %v12201_v3 = vadd.f32 %v22837_v45, %v12162_v21  ;;  %v12277_v10 = vsel %vm3068_vm5, %v12232_v20, 0.0  ;;  %v24451_v36 = vld [vmem:[#allocation68_spill] sm:$0xff] }
 0x805   : > { %v12270_v52 = vadd.f32 %v12269_v51, %v12268_v0  ;;  %v15555_v38 = vpop.f32.mrf.mxu0  ;;  %v11961_v8 = vadd.f32 %v22866_v41, %v24449_v40  ;;  %v24450_v0 = vld [vmem:[#allocation33_spill] sm:$0xff]  ;;  %v15533_v37 = vpop.f32.mrf.mxu1 }
 0x806   : > { %v12199_v26 = vadd.f32 %v22837_v45, %v12160_v43  ;;  %v12165_v18 = vadd.f32 %v15555_v38, %v11957_v55  ;;  %v12273_v24 = vsel %vm3068_vm5, %v12230_v16, 0.0  ;;  %v12233_v23 = vmax.f32 %v12201_v3, 0.0  ;;  %v24453_v3 = vld [vmem:[#allocation97_spill] sm:$0xff] }
 0x807   : > { %v12272_v39 = vadd.f32 %v12271_v12, %v12270_v52  ;;  %v12084_v44 = vpop.f32.mrf.mxu0  ;;  %v11542_v51 = vadd.f32 %v24451_v36, %v24450_v0  ;;  %v11962_v52 = vadd.f32 %v22891_v53, %v24452_v62  ;;  %v24454_v53 = vld [vmem:[#allocation51_spill] sm:$0xff] }
 0x808   : > { %v12231_v4 = vmax.f32 %v12199_v26, 0.0  ;;  %v12163_v15 = vadd.f32 %v12084_v44, %v11955_v1  ;;  %v12204_v49 = vadd.f32 %v22837_v45, %v12165_v18  ;;  %v12279_v25 = vsel %vm3068_vm5, %v12233_v23, 0.0 }
 0x809   : > { %v12274_v19 = vadd.f32 %v12273_v24, %v12272_v39  ;;  %v15556_v13 = vpop.f32.mrf.mxu0  ;;  %v11745_v26 = vadd.f32 %v24453_v3, %v11542_v51 }
 0x80a   : > { %v12275_v35 = vsel %vm3068_vm5, %v12231_v4, 0.0  ;;  %v12202_v17 = vadd.f32 %v22837_v45, %v12163_v15  ;;  %v12166_v6 = vadd.f32 %v15556_v13, %v11958_v9  ;;  %v12236_v48 = vmax.f32 %v12204_v49, 0.0  ;;  %v24459_v49 = vld [vmem:[#allocation133_spill] sm:$0xff] }
 0x80b   : > { %v12276_v59 = vadd.f32 %v12275_v35, %v12274_v19  ;;  %v12087_v47 = vpop.f32.mrf.mxu0  ;;  %v11543_v9 = vadd.f32 %v24455_v46, %v24454_v53  ;;  %v24456_v19 = vld [vmem:[#allocation16_spill] sm:$0xff]  ;;  %v11963_v29 = vadd.f32 %v22929_v30, %v11745_v26 }
 0x80c   : > { %v12234_v5 = vmax.f32 %v12202_v17, 0.0  ;;  %v12164_v14 = vadd.f32 %v12087_v47, %v11956_v22  ;;  %v12205_v34 = vadd.f32 %v22837_v45, %v12166_v6  ;;  %v12285_v4 = vsel %vm3068_vm5, %v12236_v48, 0.0  ;;  %v24457_v22 = vld [vmem:[#allocation13_spill] sm:$0xff]  ;;  %v11924_v17 = vpop.f32.mrf.mxu1  ;;  %v24461_v48 = vld [vmem:[#allocation126_spill] sm:$0xff] }
 0x80d   : > { %v12278_v2 = vadd.f32 %v12277_v10, %v12276_v59  ;;  %v15559_v50 = vpop.f32.mrf.mxu0  ;;  %v11746_v7 = vadd.f32 %v24456_v19, %v11543_v9  ;;  %v11965_v23 = vadd.f32 %v22914_v32, %v24457_v22  ;;  %v24458_v59 = vld [vmem:[#allocation20_spill] sm:$0xff] }
 0x80e   : > { %v12203_v21 = vadd.f32 %v22837_v45, %v12164_v14  ;;  %v12281_v41 = vsel %vm3068_vm5, %v12234_v5, 0.0  ;;  %v12169_v38 = vadd.f32 %v15559_v50, %v11961_v8  ;;  %v12237_v56 = vmax.f32 %v12205_v34, 0.0 }
 0x80f   : > { %v12280_v16 = vadd.f32 %v12279_v25, %v12278_v2  ;;  %v12100_v43 = vpop.f32.mrf.mxu0  ;;  %v11546_v47 = vadd.f32 %v24459_v49, %v24458_v59 }
 0x810   : > { %v12235_v55 = vmax.f32 %v12203_v21, 0.0  ;;  %v12167_v12 = vadd.f32 %v12100_v43, %v11959_v58  ;;  %v12208_v15 = vadd.f32 %v22837_v45, %v12169_v38  ;;  %v12287_v6 = vsel %vm3068_vm5, %v12237_v56, 0.0  ;;  %v15534_v58 = vpop.f32.mrf.mxu1  ;;  %v24463_v38 = vld [vmem:[#allocation96_spill] sm:$0xff] }
 0x811   : > { %v12282_v1 = vadd.f32 %v12281_v41, %v12280_v16  ;;  %v15560_v60 = vpop.f32.mrf.mxu0  ;;  %v11749_v50 = vadd.f32 %v22811_v63, %v11546_v47  ;;  %v11964_v21 = vadd.f32 %v11911_v28, %v11746_v7  ;;  %v24462_v16 = vld [vmem:[#allocation47_spill] sm:$0xff]  ;;  %v11969_v28 = vadd.f32 %v15533_v37, %v24463_v38 }
 0x812   : > { %v12283_v39 = vsel %vm3068_vm5, %v12235_v55, 0.0  ;;  %v12206_v18 = vadd.f32 %v22837_v45, %v12167_v12  ;;  %v12170_v44 = vadd.f32 %v15560_v60, %v11962_v52  ;;  %v12240_v2 = vmax.f32 %v12208_v15, 0.0  ;;  %v24464_v12 = vld [vmem:[#allocation26_spill] sm:$0xff] }
 0x813   : > { %v12284_v20 = vadd.f32 %v12283_v39, %v12282_v1  ;;  %v12103_v24 = vpop.f32.mrf.mxu0  ;;  %v11547_v11 = vadd.f32 %v24462_v16, %v24461_v48  ;;  %v11967_v60 = vadd.f32 %v11924_v17, %v11749_v50  ;;  %v12398_v16 = vlaneseq }
 0x814   : > { %v12238_v42 = vmax.f32 %v12206_v18, 0.0  ;;  %v12168_v33 = vadd.f32 %v12103_v24, %v11960_v54  ;;  %v12209_v31 = vadd.f32 %v22837_v45, %v12170_v44  ;;  %v12293_v41 = vsel %vm3068_vm5, %v12240_v2, 0.0  ;;  %v11927_v54 = vpop.f32.mrf.mxu1  ;;  %v24465_v44 = vld [vmem:[#allocation102_spill] sm:$0xff] }
 0x815   : > { %v12286_v13 = vadd.f32 %v12285_v4, %v12284_v20  ;;  %v15563_v35 = vpop.f32.mrf.mxu0  ;;  %v11750_v3 = vadd.f32 %v24464_v12, %v11547_v11  ;;  %v11970_v53 = vadd.f32 %v15534_v58, %v24465_v44  ;;  %v12399_v11 = vshrl.u32 %v12398_v16, 7 }
 0x816   : > { %v12207_v27 = vadd.f32 %v22837_v45, %v12168_v33  ;;  %v12173_v5 = vadd.f32 %v15563_v35, %v11965_v23  ;;  %v12289_v32 = vsel %vm3068_vm5, %v12238_v42, 0.0  ;;  %v12241_v30 = vmax.f32 %v12209_v31, 0.0 }
 0x817   : > { %v12288_v10 = vadd.f32 %v12287_v6, %v12286_v13  ;;  %v12116_v14 = vpop.f32.mrf.mxu0  ;;  %v11968_v42 = vadd.f32 %v11927_v54, %v11750_v3 }
 0x818   : > { %v12239_v40 = vmax.f32 %v12207_v27, 0.0  ;;  %v12171_v8 = vadd.f32 %v12116_v14, %v11963_v29  ;;  %v12212_v62 = vadd.f32 %v22837_v45, %v12173_v5  ;;  %v12295_v56 = vsel %vm3068_vm5, %v12241_v30, 0.0 }
 0x819   : > { %v12290_v25 = vadd.f32 %v12289_v32, %v12288_v10  ;;  %v15564_v34 = vpop.f32.mrf.mxu0 }
 0x81a   : > { %v12291_v0 = vsel %vm3068_vm5, %v12239_v40, 0.0  ;;  %v12210_v36 = vadd.f32 %v22837_v45, %v12171_v8  ;;  %v12174_v51 = vadd.f32 %v15564_v34, %v11966_v57  ;;  %v12244_v46 = vmax.f32 %v12212_v62, 0.0 }
 0x81b   : > { %v12292_v43 = vadd.f32 %v12291_v0, %v12290_v25  ;;  %v12119_v52 = vpop.f32.mrf.mxu0 }
 0x81c   : > { %v12242_v63 = vmax.f32 %v12210_v36, 0.0  ;;  %v12172_v55 = vadd.f32 %v12119_v52, %v11964_v21  ;;  %v12213_v39 = vadd.f32 %v22837_v45, %v12174_v51  ;;  %v12301_v6 = vsel %vm3068_vm5, %v12244_v46, 0.0 }
 0x81d   : > { %v12294_v26 = vadd.f32 %v12293_v41, %v12292_v43  ;;  %v15567_v1 = vpop.f32.mrf.mxu0  ;;  %v12323_v43 = vld [vmem:[%s23025_s17] sm:$0x1]  ;;  %v12400_v52 = vsub.s32 0, %v12399_v11 }
 0x81e   : > { %v12211_v18 = vadd.f32 %v22837_v45, %v12172_v55  ;;  %v12297_v24 = vsel %vm3068_vm5, %v12242_v63, 0.0  ;;  %v12177_v4 = vadd.f32 %v15567_v1, %v11969_v28  ;;  %v12245_v7 = vmax.f32 %v12213_v39, 0.0 }
 0x81f   : > { %v12296_v9 = vadd.f32 %v12295_v56, %v12294_v26  ;;  %v12132_v20 = vpop.f32.mrf.mxu0 }
 0x820   : > { %v12243_v37 = vmax.f32 %v12211_v18, 0.0  ;;  %v12175_v15 = vadd.f32 %v12132_v20, %v11967_v60  ;;  %v12216_v31 = vadd.f32 %v22837_v45, %v12177_v4  ;;  %v12303_v49 = vsel %vm3068_vm5, %v12245_v7, 0.0 }
 0x821   : > { %v12298_v33 = vadd.f32 %v12297_v24, %v12296_v9  ;;  %v15568_v19 = vpop.f32.mrf.mxu0 }
 0x822   : > { %v12299_v13 = vsel %vm3068_vm5, %v12243_v37, 0.0  ;;  %v12214_v22 = vadd.f32 %v22837_v45, %v12175_v15  ;;  %v12178_v23 = vadd.f32 %v15568_v19, %v11970_v53  ;;  %v12248_v14 = vmax.f32 %v12216_v31, 0.0 }
 0x823   : > { %v12300_v35 = vadd.f32 %v12299_v13, %v12298_v33  ;;  %v12135_v17 = vpop.f32.mrf.mxu0 }
 0x824   : > { %v12246_v27 = vmax.f32 %v12214_v22, 0.0  ;;  %v12176_v29 = vadd.f32 %v12135_v17, %v11968_v42  ;;  %v12217_v47 = vadd.f32 %v22837_v45, %v12178_v23  ;;  %v12309_v50 = vsel %vm3068_vm5, %v12248_v14, 0.0 }
 0x825   : > { %v12302_v59 = vadd.f32 %v12301_v6, %v12300_v35 }
 0x826   : > { %v12215_v10 = vadd.f32 %v22837_v45, %v12176_v29  ;;  %v12305_v61 = vsel %vm3068_vm5, %v12246_v27, 0.0  ;;  %v12249_v32 = vmax.f32 %v12217_v47, 0.0 }
 0x827   : > { %v12304_v5 = vadd.f32 %v12303_v49, %v12302_v59 }
 0x828   : > { %v12247_v57 = vmax.f32 %v12215_v10, 0.0  ;;  %v12311_v34 = vsel %vm3068_vm5, %v12249_v32, 0.0 }
 0x829   : > { %v12306_v2 = vadd.f32 %v12305_v61, %v12304_v5 }
 0x82a   : > { %v12307_v40 = vsel %vm3068_vm5, %v12247_v57, 0.0 }
 0x82b   : > { %v12308_v8 = vadd.f32 %v12307_v40, %v12306_v2 }
 0x82d   : > { %v12310_v25 = vadd.f32 %v12309_v50, %v12308_v8 }
 0x82f   : > { %v12312_v21 = vadd.f32 %v12311_v34, %v12310_v25 }
 0x831   : > { %v12313_v58 = vrot.slane %v12312_v21, 4 }
 0x833   : > { %v12314_v30 = vadd.f32 %v12313_v58, %v12312_v21 }
 0x835   : > { %v12315_v45 = vrot.slane %v12314_v30, 2 }
 0x837   : > { %v12316_v0 = vadd.f32 %v12315_v45, %v12314_v30 }
 0x839   : > { %v12317_v36 = vrot.slane %v12316_v0, 1 }
 0x83b   : > { %v12318_v51 = vadd.f32 %v12317_v36, %v12316_v0 }
 0x83d   : > { %v12320_v48 = vmul.f32 0.00390625, %v12318_v51 }
 0x83f   : > { %15574 = vmatmul.mubr.msk.f32.vlgmr.msra.gmra.mxu1 %vm3068_vm5, %v12320_v48 }
 0x8ff   : > { %v12393_v62 = vpop.f32.mrf.mxu1 }
 0x900   : > { %v12394_v41 = vadd.f32 %v12393_v62, %v12323_v43 }
 0x901   : > { %v15575_v63 = vpop.f32.mrf.mxu1 }
 0x902   : > { %v12397_v55 = vsel %vm3158_vm8, %v12394_v41, 0.0 }
 0x903   : > { %v12401_v38 = vrot.slane %v12397_v55, %v12400_v52 }
 0x905   : > { %12402 = vst [vmem:[%s666_s9] sm:$0xff] %v12401_v38 }
 0x906 PF: > { %s31_s27 = sadd.s32 1, %s15606_s27  }
 0x907   : > { %p28_p4 = scmp.ge.s32.totalorder %s31_s27, 4  }
 0x909   :  { %30 = sbr.rel (!%p28_p4) target bundleno = 6 (0x6), region = 152 }

</bundles_post_ra>
